<compile_context>
chip_gen: v6e
topology: v6e:2x2x1
jax: 0.10.0
libtpu: 0.0.40
codegen_flags: <defaults>
</compile_context>

<pallas_src>
import functools

import jax
import jax.numpy as jnp
import numpy as np
from jax.experimental import pallas as pl
from jax.experimental.pallas import tpu as pltpu

LANE = 128
H3_CHUNK = 512  # contraction chunk for the fused layer-3/4 loop


def _round_up(n, m):
    return ((n + m - 1) // m) * m


def _cdiv(a, b):
    return (a + b - 1) // b


def encoder_kernel(x_ref,
                   w1_ref, b1_ref,
                   w2_ref, b2_ref,
                   w3_ref, b3_ref,
                   w4_ref, b4_ref,
                   o_ref):
    # Layer 1: Linear + ReLU (bf16 MXU operands, f32 accumulation)
    h1 = jnp.dot(x_ref[...], w1_ref[...], preferred_element_type=jnp.float32)
    h1 = jnp.maximum(h1 + b1_ref[...], 0.0).astype(jnp.bfloat16)

    # Layer 2: Linear + ReLU
    h2 = jnp.dot(h1, w2_ref[...], preferred_element_type=jnp.float32)
    h2 = jnp.maximum(h2 + b2_ref[...], 0.0).astype(jnp.bfloat16)

    # Layers 3 + 4 fused: chunk over the (padded) 2048-wide hidden dim so
    # only a (tile_b, H3_CHUNK) slice of h3 is ever live, accumulating the
    # layer-4 result in f32.
    h3_dim = w3_ref.shape[1]
    chunk = H3_CHUNK if (h3_dim % H3_CHUNK == 0) else h3_dim
    n_chunks = h3_dim // chunk

    acc = jnp.zeros((x_ref.shape[0], w4_ref.shape[1]), jnp.float32)
    for c in range(n_chunks):  # static, small trip count (4)
        lo, hi = c * chunk, (c + 1) * chunk
        h3c = jnp.dot(h2, w3_ref[:, lo:hi], preferred_element_type=jnp.float32)
        h3c = jnp.maximum(h3c + b3_ref[:, lo:hi], 0.0).astype(jnp.bfloat16)
        acc = acc + jnp.dot(h3c, w4_ref[lo:hi, :],
                            preferred_element_type=jnp.float32)

    o_ref[...] = (acc + b4_ref[...]).astype(o_ref.dtype)


def prepare_params(params):
    """Zero-pad every Linear to lane-aligned (multiple-of-128) dims and cast
    weights to bf16 (biases stay f32).  Exact w.r.t. the unpadded model:
    zero rows/cols and zero bias padding contribute nothing, ReLU(0) == 0."""
    prepared = []
    for w_t, b in params:
        din, dout = w_t.shape
        din_p, dout_p = _round_up(din, LANE), _round_up(dout, LANE)
        w_p = jnp.pad(w_t, ((0, din_p - din), (0, dout_p - dout))).astype(jnp.bfloat16)
        b_p = jnp.pad(b, ((0, 0), (0, dout_p - dout))).astype(jnp.float32)
        prepared.append((w_p, b_p))
    return prepared


@functools.partial(
    jax.jit,
    static_argnames=("feature_dim", "max_tile_b", "single_buffer_weights"))
def _encoder_forward_impl(x, prepared, feature_dim, max_tile_b,
                          single_buffer_weights):
    (w1, b1), (w2, b2), (w3, b3), (w4, b4) = prepared
    B, input_dim = x.shape
    in_pad = w1.shape[0]
    h1, h2, h3, out_pad = w1.shape[1], w2.shape[1], w3.shape[1], w4.shape[1]

    # --- batch tiling ---------------------------------------------------
    # Prefer >= 2 (and an even number of) grid steps so v7x's two
    # TensorCores both get work; size the tile from B to minimize padding.
    num_tiles = _cdiv(B, max_tile_b)
    if num_tiles == 1 and B >= 16:
        num_tiles = 2
    elif num_tiles > 2 and num_tiles % 2 == 1:
        num_tiles += 1
    tile_b = _round_up(_cdiv(B, num_tiles), 8)
    b_pad = _round_up(B, tile_b)
    grid = (b_pad // tile_b,)

    # Pad batch rows / input features with zeros; bf16 for the MXU.
    x_p = jnp.pad(x, ((0, b_pad - B), (0, in_pad - input_dim))).astype(jnp.bfloat16)

    # --- block specs ----------------------------------------------------
    resident = lambda i: (0, 0)  # same block every step -> stays in VMEM

    def resident_spec(shape):
        if single_buffer_weights:
            # Grid-invariant operand: a single VMEM buffer is enough.
            return pl.BlockSpec(shape, resident, pipeline_mode=pl.Buffered(1))
        return pl.BlockSpec(shape, resident)

    in_specs = [
        pl.BlockSpec((tile_b, in_pad), lambda i: (i, 0)),
        resident_spec((in_pad, h1)), resident_spec((1, h1)),
        resident_spec((h1, h2)), resident_spec((1, h2)),
        resident_spec((h2, h3)), resident_spec((1, h3)),
        resident_spec((h3, out_pad)), resident_spec((1, out_pad)),
    ]
    out_spec = pl.BlockSpec((tile_b, out_pad), lambda i: (i, 0))

    flops = 2 * b_pad * (in_pad * h1 + h1 * h2 + h2 * h3 + h3 * out_pad)
    bytes_accessed = (
        x_p.size * 2
        + (w1.size + w2.size + w3.size + w4.size) * 2
        + (b1.size + b2.size + b3.size + b4.size) * 4
        + b_pad * out_pad * 4)

    out = pl.pallas_call(
        encoder_kernel,
        out_shape=jax.ShapeDtypeStruct((b_pad, out_pad), jnp.float32),
        grid=grid,
        in_specs=in_specs,
        out_specs=out_spec,
        compiler_params=pltpu.CompilerParams(
            dimension_semantics=("parallel",),
            vmem_limit_bytes=32 * 1024 * 1024),
        cost_estimate=pl.CostEstimate(
            flops=flops, transcendentals=0, bytes_accessed=bytes_accessed),
    )(x_p, w1, b1, w2, b2, w3, b3, w4, b4)

    return out[:B, :feature_dim]


def encoder_forward(x, prepared, feature_dim, max_tile_b=512):
    """x: (B, input_dim) f32.  prepared: output of prepare_params()."""
    try:
        return _encoder_forward_impl(x, prepared, feature_dim, max_tile_b,
                                     single_buffer_weights=True)
    except Exception:
        # Fallback if this JAX build rejects pipeline_mode=pl.Buffered(1);
        # identical numerics, just default double-buffering of the weights.
        return _encoder_forward_impl(x, prepared, feature_dim, max_tile_b,
                                     single_buffer_weights=False)


def init_linear(key, in_dim, out_dim):
    """Deterministic init matching torch.nn.Linear's default (uniform +-1/sqrt(in)).
    Weight already transposed to (in, out); bias as (1, out)."""
    k_w, k_b = jax.random.split(key)
    bound = 1.0 / np.sqrt(in_dim)
    w_t = jax.random.uniform(k_w, (in_dim, out_dim), jnp.float32, -bound, bound)
    b = jax.random.uniform(k_b, (1, out_dim), jnp.float32, -bound, bound)
    return w_t, b


def make_params(key, input_dim, feature_dim):
    dims = [(input_dim, 500), (500, 500), (500, 2000), (2000, feature_dim)]
    keys = jax.random.split(key, len(dims))
    return [init_linear(k, din, dout) for k, (din, dout) in zip(keys, dims)]


def encoder_ref(x, params):
    """Pure-JAX reference with the same numerics as the kernel:
    bf16 matmul operands, f32 accumulation, f32 bias-add / ReLU."""
    h = x
    for i, (w_t, b) in enumerate(params):
        h = jnp.dot(h.astype(jnp.bfloat16), w_t.astype(jnp.bfloat16),
                    preferred_element_type=jnp.float32) + b
        if i < len(params) - 1:
            h = jnp.maximum(h, 0.0)
    return h


if __name__ == "__main__":
    key = jax.random.PRNGKey(0)
    k_x, k_x2, k_p = jax.random.split(key, 3)

    input_dim = 32
    feature_dim = 32
    params = make_params(k_p, input_dim, feature_dim)
    prepared = prepare_params(params)

    # Small batch (single grid step).
    batch = 8
    x = jax.random.normal(k_x, (batch, input_dim), jnp.float32)
    out = jax.block_until_ready(encoder_forward(x, prepared, feature_dim))
    assert out.shape == (batch, feature_dim)
    ref = encoder_ref(x, params)
    np.testing.assert_allclose(np.asarray(out), np.asarray(ref),
                               rtol=2e-3, atol=2e-3)

    # Larger, non-multiple batch: exercises the multi-step grid and
    # padded-row slicing.
    batch2 = 40
    x2 = jax.random.normal(k_x2, (batch2, input_dim), jnp.float32)
    out2 = jax.block_until_ready(encoder_forward(x2, prepared, feature_dim))
    assert out2.shape == (batch2, feature_dim)
    ref2 = encoder_ref(x2, params)
    np.testing.assert_allclose(np.asarray(out2), np.asarray(ref2),
                               rtol=2e-3, atol=2e-3)

    print("KERNEL_OK")
</pallas_src>

<mosaic_0001>
module attributes {stable_mosaic.version = 11 : i64} {
  func.func @encoder_kernel(%arg0: i32, %arg1: memref<8x128xbf16, #tpu.memory_space<vmem>>, %arg2: memref<128x512xbf16, #tpu.memory_space<vmem>>, %arg3: memref<1x512xf32, #tpu.memory_space<vmem>>, %arg4: memref<512x512xbf16, #tpu.memory_space<vmem>>, %arg5: memref<1x512xf32, #tpu.memory_space<vmem>>, %arg6: memref<512x2048xbf16, #tpu.memory_space<vmem>>, %arg7: memref<1x2048xf32, #tpu.memory_space<vmem>>, %arg8: memref<2048x128xbf16, #tpu.memory_space<vmem>>, %arg9: memref<1x128xf32, #tpu.memory_space<vmem>>, %arg10: memref<8x128xf32, #tpu.memory_space<vmem>>) attributes {dimension_semantics = [#tpu.dimension_semantics<parallel>], iteration_bounds = array<i64: 1>, scalar_prefetch = 0 : i64, scratch_operands = 0 : i64, tpu.core_type = #tpu.core_type<tc>, window_params = [{transform_indices = @transform_0, window_bounds = array<i64: 8, 128>}, {pipeline_mode = #tpu.pipeline_mode<synchronous>, transform_indices = @transform_1, window_bounds = array<i64: 128, 512>}, {pipeline_mode = #tpu.pipeline_mode<synchronous>, transform_indices = @transform_2, window_bounds = array<i64: 1, 512>}, {pipeline_mode = #tpu.pipeline_mode<synchronous>, transform_indices = @transform_3, window_bounds = array<i64: 512, 512>}, {pipeline_mode = #tpu.pipeline_mode<synchronous>, transform_indices = @transform_4, window_bounds = array<i64: 1, 512>}, {pipeline_mode = #tpu.pipeline_mode<synchronous>, transform_indices = @transform_5, window_bounds = array<i64: 512, 2048>}, {pipeline_mode = #tpu.pipeline_mode<synchronous>, transform_indices = @transform_6, window_bounds = array<i64: 1, 2048>}, {pipeline_mode = #tpu.pipeline_mode<synchronous>, transform_indices = @transform_7, window_bounds = array<i64: 2048, 128>}, {pipeline_mode = #tpu.pipeline_mode<synchronous>, transform_indices = @transform_8, window_bounds = array<i64: 1, 128>}, {transform_indices = @transform_9, window_bounds = array<i64: 8, 128>}]} {
    %c0 = arith.constant 0 : index
    %c0_0 = arith.constant 0 : index
    %0 = vector.load %arg1[%c0, %c0_0] : memref<8x128xbf16, #tpu.memory_space<vmem>>, vector<8x128xbf16>
    %c0_1 = arith.constant 0 : index
    %c0_2 = arith.constant 0 : index
    %1 = vector.load %arg2[%c0_1, %c0_2] : memref<128x512xbf16, #tpu.memory_space<vmem>>, vector<128x512xbf16>
    %cst = arith.constant dense<0.000000e+00> : vector<8x512xf32>
    %2 = tpu.matmul %0, %1, %cst {dimension_numbers = #tpu.dot_dimension_numbers<[1], [0], [0], [1], [0, 0, 1, 1], [], []>} : vector<8x128xbf16>, vector<128x512xbf16>, vector<8x512xf32> -> vector<8x512xf32>
    %c0_3 = arith.constant 0 : index
    %c0_4 = arith.constant 0 : index
    %3 = vector.load %arg3[%c0_3, %c0_4] : memref<1x512xf32, #tpu.memory_space<vmem>>, vector<1x512xf32>
    %4 = vector.broadcast %3 : vector<1x512xf32> to vector<8x512xf32>
    %5 = arith.addf %2, %4 : vector<8x512xf32>
    %cst_5 = arith.constant 0.000000e+00 : f32
    %6 = vector.broadcast %cst_5 : f32 to vector<8x512xf32>
    %7 = arith.maximumf %5, %6 : vector<8x512xf32>
    %8 = arith.truncf %7 : vector<8x512xf32> to vector<8x512xbf16>
    %c0_6 = arith.constant 0 : index
    %c0_7 = arith.constant 0 : index
    %9 = vector.load %arg4[%c0_6, %c0_7] : memref<512x512xbf16, #tpu.memory_space<vmem>>, vector<512x512xbf16>
    %cst_8 = arith.constant dense<0.000000e+00> : vector<8x512xf32>
    %10 = tpu.matmul %8, %9, %cst_8 {dimension_numbers = #tpu.dot_dimension_numbers<[1], [0], [0], [1], [0, 0, 1, 1], [], []>} : vector<8x512xbf16>, vector<512x512xbf16>, vector<8x512xf32> -> vector<8x512xf32>
    %c0_9 = arith.constant 0 : index
    %c0_10 = arith.constant 0 : index
    %11 = vector.load %arg5[%c0_9, %c0_10] : memref<1x512xf32, #tpu.memory_space<vmem>>, vector<1x512xf32>
    %12 = vector.broadcast %11 : vector<1x512xf32> to vector<8x512xf32>
    %13 = arith.addf %10, %12 : vector<8x512xf32>
    %cst_11 = arith.constant 0.000000e+00 : f32
    %14 = vector.broadcast %cst_11 : f32 to vector<8x512xf32>
    %15 = arith.maximumf %13, %14 : vector<8x512xf32>
    %16 = arith.truncf %15 : vector<8x512xf32> to vector<8x512xbf16>
    %cst_12 = arith.constant 0.000000e+00 : f32
    %17 = vector.broadcast %cst_12 : f32 to vector<8x128xf32>
    %c0_13 = arith.constant 0 : index
    %c0_14 = arith.constant 0 : index
    %18 = vector.load %arg6[%c0_13, %c0_14] : memref<512x2048xbf16, #tpu.memory_space<vmem>>, vector<512x512xbf16>
    %cst_15 = arith.constant dense<0.000000e+00> : vector<8x512xf32>
    %19 = tpu.matmul %16, %18, %cst_15 {dimension_numbers = #tpu.dot_dimension_numbers<[1], [0], [0], [1], [0, 0, 1, 1], [], []>} : vector<8x512xbf16>, vector<512x512xbf16>, vector<8x512xf32> -> vector<8x512xf32>
    %c0_16 = arith.constant 0 : index
    %c0_17 = arith.constant 0 : index
    %20 = vector.load %arg7[%c0_16, %c0_17] : memref<1x2048xf32, #tpu.memory_space<vmem>>, vector<1x512xf32>
    %21 = vector.broadcast %20 : vector<1x512xf32> to vector<8x512xf32>
    %22 = arith.addf %19, %21 : vector<8x512xf32>
    %cst_18 = arith.constant 0.000000e+00 : f32
    %23 = vector.broadcast %cst_18 : f32 to vector<8x512xf32>
    %24 = arith.maximumf %22, %23 : vector<8x512xf32>
    %25 = arith.truncf %24 : vector<8x512xf32> to vector<8x512xbf16>
    %c0_19 = arith.constant 0 : index
    %c0_20 = arith.constant 0 : index
    %26 = vector.load %arg8[%c0_19, %c0_20] : memref<2048x128xbf16, #tpu.memory_space<vmem>>, vector<512x128xbf16>
    %cst_21 = arith.constant dense<0.000000e+00> : vector<8x128xf32>
    %27 = tpu.matmul %25, %26, %cst_21 {dimension_numbers = #tpu.dot_dimension_numbers<[1], [0], [0], [1], [0, 0, 1, 1], [], []>} : vector<8x512xbf16>, vector<512x128xbf16>, vector<8x128xf32> -> vector<8x128xf32>
    %28 = arith.addf %17, %27 : vector<8x128xf32>
    %c0_22 = arith.constant 0 : index
    %c512 = arith.constant 512 : index
    %29 = vector.load %arg6[%c0_22, %c512] : memref<512x2048xbf16, #tpu.memory_space<vmem>>, vector<512x512xbf16>
    %cst_23 = arith.constant dense<0.000000e+00> : vector<8x512xf32>
    %30 = tpu.matmul %16, %29, %cst_23 {dimension_numbers = #tpu.dot_dimension_numbers<[1], [0], [0], [1], [0, 0, 1, 1], [], []>} : vector<8x512xbf16>, vector<512x512xbf16>, vector<8x512xf32> -> vector<8x512xf32>
    %c0_24 = arith.constant 0 : index
    %c512_25 = arith.constant 512 : index
    %31 = vector.load %arg7[%c0_24, %c512_25] : memref<1x2048xf32, #tpu.memory_space<vmem>>, vector<1x512xf32>
    %32 = vector.broadcast %31 : vector<1x512xf32> to vector<8x512xf32>
    %33 = arith.addf %30, %32 : vector<8x512xf32>
    %cst_26 = arith.constant 0.000000e+00 : f32
    %34 = vector.broadcast %cst_26 : f32 to vector<8x512xf32>
    %35 = arith.maximumf %33, %34 : vector<8x512xf32>
    %36 = arith.truncf %35 : vector<8x512xf32> to vector<8x512xbf16>
    %c512_27 = arith.constant 512 : index
    %c0_28 = arith.constant 0 : index
    %37 = vector.load %arg8[%c512_27, %c0_28] : memref<2048x128xbf16, #tpu.memory_space<vmem>>, vector<512x128xbf16>
    %cst_29 = arith.constant dense<0.000000e+00> : vector<8x128xf32>
    %38 = tpu.matmul %36, %37, %cst_29 {dimension_numbers = #tpu.dot_dimension_numbers<[1], [0], [0], [1], [0, 0, 1, 1], [], []>} : vector<8x512xbf16>, vector<512x128xbf16>, vector<8x128xf32> -> vector<8x128xf32>
    %39 = arith.addf %28, %38 : vector<8x128xf32>
    %c0_30 = arith.constant 0 : index
    %c1024 = arith.constant 1024 : index
    %40 = vector.load %arg6[%c0_30, %c1024] : memref<512x2048xbf16, #tpu.memory_space<vmem>>, vector<512x512xbf16>
    %cst_31 = arith.constant dense<0.000000e+00> : vector<8x512xf32>
    %41 = tpu.matmul %16, %40, %cst_31 {dimension_numbers = #tpu.dot_dimension_numbers<[1], [0], [0], [1], [0, 0, 1, 1], [], []>} : vector<8x512xbf16>, vector<512x512xbf16>, vector<8x512xf32> -> vector<8x512xf32>
    %c0_32 = arith.constant 0 : index
    %c1024_33 = arith.constant 1024 : index
    %42 = vector.load %arg7[%c0_32, %c1024_33] : memref<1x2048xf32, #tpu.memory_space<vmem>>, vector<1x512xf32>
    %43 = vector.broadcast %42 : vector<1x512xf32> to vector<8x512xf32>
    %44 = arith.addf %41, %43 : vector<8x512xf32>
    %cst_34 = arith.constant 0.000000e+00 : f32
    %45 = vector.broadcast %cst_34 : f32 to vector<8x512xf32>
    %46 = arith.maximumf %44, %45 : vector<8x512xf32>
    %47 = arith.truncf %46 : vector<8x512xf32> to vector<8x512xbf16>
    %c1024_35 = arith.constant 1024 : index
    %c0_36 = arith.constant 0 : index
    %48 = vector.load %arg8[%c1024_35, %c0_36] : memref<2048x128xbf16, #tpu.memory_space<vmem>>, vector<512x128xbf16>
    %cst_37 = arith.constant dense<0.000000e+00> : vector<8x128xf32>
    %49 = tpu.matmul %47, %48, %cst_37 {dimension_numbers = #tpu.dot_dimension_numbers<[1], [0], [0], [1], [0, 0, 1, 1], [], []>} : vector<8x512xbf16>, vector<512x128xbf16>, vector<8x128xf32> -> vector<8x128xf32>
    %50 = arith.addf %39, %49 : vector<8x128xf32>
    %c0_38 = arith.constant 0 : index
    %c1536 = arith.constant 1536 : index
    %51 = vector.load %arg6[%c0_38, %c1536] : memref<512x2048xbf16, #tpu.memory_space<vmem>>, vector<512x512xbf16>
    %cst_39 = arith.constant dense<0.000000e+00> : vector<8x512xf32>
    %52 = tpu.matmul %16, %51, %cst_39 {dimension_numbers = #tpu.dot_dimension_numbers<[1], [0], [0], [1], [0, 0, 1, 1], [], []>} : vector<8x512xbf16>, vector<512x512xbf16>, vector<8x512xf32> -> vector<8x512xf32>
    %c0_40 = arith.constant 0 : index
    %c1536_41 = arith.constant 1536 : index
    %53 = vector.load %arg7[%c0_40, %c1536_41] : memref<1x2048xf32, #tpu.memory_space<vmem>>, vector<1x512xf32>
    %54 = vector.broadcast %53 : vector<1x512xf32> to vector<8x512xf32>
    %55 = arith.addf %52, %54 : vector<8x512xf32>
    %cst_42 = arith.constant 0.000000e+00 : f32
    %56 = vector.broadcast %cst_42 : f32 to vector<8x512xf32>
    %57 = arith.maximumf %55, %56 : vector<8x512xf32>
    %58 = arith.truncf %57 : vector<8x512xf32> to vector<8x512xbf16>
    %c1536_43 = arith.constant 1536 : index
    %c0_44 = arith.constant 0 : index
    %59 = vector.load %arg8[%c1536_43, %c0_44] : memref<2048x128xbf16, #tpu.memory_space<vmem>>, vector<512x128xbf16>
    %cst_45 = arith.constant dense<0.000000e+00> : vector<8x128xf32>
    %60 = tpu.matmul %58, %59, %cst_45 {dimension_numbers = #tpu.dot_dimension_numbers<[1], [0], [0], [1], [0, 0, 1, 1], [], []>} : vector<8x512xbf16>, vector<512x128xbf16>, vector<8x128xf32> -> vector<8x128xf32>
    %61 = arith.addf %50, %60 : vector<8x128xf32>
    %c0_46 = arith.constant 0 : index
    %c0_47 = arith.constant 0 : index
    %62 = vector.load %arg9[%c0_46, %c0_47] : memref<1x128xf32, #tpu.memory_space<vmem>>, vector<1x128xf32>
    %63 = vector.broadcast %62 : vector<1x128xf32> to vector<8x128xf32>
    %64 = arith.addf %61, %63 : vector<8x128xf32>
    %c0_48 = arith.constant 0 : index
    %c0_49 = arith.constant 0 : index
    %65 = vector.load %arg10[%c0_48, %c0_49] : memref<8x128xf32, #tpu.memory_space<vmem>>, vector<8x128xf32>
    tpu.vector_store %arg10[%c0_48, %c0_49], %64 {strides = array<i32>} : memref<8x128xf32, #tpu.memory_space<vmem>>, vector<8x128xf32>,
    return
  }
  func.func @transform_0(%arg0: i32) -> (i32, i32) {
    %c0_i32 = arith.constant 0 : i32
    %c0_i32_0 = arith.constant 0 : i32
    return %arg0, %c0_i32 : i32, i32
  }
  func.func @transform_1(%arg0: i32) -> (i32, i32) {
    %c0_i32 = arith.constant 0 : i32
    %c0_i32_0 = arith.constant 0 : i32
    %c0_i32_1 = arith.constant 0 : i32
    return %c0_i32, %c0_i32_0 : i32, i32
  }
  func.func @transform_2(%arg0: i32) -> (i32, i32) {
    %c0_i32 = arith.constant 0 : i32
    %c0_i32_0 = arith.constant 0 : i32
    %c0_i32_1 = arith.constant 0 : i32
    return %c0_i32, %c0_i32_0 : i32, i32
  }
  func.func @transform_3(%arg0: i32) -> (i32, i32) {
    %c0_i32 = arith.constant 0 : i32
    %c0_i32_0 = arith.constant 0 : i32
    %c0_i32_1 = arith.constant 0 : i32
    return %c0_i32, %c0_i32_0 : i32, i32
  }
  func.func @transform_4(%arg0: i32) -> (i32, i32) {
    %c0_i32 = arith.constant 0 : i32
    %c0_i32_0 = arith.constant 0 : i32
    %c0_i32_1 = arith.constant 0 : i32
    return %c0_i32, %c0_i32_0 : i32, i32
  }
  func.func @transform_5(%arg0: i32) -> (i32, i32) {
    %c0_i32 = arith.constant 0 : i32
    %c0_i32_0 = arith.constant 0 : i32
    %c0_i32_1 = arith.constant 0 : i32
    return %c0_i32, %c0_i32_0 : i32, i32
  }
  func.func @transform_6(%arg0: i32) -> (i32, i32) {
    %c0_i32 = arith.constant 0 : i32
    %c0_i32_0 = arith.constant 0 : i32
    %c0_i32_1 = arith.constant 0 : i32
    return %c0_i32, %c0_i32_0 : i32, i32
  }
  func.func @transform_7(%arg0: i32) -> (i32, i32) {
    %c0_i32 = arith.constant 0 : i32
    %c0_i32_0 = arith.constant 0 : i32
    %c0_i32_1 = arith.constant 0 : i32
    return %c0_i32, %c0_i32_0 : i32, i32
  }
  func.func @transform_8(%arg0: i32) -> (i32, i32) {
    %c0_i32 = arith.constant 0 : i32
    %c0_i32_0 = arith.constant 0 : i32
    %c0_i32_1 = arith.constant 0 : i32
    return %c0_i32, %c0_i32_0 : i32, i32
  }
  func.func @transform_9(%arg0: i32) -> (i32, i32) {
    %c0_i32 = arith.constant 0 : i32
    %c0_i32_0 = arith.constant 0 : i32
    return %arg0, %c0_i32 : i32, i32
  }
}

module attributes {stable_mosaic.version = 11 : i64} {
  func.func @encoder_kernel(%arg0: i32, %arg1: memref<8x128xbf16, #tpu.memory_space<vmem>>, %arg2: memref<128x512xbf16, #tpu.memory_space<vmem>>, %arg3: memref<1x512xf32, #tpu.memory_space<vmem>>, %arg4: memref<512x512xbf16, #tpu.memory_space<vmem>>, %arg5: memref<1x512xf32, #tpu.memory_space<vmem>>, %arg6: memref<512x2048xbf16, #tpu.memory_space<vmem>>, %arg7: memref<1x2048xf32, #tpu.memory_space<vmem>>, %arg8: memref<2048x128xbf16, #tpu.memory_space<vmem>>, %arg9: memref<1x128xf32, #tpu.memory_space<vmem>>, %arg10: memref<8x128xf32, #tpu.memory_space<vmem>>) attributes {dimension_semantics = [#tpu.dimension_semantics<parallel>], iteration_bounds = array<i64: 1>, scalar_prefetch = 0 : i64, scratch_operands = 0 : i64, tpu.core_type = #tpu.core_type<tc>, window_params = [{transform_indices = @transform_0, window_bounds = array<i64: 8, 128>}, {pipeline_mode = #tpu.pipeline_mode<synchronous>, transform_indices = @transform_1, window_bounds = array<i64: 128, 512>}, {pipeline_mode = #tpu.pipeline_mode<synchronous>, transform_indices = @transform_2, window_bounds = array<i64: 1, 512>}, {pipeline_mode = #tpu.pipeline_mode<synchronous>, transform_indices = @transform_3, window_bounds = array<i64: 512, 512>}, {pipeline_mode = #tpu.pipeline_mode<synchronous>, transform_indices = @transform_4, window_bounds = array<i64: 1, 512>}, {pipeline_mode = #tpu.pipeline_mode<synchronous>, transform_indices = @transform_5, window_bounds = array<i64: 512, 2048>}, {pipeline_mode = #tpu.pipeline_mode<synchronous>, transform_indices = @transform_6, window_bounds = array<i64: 1, 2048>}, {pipeline_mode = #tpu.pipeline_mode<synchronous>, transform_indices = @transform_7, window_bounds = array<i64: 2048, 128>}, {pipeline_mode = #tpu.pipeline_mode<synchronous>, transform_indices = @transform_8, window_bounds = array<i64: 1, 128>}, {transform_indices = @transform_9, window_bounds = array<i64: 8, 128>}]} {
    %c0 = arith.constant 0 : index
    %c0_0 = arith.constant 0 : index
    %0 = vector.load %arg1[%c0, %c0_0] : memref<8x128xbf16, #tpu.memory_space<vmem>>, vector<8x128xbf16>
    %c0_1 = arith.constant 0 : index
    %c0_2 = arith.constant 0 : index
    %1 = vector.load %arg2[%c0_1, %c0_2] : memref<128x512xbf16, #tpu.memory_space<vmem>>, vector<128x512xbf16>
    %cst = arith.constant dense<0.000000e+00> : vector<8x512xf32>
    %2 = tpu.matmul %0, %1, %cst {dimension_numbers = #tpu.dot_dimension_numbers<[1], [0], [0], [1], [0, 0, 1, 1], [], []>} : vector<8x128xbf16>, vector<128x512xbf16>, vector<8x512xf32> -> vector<8x512xf32>
    %c0_3 = arith.constant 0 : index
    %c0_4 = arith.constant 0 : index
    %3 = vector.load %arg3[%c0_3, %c0_4] : memref<1x512xf32, #tpu.memory_space<vmem>>, vector<1x512xf32>
    %4 = vector.broadcast %3 : vector<1x512xf32> to vector<8x512xf32>
    %5 = arith.addf %2, %4 : vector<8x512xf32>
    %cst_5 = arith.constant 0.000000e+00 : f32
    %6 = vector.broadcast %cst_5 : f32 to vector<8x512xf32>
    %7 = arith.maximumf %5, %6 : vector<8x512xf32>
    %8 = arith.truncf %7 : vector<8x512xf32> to vector<8x512xbf16>
    %c0_6 = arith.constant 0 : index
    %c0_7 = arith.constant 0 : index
    %9 = vector.load %arg4[%c0_6, %c0_7] : memref<512x512xbf16, #tpu.memory_space<vmem>>, vector<512x512xbf16>
    %cst_8 = arith.constant dense<0.000000e+00> : vector<8x512xf32>
    %10 = tpu.matmul %8, %9, %cst_8 {dimension_numbers = #tpu.dot_dimension_numbers<[1], [0], [0], [1], [0, 0, 1, 1], [], []>} : vector<8x512xbf16>, vector<512x512xbf16>, vector<8x512xf32> -> vector<8x512xf32>
    %c0_9 = arith.constant 0 : index
    %c0_10 = arith.constant 0 : index
    %11 = vector.load %arg5[%c0_9, %c0_10] : memref<1x512xf32, #tpu.memory_space<vmem>>, vector<1x512xf32>
    %12 = vector.broadcast %11 : vector<1x512xf32> to vector<8x512xf32>
    %13 = arith.addf %10, %12 : vector<8x512xf32>
    %cst_11 = arith.constant 0.000000e+00 : f32
    %14 = vector.broadcast %cst_11 : f32 to vector<8x512xf32>
    %15 = arith.maximumf %13, %14 : vector<8x512xf32>
    %16 = arith.truncf %15 : vector<8x512xf32> to vector<8x512xbf16>
    %cst_12 = arith.constant 0.000000e+00 : f32
    %17 = vector.broadcast %cst_12 : f32 to vector<8x128xf32>
    %c0_13 = arith.constant 0 : index
    %c0_14 = arith.constant 0 : index
    %18 = vector.load %arg6[%c0_13, %c0_14] : memref<512x2048xbf16, #tpu.memory_space<vmem>>, vector<512x512xbf16>
    %cst_15 = arith.constant dense<0.000000e+00> : vector<8x512xf32>
    %19 = tpu.matmul %16, %18, %cst_15 {dimension_numbers = #tpu.dot_dimension_numbers<[1], [0], [0], [1], [0, 0, 1, 1], [], []>} : vector<8x512xbf16>, vector<512x512xbf16>, vector<8x512xf32> -> vector<8x512xf32>
    %c0_16 = arith.constant 0 : index
    %c0_17 = arith.constant 0 : index
    %20 = vector.load %arg7[%c0_16, %c0_17] : memref<1x2048xf32, #tpu.memory_space<vmem>>, vector<1x512xf32>
    %21 = vector.broadcast %20 : vector<1x512xf32> to vector<8x512xf32>
    %22 = arith.addf %19, %21 : vector<8x512xf32>
    %cst_18 = arith.constant 0.000000e+00 : f32
    %23 = vector.broadcast %cst_18 : f32 to vector<8x512xf32>
    %24 = arith.maximumf %22, %23 : vector<8x512xf32>
    %25 = arith.truncf %24 : vector<8x512xf32> to vector<8x512xbf16>
    %c0_19 = arith.constant 0 : index
    %c0_20 = arith.constant 0 : index
    %26 = vector.load %arg8[%c0_19, %c0_20] : memref<2048x128xbf16, #tpu.memory_space<vmem>>, vector<512x128xbf16>
    %cst_21 = arith.constant dense<0.000000e+00> : vector<8x128xf32>
    %27 = tpu.matmul %25, %26, %cst_21 {dimension_numbers = #tpu.dot_dimension_numbers<[1], [0], [0], [1], [0, 0, 1, 1], [], []>} : vector<8x512xbf16>, vector<512x128xbf16>, vector<8x128xf32> -> vector<8x128xf32>
    %28 = arith.addf %17, %27 : vector<8x128xf32>
    %c0_22 = arith.constant 0 : index
    %c512 = arith.constant 512 : index
    %29 = vector.load %arg6[%c0_22, %c512] : memref<512x2048xbf16, #tpu.memory_space<vmem>>, vector<512x512xbf16>
    %cst_23 = arith.constant dense<0.000000e+00> : vector<8x512xf32>
    %30 = tpu.matmul %16, %29, %cst_23 {dimension_numbers = #tpu.dot_dimension_numbers<[1], [0], [0], [1], [0, 0, 1, 1], [], []>} : vector<8x512xbf16>, vector<512x512xbf16>, vector<8x512xf32> -> vector<8x512xf32>
    %c0_24 = arith.constant 0 : index
    %c512_25 = arith.constant 512 : index
    %31 = vector.load %arg7[%c0_24, %c512_25] : memref<1x2048xf32, #tpu.memory_space<vmem>>, vector<1x512xf32>
    %32 = vector.broadcast %31 : vector<1x512xf32> to vector<8x512xf32>
    %33 = arith.addf %30, %32 : vector<8x512xf32>
    %cst_26 = arith.constant 0.000000e+00 : f32
    %34 = vector.broadcast %cst_26 : f32 to vector<8x512xf32>
    %35 = arith.maximumf %33, %34 : vector<8x512xf32>
    %36 = arith.truncf %35 : vector<8x512xf32> to vector<8x512xbf16>
    %c512_27 = arith.constant 512 : index
    %c0_28 = arith.constant 0 : index
    %37 = vector.load %arg8[%c512_27, %c0_28] : memref<2048x128xbf16, #tpu.memory_space<vmem>>, vector<512x128xbf16>
    %cst_29 = arith.constant dense<0.000000e+00> : vector<8x128xf32>
    %38 = tpu.matmul %36, %37, %cst_29 {dimension_numbers = #tpu.dot_dimension_numbers<[1], [0], [0], [1], [0, 0, 1, 1], [], []>} : vector<8x512xbf16>, vector<512x128xbf16>, vector<8x128xf32> -> vector<8x128xf32>
    %39 = arith.addf %28, %38 : vector<8x128xf32>
    %c0_30 = arith.constant 0 : index
    %c1024 = arith.constant 1024 : index
    %40 = vector.load %arg6[%c0_30, %c1024] : memref<512x2048xbf16, #tpu.memory_space<vmem>>, vector<512x512xbf16>
    %cst_31 = arith.constant dense<0.000000e+00> : vector<8x512xf32>
    %41 = tpu.matmul %16, %40, %cst_31 {dimension_numbers = #tpu.dot_dimension_numbers<[1], [0], [0], [1], [0, 0, 1, 1], [], []>} : vector<8x512xbf16>, vector<512x512xbf16>, vector<8x512xf32> -> vector<8x512xf32>
    %c0_32 = arith.constant 0 : index
    %c1024_33 = arith.constant 1024 : index
    %42 = vector.load %arg7[%c0_32, %c1024_33] : memref<1x2048xf32, #tpu.memory_space<vmem>>, vector<1x512xf32>
    %43 = vector.broadcast %42 : vector<1x512xf32> to vector<8x512xf32>
    %44 = arith.addf %41, %43 : vector<8x512xf32>
    %cst_34 = arith.constant 0.000000e+00 : f32
    %45 = vector.broadcast %cst_34 : f32 to vector<8x512xf32>
    %46 = arith.maximumf %44, %45 : vector<8x512xf32>
    %47 = arith.truncf %46 : vector<8x512xf32> to vector<8x512xbf16>
    %c1024_35 = arith.constant 1024 : index
    %c0_36 = arith.constant 0 : index
    %48 = vector.load %arg8[%c1024_35, %c0_36] : memref<2048x128xbf16, #tpu.memory_space<vmem>>, vector<512x128xbf16>
    %cst_37 = arith.constant dense<0.000000e+00> : vector<8x128xf32>
    %49 = tpu.matmul %47, %48, %cst_37 {dimension_numbers = #tpu.dot_dimension_numbers<[1], [0], [0], [1], [0, 0, 1, 1], [], []>} : vector<8x512xbf16>, vector<512x128xbf16>, vector<8x128xf32> -> vector<8x128xf32>
    %50 = arith.addf %39, %49 : vector<8x128xf32>
    %c0_38 = arith.constant 0 : index
    %c1536 = arith.constant 1536 : index
    %51 = vector.load %arg6[%c0_38, %c1536] : memref<512x2048xbf16, #tpu.memory_space<vmem>>, vector<512x512xbf16>
    %cst_39 = arith.constant dense<0.000000e+00> : vector<8x512xf32>
    %52 = tpu.matmul %16, %51, %cst_39 {dimension_numbers = #tpu.dot_dimension_numbers<[1], [0], [0], [1], [0, 0, 1, 1], [], []>} : vector<8x512xbf16>, vector<512x512xbf16>, vector<8x512xf32> -> vector<8x512xf32>
    %c0_40 = arith.constant 0 : index
    %c1536_41 = arith.constant 1536 : index
    %53 = vector.load %arg7[%c0_40, %c1536_41] : memref<1x2048xf32, #tpu.memory_space<vmem>>, vector<1x512xf32>
    %54 = vector.broadcast %53 : vector<1x512xf32> to vector<8x512xf32>
    %55 = arith.addf %52, %54 : vector<8x512xf32>
    %cst_42 = arith.constant 0.000000e+00 : f32
    %56 = vector.broadcast %cst_42 : f32 to vector<8x512xf32>
    %57 = arith.maximumf %55, %56 : vector<8x512xf32>
    %58 = arith.truncf %57 : vector<8x512xf32> to vector<8x512xbf16>
    %c1536_43 = arith.constant 1536 : index
    %c0_44 = arith.constant 0 : index
    %59 = vector.load %arg8[%c1536_43, %c0_44] : memref<2048x128xbf16, #tpu.memory_space<vmem>>, vector<512x128xbf16>
    %cst_45 = arith.constant dense<0.000000e+00> : vector<8x128xf32>
    %60 = tpu.matmul %58, %59, %cst_45 {dimension_numbers = #tpu.dot_dimension_numbers<[1], [0], [0], [1], [0, 0, 1, 1], [], []>} : vector<8x512xbf16>, vector<512x128xbf16>, vector<8x128xf32> -> vector<8x128xf32>
    %61 = arith.addf %50, %60 : vector<8x128xf32>
    %c0_46 = arith.constant 0 : index
    %c0_47 = arith.constant 0 : index
    %62 = vector.load %arg9[%c0_46, %c0_47] : memref<1x128xf32, #tpu.memory_space<vmem>>, vector<1x128xf32>
    %63 = vector.broadcast %62 : vector<1x128xf32> to vector<8x128xf32>
    %64 = arith.addf %61, %63 : vector<8x128xf32>
    %c0_48 = arith.constant 0 : index
    %c0_49 = arith.constant 0 : index
    %65 = vector.load %arg10[%c0_48, %c0_49] : memref<8x128xf32, #tpu.memory_space<vmem>>, vector<8x128xf32>
    tpu.vector_store %arg10[%c0_48, %c0_49], %64 {strides = array<i32>} : memref<8x128xf32, #tpu.memory_space<vmem>>, vector<8x128xf32>,
    return
  }
  func.func @transform_0(%arg0: i32) -> (i32, i32) {
    %c0_i32 = arith.constant 0 : i32
    %c0_i32_0 = arith.constant 0 : i32
    return %arg0, %c0_i32 : i32, i32
  }
  func.func @transform_1(%arg0: i32) -> (i32, i32) {
    %c0_i32 = arith.constant 0 : i32
    %c0_i32_0 = arith.constant 0 : i32
    %c0_i32_1 = arith.constant 0 : i32
    return %c0_i32, %c0_i32_0 : i32, i32
  }
  func.func @transform_2(%arg0: i32) -> (i32, i32) {
    %c0_i32 = arith.constant 0 : i32
    %c0_i32_0 = arith.constant 0 : i32
    %c0_i32_1 = arith.constant 0 : i32
    return %c0_i32, %c0_i32_0 : i32, i32
  }
  func.func @transform_3(%arg0: i32) -> (i32, i32) {
    %c0_i32 = arith.constant 0 : i32
    %c0_i32_0 = arith.constant 0 : i32
    %c0_i32_1 = arith.constant 0 : i32
    return %c0_i32, %c0_i32_0 : i32, i32
  }
  func.func @transform_4(%arg0: i32) -> (i32, i32) {
    %c0_i32 = arith.constant 0 : i32
    %c0_i32_0 = arith.constant 0 : i32
    %c0_i32_1 = arith.constant 0 : i32
    return %c0_i32, %c0_i32_0 : i32, i32
  }
  func.func @transform_5(%arg0: i32) -> (i32, i32) {
    %c0_i32 = arith.constant 0 : i32
    %c0_i32_0 = arith.constant 0 : i32
    %c0_i32_1 = arith.constant 0 : i32
    return %c0_i32, %c0_i32_0 : i32, i32
  }
  func.func @transform_6(%arg0: i32) -> (i32, i32) {
    %c0_i32 = arith.constant 0 : i32
    %c0_i32_0 = arith.constant 0 : i32
    %c0_i32_1 = arith.constant 0 : i32
    return %c0_i32, %c0_i32_0 : i32, i32
  }
  func.func @transform_7(%arg0: i32) -> (i32, i32) {
    %c0_i32 = arith.constant 0 : i32
    %c0_i32_0 = arith.constant 0 : i32
    %c0_i32_1 = arith.constant 0 : i32
    return %c0_i32, %c0_i32_0 : i32, i32
  }
  func.func @transform_8(%arg0: i32) -> (i32, i32) {
    %c0_i32 = arith.constant 0 : i32
    %c0_i32_0 = arith.constant 0 : i32
    %c0_i32_1 = arith.constant 0 : i32
    return %c0_i32, %c0_i32_0 : i32, i32
  }
  func.func @transform_9(%arg0: i32) -> (i32, i32) {
    %c0_i32 = arith.constant 0 : i32
    %c0_i32_0 = arith.constant 0 : i32
    return %arg0, %c0_i32 : i32, i32
  }
}

</mosaic_0001>

<bundles_post_ra>
// kernel: _encoder_forward_impl.1
= control target key start
LH: loop header
LB: loop body
LE: loop exit
PB: predicated region body
PF: predicated region fallthrough
CT: control target
= control target key end

     0   :  { %14 = vsyncpa [#allocation3], 0  ;;  %s8446_s0 = inlined_call_operand.vmem [shape: bf16[8,128], index: 0, kind: input, shape index: {}]   ;;  %s8447_s1 = inlined_call_operand.hbm [shape: bf16[128,512], index: 1, kind: input, shape index: {}]   ;;  %s8448_s2 = inlined_call_operand.hbm [shape: f32[1,512], index: 2, kind: input, shape index: {}]   ;;  %s8449_s3 = inlined_call_operand.hbm [shape: bf16[512,512], index: 3, kind: input, shape index: {}]   ;;  %s8450_s4 = inlined_call_operand.hbm [shape: f32[1,512], index: 4, kind: input, shape index: {}]   ;;  %s8451_s5 = inlined_call_operand.hbm [shape: bf16[512,2048], index: 5, kind: input, shape index: {}]   ;;  %s8452_s6 = inlined_call_operand.hbm [shape: f32[1,2048], index: 6, kind: input, shape index: {}]   ;;  %s8453_s7 = inlined_call_operand.hbm [shape: bf16[2048,128], index: 7, kind: input, shape index: {}]   ;;  %s8454_s8 = inlined_call_operand.hbm [shape: f32[1,128], index: 8, kind: input, shape index: {}]   ;;  %s8455_s9 = inlined_call_operand.hbm [shape: f32[8,128], index: 9, kind: output, shape index: {}]  }
   0x1   :  { %15 = vsyncpa [#allocation6], 0 }
   0x2   :  { %16 = vsyncpa [#allocation9], 0 }
   0x3   :  { %17 = vsyncpa [#allocation12], 0 }
   0x4   :  { %18 = vsyncpa [#allocation15], 0 }
   0x5   :  { %19 = vsyncpa [#allocation4], 0  ;;  %s8176_s30 = smov [#allocation5]   ;;  %s8177_s11 = smov [#allocation8]  }
   0x6   :  { %s40_s10 = sshll.u32 %s8176_s30, 4  ;;  %s62_s12 = sshll.u32 %s8177_s11, 4  ;;  %s41_s10 = int_to_ptr.vmem [resolvable:$true] %s40_s10  ;;  %s63_s12 = int_to_ptr.vmem [resolvable:$true] %s62_s12 }
   0x7   :  { %s7992_s13 = scalar_lea.vmem %s41_s10, 64  ;;  %p7997_p1 = scmp.lt.s32.totalorder %s41_s10, %s41_s10 }
   0x8   :  { %p7993_p0 = scmp.ne.s32.totalorder %s41_s10, %s7992_s13  ;;  %p7998_p2 = scmp.lt.s32.totalorder %s7992_s13, %s7992_s13 }
   0xa   :  { %p7999_p3 = por %p7998_p2, %p7997_p1 }
   0xc   :  { %p8000_p4 = pnand %p7999_p3, %p7993_p0 }
   0xe   :  { %8003 = shalt.err (!%p8000_p4)
}
   0xf   :  { %43 = dma.hbm_to_vmem [thread:$0]  %s8448_s2, 64, %s41_s10, [#allocation6]  }
  0x10   :  { %s8012_s16 = scalar_lea.vmem %s63_s12, 64  ;;  %p8017_p6 = scmp.lt.s32.totalorder %s63_s12, %s63_s12 }
  0x11   :  { %p8013_p5 = scmp.ne.s32.totalorder %s63_s12, %s8012_s16  ;;  %p8018_p7 = scmp.lt.s32.totalorder %s8012_s16, %s8012_s16 }
  0x13   :  { %p8019_p8 = por %p8018_p7, %p8017_p6 }
  0x15   :  { %p8020_p9 = pnand %p8019_p8, %p8013_p5 }
  0x17   :  { %8023 = shalt.err (!%p8020_p9)
}
  0x18   :  { %65 = dma.hbm_to_vmem [thread:$0]  %s8450_s4, 64, %s63_s12, [#allocation9]  }
  0x19   :  { %s8178_s19 = smov [#allocation11]   ;;  %s8179_s21 = smov [#allocation2]  }
  0x1a   :  { %s84_s20 = sshll.u32 %s8178_s19, 4  ;;  %s27_s22 = sshll.u32 %s8179_s21, 4  ;;  %s85_s20 = int_to_ptr.vmem [resolvable:$true] %s84_s20  ;;  %s28_s22 = int_to_ptr.vmem [resolvable:$true] %s27_s22 }
  0x1b   :  { %s8032_s23 = scalar_lea.vmem %s85_s20, 256  ;;  %p8037_p11 = scmp.lt.s32.totalorder %s85_s20, %s85_s20 }
  0x1c   :  { %p8033_p10 = scmp.ne.s32.totalorder %s85_s20, %s8032_s23  ;;  %p8038_p12 = scmp.lt.s32.totalorder %s8032_s23, %s8032_s23 }
  0x1e   :  { %p8039_p13 = por %p8038_p12, %p8037_p11 }
  0x20   :  { %p8040_p0 = pnand %p8039_p13, %p8033_p10 }
  0x22   :  { %8043 = shalt.err (!%p8040_p0)
}
  0x23   :  { %87 = dma.hbm_to_vmem [thread:$0]  %s8452_s6, 256, %s85_s20, [#allocation12]  }
  0x24   :  { %s8052_s25 = scalar_lea.vmem %s28_s22, 4096  ;;  %p8057_p2 = scmp.lt.s32.totalorder %s28_s22, %s28_s22 }
  0x25   :  { %p8053_p1 = scmp.ne.s32.totalorder %s28_s22, %s8052_s25  ;;  %p8058_p3 = scmp.lt.s32.totalorder %s8052_s25, %s8052_s25 }
  0x27   :  { %p8059_p4 = por %p8058_p3, %p8057_p2 }
  0x29   :  { %p8060_p5 = pnand %p8059_p4, %p8053_p1 }
  0x2b   :  { %8063 = shalt.err (!%p8060_p5)
}
  0x2c   :  { %s8180_s4 = smov 256   ;;  %s8181_s26 = smov 16  }
  0x2d   :  { %33 = dma.hbm_to_vmem [thread:$0]  %s8447_s1, 4096, %s28_s22, [#allocation3], %s8180_s4, %s8180_s4, %s8181_s26  }
  0x2e   :  { %s8182_s29 = smov [#allocation7]   ;;  %s8183_s10 = smov [#allocation10]  }
  0x2f   :  { %s49_s30 = sshll.u32 %s8182_s29, 4  ;;  %s71_s11 = sshll.u32 %s8183_s10, 4  ;;  %s50_s30 = int_to_ptr.vmem [resolvable:$true] %s49_s30  ;;  %s72_s11 = int_to_ptr.vmem [resolvable:$true] %s71_s11 }
  0x30   :  { %s8072_s6 = scalar_lea.vmem %s50_s30, 16384  ;;  %p8077_p7 = scmp.lt.s32.totalorder %s50_s30, %s50_s30 }
  0x31   :  { %p8073_p6 = scmp.ne.s32.totalorder %s50_s30, %s8072_s6  ;;  %p8078_p8 = scmp.lt.s32.totalorder %s8072_s6, %s8072_s6 }
  0x33   :  { %p8079_p9 = por %p8078_p8, %p8077_p7 }
  0x35   :  { %p8080_p10 = pnand %p8079_p9, %p8073_p6 }
  0x37   :  { %8083 = shalt.err (!%p8080_p10)
}
  0x38   :  { %55 = dma.hbm_to_vmem [thread:$0]  %s8449_s3, 16384, %s50_s30, [#allocation6], %s8180_s4, %s8180_s4, %s8181_s26  }
  0x39   :  { %s8092_s14 = scalar_lea.vmem %s72_s11, 65536  ;;  %p8097_p12 = scmp.lt.s32.totalorder %s72_s11, %s72_s11 }
  0x3a   :  { %p8093_p11 = scmp.ne.s32.totalorder %s72_s11, %s8092_s14  ;;  %p8098_p13 = scmp.lt.s32.totalorder %s8092_s14, %s8092_s14 }
  0x3c   :  { %p8099_p0 = por %p8098_p13, %p8097_p12 }
  0x3e   :  { %p8100_p1 = pnand %p8099_p0, %p8093_p11 }
  0x40   :  { %8103 = shalt.err (!%p8100_p1)
}
  0x41   :  { %s8184_s1 = smov 1024   ;;  %s8185_s15 = smov 64  }
  0x42   :  { %77 = dma.hbm_to_vmem [thread:$0]  %s8451_s5, 65536, %s72_s11, [#allocation9], %s8184_s1, %s8184_s1, %s8185_s15  }
  0x43   :  { %s8186_s18 = smov [#allocation13]   ;;  %s8187_s20 = smov [#allocation14]  }
  0x44   :  { %s93_s19 = sshll.u32 %s8186_s18, 4  ;;  %s106_s21 = sshll.u32 %s8187_s20, 4  ;;  %s94_s19 = int_to_ptr.vmem [resolvable:$true] %s93_s19  ;;  %s107_s21 = int_to_ptr.vmem [resolvable:$true] %s106_s21 }
  0x45   :  { %s8112_s22 = scalar_lea.vmem %s94_s19, 16384  ;;  %p8117_p3 = scmp.lt.s32.totalorder %s94_s19, %s94_s19 }
  0x46   :  { %p8113_p2 = scmp.ne.s32.totalorder %s94_s19, %s8112_s22  ;;  %p8118_p4 = scmp.lt.s32.totalorder %s8112_s22, %s8112_s22 }
  0x48   :  { %p8119_p5 = por %p8118_p4, %p8117_p3 }
  0x4a   :  { %p8120_p6 = pnand %p8119_p5, %p8113_p2 }
  0x4c   :  { %8123 = shalt.err (!%p8120_p6)
}
  0x4d   :  { %s8188_s3 = smov 4   ;;  %s8132_s24 = scalar_lea.vmem %s107_s21, 16 }
  0x4e   :  { %99 = dma.hbm_to_vmem [thread:$0]  %s8453_s7, 16384, %s94_s19, [#allocation12], %s8185_s15, %s8185_s15, %s8188_s3  }
  0x4f   :  { %p8133_p7 = scmp.ne.s32.totalorder %s107_s21, %s8132_s24  ;;  %s8136_s5 = scalar_lea.vmem %s107_s21, 32 }
  0x50   :  { %p8137_p8 = scmp.lt.s32.totalorder %s107_s21, %s107_s21  ;;  %p8138_p9 = scmp.lt.s32.totalorder %s8136_s5, %s8132_s24 }
  0x52   :  { %p8139_p10 = por %p8138_p9, %p8137_p8 }
  0x54   :  { %p8140_p11 = pnand %p8139_p10, %p8133_p7 }
  0x56   :  { %8143 = shalt.err (!%p8140_p11)
}
  0x57   :  { %109 = dma.hbm_to_vmem [thread:$0]  %s8454_s8, 16, %s107_s21, [#allocation15]  }
  0x58   :  { %8164 = dma.done.wait [#allocation3], 4096  }
  0x59   :  { %8165 = vsyncadd [#allocation3], 4294963200 }
  0x5a   :  { %8166 = dma.done.wait [#allocation6], 16448  }
  0x5b   :  { %8167 = vsyncadd [#allocation6], 4294950848 }
  0x5c   :  { %8168 = dma.done.wait [#allocation9], 65600  }
  0x5d   :  { %8169 = vsyncadd [#allocation9], 4294901696 }
  0x5e   :  { %8170 = dma.done.wait [#allocation12], 16640  }
  0x5f   :  { %8171 = vsyncadd [#allocation12], 4294950656 }
  0x60   :  { %8172 = dma.done.wait [#allocation15], 16  }
  0x61   :  { %8173 = vsyncadd [#allocation15], 4294967280  ;;  %v8189_v0 = vmov 0   ;;  %v7616_v1 = vld [vmem:[#allocation2 + $0xe4] ss:$16 sps:$4 sm:$0xff]  }
  0x62   :  { %382 = vmatprep.mubr.bf16.mxu0 %v8189_v0  ;;  %423 = vmatprep.mubr.bf16.mxu1 %v8189_v0  ;;  %v7618_v2 = vld [vmem:[#allocation2 + $0xec] ss:$16 sps:$4 sm:$0xff]   ;;  %v7620_v3 = vld [vmem:[#allocation2 + $0xe0] ss:$16 sps:$4 sm:$0xff]   ;;  %v7621_v4 = vld [vmem:[#allocation2 + $0xe8] ss:$16 sps:$4 sm:$0xff]  }
  0x63   :  { %350 = vmatprep.subr.bf16.mxu0 %v7616_v1  ;;  %391 = vmatprep.subr.bf16.mxu1 %v7618_v2  ;;  %v7622_v5 = vld [vmem:[#allocation2 + $0xc4] ss:$16 sps:$4 sm:$0xff]   ;;  %v7624_v6 = vld [vmem:[#allocation2 + $0xcc] ss:$16 sps:$4 sm:$0xff]   ;;  %v7626_v7 = vld [vmem:[#allocation2 + $0xc0] ss:$16 sps:$4 sm:$0xff]  }
  0x64   :  { %351 = vmatpush1.bf16.msra.mxu0 %v7620_v3  ;;  %392 = vmatpush1.bf16.msra.mxu1 %v7621_v4  ;;  %v7627_v8 = vld [vmem:[#allocation2 + $0xc8] ss:$16 sps:$4 sm:$0xff]   ;;  %v7628_v9 = vld [vmem:[#allocation2 + $0xa4] ss:$16 sps:$4 sm:$0xff]   ;;  %v7630_v10 = vld [vmem:[#allocation2 + $0xac] ss:$16 sps:$4 sm:$0xff]  }
  0x65   :  { %352 = vmatprep.subr.bf16.mxu0 %v7622_v5  ;;  %393 = vmatprep.subr.bf16.mxu1 %v7624_v6  ;;  %v7632_v11 = vld [vmem:[#allocation2 + $0xa0] ss:$16 sps:$4 sm:$0xff]   ;;  %v7633_v12 = vld [vmem:[#allocation2 + $0xa8] ss:$16 sps:$4 sm:$0xff]   ;;  %v7634_v13 = vld [vmem:[#allocation2 + $0x84] ss:$16 sps:$4 sm:$0xff]  }
  0x66   :  { %v7636_v14 = vld [vmem:[#allocation2 + $0x8c] ss:$16 sps:$4 sm:$0xff]   ;;  %v7638_v15 = vld [vmem:[#allocation2 + $0x80] ss:$16 sps:$4 sm:$0xff]   ;;  %v7639_v16 = vld [vmem:[#allocation2 + $0x88] ss:$16 sps:$4 sm:$0xff]  }
  0x67   :  { %v7640_v17 = vld [vmem:[#allocation2 + $0x64] ss:$16 sps:$4 sm:$0xff]   ;;  %v7642_v18 = vld [vmem:[#allocation2 + $0x6c] ss:$16 sps:$4 sm:$0xff]   ;;  %v7644_v19 = vld [vmem:[#allocation2 + $0x60] ss:$16 sps:$4 sm:$0xff]  }
  0x68   :  { %353 = vmatpush1.bf16.msra.mxu0 %v7626_v7  ;;  %394 = vmatpush1.bf16.msra.mxu1 %v7627_v8  ;;  %v7645_v20 = vld [vmem:[#allocation2 + $0x68] ss:$16 sps:$4 sm:$0xff]   ;;  %v7646_v21 = vld [vmem:[#allocation2 + $0x44] ss:$16 sps:$4 sm:$0xff]   ;;  %v7648_v22 = vld [vmem:[#allocation2 + $0x4c] ss:$16 sps:$4 sm:$0xff]  }
  0x69   :  { %354 = vmatprep.subr.bf16.mxu0 %v7628_v9  ;;  %395 = vmatprep.subr.bf16.mxu1 %v7630_v10  ;;  %v7650_v23 = vld [vmem:[#allocation2 + $0x40] ss:$16 sps:$4 sm:$0xff]   ;;  %v7651_v24 = vld [vmem:[#allocation2 + $0x48] ss:$16 sps:$4 sm:$0xff]   ;;  %v7652_v25 = vld [vmem:[#allocation2 + $0x24] ss:$16 sps:$4 sm:$0xff]  }
  0x6a   :  { %v7654_v26 = vld [vmem:[#allocation2 + $0x2c] ss:$16 sps:$4 sm:$0xff]   ;;  %v7656_v27 = vld [vmem:[#allocation2 + $0x20] ss:$16 sps:$4 sm:$0xff]   ;;  %v7657_v28 = vld [vmem:[#allocation2 + $0x28] ss:$16 sps:$4 sm:$0xff]  }
  0x6b   :  { %v7658_v29 = vld [vmem:[#allocation2 + $0x4] ss:$16 sps:$4 sm:$0xff]   ;;  %v7660_v30 = vld [vmem:[#allocation2 + $0xc] ss:$16 sps:$4 sm:$0xff]   ;;  %v7662_v31 = vld [vmem:[#allocation2] ss:$16 sps:$4 sm:$0xff]  }
  0x6c   :  { %355 = vmatpush1.bf16.msra.mxu0 %v7632_v11  ;;  %396 = vmatpush1.bf16.msra.mxu1 %v7633_v12  ;;  %v7663_v32 = vld [vmem:[#allocation2 + $0x8] ss:$16 sps:$4 sm:$0xff]   ;;  %v135_v35 = vld [vmem:[%s8446_s0] sm:$0xf]  ;;  %v7664_v36 = vld [vmem:[#allocation7 + $0xe0] ss:$16 sps:$4 sm:$0xff]  }
  0x6d   :  { %356 = vmatprep.subr.bf16.mxu0 %v7634_v13  ;;  %397 = vmatprep.subr.bf16.mxu1 %v7636_v14  ;;  %v7666_v33 = vld [vmem:[#allocation7 + $0xe4] ss:$16 sps:$4 sm:$0xff]   ;;  %v7667_v37 = vld [vmem:[#allocation7 + $0x2e0] ss:$16 sps:$4 sm:$0xff]   ;;  %s8190_s0 = smov [#allocation16]  }
  0x6e   :  { %v7669_v34 = vld [vmem:[#allocation7 + $0x2e4] ss:$16 sps:$4 sm:$0xff]   ;;  %v7670_v40 = vld [vmem:[#allocation7 + $0xc0] ss:$16 sps:$4 sm:$0xff]   ;;  %s6611_s26 = sshll.u32 %s8190_s0, 4  ;;  %s6612_s26 = int_to_ptr.vmem [resolvable:$true] %s6611_s26 }
  0x6f   :  { %v7672_v38 = vld [vmem:[#allocation7 + $0xc4] ss:$16 sps:$4 sm:$0xff]   ;;  %v7673_v41 = vld [vmem:[#allocation7 + $0x2c0] ss:$16 sps:$4 sm:$0xff]   ;;  %s8144_s27 = scalar_lea.vmem %s6612_s26, 128  ;;  %p8149_p13 = scmp.lt.s32.totalorder %s6612_s26, %s6612_s26 }
  0x70   :  { %357 = vmatpush1.bf16.msra.mxu0 %v7638_v15  ;;  %398 = vmatpush1.bf16.msra.mxu1 %v7639_v16  ;;  %v7675_v39 = vld [vmem:[#allocation7 + $0x2c4] ss:$16 sps:$4 sm:$0xff]   ;;  %v7676_v44 = vld [vmem:[#allocation7 + $0xa0] ss:$16 sps:$4 sm:$0xff]   ;;  %p8145_p12 = scmp.ne.s32.totalorder %s6612_s26, %s8144_s27  ;;  %p8150_p0 = scmp.lt.s32.totalorder %s8144_s27, %s8144_s27 }
  0x71   :  { %358 = vmatprep.subr.bf16.mxu0 %v7640_v17  ;;  %399 = vmatprep.subr.bf16.mxu1 %v7642_v18  ;;  %v7678_v42 = vld [vmem:[#allocation7 + $0xa4] ss:$16 sps:$4 sm:$0xff]   ;;  %v7679_v45 = vld [vmem:[#allocation7 + $0x2a0] ss:$16 sps:$4 sm:$0xff]  }
  0x72   :  { %v7681_v43 = vld [vmem:[#allocation7 + $0x2a4] ss:$16 sps:$4 sm:$0xff]   ;;  %v7682_v48 = vld [vmem:[#allocation7 + $0x80] ss:$16 sps:$4 sm:$0xff]   ;;  %p8151_p1 = por %p8150_p0, %p8149_p13 }
  0x73   :  { %v7684_v46 = vld [vmem:[#allocation7 + $0x84] ss:$16 sps:$4 sm:$0xff]   ;;  %v7685_v49 = vld [vmem:[#allocation7 + $0x280] ss:$16 sps:$4 sm:$0xff]  }
  0x74   :  { %359 = vmatpush1.bf16.msra.mxu0 %v7644_v19  ;;  %400 = vmatpush1.bf16.msra.mxu1 %v7645_v20  ;;  %v7687_v47 = vld [vmem:[#allocation7 + $0x284] ss:$16 sps:$4 sm:$0xff]   ;;  %v7688_v52 = vld [vmem:[#allocation7 + $0x60] ss:$16 sps:$4 sm:$0xff]   ;;  %p8152_p2 = pnand %p8151_p1, %p8145_p12 }
  0x75   :  { %360 = vmatprep.subr.bf16.mxu0 %v7646_v21  ;;  %401 = vmatprep.subr.bf16.mxu1 %v7648_v22  ;;  %v7690_v50 = vld [vmem:[#allocation7 + $0x64] ss:$16 sps:$4 sm:$0xff]   ;;  %v7691_v53 = vld [vmem:[#allocation7 + $0x260] ss:$16 sps:$4 sm:$0xff]  }
  0x76   :  { %v7693_v51 = vld [vmem:[#allocation7 + $0x264] ss:$16 sps:$4 sm:$0xff]   ;;  %v7694_v56 = vld [vmem:[#allocation7 + $0x40] ss:$16 sps:$4 sm:$0xff]  }
  0x77   :  { %v7696_v54 = vld [vmem:[#allocation7 + $0x44] ss:$16 sps:$4 sm:$0xff]   ;;  %v7697_v57 = vld [vmem:[#allocation7 + $0x240] ss:$16 sps:$4 sm:$0xff]  }
  0x78   :  { %361 = vmatpush1.bf16.msra.mxu0 %v7650_v23  ;;  %402 = vmatpush1.bf16.msra.mxu1 %v7651_v24  ;;  %v7699_v55 = vld [vmem:[#allocation7 + $0x244] ss:$16 sps:$4 sm:$0xff]   ;;  %v7700_v60 = vld [vmem:[#allocation7 + $0x20] ss:$16 sps:$4 sm:$0xff]  }
  0x79   :  { %362 = vmatprep.subr.bf16.mxu0 %v7652_v25  ;;  %403 = vmatprep.subr.bf16.mxu1 %v7654_v26  ;;  %v7702_v58 = vld [vmem:[#allocation7 + $0x24] ss:$16 sps:$4 sm:$0xff]   ;;  %v7703_v61 = vld [vmem:[#allocation7 + $0x220] ss:$16 sps:$4 sm:$0xff]  }
  0x7a   :  { %v7705_v59 = vld [vmem:[#allocation7 + $0x224] ss:$16 sps:$4 sm:$0xff]   ;;  %v7706_v0 = vld [vmem:[#allocation7] ss:$16 sps:$4 sm:$0xff]  }
  0x7b   :  { %v7708_v62 = vld [vmem:[#allocation7 + $0x4] ss:$16 sps:$4 sm:$0xff]   ;;  %v7709_v1 = vld [vmem:[#allocation7 + $0x200] ss:$16 sps:$4 sm:$0xff]  }
  0x7c   :  { %363 = vmatpush1.bf16.msra.mxu0 %v7656_v27  ;;  %404 = vmatpush1.bf16.msra.mxu1 %v7657_v28  ;;  %v7711_v63 = vld [vmem:[#allocation7 + $0x204] ss:$16 sps:$4 sm:$0xff]   ;;  %v7712_v4 = vld [vmem:[#allocation7 + $0x1e0] ss:$16 sps:$4 sm:$0xff]  }
  0x7d   :  { %364 = vmatprep.subr.bf16.mxu0 %v7658_v29  ;;  %405 = vmatprep.subr.bf16.mxu1 %v7660_v30  ;;  %v7714_v2 = vld [vmem:[#allocation7 + $0x1e4] ss:$16 sps:$4 sm:$0xff]   ;;  %v7715_v5 = vld [vmem:[#allocation7 + $0x3e0] ss:$16 sps:$4 sm:$0xff]  }
  0x7e   :  { %v7717_v3 = vld [vmem:[#allocation7 + $0x3e4] ss:$16 sps:$4 sm:$0xff]   ;;  %v7718_v8 = vld [vmem:[#allocation7 + $0x1c0] ss:$16 sps:$4 sm:$0xff]  }
  0x7f   :  { %v7720_v6 = vld [vmem:[#allocation7 + $0x1c4] ss:$16 sps:$4 sm:$0xff]   ;;  %v7721_v9 = vld [vmem:[#allocation7 + $0x3c0] ss:$16 sps:$4 sm:$0xff]  }
  0x80   :  { %365 = vmatpush1.bf16.msra.mxu0 %v7662_v31  ;;  %406 = vmatpush1.bf16.msra.mxu1 %v7663_v32  ;;  %v7723_v7 = vld [vmem:[#allocation7 + $0x3c4] ss:$16 sps:$4 sm:$0xff]   ;;  %v7724_v12 = vld [vmem:[#allocation7 + $0x1a0] ss:$16 sps:$4 sm:$0xff]  }
  0x81   :  { %1230 = vmatprep.subr.bf16.mxu0 %v7666_v33  ;;  %1271 = vmatprep.subr.bf16.mxu1 %v7669_v34  ;;  %v7726_v10 = vld [vmem:[#allocation7 + $0x1a4] ss:$16 sps:$4 sm:$0xff]   ;;  %v7727_v13 = vld [vmem:[#allocation7 + $0x3a0] ss:$16 sps:$4 sm:$0xff]   ;;  %v7762_v34 = vld [vmem:[#allocation7 + $0xec] ss:$16 sps:$4 sm:$0xff]  }
  0x82   :  { %v7729_v11 = vld [vmem:[#allocation7 + $0x3a4] ss:$16 sps:$4 sm:$0xff]   ;;  %v7730_v16 = vld [vmem:[#allocation7 + $0x180] ss:$16 sps:$4 sm:$0xff]  }
  0x83   :  { %383 = vmatmul.mubr.bf16.vlgmr.msra.gmra.mxu0 %v135_v35  ;;  %424 = vmatmul.mubr.bf16.vlgmr.msra.gmra.mxu1 %v135_v35  ;;  %v7732_v14 = vld [vmem:[#allocation7 + $0x184] ss:$16 sps:$4 sm:$0xff]   ;;  %v7733_v17 = vld [vmem:[#allocation7 + $0x380] ss:$16 sps:$4 sm:$0xff]   ;;  %v7765_v35 = vld [vmem:[#allocation7 + $0x2ec] ss:$16 sps:$4 sm:$0xff]  }
  0x84   :  { %1231 = vmatpush1.bf16.msra.mxu0 %v7664_v36  ;;  %1272 = vmatpush1.bf16.msra.mxu1 %v7667_v37  ;;  %v7735_v15 = vld [vmem:[#allocation7 + $0x384] ss:$16 sps:$4 sm:$0xff]   ;;  %v7736_v20 = vld [vmem:[#allocation7 + $0x160] ss:$16 sps:$4 sm:$0xff]   ;;  %v170_v36 = vlaneseq }
  0x85   :  { %1232 = vmatprep.subr.bf16.mxu0 %v7672_v38  ;;  %1273 = vmatprep.subr.bf16.mxu1 %v7675_v39  ;;  %v7738_v18 = vld [vmem:[#allocation7 + $0x164] ss:$16 sps:$4 sm:$0xff]   ;;  %v7739_v21 = vld [vmem:[#allocation7 + $0x360] ss:$16 sps:$4 sm:$0xff]  }
  0x86   :  { %v7741_v19 = vld [vmem:[#allocation7 + $0x364] ss:$16 sps:$4 sm:$0xff]   ;;  %v7742_v24 = vld [vmem:[#allocation7 + $0x140] ss:$16 sps:$4 sm:$0xff]   ;;  %v171_v37 = vshrl.u32 %v170_v36, 7 }
  0x87   :  { %v7744_v22 = vld [vmem:[#allocation7 + $0x144] ss:$16 sps:$4 sm:$0xff]   ;;  %v7745_v25 = vld [vmem:[#allocation7 + $0x340] ss:$16 sps:$4 sm:$0xff]   ;;  %v7811_v36 = vld [vmem:[#allocation7 + $0x3e8] ss:$16 sps:$4 sm:$0xff]  }
  0x88   :  { %1233 = vmatpush1.bf16.msra.mxu0 %v7670_v40  ;;  %1274 = vmatpush1.bf16.msra.mxu1 %v7673_v41  ;;  %v7747_v23 = vld [vmem:[#allocation7 + $0x344] ss:$16 sps:$4 sm:$0xff]   ;;  %v7748_v28 = vld [vmem:[#allocation7 + $0x120] ss:$16 sps:$4 sm:$0xff]   ;;  %v8268_v38 = vsub.s32 0, %v171_v37  ;;  %v8270_v39 = vsub.s32 2, %v171_v37 }
  0x89   :  { %1234 = vmatprep.subr.bf16.mxu0 %v7678_v42  ;;  %1275 = vmatprep.subr.bf16.mxu1 %v7681_v43  ;;  %v7750_v26 = vld [vmem:[#allocation7 + $0x124] ss:$16 sps:$4 sm:$0xff]   ;;  %v7751_v29 = vld [vmem:[#allocation7 + $0x320] ss:$16 sps:$4 sm:$0xff]   ;;  %v168_v40 = vld [vmem:[#allocation5] sm:$0xf] }
  0x8a   :  { %v7753_v27 = vld [vmem:[#allocation7 + $0x324] ss:$16 sps:$4 sm:$0xff]   ;;  %v7754_v32 = vld [vmem:[#allocation7 + $0x100] ss:$16 sps:$4 sm:$0xff]   ;;  %v8272_v41 = vsub.s32 1, %v171_v37  ;;  %v8274_v42 = vsub.s32 3, %v171_v37  ;;  %v173_v43 = vrot.slane %v168_v40, %v8268_v38 }
  0x8b   :  { %v7756_v30 = vld [vmem:[#allocation7 + $0x104] ss:$16 sps:$4 sm:$0xff]   ;;  %v7757_v33 = vld [vmem:[#allocation7 + $0x300] ss:$16 sps:$4 sm:$0xff]   ;;  %v7816_v37 = vld [vmem:[#allocation7 + $0x1cc] ss:$16 sps:$4 sm:$0xff]  }
  0x8c   :  { %1235 = vmatpush1.bf16.msra.mxu0 %v7676_v44  ;;  %1276 = vmatpush1.bf16.msra.mxu1 %v7679_v45  ;;  %v7759_v31 = vld [vmem:[#allocation7 + $0x304] ss:$16 sps:$4 sm:$0xff]   ;;  %v181_v44 = vrot.slane %v168_v40, %v8270_v39  ;;  %v177_v45 = vrot.slane %v168_v40, %v8272_v41 }
  0x8d   :  { %1236 = vmatprep.subr.bf16.mxu0 %v7684_v46  ;;  %1277 = vmatprep.subr.bf16.mxu1 %v7687_v47  ;;  %v185_v46 = vrot.slane %v168_v40, %v8274_v42  ;;  %v7819_v40 = vld [vmem:[#allocation7 + $0x3cc] ss:$16 sps:$4 sm:$0xff]  }
  0x90   :  { %1237 = vmatpush1.bf16.msra.mxu0 %v7682_v48  ;;  %1278 = vmatpush1.bf16.msra.mxu1 %v7685_v49 }
  0x91   :  { %1238 = vmatprep.subr.bf16.mxu0 %v7690_v50  ;;  %1279 = vmatprep.subr.bf16.mxu1 %v7693_v51 }
  0x94   :  { %1239 = vmatpush1.bf16.msra.mxu0 %v7688_v52  ;;  %1280 = vmatpush1.bf16.msra.mxu1 %v7691_v53 }
  0x95   :  { %1240 = vmatprep.subr.bf16.mxu0 %v7696_v54  ;;  %1281 = vmatprep.subr.bf16.mxu1 %v7699_v55 }
  0x98   :  { %1241 = vmatpush1.bf16.msra.mxu0 %v7694_v56  ;;  %1282 = vmatpush1.bf16.msra.mxu1 %v7697_v57 }
  0x99   :  { %1242 = vmatprep.subr.bf16.mxu0 %v7702_v58  ;;  %1283 = vmatprep.subr.bf16.mxu1 %v7705_v59 }
  0x9c   :  { %1243 = vmatpush1.bf16.msra.mxu0 %v7700_v60  ;;  %1284 = vmatpush1.bf16.msra.mxu1 %v7703_v61 }
  0x9d   :  { %1244 = vmatprep.subr.bf16.mxu0 %v7708_v62  ;;  %1285 = vmatprep.subr.bf16.mxu1 %v7711_v63 }
  0xa0   :  { %1245 = vmatpush1.bf16.msra.mxu0 %v7706_v0  ;;  %1286 = vmatpush1.bf16.msra.mxu1 %v7709_v1 }
  0xa1   :  { %1246 = vmatprep.subr.bf16.mxu0 %v7714_v2  ;;  %1287 = vmatprep.subr.bf16.mxu1 %v7717_v3  ;;  %v7760_v2 = vld [vmem:[#allocation7 + $0xe8] ss:$16 sps:$4 sm:$0xff]  }
  0xa2   :  { %v7763_v3 = vld [vmem:[#allocation7 + $0x2e8] ss:$16 sps:$4 sm:$0xff]  }
  0xa4   :  { %1247 = vmatpush2.bf16.msra.mxu0 %v7712_v4  ;;  %1288 = vmatpush2.bf16.msra.mxu1 %v7715_v5  ;;  %v7768_v5 = vld [vmem:[#allocation7 + $0xcc] ss:$16 sps:$4 sm:$0xff]  }
  0xa5   :  { %1248 = vmatprep.subr.bf16.mxu0 %v7720_v6  ;;  %1289 = vmatprep.subr.bf16.mxu1 %v7723_v7  ;;  %v7771_v6 = vld [vmem:[#allocation7 + $0x2cc] ss:$16 sps:$4 sm:$0xff]   ;;  %v7766_v7 = vld [vmem:[#allocation7 + $0xc8] ss:$16 sps:$4 sm:$0xff]  }
  0xa8   :  { %1249 = vmatpush2.bf16.msra.mxu0 %v7718_v8  ;;  %1290 = vmatpush2.bf16.msra.mxu1 %v7721_v9  ;;  %v7769_v8 = vld [vmem:[#allocation7 + $0x2c8] ss:$16 sps:$4 sm:$0xff]   ;;  %v7774_v9 = vld [vmem:[#allocation7 + $0xac] ss:$16 sps:$4 sm:$0xff]  }
  0xa9   :  { %1250 = vmatprep.subr.bf16.mxu0 %v7726_v10  ;;  %1291 = vmatprep.subr.bf16.mxu1 %v7729_v11  ;;  %v7777_v10 = vld [vmem:[#allocation7 + $0x2ac] ss:$16 sps:$4 sm:$0xff]   ;;  %v7772_v11 = vld [vmem:[#allocation7 + $0xa8] ss:$16 sps:$4 sm:$0xff]  }
  0xac   :  { %1251 = vmatpush2.bf16.msra.mxu0 %v7724_v12  ;;  %1292 = vmatpush2.bf16.msra.mxu1 %v7727_v13  ;;  %v7775_v12 = vld [vmem:[#allocation7 + $0x2a8] ss:$16 sps:$4 sm:$0xff]   ;;  %v7780_v13 = vld [vmem:[#allocation7 + $0x8c] ss:$16 sps:$4 sm:$0xff]  }
  0xad   :  { %1252 = vmatprep.subr.bf16.mxu0 %v7732_v14  ;;  %1293 = vmatprep.subr.bf16.mxu1 %v7735_v15  ;;  %v7783_v14 = vld [vmem:[#allocation7 + $0x28c] ss:$16 sps:$4 sm:$0xff]   ;;  %v7778_v15 = vld [vmem:[#allocation7 + $0x88] ss:$16 sps:$4 sm:$0xff]  }
  0xb0   :  { %1253 = vmatpush2.bf16.msra.mxu0 %v7730_v16  ;;  %1294 = vmatpush2.bf16.msra.mxu1 %v7733_v17  ;;  %v7781_v16 = vld [vmem:[#allocation7 + $0x288] ss:$16 sps:$4 sm:$0xff]   ;;  %v7786_v17 = vld [vmem:[#allocation7 + $0x6c] ss:$16 sps:$4 sm:$0xff]  }
  0xb1   :  { %1254 = vmatprep.subr.bf16.mxu0 %v7738_v18  ;;  %1295 = vmatprep.subr.bf16.mxu1 %v7741_v19  ;;  %v7789_v18 = vld [vmem:[#allocation7 + $0x26c] ss:$16 sps:$4 sm:$0xff]   ;;  %v7784_v19 = vld [vmem:[#allocation7 + $0x68] ss:$16 sps:$4 sm:$0xff]  }
  0xb4   :  { %1255 = vmatpush2.bf16.msra.mxu0 %v7736_v20  ;;  %1296 = vmatpush2.bf16.msra.mxu1 %v7739_v21  ;;  %v7787_v20 = vld [vmem:[#allocation7 + $0x268] ss:$16 sps:$4 sm:$0xff]   ;;  %v7792_v21 = vld [vmem:[#allocation7 + $0x4c] ss:$16 sps:$4 sm:$0xff]  }
  0xb5   :  { %1256 = vmatprep.subr.bf16.mxu0 %v7744_v22  ;;  %1297 = vmatprep.subr.bf16.mxu1 %v7747_v23  ;;  %v7795_v22 = vld [vmem:[#allocation7 + $0x24c] ss:$16 sps:$4 sm:$0xff]   ;;  %v7790_v23 = vld [vmem:[#allocation7 + $0x48] ss:$16 sps:$4 sm:$0xff]  }
  0xb8   :  { %1257 = vmatpush2.bf16.msra.mxu0 %v7742_v24  ;;  %1298 = vmatpush2.bf16.msra.mxu1 %v7745_v25  ;;  %v7793_v24 = vld [vmem:[#allocation7 + $0x248] ss:$16 sps:$4 sm:$0xff]   ;;  %v7798_v25 = vld [vmem:[#allocation7 + $0x2c] ss:$16 sps:$4 sm:$0xff]  }
  0xb9   :  { %1258 = vmatprep.subr.bf16.mxu0 %v7750_v26  ;;  %1299 = vmatprep.subr.bf16.mxu1 %v7753_v27  ;;  %v7801_v26 = vld [vmem:[#allocation7 + $0x22c] ss:$16 sps:$4 sm:$0xff]   ;;  %v7796_v27 = vld [vmem:[#allocation7 + $0x28] ss:$16 sps:$4 sm:$0xff]  }
  0xbc   :  { %1259 = vmatpush2.bf16.msra.mxu0 %v7748_v28  ;;  %1300 = vmatpush2.bf16.msra.mxu1 %v7751_v29  ;;  %v7799_v28 = vld [vmem:[#allocation7 + $0x228] ss:$16 sps:$4 sm:$0xff]   ;;  %v7804_v29 = vld [vmem:[#allocation7 + $0xc] ss:$16 sps:$4 sm:$0xff]  }
  0xbd   :  { %1260 = vmatprep.subr.bf16.mxu0 %v7756_v30  ;;  %1301 = vmatprep.subr.bf16.mxu1 %v7759_v31  ;;  %v7807_v30 = vld [vmem:[#allocation7 + $0x20c] ss:$16 sps:$4 sm:$0xff]   ;;  %v7802_v31 = vld [vmem:[#allocation7 + $0x8] ss:$16 sps:$4 sm:$0xff]  }
  0xc0   :  { %1261 = vmatpush2.bf16.msra.mxu0 %v7754_v32  ;;  %1302 = vmatpush2.bf16.msra.mxu1 %v7757_v33  ;;  %v7805_v32 = vld [vmem:[#allocation7 + $0x208] ss:$16 sps:$4 sm:$0xff]   ;;  %v7810_v33 = vld [vmem:[#allocation7 + $0x1ec] ss:$16 sps:$4 sm:$0xff]  }
  0xc1   :  { %1312 = vmatprep.subr.bf16.mxu0 %v7762_v34  ;;  %1353 = vmatprep.subr.bf16.mxu1 %v7765_v35  ;;  %v7813_v34 = vld [vmem:[#allocation7 + $0x3ec] ss:$16 sps:$4 sm:$0xff]   ;;  %v7808_v35 = vld [vmem:[#allocation7 + $0x1e8] ss:$16 sps:$4 sm:$0xff]  }
 0x143   :  { %v384_v47 = vpop.f32.mrf.mxu0  ;;  %v425_v48 = vpop.f32.mrf.mxu1 }
 0x144   :  { %v385_v49 = vadd.f32 %v384_v47, %v173_v43  ;;  %v426_v50 = vadd.f32 %v425_v48, %v181_v44  ;;  %v7814_v43 = vld [vmem:[#allocation7 + $0x1c8] ss:$16 sps:$4 sm:$0xff]  }
 0x145   :  { %v386_v51 = vpop.f32.mrf.mxu0  ;;  %v427_v52 = vpop.f32.mrf.mxu1  ;;  %v7817_v44 = vld [vmem:[#allocation7 + $0x3c8] ss:$16 sps:$4 sm:$0xff]  }
 0x146   :  { %v434_v53 = vmax.f32 %v426_v50, 0.0  ;;  %v387_v54 = vadd.f32 %v386_v51, %v177_v45  ;;  %v428_v55 = vadd.f32 %v427_v52, %v185_v46  ;;  %v432_v56 = vmax.f32 %v385_v49, 0.0  ;;  %v7822_v45 = vld [vmem:[#allocation7 + $0x1ac] ss:$16 sps:$4 sm:$0xff]   ;;  %v7820_v47 = vld [vmem:[#allocation7 + $0x1a8] ss:$16 sps:$4 sm:$0xff]  }
 0x147   :  { %v388_v57 = vpop.f32.mrf.mxu0  ;;  %v429_v58 = vpop.f32.mrf.mxu1  ;;  %v7825_v46 = vld [vmem:[#allocation7 + $0x3ac] ss:$16 sps:$4 sm:$0xff]   ;;  %v7823_v48 = vld [vmem:[#allocation7 + $0x3a8] ss:$16 sps:$4 sm:$0xff]  }
 0x148   :  { %v433_v59 = vmax.f32 %v387_v54, 0.0  ;;  %v435_v60 = vmax.f32 %v428_v55, 0.0  ;;  %v8280_v61 = vpack.c.bf16 %v434_v53, %v434_v53  ;;  %v8282_v4 = vpack.c.bf16 %v432_v56, %v432_v56  ;;  %v7828_v49 = vld [vmem:[#allocation7 + $0x18c] ss:$16 sps:$4 sm:$0xff]   ;;  %v7826_v51 = vld [vmem:[#allocation7 + $0x188] ss:$16 sps:$4 sm:$0xff]  }
 0x149   :  { %v389_v62 = vpop.f32.mrf.mxu0  ;;  %v430_v63 = vpop.f32.mrf.mxu1  ;;  %v7831_v50 = vld [vmem:[#allocation7 + $0x38c] ss:$16 sps:$4 sm:$0xff]   ;;  %v7829_v52 = vld [vmem:[#allocation7 + $0x388] ss:$16 sps:$4 sm:$0xff]  }
 0x14a   :  { %v437_v0 = vpack.c.bf16 %v433_v59, %v433_v59  ;;  %v439_v1 = vpack.c.bf16 %v435_v60, %v435_v60  ;;  %v7834_v53 = vld [vmem:[#allocation7 + $0x16c] ss:$16 sps:$4 sm:$0xff]   ;;  %v7832_v55 = vld [vmem:[#allocation7 + $0x168] ss:$16 sps:$4 sm:$0xff]  }
 0x14b   :  { %v7837_v54 = vld [vmem:[#allocation7 + $0x36c] ss:$16 sps:$4 sm:$0xff]   ;;  %v7835_v56 = vld [vmem:[#allocation7 + $0x368] ss:$16 sps:$4 sm:$0xff]  }
 0x14c   :  { %1262 = vmatprep.mubr.bf16.mxu0 %v437_v0  ;;  %1303 = vmatprep.mubr.bf16.mxu1 %v439_v1  ;;  %v7840_v57 = vld [vmem:[#allocation7 + $0x14c] ss:$16 sps:$4 sm:$0xff]   ;;  %v7838_v59 = vld [vmem:[#allocation7 + $0x148] ss:$16 sps:$4 sm:$0xff]  }
 0x14d   :  { %1263 = vmatmul.mubr.bf16.vlgmr.msra.gmra.mxu0 %v8282_v4  ;;  %1304 = vmatmul.mubr.bf16.vlgmr.msra.gmra.mxu1 %v8280_v61  ;;  %v7843_v58 = vld [vmem:[#allocation7 + $0x34c] ss:$16 sps:$4 sm:$0xff]   ;;  %v7841_v60 = vld [vmem:[#allocation7 + $0x348] ss:$16 sps:$4 sm:$0xff]  }
 0x14e   :  { %1313 = vmatpush1.bf16.msra.mxu0 %v7760_v2  ;;  %1354 = vmatpush1.bf16.msra.mxu1 %v7763_v3  ;;  %v7846_v62 = vld [vmem:[#allocation7 + $0x12c] ss:$16 sps:$4 sm:$0xff]  }
 0x14f   :  { %1344 = vmatprep.mubr.bf16.mxu0 %v437_v0  ;;  %1385 = vmatprep.mubr.bf16.mxu1 %v439_v1  ;;  %v7849_v63 = vld [vmem:[#allocation7 + $0x32c] ss:$16 sps:$4 sm:$0xff]   ;;  %v7844_v0 = vld [vmem:[#allocation7 + $0x128] ss:$16 sps:$4 sm:$0xff]  }
 0x150   :  { %1314 = vmatprep.subr.bf16.mxu0 %v7768_v5  ;;  %1355 = vmatprep.subr.bf16.mxu1 %v7771_v6  ;;  %v7847_v1 = vld [vmem:[#allocation7 + $0x328] ss:$16 sps:$4 sm:$0xff]   ;;  %v7852_v2 = vld [vmem:[#allocation7 + $0x10c] ss:$16 sps:$4 sm:$0xff]  }
 0x151   :  { %v7855_v3 = vld [vmem:[#allocation7 + $0x30c] ss:$16 sps:$4 sm:$0xff]   ;;  %v1430_v5 = vld [vmem:[#allocation10 + $0x380] sm:$0xff] }
 0x152   :  { %1315 = vmatpush1.bf16.msra.mxu0 %v7766_v7  ;;  %1356 = vmatpush1.bf16.msra.mxu1 %v7769_v8  ;;  %v1432_v6 = vld [vmem:[#allocation10 + $0x3c0] sm:$0xff] }
 0x153   :  { %1316 = vmatprep.subr.bf16.mxu0 %v7774_v9  ;;  %1357 = vmatprep.subr.bf16.mxu1 %v7777_v10  ;;  %v7850_v7 = vld [vmem:[#allocation7 + $0x108] ss:$16 sps:$4 sm:$0xff]   ;;  %v6813_v9 = vcombine.high %v1430_v5, %v1432_v6 }
 0x154   :  { %v7853_v8 = vld [vmem:[#allocation7 + $0x308] ss:$16 sps:$4 sm:$0xff]  }
 0x155   :  { %v1426_v10 = vld [vmem:[#allocation10 + $0x300] sm:$0xff] }
 0x156   :  { %1317 = vmatpush1.bf16.msra.mxu0 %v7772_v11  ;;  %1358 = vmatpush1.bf16.msra.mxu1 %v7775_v12  ;;  %v1428_v11 = vld [vmem:[#allocation10 + $0x340] sm:$0xff]  ;;  %v6812_v12 = vcombine.low %v1430_v5, %v1432_v6 }
 0x157   :  { %1318 = vmatprep.subr.bf16.mxu0 %v7780_v13  ;;  %1359 = vmatprep.subr.bf16.mxu1 %v7783_v14  ;;  %v6809_v13 = vcombine.high %v1426_v10, %v1428_v11  ;;  %v1422_v14 = vld [vmem:[#allocation10 + $0x280] sm:$0xff] }
 0x158   :  { %v1458_v5 = vld [vmem:[#allocation10 + $0x700] sm:$0xff] }
 0x159   :  { %v1460_v6 = vld [vmem:[#allocation10 + $0x740] sm:$0xff] }
 0x15a   :  { %1319 = vmatpush1.bf16.msra.mxu0 %v7778_v15  ;;  %1360 = vmatpush1.bf16.msra.mxu1 %v7781_v16  ;;  %v1424_v15 = vld [vmem:[#allocation10 + $0x2c0] sm:$0xff]  ;;  %v6808_v16 = vcombine.low %v1426_v10, %v1428_v11 }
 0x15b   :  { %1320 = vmatprep.subr.bf16.mxu0 %v7786_v17  ;;  %1361 = vmatprep.subr.bf16.mxu1 %v7789_v18  ;;  %v6805_v17 = vcombine.high %v1422_v14, %v1424_v15  ;;  %v1418_v18 = vld [vmem:[#allocation10 + $0x200] sm:$0xff] }
 0x15e   :  { %1321 = vmatpush1.bf16.msra.mxu0 %v7784_v19  ;;  %1362 = vmatpush1.bf16.msra.mxu1 %v7787_v20  ;;  %v1420_v19 = vld [vmem:[#allocation10 + $0x240] sm:$0xff]  ;;  %v6804_v20 = vcombine.low %v1422_v14, %v1424_v15 }
 0x15f   :  { %1322 = vmatprep.subr.bf16.mxu0 %v7792_v21  ;;  %1363 = vmatprep.subr.bf16.mxu1 %v7795_v22  ;;  %v6801_v21 = vcombine.high %v1418_v18, %v1420_v19  ;;  %v1414_v22 = vld [vmem:[#allocation10 + $0x180] sm:$0xff] }
 0x160   :  { %v1456_v14 = vld [vmem:[#allocation10 + $0x6c0] sm:$0xff] }
 0x161   :  { %v1470_v15 = vld [vmem:[#allocation10 + $0x880] sm:$0xff] }
 0x162   :  { %1323 = vmatpush1.bf16.msra.mxu0 %v7790_v23  ;;  %1364 = vmatpush1.bf16.msra.mxu1 %v7793_v24  ;;  %v1416_v23 = vld [vmem:[#allocation10 + $0x1c0] sm:$0xff] }
 0x163   :  { %1324 = vmatprep.subr.bf16.mxu0 %v7798_v25  ;;  %1365 = vmatprep.subr.bf16.mxu1 %v7801_v26  ;;  %v1494_v24 = vld [vmem:[#allocation10 + $0xb80] sm:$0xff]  ;;  %v6800_v26 = vcombine.low %v1418_v18, %v1420_v19 }
 0x164   :  { %v1496_v25 = vld [vmem:[#allocation10 + $0xbc0] sm:$0xff] }
 0x166   :  { %1325 = vmatpush1.bf16.msra.mxu0 %v7796_v27  ;;  %1366 = vmatpush1.bf16.msra.mxu1 %v7799_v28  ;;  %v6876_v27 = vcombine.low %v1494_v24, %v1496_v25  ;;  %v8288_v28 = vld [vmem:[#allocation10 + $0x388] sm:$0xff] }
 0x167   :  { %1326 = vmatprep.subr.bf16.mxu0 %v7804_v29  ;;  %1367 = vmatprep.subr.bf16.mxu1 %v7807_v30  ;;  %v6797_v29 = vcombine.high %v1414_v22, %v1416_v23  ;;  %v1410_v30 = vld [vmem:[#allocation10 + $0x100] sm:$0xff] }
 0x16a   :  { %1327 = vmatpush1.bf16.msra.mxu0 %v7802_v31  ;;  %1368 = vmatpush1.bf16.msra.mxu1 %v7805_v32  ;;  %v1412_v31 = vld [vmem:[#allocation10 + $0x140] sm:$0xff] }
 0x16b   :  { %1328 = vmatprep.subr.bf16.mxu0 %v7810_v33  ;;  %1369 = vmatprep.subr.bf16.mxu1 %v7813_v34  ;;  %v1490_v33 = vld [vmem:[#allocation10 + $0xb00] sm:$0xff] }
 0x16c   :  { %v1492_v34 = vld [vmem:[#allocation10 + $0xb40] sm:$0xff] }
 0x16e   :  { %1329 = vmatpush2.bf16.msra.mxu0 %v7808_v35  ;;  %1370 = vmatpush2.bf16.msra.mxu1 %v7811_v36  ;;  %v6796_v35 = vcombine.low %v1414_v22, %v1416_v23  ;;  %v6872_v36 = vcombine.low %v1490_v33, %v1492_v34  ;;  %v1452_v22 = vld [vmem:[#allocation10 + $0x640] sm:$0xff] }
 0x16f   :  { %1330 = vmatprep.subr.bf16.mxu0 %v7816_v37  ;;  %1371 = vmatprep.subr.bf16.mxu1 %v7819_v40  ;;  %v6873_v37 = vcombine.high %v1490_v33, %v1492_v34  ;;  %v6793_v40 = vcombine.high %v1410_v30, %v1412_v31  ;;  %v1466_v23 = vld [vmem:[#allocation10 + $0x800] sm:$0xff] }
 0x170   :  { %v1528_v33 = vld [vmem:[#allocation10 + $0xfc0] sm:$0xff] }
 0x172   :  { %1331 = vmatpush2.bf16.msra.mxu0 %v7814_v43  ;;  %1372 = vmatpush2.bf16.msra.mxu1 %v7817_v44  ;;  %v1406_v43 = vld [vmem:[#allocation10 + $0x80] sm:$0xff] }
 0x173   :  { %1332 = vmatprep.subr.bf16.mxu0 %v7822_v45  ;;  %1373 = vmatprep.subr.bf16.mxu1 %v7825_v46  ;;  %v1408_v44 = vld [vmem:[#allocation10 + $0xc0] sm:$0xff] }
 0x174   :  { %v1486_v45 = vld [vmem:[#allocation10 + $0xa80] sm:$0xff] }
 0x175   :  { %v1488_v46 = vld [vmem:[#allocation10 + $0xac0] sm:$0xff] }
 0x176   :  { %1333 = vmatpush2.bf16.msra.mxu0 %v7820_v47  ;;  %1374 = vmatpush2.bf16.msra.mxu1 %v7823_v48  ;;  %v6792_v47 = vcombine.low %v1410_v30, %v1412_v31  ;;  %v6868_v48 = vcombine.low %v1486_v45, %v1488_v46  ;;  %v1448_v30 = vld [vmem:[#allocation10 + $0x5c0] sm:$0xff] }
 0x177   :  { %1334 = vmatprep.subr.bf16.mxu0 %v7828_v49  ;;  %1375 = vmatprep.subr.bf16.mxu1 %v7831_v50  ;;  %v6869_v49 = vcombine.high %v1486_v45, %v1488_v46  ;;  %v6789_v50 = vcombine.high %v1406_v43, %v1408_v44  ;;  %v1526_v31 = vld [vmem:[#allocation10 + $0xf80] sm:$0xff] }
 0x178   :  { %v1524_v45 = vld [vmem:[#allocation10 + $0xf40] sm:$0xff] }
 0x17a   :  { %1335 = vmatpush2.bf16.msra.mxu0 %v7826_v51  ;;  %1376 = vmatpush2.bf16.msra.mxu1 %v7829_v52  ;;  %v1402_v51 = vld [vmem:[#allocation10] sm:$0xff] }
 0x17b   :  { %1336 = vmatprep.subr.bf16.mxu0 %v7834_v53  ;;  %1377 = vmatprep.subr.bf16.mxu1 %v7837_v54  ;;  %v1404_v52 = vld [vmem:[#allocation10 + $0x40] sm:$0xff] }
 0x17c   :  { %v1482_v53 = vld [vmem:[#allocation10 + $0xa00] sm:$0xff] }
 0x17d   :  { %v1484_v54 = vld [vmem:[#allocation10 + $0xa40] sm:$0xff] }
 0x17e   :  { %1337 = vmatpush2.bf16.msra.mxu0 %v7832_v55  ;;  %1378 = vmatpush2.bf16.msra.mxu1 %v7835_v56  ;;  %v6788_v55 = vcombine.low %v1406_v43, %v1408_v44  ;;  %v6864_v56 = vcombine.low %v1482_v53, %v1484_v54  ;;  %v1444_v43 = vld [vmem:[#allocation10 + $0x540] sm:$0xff] }
 0x17f   :  { %1338 = vmatprep.subr.bf16.mxu0 %v7840_v57  ;;  %1379 = vmatprep.subr.bf16.mxu1 %v7843_v58  ;;  %v6865_v57 = vcombine.high %v1482_v53, %v1484_v54  ;;  %v6785_v58 = vcombine.high %v1402_v51, %v1404_v52  ;;  %v1522_v44 = vld [vmem:[#allocation10 + $0xf00] sm:$0xff] }
 0x180   :  { %v1520_v53 = vld [vmem:[#allocation10 + $0xec0] sm:$0xff] }
 0x182   :  { %1339 = vmatpush2.bf16.msra.mxu0 %v7838_v59  ;;  %1380 = vmatpush2.bf16.msra.mxu1 %v7841_v60  ;;  %v1462_v59 = vld [vmem:[#allocation10 + $0x780] sm:$0xff] }
 0x183   :  { %1340 = vmatprep.subr.bf16.mxu0 %v7846_v62  ;;  %1381 = vmatprep.subr.bf16.mxu1 %v7849_v63  ;;  %v1464_v60 = vld [vmem:[#allocation10 + $0x7c0] sm:$0xff] }
 0x184   :  { %v1478_v62 = vld [vmem:[#allocation10 + $0x980] sm:$0xff] }
 0x185   :  { %v1480_v63 = vld [vmem:[#allocation10 + $0x9c0] sm:$0xff] }
 0x186   :  { %1341 = vmatpush2.bf16.msra.mxu0 %v7844_v0  ;;  %1382 = vmatpush2.bf16.msra.mxu1 %v7847_v1  ;;  %v6784_v0 = vcombine.low %v1402_v51, %v1404_v52  ;;  %v6860_v1 = vcombine.low %v1478_v62, %v1480_v63  ;;  %v1440_v51 = vld [vmem:[#allocation10 + $0x4c0] sm:$0xff] }
 0x187   :  { %1342 = vmatprep.subr.bf16.mxu0 %v7852_v2  ;;  %1383 = vmatprep.subr.bf16.mxu1 %v7855_v3  ;;  %v6861_v2 = vcombine.high %v1478_v62, %v1480_v63  ;;  %v6845_v3 = vcombine.high %v1462_v59, %v1464_v60  ;;  %v1518_v52 = vld [vmem:[#allocation10 + $0xe80] sm:$0xff] }
 0x188   :  { %v1516_v62 = vld [vmem:[#allocation10 + $0xe40] sm:$0xff] }
 0x18a   :  { %1343 = vmatpush2.bf16.msra.mxu0 %v7850_v7  ;;  %1384 = vmatpush2.bf16.msra.mxu1 %v7853_v8  ;;  %v1474_v7 = vld [vmem:[#allocation10 + $0x900] sm:$0xff] }
 0x18b   :  { %2192 = vmatprep.subr.bf16.mxu0 %v6813_v9  ;;  %v1476_v8 = vld [vmem:[#allocation10 + $0x940] sm:$0xff]  ;;  %v6844_v9 = vcombine.low %v1462_v59, %v1464_v60 }
 0x18c   :  { %v6856_v10 = vcombine.low %v1474_v7, %v1476_v8  ;;  %v6857_v11 = vcombine.high %v1474_v7, %v1476_v8  ;;  %v1436_v59 = vld [vmem:[#allocation10 + $0x440] sm:$0xff] }
 0x18d   :  { %1345 = vmatmul.mubr.bf16.vlgmr.msra.gmra.mxu0 %v8282_v4  ;;  %1386 = vmatmul.mubr.bf16.vlgmr.msra.gmra.mxu1 %v8280_v61  ;;  %v6877_v4 = vcombine.high %v1494_v24, %v1496_v25  ;;  %v8290_v61 = vld [vmem:[#allocation10 + $0x3c8] sm:$0xff]  ;;  %v1468_v24 = vld [vmem:[#allocation10 + $0x840] sm:$0xff] }
 0x18e   :  { %2193 = vmatpush1.bf16.msra.mxu0 %v6812_v12  ;;  %v6814_v32 = vcombine.low %v8288_v28, %v8290_v61  ;;  %v6841_v12 = vcombine.high %v1458_v5, %v1460_v6  ;;  %v1514_v60 = vld [vmem:[#allocation10 + $0xe00] sm:$0xff] }
 0x18f   :  { %2194 = vmatprep.subr.bf16.mxu0 %v6809_v13  ;;  %2233 = vmatprep.subr.bf16.mxu1 %v6877_v4  ;;  %v1454_v13 = vld [vmem:[#allocation10 + $0x680] sm:$0xff] }
 0x190   :  { %2234 = vmatpush1.bf16.msra.mxu1 %v6876_v27  ;;  %v6836_v25 = vcombine.low %v1454_v13, %v1456_v14  ;;  %v6849_v27 = vcombine.high %v1466_v23, %v1468_v24 }
 0x191   :  { %2235 = vmatprep.subr.bf16.mxu1 %v6873_v37 }
 0x192   :  { %2195 = vmatpush1.bf16.msra.mxu0 %v6808_v16  ;;  %v1472_v16 = vld [vmem:[#allocation10 + $0x8c0] sm:$0xff] }
 0x193   :  { %2196 = vmatprep.subr.bf16.mxu0 %v6805_v17  ;;  %v6840_v17 = vcombine.low %v1458_v5, %v1460_v6  ;;  %v6852_v18 = vcombine.low %v1470_v15, %v1472_v16  ;;  %v6853_v19 = vcombine.high %v1470_v15, %v1472_v16  ;;  %v1512_v5 = vld [vmem:[#allocation10 + $0xdc0] sm:$0xff] }
 0x194   :  { %2236 = vmatpush1.bf16.msra.mxu1 %v6872_v36  ;;  %v6909_v36 = vcombine.high %v1526_v31, %v1528_v33  ;;  %v1504_v15 = vld [vmem:[#allocation10 + $0xcc0] sm:$0xff] }
 0x195   :  { %2237 = vmatprep.subr.bf16.mxu1 %v6869_v49 }
 0x196   :  { %2197 = vmatpush1.bf16.msra.mxu0 %v6804_v20  ;;  %v6837_v20 = vcombine.high %v1454_v13, %v1456_v14  ;;  %v1502_v14 = vld [vmem:[#allocation10 + $0xc80] sm:$0xff] }
 0x197   :  { %2198 = vmatprep.subr.bf16.mxu0 %v6801_v21  ;;  %v1450_v21 = vld [vmem:[#allocation10 + $0x600] sm:$0xff]  ;;  %v6885_v16 = vcombine.high %v1502_v14, %v1504_v15 }
 0x198   :  { %2238 = vmatpush1.bf16.msra.mxu1 %v6868_v48  ;;  %v6833_v4 = vcombine.high %v1450_v21, %v1452_v22  ;;  %v6832_v34 = vcombine.low %v1450_v21, %v1452_v22  ;;  %v6905_v48 = vcombine.high %v1522_v44, %v1524_v45  ;;  %v8296_v22 = vld [vmem:[#allocation10 + $0xb88] sm:$0xff] }
 0x199   :  { %2239 = vmatprep.subr.bf16.mxu1 %v6865_v57 }
 0x19a   :  { %2199 = vmatpush1.bf16.msra.mxu0 %v6800_v26  ;;  %v6848_v26 = vcombine.low %v1466_v23, %v1468_v24  ;;  %v8298_v23 = vld [vmem:[#allocation10 + $0xbc8] sm:$0xff] }
 0x19b   :  { %2200 = vmatprep.subr.bf16.mxu0 %v6797_v29  ;;  %v1446_v29 = vld [vmem:[#allocation10 + $0x580] sm:$0xff]  ;;  %v6879_v24 = vcombine.high %v8296_v22, %v8298_v23 }
 0x19c   :  { %2240 = vmatpush1.bf16.msra.mxu1 %v6864_v56  ;;  %v6829_v37 = vcombine.high %v1446_v29, %v1448_v30  ;;  %v6828_v46 = vcombine.low %v1446_v29, %v1448_v30  ;;  %v6901_v56 = vcombine.high %v1518_v52, %v1520_v53 }
 0x19d   :  { %2241 = vmatprep.subr.bf16.mxu1 %v6861_v2 }
 0x19e   :  { %2201 = vmatpush1.bf16.msra.mxu0 %v6796_v35  ;;  %v6908_v35 = vcombine.low %v1526_v31, %v1528_v33 }
 0x19f   :  { %2202 = vmatprep.subr.bf16.mxu0 %v6793_v40  ;;  %v1442_v40 = vld [vmem:[#allocation10 + $0x500] sm:$0xff] }
 0x1a0   :  { %2242 = vmatpush1.bf16.msra.mxu1 %v6860_v1  ;;  %v6825_v49 = vcombine.high %v1442_v40, %v1444_v43  ;;  %v6824_v54 = vcombine.low %v1442_v40, %v1444_v43  ;;  %v6897_v1 = vcombine.high %v1514_v60, %v1516_v62 }
 0x1a1   :  { %2243 = vmatprep.subr.bf16.mxu1 %v6857_v11  ;;  %v1508_v11 = vld [vmem:[#allocation10 + $0xd40] sm:$0xff] }
 0x1a2   :  { %2203 = vmatpush1.bf16.msra.mxu0 %v6792_v47  ;;  %v6904_v47 = vcombine.low %v1522_v44, %v1524_v45 }
 0x1a3   :  { %2204 = vmatprep.subr.bf16.mxu0 %v6789_v50  ;;  %v1438_v50 = vld [vmem:[#allocation10 + $0x480] sm:$0xff] }
 0x1a4   :  { %2244 = vmatpush1.bf16.msra.mxu1 %v6856_v10  ;;  %v6821_v57 = vcombine.high %v1438_v50, %v1440_v51  ;;  %v6820_v63 = vcombine.low %v1438_v50, %v1440_v51  ;;  %v1506_v10 = vld [vmem:[#allocation10 + $0xd00] sm:$0xff] }
 0x1a5   :  { %2245 = vmatprep.subr.bf16.mxu1 %v6853_v19  ;;  %v6889_v13 = vcombine.high %v1506_v10, %v1508_v11  ;;  %v1500_v19 = vld [vmem:[#allocation10 + $0xc40] sm:$0xff] }
 0x1a6   :  { %2205 = vmatpush1.bf16.msra.mxu0 %v6788_v55  ;;  %v6900_v55 = vcombine.low %v1518_v52, %v1520_v53  ;;  %v1423_v53 = vld [vmem:[#allocation10 + $0x288] sm:$0xff] }
 0x1a7   :  { %2206 = vmatprep.subr.bf16.mxu0 %v6785_v58  ;;  %v1434_v58 = vld [vmem:[#allocation10 + $0x400] sm:$0xff] }
 0x1a8   :  { %2246 = vmatpush1.bf16.msra.mxu1 %v6852_v18  ;;  %v6817_v2 = vcombine.high %v1434_v58, %v1436_v59  ;;  %v6816_v6 = vcombine.low %v1434_v58, %v1436_v59  ;;  %v1498_v18 = vld [vmem:[#allocation10 + $0xc00] sm:$0xff]  ;;  %v1421_v58 = vld [vmem:[#allocation10 + $0x248] sm:$0xff] }
 0x1a9   :  { %2247 = vmatprep.subr.bf16.mxu1 %v6849_v27  ;;  %v6880_v21 = vcombine.low %v1498_v18, %v1500_v19 }
 0x1aa   :  { %2207 = vmatpush1.bf16.msra.mxu0 %v6784_v0  ;;  %v6896_v0 = vcombine.low %v1514_v60, %v1516_v62  ;;  %v1415_v62 = vld [vmem:[#allocation10 + $0x188] sm:$0xff] }
 0x1ab   :  { %2208 = vmatprep.subr.bf16.mxu0 %v6845_v3  ;;  %v1510_v3 = vld [vmem:[#allocation10 + $0xd80] sm:$0xff] }
 0x1ac   :  { %2248 = vmatpush1.bf16.msra.mxu1 %v6848_v26  ;;  %v6892_v7 = vcombine.low %v1510_v3, %v1512_v5  ;;  %v6893_v8 = vcombine.high %v1510_v3, %v1512_v5  ;;  %v8304_v26 = vld [vmem:[#allocation8] sm:$0xf]  ;;  %v1407_v3 = vld [vmem:[#allocation10 + $0x88] sm:$0xff] }
 0x1ad   :  { %2249 = vmatprep.subr.bf16.mxu1 %v6909_v36  ;;  %v573_v27 = vrot.slane %v8304_v26, %v8268_v38  ;;  %v1409_v5 = vld [vmem:[#allocation10 + $0xc8] sm:$0xff] }
 0x1ae   :  { %2209 = vmatpush2.bf16.msra.mxu0 %v6844_v9  ;;  %v6815_v9 = vcombine.high %v8288_v28, %v8290_v61  ;;  %v1413_v28 = vld [vmem:[#allocation10 + $0x148] sm:$0xff] }
 0x1af   :  { %2210 = vmatprep.subr.bf16.mxu0 %v6841_v12  ;;  %v6888_v12 = vcombine.low %v1506_v10, %v1508_v11  ;;  %v6790_v10 = vcombine.low %v1407_v3, %v1409_v5 }
 0x1b0   :  { %2250 = vmatpush2.bf16.msra.mxu1 %v6908_v35 }
 0x1b1   :  { %2251 = vmatprep.subr.bf16.mxu1 %v6905_v48  ;;  %v1427_v48 = vld [vmem:[#allocation10 + $0x308] sm:$0xff] }
 0x1b2   :  { %2211 = vmatpush2.bf16.msra.mxu0 %v6840_v17  ;;  %v6884_v17 = vcombine.low %v1502_v14, %v1504_v15 }
 0x1b3   :  { %2212 = vmatprep.subr.bf16.mxu0 %v6837_v20  ;;  %v6881_v20 = vcombine.high %v1498_v18, %v1500_v19 }
 0x1b4   :  { %2252 = vmatpush2.bf16.msra.mxu1 %v6904_v47 }
 0x1b5   :  { %2253 = vmatprep.subr.bf16.mxu1 %v6901_v56 }
 0x1b6   :  { %2213 = vmatpush2.bf16.msra.mxu0 %v6836_v25  ;;  %v6878_v25 = vcombine.low %v8296_v22, %v8298_v23 }
 0x1b7   :  { %2214 = vmatprep.subr.bf16.mxu0 %v6833_v4  ;;  %v577_v4 = vrot.slane %v8304_v26, %v8272_v41 }
 0x1b8   :  { %2254 = vmatpush2.bf16.msra.mxu1 %v6900_v55 }
 0x1b9   :  { %2255 = vmatprep.subr.bf16.mxu1 %v6897_v1 }
 0x1ba   :  { %2215 = vmatpush2.bf16.msra.mxu0 %v6832_v34 }
 0x1bb   :  { %2216 = vmatprep.subr.bf16.mxu0 %v6829_v37 }
 0x1bc   :  { %2256 = vmatpush2.bf16.msra.mxu1 %v6896_v0 }
 0x1bd   :  { %2257 = vmatprep.subr.bf16.mxu1 %v6893_v8  ;;  %v1403_v8 = vld [vmem:[#allocation10 + $0x8] sm:$0xff] }
 0x1be   :  { %2217 = vmatpush2.bf16.msra.mxu0 %v6828_v46 }
 0x1bf   :  { %2218 = vmatprep.subr.bf16.mxu0 %v6825_v49  ;;  %v1429_v49 = vld [vmem:[#allocation10 + $0x348] sm:$0xff] }
 0x1c0   :  { %2258 = vmatpush2.bf16.msra.mxu1 %v6892_v7  ;;  %v6811_v52 = vcombine.high %v1427_v48, %v1429_v49  ;;  %v6810_v55 = vcombine.low %v1427_v48, %v1429_v49  ;;  %v6791_v7 = vcombine.high %v1407_v3, %v1409_v5 }
 0x1c1   :  { %2259 = vmatprep.subr.bf16.mxu1 %v6889_v13  ;;  %v1465_v13 = vld [vmem:[#allocation10 + $0x7c8] sm:$0xff] }
 0x1c2   :  { %2219 = vmatpush2.bf16.msra.mxu0 %v6824_v54  ;;  %v1425_v54 = vld [vmem:[#allocation10 + $0x2c8] sm:$0xff] }
 0x1c3   :  { %2220 = vmatprep.subr.bf16.mxu0 %v6821_v57  ;;  %v6807_v56 = vcombine.high %v1423_v53, %v1425_v54  ;;  %v1419_v57 = vld [vmem:[#allocation10 + $0x208] sm:$0xff]  ;;  %v6806_v59 = vcombine.low %v1423_v53, %v1425_v54 }
 0x1c4   :  { %2260 = vmatpush2.bf16.msra.mxu1 %v6888_v12  ;;  %v6803_v60 = vcombine.high %v1419_v57, %v1421_v58  ;;  %v6802_v0 = vcombine.low %v1419_v57, %v1421_v58  ;;  %v1463_v12 = vld [vmem:[#allocation10 + $0x788] sm:$0xff] }
 0x1c5   :  { %2261 = vmatprep.subr.bf16.mxu1 %v6885_v16  ;;  %v6847_v15 = vcombine.high %v1463_v12, %v1465_v13  ;;  %v1459_v16 = vld [vmem:[#allocation10 + $0x708] sm:$0xff]  ;;  %v6846_v18 = vcombine.low %v1463_v12, %v1465_v13  ;;  %v2454_v12 = vld [vmem:[#allocation10 + $0x350] sm:$0xff] }
 0x1c6   :  { %2221 = vmatpush2.bf16.msra.mxu0 %v6820_v63  ;;  %v1417_v63 = vld [vmem:[#allocation10 + $0x1c8] sm:$0xff] }
 0x1c7   :  { %2222 = vmatprep.subr.bf16.mxu0 %v6817_v2  ;;  %v6799_v1 = vcombine.high %v1415_v62, %v1417_v63  ;;  %v1411_v2 = vld [vmem:[#allocation10 + $0x108] sm:$0xff]  ;;  %v6798_v61 = vcombine.low %v1415_v62, %v1417_v63 }
 0x1c8   :  { %2262 = vmatpush2.bf16.msra.mxu1 %v6884_v17  ;;  %v1461_v17 = vld [vmem:[#allocation10 + $0x748] sm:$0xff] }
 0x1c9   :  { %2263 = vmatprep.subr.bf16.mxu1 %v6881_v20  ;;  %v6843_v19 = vcombine.high %v1459_v16, %v1461_v17  ;;  %v1455_v20 = vld [vmem:[#allocation10 + $0x688] sm:$0xff] }
 0x1ca   :  { %2223 = vmatpush2.bf16.msra.mxu0 %v6816_v6  ;;  %v6794_v6 = vcombine.low %v1411_v2, %v1413_v28  ;;  %v1435_v53 = vld [vmem:[#allocation10 + $0x408] sm:$0xff] }
 0x1cb   :  { %2274 = vmatprep.subr.bf16.mxu0 %v6815_v9  ;;  %v1405_v9 = vld [vmem:[#allocation10 + $0x48] sm:$0xff] }
 0x1cc   :  { %2264 = vmatpush2.bf16.msra.mxu1 %v6880_v21  ;;  %v6787_v11 = vcombine.high %v1403_v8, %v1405_v9  ;;  %v6786_v14 = vcombine.low %v1403_v8, %v1405_v9  ;;  %v1457_v21 = vld [vmem:[#allocation10 + $0x6c8] sm:$0xff] }
 0x1cd   :  { %2315 = vmatprep.subr.bf16.mxu1 %v6879_v24  ;;  %v6842_v24 = vcombine.low %v1459_v16, %v1461_v17  ;;  %v1437_v54 = vld [vmem:[#allocation10 + $0x448] sm:$0xff] }
 0x1ce   :  { %v6819_v62 = vcombine.high %v1435_v53, %v1437_v54  ;;  %v1491_v9 = vld [vmem:[#allocation10 + $0xb08] sm:$0xff] }
 0x20d   :  { %v1264_v29 = vpop.f32.mrf.mxu0  ;;  %v1305_v30 = vpop.f32.mrf.mxu1 }
 0x20e   :  { %v1265_v31 = vadd.f32 %v1264_v29, %v573_v27  ;;  %v6839_v27 = vcombine.high %v1455_v20, %v1457_v21  ;;  %v1453_v29 = vld [vmem:[#allocation10 + $0x648] sm:$0xff] }
 0x20f   :  { %v1266_v33 = vpop.f32.mrf.mxu0  ;;  %v1307_v34 = vpop.f32.mrf.mxu1 }
 0x210   :  { %v1306_v35 = vadd.f32 %v1305_v30, %v1265_v31  ;;  %v1267_v36 = vadd.f32 %v1266_v33, %v577_v4  ;;  %v1451_v4 = vld [vmem:[#allocation10 + $0x608] sm:$0xff]  ;;  %v6838_v30 = vcombine.low %v1455_v20, %v1457_v21  ;;  %v2448_v20 = vld [vmem:[#allocation10 + $0x290] sm:$0xff] }
 0x211   :  { %v1268_v37 = vpop.f32.mrf.mxu0  ;;  %v1309_v40 = vpop.f32.mrf.mxu1  ;;  %v6835_v31 = vcombine.high %v1451_v4, %v1453_v29  ;;  %v1447_v33 = vld [vmem:[#allocation10 + $0x588] sm:$0xff]  ;;  %v2450_v21 = vld [vmem:[#allocation10 + $0x2d0] sm:$0xff] }
 0x212   :  { %v1308_v43 = vadd.f32 %v1307_v34, %v1267_v36  ;;  %v1394_v44 = vmax.f32 %v1306_v35, 0.0  ;;  %v1449_v34 = vld [vmem:[#allocation10 + $0x5c8] sm:$0xff]  ;;  %v6834_v35 = vcombine.low %v1451_v4, %v1453_v29  ;;  %v6933_v29 = vcombine.high %v2448_v20, %v2450_v21 }
 0x213   :  { %v1269_v45 = vpop.f32.mrf.mxu0  ;;  %v1310_v46 = vpop.f32.mrf.mxu1  ;;  %v6831_v36 = vcombine.high %v1447_v33, %v1449_v34  ;;  %v1443_v37 = vld [vmem:[#allocation10 + $0x508] sm:$0xff]  ;;  %v6932_v22 = vcombine.low %v2448_v20, %v2450_v21  ;;  %v2484_v20 = vld [vmem:[#allocation10 + $0x710] sm:$0xff] }
 0x214   :  { %v1395_v47 = vmax.f32 %v1308_v43, 0.0  ;;  %v8312_v51 = vpack.c.bf16 %v1394_v44, %v1394_v44  ;;  %v1445_v40 = vld [vmem:[#allocation10 + $0x548] sm:$0xff]  ;;  %v6830_v43 = vcombine.low %v1447_v33, %v1449_v34  ;;  %v2444_v33 = vld [vmem:[#allocation10 + $0x210] sm:$0xff] }
 0x215   :  { %v6827_v44 = vcombine.high %v1443_v37, %v1445_v40  ;;  %v1439_v45 = vld [vmem:[#allocation10 + $0x488] sm:$0xff]  ;;  %v6826_v48 = vcombine.low %v1443_v37, %v1445_v40  ;;  %v2446_v34 = vld [vmem:[#allocation10 + $0x250] sm:$0xff] }
 0x216   :  { %v8310_v50 = vpack.c.bf16 %v1395_v47, %v1395_v47  ;;  %v1441_v46 = vld [vmem:[#allocation10 + $0x4c8] sm:$0xff]  ;;  %v581_v47 = vrot.slane %v8304_v26, %v8270_v39  ;;  %v2440_v40 = vld [vmem:[#allocation10 + $0x190] sm:$0xff] }
 0x217   :  { %v6823_v49 = vcombine.high %v1439_v45, %v1441_v46  ;;  %v6822_v58 = vcombine.low %v1439_v45, %v1441_v46  ;;  %v1481_v37 = vld [vmem:[#allocation10 + $0x9c8] sm:$0xff]  ;;  %v6928_v45 = vcombine.low %v2444_v33, %v2446_v34  ;;  %v2486_v21 = vld [vmem:[#allocation10 + $0x750] sm:$0xff] }
 0x218   :  { %2224 = vmatprep.mubr.bf16.mxu0 %v8310_v50 }
 0x219   :  { %2225 = vmatmul.mubr.bf16.vlgmr.msra.gmra.mxu0 %v8312_v51 }
 0x21a   :  { %2275 = vmatpush1.bf16.msra.mxu0 %v6814_v32  ;;  %2306 = vmatprep.mubr.bf16.mxu0 %v8310_v50  ;;  %v6795_v32 = vcombine.high %v1411_v2, %v1413_v28  ;;  %v2458_v2 = vld [vmem:[#allocation10 + $0x3d0] sm:$0xff] }
 0x21b   :  { %2276 = vmatprep.subr.bf16.mxu0 %v6811_v52  ;;  %v585_v52 = vrot.slane %v8304_v26, %v8274_v42  ;;  %v6818_v26 = vcombine.low %v1435_v53, %v1437_v54  ;;  %v2438_v53 = vld [vmem:[#allocation10 + $0x150] sm:$0xff] }
 0x21e   :  { %2277 = vmatpush1.bf16.msra.mxu0 %v6810_v55 }
 0x21f   :  { %2278 = vmatprep.subr.bf16.mxu0 %v6807_v56 }
 0x222   :  { %2279 = vmatpush1.bf16.msra.mxu0 %v6806_v59 }
 0x223   :  { %2280 = vmatprep.subr.bf16.mxu0 %v6803_v60 }
 0x226   :  { %2281 = vmatpush1.bf16.msra.mxu0 %v6802_v0 }
 0x227   :  { %2282 = vmatprep.subr.bf16.mxu0 %v6799_v1  ;;  %v2456_v1 = vld [vmem:[#allocation10 + $0x390] sm:$0xff] }
 0x22a   :  { %2283 = vmatpush1.bf16.msra.mxu0 %v6798_v61 }
 0x22b   :  { %2284 = vmatprep.subr.bf16.mxu0 %v6795_v32 }
 0x22e   :  { %2285 = vmatpush1.bf16.msra.mxu0 %v6794_v6 }
 0x22f   :  { %2286 = vmatprep.subr.bf16.mxu0 %v6791_v7  ;;  %v6941_v7 = vcombine.high %v2456_v1, %v2458_v2 }
 0x232   :  { %2287 = vmatpush1.bf16.msra.mxu0 %v6790_v10  ;;  %v1493_v10 = vld [vmem:[#allocation10 + $0xb48] sm:$0xff] }
 0x233   :  { %2288 = vmatprep.subr.bf16.mxu0 %v6787_v11  ;;  %v2452_v11 = vld [vmem:[#allocation10 + $0x310] sm:$0xff]  ;;  %v6875_v16 = vcombine.high %v1491_v9, %v1493_v10 }
 0x234   :  { %v6937_v17 = vcombine.high %v2452_v11, %v2454_v12 }
 0x236   :  { %2289 = vmatpush1.bf16.msra.mxu0 %v6786_v14 }
 0x237   :  { %2290 = vmatprep.subr.bf16.mxu0 %v6847_v15  ;;  %v6940_v15 = vcombine.low %v2456_v1, %v2458_v2 }
 0x23a   :  { %2291 = vmatpush2.bf16.msra.mxu0 %v6846_v18  ;;  %v1487_v18 = vld [vmem:[#allocation10 + $0xa88] sm:$0xff] }
 0x23b   :  { %2292 = vmatprep.subr.bf16.mxu0 %v6843_v19  ;;  %v1489_v19 = vld [vmem:[#allocation10 + $0xac8] sm:$0xff] }
 0x23c   :  { %v6871_v4 = vcombine.high %v1487_v18, %v1489_v19 }
 0x23e   :  { %2293 = vmatpush2.bf16.msra.mxu0 %v6842_v24  ;;  %v6874_v24 = vcombine.low %v1491_v9, %v1493_v10  ;;  %v1529_v9 = vld [vmem:[#allocation10 + $0xfc8] sm:$0xff]  ;;  %v2488_v10 = vld [vmem:[#allocation10 + $0x790] sm:$0xff] }
 0x23f   :  { %2294 = vmatprep.subr.bf16.mxu0 %v6839_v27  ;;  %v6936_v27 = vcombine.low %v2452_v11, %v2454_v12  ;;  %v2490_v11 = vld [vmem:[#allocation10 + $0x7d0] sm:$0xff] }
 0x242   :  { %2295 = vmatpush2.bf16.msra.mxu0 %v6838_v30  ;;  %v1483_v30 = vld [vmem:[#allocation10 + $0xa08] sm:$0xff] }
 0x243   :  { %2296 = vmatprep.subr.bf16.mxu0 %v6835_v31  ;;  %v1485_v31 = vld [vmem:[#allocation10 + $0xa48] sm:$0xff] }
 0x244   :  { %v6867_v23 = vcombine.high %v1483_v30, %v1485_v31 }
 0x246   :  { %2297 = vmatpush2.bf16.msra.mxu0 %v6834_v35  ;;  %v6870_v35 = vcombine.low %v1487_v18, %v1489_v19  ;;  %v1523_v18 = vld [vmem:[#allocation10 + $0xf08] sm:$0xff] }
 0x247   :  { %2298 = vmatprep.subr.bf16.mxu0 %v6831_v36  ;;  %v1479_v36 = vld [vmem:[#allocation10 + $0x988] sm:$0xff] }
 0x248   :  { %v6863_v46 = vcombine.high %v1479_v36, %v1481_v37  ;;  %v6862_v54 = vcombine.low %v1479_v36, %v1481_v37  ;;  %v1525_v19 = vld [vmem:[#allocation10 + $0xf48] sm:$0xff] }
 0x249   :  { %v1515_v36 = vld [vmem:[#allocation10 + $0xe08] sm:$0xff] }
 0x24a   :  { %2299 = vmatpush2.bf16.msra.mxu0 %v6830_v43  ;;  %v2442_v43 = vld [vmem:[#allocation10 + $0x1d0] sm:$0xff]  ;;  %v1517_v37 = vld [vmem:[#allocation10 + $0xe48] sm:$0xff] }
 0x24b   :  { %2300 = vmatprep.subr.bf16.mxu0 %v6827_v44  ;;  %v6866_v44 = vcombine.low %v1483_v30, %v1485_v31  ;;  %v1519_v30 = vld [vmem:[#allocation10 + $0xe88] sm:$0xff] }
 0x24c   :  { %v1521_v31 = vld [vmem:[#allocation10 + $0xec8] sm:$0xff] }
 0x24d   :  { %v1346_v55 = vpop.f32.mrf.mxu0  ;;  %v1387_v56 = vpop.f32.mrf.mxu1 }
 0x24e   :  { %v1347_v57 = vadd.f32 %v1346_v55, %v581_v47  ;;  %2301 = vmatpush2.bf16.msra.mxu0 %v6826_v48  ;;  %v6925_v47 = vcombine.high %v2440_v40, %v2442_v43  ;;  %v1475_v48 = vld [vmem:[#allocation10 + $0x908] sm:$0xff]  ;;  %v6924_v55 = vcombine.low %v2440_v40, %v2442_v43  ;;  %v2476_v40 = vld [vmem:[#allocation10 + $0x610] sm:$0xff] }
 0x24f   :  { %v1348_v59 = vpop.f32.mrf.mxu0  ;;  %v1389_v60 = vpop.f32.mrf.mxu1  ;;  %2302 = vmatprep.subr.bf16.mxu0 %v6823_v49  ;;  %v1477_v49 = vld [vmem:[#allocation10 + $0x948] sm:$0xff]  ;;  %v2478_v43 = vld [vmem:[#allocation10 + $0x650] sm:$0xff] }
 0x250   :  { %v1388_v63 = vadd.f32 %v1387_v56, %v1347_v57  ;;  %v1349_v0 = vadd.f32 %v1348_v59, %v585_v52  ;;  %v2436_v52 = vld [vmem:[#allocation10 + $0x110] sm:$0xff]  ;;  %v6859_v56 = vcombine.high %v1475_v48, %v1477_v49  ;;  %v1473_v59 = vld [vmem:[#allocation10 + $0x8c8] sm:$0xff] }
 0x251   :  { %v1350_v28 = vpop.f32.mrf.mxu0  ;;  %v1391_v61 = vpop.f32.mrf.mxu1  ;;  %v6921_v57 = vcombine.high %v2436_v52, %v2438_v53 }
 0x252   :  { %v1390_v32 = vadd.f32 %v1389_v60, %v1349_v0  ;;  %2303 = vmatpush2.bf16.msra.mxu0 %v6822_v58  ;;  %v1396_v3 = vmax.f32 %v1388_v63, 0.0  ;;  %v1471_v58 = vld [vmem:[#allocation10 + $0x888] sm:$0xff]  ;;  %v2432_v60 = vld [vmem:[#allocation10 + $0x90] sm:$0xff]  ;;  %v6858_v63 = vcombine.low %v1475_v48, %v1477_v49  ;;  %v6920_v0 = vcombine.low %v2436_v52, %v2438_v53 }
 0x253   :  { %v1351_v5 = vpop.f32.mrf.mxu0  ;;  %v1392_v6 = vpop.f32.mrf.mxu1  ;;  %2304 = vmatprep.subr.bf16.mxu0 %v6819_v62  ;;  %v2434_v62 = vld [vmem:[#allocation10 + $0xd0] sm:$0xff]  ;;  %v6855_v1 = vcombine.high %v1471_v58, %v1473_v59  ;;  %v1467_v28 = vld [vmem:[#allocation10 + $0x808] sm:$0xff] }
 0x254   :  { %v1397_v8 = vmax.f32 %v1390_v32, 0.0  ;;  %v8326_v14 = vpack.c.bf16 %v1396_v3, %v1396_v3  ;;  %v6917_v2 = vcombine.high %v2432_v60, %v2434_v62  ;;  %v1469_v61 = vld [vmem:[#allocation10 + $0x848] sm:$0xff]  ;;  %v2428_v32 = vld [vmem:[#allocation10 + $0x10] sm:$0xff]  ;;  %v6854_v3 = vcombine.low %v1471_v58, %v1473_v59 }
 0x255   :  { %v6916_v5 = vcombine.low %v2432_v60, %v2434_v62  ;;  %v6851_v6 = vcombine.high %v1467_v28, %v1469_v61  ;;  %v6850_v12 = vcombine.low %v1467_v28, %v1469_v61  ;;  %v1511_v48 = vld [vmem:[#allocation10 + $0xd88] sm:$0xff]  ;;  %v2472_v52 = vld [vmem:[#allocation10 + $0x590] sm:$0xff] }
 0x256   :  { %v8324_v13 = vpack.c.bf16 %v1397_v8, %v1397_v8  ;;  %2305 = vmatpush2.bf16.msra.mxu0 %v6818_v26  ;;  %v2430_v26 = vld [vmem:[#allocation10 + $0x50] sm:$0xff]  ;;  %v1527_v8 = vld [vmem:[#allocation10 + $0xf88] sm:$0xff] }
 0x257   :  { %3218 = vmatprep.subr.bf16.mxu0 %v6941_v7  ;;  %v6913_v7 = vcombine.high %v2428_v32, %v2430_v26  ;;  %v1513_v49 = vld [vmem:[#allocation10 + $0xdc8] sm:$0xff]  ;;  %v2474_v53 = vld [vmem:[#allocation10 + $0x5d0] sm:$0xff] }
 0x258   :  { %2265 = vmatprep.mubr.bf16.mxu1 %v8324_v13  ;;  %v1507_v58 = vld [vmem:[#allocation10 + $0xd08] sm:$0xff]  ;;  %v2468_v60 = vld [vmem:[#allocation10 + $0x510] sm:$0xff] }
 0x259   :  { %2266 = vmatmul.mubr.bf16.vlgmr.msra.gmra.mxu1 %v8326_v14  ;;  %2307 = vmatmul.mubr.bf16.vlgmr.msra.gmra.mxu0 %v8312_v51  ;;  %v1509_v59 = vld [vmem:[#allocation10 + $0xd48] sm:$0xff]  ;;  %v2470_v62 = vld [vmem:[#allocation10 + $0x550] sm:$0xff] }
 0x25a   :  { %2316 = vmatpush1.bf16.msra.mxu1 %v6878_v25  ;;  %2347 = vmatprep.mubr.bf16.mxu1 %v8324_v13  ;;  %v6929_v25 = vcombine.high %v2444_v33, %v2446_v34  ;;  %v2480_v33 = vld [vmem:[#allocation10 + $0x690] sm:$0xff]  ;;  %v1503_v28 = vld [vmem:[#allocation10 + $0xc88] sm:$0xff] }
 0x25b   :  { %3219 = vmatpush1.bf16.msra.mxu0 %v6940_v15  ;;  %3250 = vmatprep.mubr.bf16.mxu0 %v8310_v50  ;;  %v6912_v15 = vcombine.low %v2428_v32, %v2430_v26  ;;  %v2482_v34 = vld [vmem:[#allocation10 + $0x6d0] sm:$0xff]  ;;  %v1505_v61 = vld [vmem:[#allocation10 + $0xcc8] sm:$0xff] }
 0x25c   :  { %2317 = vmatprep.subr.bf16.mxu1 %v6875_v16  ;;  %3220 = vmatprep.subr.bf16.mxu0 %v6937_v17  ;;  %v6911_v16 = vcombine.high %v1527_v8, %v1529_v9  ;;  %v6973_v17 = vcombine.high %v2488_v10, %v2490_v11  ;;  %v2464_v32 = vld [vmem:[#allocation10 + $0x490] sm:$0xff] }
 0x25d   :  { %v2466_v26 = vld [vmem:[#allocation10 + $0x4d0] sm:$0xff] }
 0x25e   :  { %2318 = vmatpush1.bf16.msra.mxu1 %v6874_v24  ;;  %v6910_v24 = vcombine.low %v1527_v8, %v1529_v9  ;;  %v1499_v8 = vld [vmem:[#allocation10 + $0xc08] sm:$0xff] }
 0x25f   :  { %3221 = vmatpush1.bf16.msra.mxu0 %v6936_v27  ;;  %2319 = vmatprep.subr.bf16.mxu1 %v6871_v4  ;;  %v6972_v27 = vcombine.low %v2488_v10, %v2490_v11  ;;  %v6907_v4 = vcombine.high %v1523_v18, %v1525_v19  ;;  %v1501_v9 = vld [vmem:[#allocation10 + $0xc48] sm:$0xff]  ;;  %v2460_v10 = vld [vmem:[#allocation10 + $0x410] sm:$0xff] }
 0x260   :  { %3222 = vmatprep.subr.bf16.mxu0 %v6933_v29  ;;  %v6969_v29 = vcombine.high %v2484_v20, %v2486_v21  ;;  %v2462_v11 = vld [vmem:[#allocation10 + $0x450] sm:$0xff] }
 0x262   :  { %2320 = vmatpush1.bf16.msra.mxu1 %v6870_v35  ;;  %v6906_v35 = vcombine.low %v1523_v18, %v1525_v19  ;;  %v2520_v18 = vld [vmem:[#allocation10 + $0xb90] sm:$0xff] }
 0x263   :  { %3223 = vmatpush1.bf16.msra.mxu0 %v6932_v22  ;;  %2321 = vmatprep.subr.bf16.mxu1 %v6867_v23  ;;  %v6968_v22 = vcombine.low %v2484_v20, %v2486_v21  ;;  %v6903_v23 = vcombine.high %v1519_v30, %v1521_v31  ;;  %v2522_v19 = vld [vmem:[#allocation10 + $0xbd0] sm:$0xff]  ;;  %v2457_v20 = vld [vmem:[#allocation10 + $0x398] sm:$0xff] }
 0x264   :  { %3224 = vmatprep.subr.bf16.mxu0 %v6929_v25  ;;  %v6965_v25 = vcombine.high %v2480_v33, %v2482_v34  ;;  %v2459_v21 = vld [vmem:[#allocation10 + $0x3d8] sm:$0xff] }
 0x266   :  { %2322 = vmatpush1.bf16.msra.mxu1 %v6866_v44  ;;  %v6902_v44 = vcombine.low %v1519_v30, %v1521_v31  ;;  %v2516_v30 = vld [vmem:[#allocation10 + $0xb10] sm:$0xff] }
 0x267   :  { %3225 = vmatpush1.bf16.msra.mxu0 %v6928_v45  ;;  %2323 = vmatprep.subr.bf16.mxu1 %v6863_v46  ;;  %v6964_v45 = vcombine.low %v2480_v33, %v2482_v34  ;;  %v6899_v46 = vcombine.high %v1515_v36, %v1517_v37  ;;  %v2518_v31 = vld [vmem:[#allocation10 + $0xb50] sm:$0xff]  ;;  %v7004_v33 = vcombine.low %v2520_v18, %v2522_v19  ;;  %v2453_v34 = vld [vmem:[#allocation10 + $0x318] sm:$0xff] }
 0x268   :  { %3226 = vmatprep.subr.bf16.mxu0 %v6925_v47  ;;  %v6961_v47 = vcombine.high %v2476_v40, %v2478_v43 }
 0x26a   :  { %2324 = vmatpush1.bf16.msra.mxu1 %v6862_v54  ;;  %v6898_v54 = vcombine.low %v1515_v36, %v1517_v37  ;;  %v2514_v36 = vld [vmem:[#allocation10 + $0xad0] sm:$0xff] }
 0x26b   :  { %3227 = vmatpush1.bf16.msra.mxu0 %v6924_v55  ;;  %2325 = vmatprep.subr.bf16.mxu1 %v6859_v56  ;;  %v6960_v55 = vcombine.low %v2476_v40, %v2478_v43  ;;  %v6895_v56 = vcombine.high %v1511_v48, %v1513_v49  ;;  %v2449_v40 = vld [vmem:[#allocation10 + $0x298] sm:$0xff] }
 0x26c   :  { %3228 = vmatprep.subr.bf16.mxu0 %v6921_v57  ;;  %v6957_v57 = vcombine.high %v2472_v52, %v2474_v53  ;;  %v2451_v43 = vld [vmem:[#allocation10 + $0x2d8] sm:$0xff] }
 0x26e   :  { %2326 = vmatpush1.bf16.msra.mxu1 %v6858_v63  ;;  %v6894_v63 = vcombine.low %v1511_v48, %v1513_v49  ;;  %v2508_v48 = vld [vmem:[#allocation10 + $0xa10] sm:$0xff] }
 0x26f   :  { %3229 = vmatpush1.bf16.msra.mxu0 %v6920_v0  ;;  %2327 = vmatprep.subr.bf16.mxu1 %v6855_v1  ;;  %v6956_v0 = vcombine.low %v2472_v52, %v2474_v53  ;;  %v6891_v1 = vcombine.high %v1507_v58, %v1509_v59  ;;  %v2510_v49 = vld [vmem:[#allocation10 + $0xa50] sm:$0xff]  ;;  %v2445_v52 = vld [vmem:[#allocation10 + $0x218] sm:$0xff] }
 0x270   :  { %3230 = vmatprep.subr.bf16.mxu0 %v6917_v2  ;;  %v6953_v2 = vcombine.high %v2468_v60, %v2470_v62  ;;  %v2447_v53 = vld [vmem:[#allocation10 + $0x258] sm:$0xff] }
 0x272   :  { %2328 = vmatpush1.bf16.msra.mxu1 %v6854_v3  ;;  %v6890_v3 = vcombine.low %v1507_v58, %v1509_v59  ;;  %v2504_v58 = vld [vmem:[#allocation10 + $0x990] sm:$0xff] }
 0x273   :  { %3231 = vmatpush1.bf16.msra.mxu0 %v6916_v5  ;;  %2329 = vmatprep.subr.bf16.mxu1 %v6851_v6  ;;  %v6952_v5 = vcombine.low %v2468_v60, %v2470_v62  ;;  %v6887_v6 = vcombine.high %v1503_v28, %v1505_v61  ;;  %v2506_v59 = vld [vmem:[#allocation10 + $0x9d0] sm:$0xff]  ;;  %v2441_v60 = vld [vmem:[#allocation10 + $0x198] sm:$0xff] }
 0x274   :  { %3232 = vmatprep.subr.bf16.mxu0 %v6913_v7  ;;  %v6949_v7 = vcombine.high %v2464_v32, %v2466_v26  ;;  %v2443_v62 = vld [vmem:[#allocation10 + $0x1d8] sm:$0xff] }
 0x276   :  { %2330 = vmatpush1.bf16.msra.mxu1 %v6850_v12  ;;  %v6886_v12 = vcombine.low %v1503_v28, %v1505_v61  ;;  %v2500_v28 = vld [vmem:[#allocation10 + $0x910] sm:$0xff] }
 0x277   :  { %3233 = vmatpush1.bf16.msra.mxu0 %v6912_v15  ;;  %2331 = vmatprep.subr.bf16.mxu1 %v6911_v16  ;;  %v6948_v15 = vcombine.low %v2464_v32, %v2466_v26  ;;  %v6883_v16 = vcombine.high %v1499_v8, %v1501_v9  ;;  %v2502_v61 = vld [vmem:[#allocation10 + $0x950] sm:$0xff]  ;;  %v2437_v32 = vld [vmem:[#allocation10 + $0x118] sm:$0xff] }
 0x278   :  { %3234 = vmatprep.subr.bf16.mxu0 %v6973_v17  ;;  %v6945_v17 = vcombine.high %v2460_v10, %v2462_v11  ;;  %v2439_v26 = vld [vmem:[#allocation10 + $0x158] sm:$0xff] }
 0x27a   :  { %2332 = vmatpush2.bf16.msra.mxu1 %v6910_v24  ;;  %v6882_v24 = vcombine.low %v1499_v8, %v1501_v9  ;;  %v2496_v8 = vld [vmem:[#allocation10 + $0x890] sm:$0xff] }
 0x27b   :  { %3235 = vmatpush2.bf16.msra.mxu0 %v6972_v27  ;;  %2333 = vmatprep.subr.bf16.mxu1 %v6907_v4  ;;  %v6944_v27 = vcombine.low %v2460_v10, %v2462_v11  ;;  %v7005_v4 = vcombine.high %v2520_v18, %v2522_v19  ;;  %v2498_v9 = vld [vmem:[#allocation10 + $0x8d0] sm:$0xff]  ;;  %v2433_v10 = vld [vmem:[#allocation10 + $0x98] sm:$0xff] }
 0x27c   :  { %3236 = vmatprep.subr.bf16.mxu0 %v6969_v29  ;;  %v6943_v29 = vcombine.high %v2457_v20, %v2459_v21  ;;  %v2435_v11 = vld [vmem:[#allocation10 + $0xd8] sm:$0xff]  ;;  %v2492_v18 = vld [vmem:[#allocation10 + $0x810] sm:$0xff] }
 0x27d   :  { %v2494_v19 = vld [vmem:[#allocation10 + $0x850] sm:$0xff] }
 0x27e   :  { %2334 = vmatpush2.bf16.msra.mxu1 %v6906_v35  ;;  %v2455_v35 = vld [vmem:[#allocation10 + $0x358] sm:$0xff] }
 0x27f   :  { %3237 = vmatpush2.bf16.msra.mxu0 %v6968_v22  ;;  %2335 = vmatprep.subr.bf16.mxu1 %v6903_v23  ;;  %v6942_v22 = vcombine.low %v2457_v20, %v2459_v21  ;;  %v7001_v23 = vcombine.high %v2516_v30, %v2518_v31  ;;  %v6939_v37 = vcombine.high %v2453_v34, %v2455_v35  ;;  %v2429_v20 = vld [vmem:[#allocation10 + $0x18] sm:$0xff] }
 0x280   :  { %3238 = vmatprep.subr.bf16.mxu0 %v6965_v25  ;;  %v2512_v25 = vld [vmem:[#allocation10 + $0xa90] sm:$0xff]  ;;  %v2431_v21 = vld [vmem:[#allocation10 + $0x58] sm:$0xff] }
 0x282   :  { %2336 = vmatpush2.bf16.msra.mxu1 %v6902_v44  ;;  %v7000_v44 = vcombine.low %v2516_v30, %v2518_v31  ;;  %v2552_v30 = vld [vmem:[#allocation10 + $0xf90] sm:$0xff] }
 0x283   :  { %3239 = vmatpush2.bf16.msra.mxu0 %v6964_v45  ;;  %2337 = vmatprep.subr.bf16.mxu1 %v6899_v46  ;;  %v6938_v45 = vcombine.low %v2453_v34, %v2455_v35  ;;  %v6997_v46 = vcombine.high %v2512_v25, %v2514_v36  ;;  %v2554_v31 = vld [vmem:[#allocation10 + $0xfd0] sm:$0xff]  ;;  %v2491_v34 = vld [vmem:[#allocation10 + $0x7d8] sm:$0xff]  ;;  %v6976_v35 = vcombine.low %v2492_v18, %v2494_v19 }
 0x284   :  { %3240 = vmatprep.subr.bf16.mxu0 %v6961_v47  ;;  %v6935_v47 = vcombine.high %v2449_v40, %v2451_v43 }
 0x286   :  { %2338 = vmatpush2.bf16.msra.mxu1 %v6898_v54  ;;  %v6996_v54 = vcombine.low %v2512_v25, %v2514_v36  ;;  %v2548_v36 = vld [vmem:[#allocation10 + $0xf10] sm:$0xff] }
 0x287   :  { %3241 = vmatpush2.bf16.msra.mxu0 %v6960_v55  ;;  %2339 = vmatprep.subr.bf16.mxu1 %v6895_v56  ;;  %v6934_v55 = vcombine.low %v2449_v40, %v2451_v43  ;;  %v6993_v56 = vcombine.high %v2508_v48, %v2510_v49  ;;  %v2485_v40 = vld [vmem:[#allocation10 + $0x718] sm:$0xff] }
 0x288   :  { %3242 = vmatprep.subr.bf16.mxu0 %v6957_v57  ;;  %v6931_v57 = vcombine.high %v2445_v52, %v2447_v53  ;;  %v2487_v43 = vld [vmem:[#allocation10 + $0x758] sm:$0xff] }
 0x28a   :  { %2340 = vmatpush2.bf16.msra.mxu1 %v6894_v63  ;;  %v6992_v63 = vcombine.low %v2508_v48, %v2510_v49  ;;  %v2544_v48 = vld [vmem:[#allocation10 + $0xe90] sm:$0xff] }
 0x28b   :  { %3243 = vmatpush2.bf16.msra.mxu0 %v6956_v0  ;;  %2341 = vmatprep.subr.bf16.mxu1 %v6891_v1  ;;  %v6930_v0 = vcombine.low %v2445_v52, %v2447_v53  ;;  %v6989_v1 = vcombine.high %v2504_v58, %v2506_v59  ;;  %v2546_v49 = vld [vmem:[#allocation10 + $0xed0] sm:$0xff]  ;;  %v2481_v52 = vld [vmem:[#allocation10 + $0x698] sm:$0xff] }
 0x28c   :  { %3244 = vmatprep.subr.bf16.mxu0 %v6953_v2  ;;  %v6927_v2 = vcombine.high %v2441_v60, %v2443_v62  ;;  %v2483_v53 = vld [vmem:[#allocation10 + $0x6d8] sm:$0xff] }
 0x28e   :  { %2342 = vmatpush2.bf16.msra.mxu1 %v6890_v3  ;;  %v6988_v3 = vcombine.low %v2504_v58, %v2506_v59  ;;  %v2540_v58 = vld [vmem:[#allocation10 + $0xe10] sm:$0xff] }
 0x28f   :  { %3245 = vmatpush2.bf16.msra.mxu0 %v6952_v5  ;;  %2343 = vmatprep.subr.bf16.mxu1 %v6887_v6  ;;  %v6926_v5 = vcombine.low %v2441_v60, %v2443_v62  ;;  %v6985_v6 = vcombine.high %v2500_v28, %v2502_v61  ;;  %v2542_v59 = vld [vmem:[#allocation10 + $0xe50] sm:$0xff]  ;;  %v2477_v60 = vld [vmem:[#allocation10 + $0x618] sm:$0xff] }
 0x290   :  { %3246 = vmatprep.subr.bf16.mxu0 %v6949_v7  ;;  %v6923_v7 = vcombine.high %v2437_v32, %v2439_v26  ;;  %v2479_v62 = vld [vmem:[#allocation10 + $0x658] sm:$0xff] }
 0x292   :  { %2344 = vmatpush2.bf16.msra.mxu1 %v6886_v12  ;;  %v6984_v12 = vcombine.low %v2500_v28, %v2502_v61  ;;  %v2536_v28 = vld [vmem:[#allocation10 + $0xd90] sm:$0xff] }
 0x293   :  { %3247 = vmatpush2.bf16.msra.mxu0 %v6948_v15  ;;  %2345 = vmatprep.subr.bf16.mxu1 %v6883_v16  ;;  %v6922_v15 = vcombine.low %v2437_v32, %v2439_v26  ;;  %v6981_v16 = vcombine.high %v2496_v8, %v2498_v9  ;;  %v2538_v61 = vld [vmem:[#allocation10 + $0xdd0] sm:$0xff]  ;;  %v2473_v32 = vld [vmem:[#allocation10 + $0x598] sm:$0xff] }
 0x294   :  { %3248 = vmatprep.subr.bf16.mxu0 %v6945_v17  ;;  %v6919_v17 = vcombine.high %v2433_v10, %v2435_v11  ;;  %v2475_v26 = vld [vmem:[#allocation10 + $0x5d8] sm:$0xff] }
 0x296   :  { %2346 = vmatpush2.bf16.msra.mxu1 %v6882_v24  ;;  %v6980_v24 = vcombine.low %v2496_v8, %v2498_v9  ;;  %v2532_v8 = vld [vmem:[#allocation10 + $0xd10] sm:$0xff] }
 0x297   :  { %3249 = vmatpush2.bf16.msra.mxu0 %v6944_v27  ;;  %3259 = vmatprep.subr.bf16.mxu1 %v7005_v4  ;;  %v6918_v27 = vcombine.low %v2433_v10, %v2435_v11  ;;  %v6977_v4 = vcombine.high %v2492_v18, %v2494_v19  ;;  %v2534_v9 = vld [vmem:[#allocation10 + $0xd50] sm:$0xff]  ;;  %v2469_v10 = vld [vmem:[#allocation10 + $0x518] sm:$0xff] }
 0x298   :  { %3300 = vmatprep.subr.bf16.mxu0 %v6943_v29  ;;  %v6915_v29 = vcombine.high %v2429_v20, %v2431_v21  ;;  %v2471_v11 = vld [vmem:[#allocation10 + $0x558] sm:$0xff]  ;;  %v2528_v18 = vld [vmem:[#allocation10 + $0xc90] sm:$0xff] }
 0x299   :  { %2348 = vmatmul.mubr.bf16.vlgmr.msra.gmra.mxu1 %v8326_v14  ;;  %v2530_v19 = vld [vmem:[#allocation10 + $0xcd0] sm:$0xff] }
 0x29a   :  { %3251 = vmatmul.mubr.bf16.vlgmr.msra.gmra.mxu0 %v8312_v51  ;;  %3260 = vmatpush1.bf16.msra.mxu1 %v7004_v33  ;;  %v2489_v33 = vld [vmem:[#allocation10 + $0x798] sm:$0xff] }
 0x29b   :  { %3291 = vmatprep.mubr.bf16.mxu1 %v8324_v13  ;;  %3301 = vmatpush1.bf16.msra.mxu0 %v6942_v22  ;;  %v6914_v22 = vcombine.low %v2429_v20, %v2431_v21  ;;  %v6975_v25 = vcombine.high %v2489_v33, %v2491_v34  ;;  %v2465_v20 = vld [vmem:[#allocation10 + $0x498] sm:$0xff] }
 0x29c   :  { %3332 = vmatprep.mubr.bf16.mxu0 %v8310_v50  ;;  %3261 = vmatprep.subr.bf16.mxu1 %v7001_v23  ;;  %v7037_v23 = vcombine.high %v2552_v30, %v2554_v31  ;;  %v2467_v21 = vld [vmem:[#allocation10 + $0x4d8] sm:$0xff] }
 0x29d   :  { %3302 = vmatprep.subr.bf16.mxu0 %v6939_v37  ;;  %v2550_v37 = vld [vmem:[#allocation10 + $0xf50] sm:$0xff] }
 0x29e   :  { %3262 = vmatpush1.bf16.msra.mxu1 %v7000_v44  ;;  %v7036_v44 = vcombine.low %v2552_v30, %v2554_v31  ;;  %v2524_v30 = vld [vmem:[#allocation10 + $0xc10] sm:$0xff] }
 0x29f   :  { %3303 = vmatpush1.bf16.msra.mxu0 %v6938_v45  ;;  %3263 = vmatprep.subr.bf16.mxu1 %v6997_v46  ;;  %v6974_v45 = vcombine.low %v2489_v33, %v2491_v34  ;;  %v7033_v46 = vcombine.high %v2548_v36, %v2550_v37  ;;  %v2526_v31 = vld [vmem:[#allocation10 + $0xc50] sm:$0xff]  ;;  %v2461_v33 = vld [vmem:[#allocation10 + $0x418] sm:$0xff] }
 0x2a0   :  { %3304 = vmatprep.subr.bf16.mxu0 %v6935_v47  ;;  %v6971_v47 = vcombine.high %v2485_v40, %v2487_v43  ;;  %v2463_v34 = vld [vmem:[#allocation10 + $0x458] sm:$0xff] }
 0x2a2   :  { %3264 = vmatpush1.bf16.msra.mxu1 %v6996_v54  ;;  %v7032_v54 = vcombine.low %v2548_v36, %v2550_v37  ;;  %v2521_v36 = vld [vmem:[#allocation10 + $0xb98] sm:$0xff] }
 0x2a3   :  { %3305 = vmatpush1.bf16.msra.mxu0 %v6934_v55  ;;  %3265 = vmatprep.subr.bf16.mxu1 %v6993_v56  ;;  %v6970_v55 = vcombine.low %v2485_v40, %v2487_v43  ;;  %v7029_v56 = vcombine.high %v2544_v48, %v2546_v49  ;;  %v2523_v37 = vld [vmem:[#allocation10 + $0xbd8] sm:$0xff]  ;;  %v7008_v40 = vcombine.low %v2524_v30, %v2526_v31 }
 0x2a4   :  { %3306 = vmatprep.subr.bf16.mxu0 %v6931_v57  ;;  %v6967_v57 = vcombine.high %v2481_v52, %v2483_v53  ;;  %v6946_v43 = vcombine.low %v2461_v33, %v2463_v34 }
 0x2a6   :  { %3266 = vmatpush1.bf16.msra.mxu1 %v6992_v63  ;;  %v7028_v63 = vcombine.low %v2544_v48, %v2546_v49  ;;  %v2513_v49 = vld [vmem:[#allocation10 + $0xa98] sm:$0xff] }
 0x2a7   :  { %3307 = vmatpush1.bf16.msra.mxu0 %v6930_v0  ;;  %3267 = vmatprep.subr.bf16.mxu1 %v6989_v1  ;;  %v6966_v0 = vcombine.low %v2481_v52, %v2483_v53  ;;  %v7025_v1 = vcombine.high %v2540_v58, %v2542_v59  ;;  %v2515_v52 = vld [vmem:[#allocation10 + $0xad8] sm:$0xff] }
 0x2a8   :  { %3308 = vmatprep.subr.bf16.mxu0 %v6927_v2  ;;  %v6963_v2 = vcombine.high %v2477_v60, %v2479_v62 }
 0x2aa   :  { %3268 = vmatpush1.bf16.msra.mxu1 %v6988_v3  ;;  %v7024_v3 = vcombine.low %v2540_v58, %v2542_v59  ;;  %v2511_v58 = vld [vmem:[#allocation10 + $0xa58] sm:$0xff] }
 0x2ab   :  { %3309 = vmatpush1.bf16.msra.mxu0 %v6926_v5  ;;  %3269 = vmatprep.subr.bf16.mxu1 %v6985_v6  ;;  %v6962_v5 = vcombine.low %v2477_v60, %v2479_v62  ;;  %v7021_v6 = vcombine.high %v2536_v28, %v2538_v61  ;;  %v6998_v60 = vcombine.low %v2513_v49, %v2515_v52 }
 0x2ac   :  { %3310 = vmatprep.subr.bf16.mxu0 %v6923_v7  ;;  %v6959_v7 = vcombine.high %v2473_v32, %v2475_v26 }
 0x2ae   :  { %3270 = vmatpush1.bf16.msra.mxu1 %v6984_v12  ;;  %v7020_v12 = vcombine.low %v2536_v28, %v2538_v61  ;;  %v7857_v28 = vld [vmem:[#allocation13 + $0x138] sm:$0xff]   ;;  %v7858_v61 = vld [vmem:[#allocation13 + $0x170] sm:$0xff]  }
 0x2af   :  { %3311 = vmatpush1.bf16.msra.mxu0 %v6922_v15  ;;  %3271 = vmatprep.subr.bf16.mxu1 %v6981_v16  ;;  %v6958_v15 = vcombine.low %v2473_v32, %v2475_v26  ;;  %v7017_v16 = vcombine.high %v2532_v8, %v2534_v9 }
 0x2b0   :  { %3312 = vmatprep.subr.bf16.mxu0 %v6919_v17  ;;  %v6955_v17 = vcombine.high %v2469_v10, %v2471_v11 }
 0x2b2   :  { %3272 = vmatpush1.bf16.msra.mxu1 %v6980_v24  ;;  %v7016_v24 = vcombine.low %v2532_v8, %v2534_v9 }
 0x2b3   :  { %3313 = vmatpush1.bf16.msra.mxu0 %v6918_v27  ;;  %3273 = vmatprep.subr.bf16.mxu1 %v6977_v4  ;;  %v6954_v27 = vcombine.low %v2469_v10, %v2471_v11  ;;  %v7013_v4 = vcombine.high %v2528_v18, %v2530_v19  ;;  %v7861_v10 = vld [vmem:[#allocation13 + $0x128] sm:$0xff]  }
 0x2b4   :  { %3314 = vmatprep.subr.bf16.mxu0 %v6915_v29  ;;  %v6951_v29 = vcombine.high %v2465_v20, %v2467_v21  ;;  %v2497_v11 = vld [vmem:[#allocation10 + $0x898] sm:$0xff] }
 0x2b6   :  { %3274 = vmatpush1.bf16.msra.mxu1 %v6976_v35  ;;  %v7012_v35 = vcombine.low %v2528_v18, %v2530_v19  ;;  %v7863_v18 = vld [vmem:[#allocation13 + $0x120] sm:$0xff]   ;;  %v2493_v19 = vld [vmem:[#allocation10 + $0x818] sm:$0xff] }
 0x2b7   :  { %3315 = vmatpush1.bf16.msra.mxu0 %v6914_v22  ;;  %3275 = vmatprep.subr.bf16.mxu1 %v7037_v23  ;;  %v6950_v22 = vcombine.low %v2465_v20, %v2467_v21  ;;  %v7009_v23 = vcombine.high %v2524_v30, %v2526_v31  ;;  %v2495_v20 = vld [vmem:[#allocation10 + $0x858] sm:$0xff]  ;;  %v7864_v21 = vld [vmem:[#allocation13 + $0x158] sm:$0xff]   ;;  %v7866_v31 = vld [vmem:[#allocation13 + $0x150] sm:$0xff]  }
 0x2b8   :  { %3316 = vmatprep.subr.bf16.mxu0 %v6975_v25  ;;  %v6947_v25 = vcombine.high %v2461_v33, %v2463_v34  ;;  %v2555_v30 = vld [vmem:[#allocation10 + $0xfd8] sm:$0xff]  ;;  %v6978_v33 = vcombine.low %v2493_v19, %v2495_v20 }
 0x2ba   :  { %3276 = vmatpush2.bf16.msra.mxu1 %v7036_v44  ;;  %v7007_v44 = vcombine.high %v2521_v36, %v2523_v37 }
 0x2bb   :  { %3317 = vmatpush2.bf16.msra.mxu0 %v6974_v45  ;;  %3277 = vmatprep.subr.bf16.mxu1 %v7033_v46  ;;  %v2517_v45 = vld [vmem:[#allocation10 + $0xb18] sm:$0xff] }
 0x2bc   :  { %3318 = vmatprep.subr.bf16.mxu0 %v6971_v47  ;;  %v2519_v46 = vld [vmem:[#allocation10 + $0xb58] sm:$0xff]  ;;  %v7006_v47 = vcombine.low %v2521_v36, %v2523_v37 }
 0x2bd   :  { %v7003_v48 = vcombine.high %v2517_v45, %v2519_v46  ;;  %v2545_v37 = vld [vmem:[#allocation10 + $0xe98] sm:$0xff] }
 0x2be   :  { %3278 = vmatpush2.bf16.msra.mxu1 %v7032_v54  ;;  %v7002_v54 = vcombine.low %v2517_v45, %v2519_v46  ;;  %v2541_v45 = vld [vmem:[#allocation10 + $0xe18] sm:$0xff] }
 0x2bf   :  { %3319 = vmatpush2.bf16.msra.mxu0 %v6970_v55  ;;  %3279 = vmatprep.subr.bf16.mxu1 %v7029_v56  ;;  %v6999_v56 = vcombine.high %v2513_v49, %v2515_v52  ;;  %v2543_v46 = vld [vmem:[#allocation10 + $0xe58] sm:$0xff] }
 0x2c0   :  { %3320 = vmatprep.subr.bf16.mxu0 %v6967_v57  ;;  %v2509_v57 = vld [vmem:[#allocation10 + $0xa18] sm:$0xff] }
 0x2c1   :  { %v6994_v32 = vcombine.low %v2509_v57, %v2511_v58  ;;  %v2537_v49 = vld [vmem:[#allocation10 + $0xd98] sm:$0xff] }
 0x2c2   :  { %3280 = vmatpush2.bf16.msra.mxu1 %v7028_v63  ;;  %v6995_v63 = vcombine.high %v2509_v57, %v2511_v58  ;;  %v2539_v52 = vld [vmem:[#allocation10 + $0xdd8] sm:$0xff] }
 0x2c3   :  { %3321 = vmatpush2.bf16.msra.mxu0 %v6966_v0  ;;  %3281 = vmatprep.subr.bf16.mxu1 %v7025_v1  ;;  %v2505_v0 = vld [vmem:[#allocation10 + $0x998] sm:$0xff] }
 0x2c4   :  { %3322 = vmatprep.subr.bf16.mxu0 %v6963_v2  ;;  %v2507_v1 = vld [vmem:[#allocation10 + $0x9d8] sm:$0xff]  ;;  %v7856_v2 = vld [vmem:[#allocation13 + $0x178] sm:$0xff]  }
 0x2c5   :  { %v6991_v26 = vcombine.high %v2505_v0, %v2507_v1  ;;  %v6990_v8 = vcombine.low %v2505_v0, %v2507_v1  ;;  %v2533_v57 = vld [vmem:[#allocation10 + $0xd18] sm:$0xff] }
 0x2c6   :  { %3282 = vmatpush2.bf16.msra.mxu1 %v7024_v3  ;;  %v7859_v3 = vld [vmem:[#allocation13 + $0x130] sm:$0xff]   ;;  %v2535_v58 = vld [vmem:[#allocation10 + $0xd58] sm:$0xff] }
 0x2c7   :  { %3323 = vmatpush2.bf16.msra.mxu0 %v6962_v5  ;;  %3283 = vmatprep.subr.bf16.mxu1 %v7021_v6  ;;  %v2501_v5 = vld [vmem:[#allocation10 + $0x918] sm:$0xff]  ;;  %v7018_v0 = vcombine.low %v2533_v57, %v2535_v58 }
 0x2c8   :  { %3324 = vmatprep.subr.bf16.mxu0 %v6959_v7  ;;  %v2503_v6 = vld [vmem:[#allocation10 + $0x958] sm:$0xff] }
 0x2c9   :  { %v7860_v7 = vld [vmem:[#allocation13 + $0x168] sm:$0xff]   ;;  %v6987_v9 = vcombine.high %v2501_v5, %v2503_v6 }
 0x2ca   :  { %3284 = vmatpush2.bf16.msra.mxu1 %v7020_v12  ;;  %v2499_v12 = vld [vmem:[#allocation10 + $0x8d8] sm:$0xff] }
 0x2cb   :  { %3325 = vmatpush2.bf16.msra.mxu0 %v6958_v15  ;;  %3285 = vmatprep.subr.bf16.mxu1 %v7017_v16  ;;  %v7862_v15 = vld [vmem:[#allocation13 + $0x160] sm:$0xff]   ;;  %v6986_v16 = vcombine.low %v2501_v5, %v2503_v6 }
 0x2cc   :  { %3326 = vmatprep.subr.bf16.mxu0 %v6955_v17  ;;  %v6983_v17 = vcombine.high %v2497_v11, %v2499_v12 }
 0x2ce   :  { %3286 = vmatpush2.bf16.msra.mxu1 %v7016_v24  ;;  %v6982_v24 = vcombine.low %v2497_v11, %v2499_v12 }
 0x2cf   :  { %3327 = vmatpush2.bf16.msra.mxu0 %v6954_v27  ;;  %3287 = vmatprep.subr.bf16.mxu1 %v7013_v4  ;;  %v6979_v27 = vcombine.high %v2493_v19, %v2495_v20  ;;  %v7865_v4 = vld [vmem:[#allocation13 + $0x118] sm:$0xff]  }
 0x2d0   :  { %3328 = vmatprep.subr.bf16.mxu0 %v6951_v29  ;;  %v2553_v29 = vld [vmem:[#allocation10 + $0xf98] sm:$0xff] }
 0x2d1   :  { %v7039_v34 = vcombine.high %v2553_v29, %v2555_v30 }
 0x2d2   :  { %3288 = vmatpush2.bf16.msra.mxu1 %v7012_v35  ;;  %v7867_v35 = vld [vmem:[#allocation13 + $0x110] sm:$0xff]  }
 0x2d3   :  { %3329 = vmatpush2.bf16.msra.mxu0 %v6950_v22  ;;  %3289 = vmatprep.subr.bf16.mxu1 %v7009_v23  ;;  %v2549_v22 = vld [vmem:[#allocation10 + $0xf18] sm:$0xff] }
 0x2d4   :  { %3330 = vmatprep.subr.bf16.mxu0 %v6947_v25  ;;  %v2551_v23 = vld [vmem:[#allocation10 + $0xf58] sm:$0xff]  ;;  %v7038_v25 = vcombine.low %v2553_v29, %v2555_v30  ;;  %v7889_v29 = vld [vmem:[#allocation13 + $0x1b8] sm:$0xff]   ;;  %v7890_v30 = vld [vmem:[#allocation13 + $0x1f0] sm:$0xff]  }
 0x2d5   :  { %v7035_v36 = vcombine.high %v2549_v22, %v2551_v23 }
 0x2d6   :  { %3290 = vmatpush2.bf16.msra.mxu1 %v7008_v40  ;;  %v2547_v40 = vld [vmem:[#allocation10 + $0xed8] sm:$0xff] }
 0x2d7   :  { %3331 = vmatpush2.bf16.msra.mxu0 %v6946_v43  ;;  %3341 = vmatprep.subr.bf16.mxu1 %v7007_v44  ;;  %v7034_v43 = vcombine.low %v2549_v22, %v2551_v23  ;;  %v7031_v44 = vcombine.high %v2545_v37, %v2547_v40  ;;  %v7895_v22 = vld [vmem:[#allocation13 + $0x1a0] sm:$0xff]   ;;  %v7896_v23 = vld [vmem:[#allocation13 + $0x1d8] sm:$0xff]  }
 0x2d8   :  { %7425 = vmatprep.subr.bf16.mxu0 %v7856_v2  ;;  %v2525_v2 = vld [vmem:[#allocation10 + $0xc18] sm:$0xff] }
 0x2d9   :  { %3292 = vmatmul.mubr.bf16.vlgmr.msra.gmra.mxu1 %v8326_v14  ;;  %v8341_v53 = vpop.f32.mrf.mxu0 }
 0x2da   :  { %3333 = vmatmul.mubr.bf16.vlgmr.msra.gmra.mxu0 %v8312_v51  ;;  %3342 = vmatpush1.bf16.msra.mxu1 %v7006_v47  ;;  %v7030_v47 = vcombine.low %v2545_v37, %v2547_v40  ;;  %v7898_v37 = vld [vmem:[#allocation13 + $0x1d0] sm:$0xff]  }
 0x2db   :  { %3373 = vmatprep.mubr.bf16.mxu1 %v8324_v13  ;;  %v8345_v55 = vpop.f32.mrf.mxu0  ;;  %3343 = vmatprep.subr.bf16.mxu1 %v7003_v48  ;;  %v7027_v48 = vcombine.high %v2541_v45, %v2543_v46  ;;  %v7899_v40 = vld [vmem:[#allocation13 + $0x190] sm:$0xff]  }
 0x2dc   :  { %7426 = vmatpush3.bf16.msra.mxu0 %v7857_v28  ;;  %v2527_v28 = vld [vmem:[#allocation10 + $0xc58] sm:$0xff] }
 0x2dd   :  { %v2230_v59 = vpop.f32.mrf.mxu0  ;;  %7427 = vmatprep.subr.bf16.mxu0 %v7858_v61 }
 0x2de   :  { %3344 = vmatpush1.bf16.msra.mxu1 %v7002_v54  ;;  %v7026_v54 = vcombine.low %v2541_v45, %v2543_v46  ;;  %v7022_v59 = vcombine.low %v2537_v49, %v2539_v52  ;;  %v7900_v46 = vld [vmem:[#allocation13 + $0x1c8] sm:$0xff]  }
 0x2df   :  { %v2231_v62 = vpop.f32.mrf.mxu0  ;;  %3345 = vmatprep.subr.bf16.mxu1 %v6999_v56  ;;  %v7023_v56 = vcombine.high %v2537_v49, %v2539_v52  ;;  %v7901_v52 = vld [vmem:[#allocation13 + $0x188] sm:$0xff]  }
 0x2e0   :  { %7428 = vmatpush3.bf16.msra.mxu0 %v7859_v3  ;;  %v2529_v62 = vld [vmem:[#allocation10 + $0xc98] sm:$0xff]  ;;  %v7010_v3 = vcombine.low %v2525_v2, %v2527_v28 }
 0x2e1   :  { %7429 = vmatprep.subr.bf16.mxu0 %v7860_v7 }
 0x2e2   :  { %3346 = vmatpush1.bf16.msra.mxu1 %v6998_v60  ;;  %v7019_v60 = vcombine.high %v2533_v57, %v2535_v58 }
 0x2e3   :  { %3347 = vmatprep.subr.bf16.mxu1 %v6995_v63  ;;  %v2531_v63 = vld [vmem:[#allocation10 + $0xcd8] sm:$0xff] }
 0x2e4   :  { %7430 = vmatpush3.bf16.msra.mxu0 %v7861_v10  ;;  %v7015_v1 = vcombine.high %v2529_v62, %v2531_v63  ;;  %v7014_v61 = vcombine.low %v2529_v62, %v2531_v63  ;;  %v7868_v10 = vld [vmem:[#allocation13 + $0x148] sm:$0xff]   ;;  %v7903_v62 = vld [vmem:[#allocation13 + $0x180] sm:$0xff]  }
 0x2e5   :  { %7431 = vmatprep.subr.bf16.mxu0 %v7862_v15  ;;  %v7869_v15 = vld [vmem:[#allocation13 + $0x108] sm:$0xff]  }
 0x2e6   :  { %3348 = vmatpush1.bf16.msra.mxu1 %v6994_v32  ;;  %v7011_v32 = vcombine.high %v2525_v2, %v2527_v28  ;;  %v8362_v2 = vld [vmem:[#allocation11 + $0x4] sm:$0xf] }
 0x2e7   :  { %3349 = vmatprep.subr.bf16.mxu1 %v6991_v26  ;;  %v1530_v26 = vld [vmem:[#allocation11] sm:$0xf]  ;;  %v2561_v28 = vrot.slane %v8362_v2, %v8268_v38 }
 0x2e8   :  { %7432 = vmatpush3.bf16.msra.mxu0 %v7863_v18  ;;  %v1535_v5 = vrot.slane %v1530_v26, %v8268_v38  ;;  %v1539_v6 = vrot.slane %v1530_v26, %v8272_v41 }
 0x2e9   :  { %7433 = vmatprep.subr.bf16.mxu0 %v7864_v21  ;;  %v7870_v21 = vld [vmem:[#allocation13 + $0x140] sm:$0xff]  }
 0x2ea   :  { %3350 = vmatpush1.bf16.msra.mxu1 %v6990_v8  ;;  %v2227_v7 = vadd.f32 %v8341_v53, %v1535_v5  ;;  %v2229_v11 = vadd.f32 %v8345_v55, %v1539_v6  ;;  %v7871_v53 = vld [vmem:[#allocation13 + $0x100] sm:$0xff]   ;;  %v7888_v55 = vld [vmem:[#allocation13 + $0x1f8] sm:$0xff]  }
 0x2eb   :  { %3351 = vmatprep.subr.bf16.mxu1 %v6987_v9 }
 0x2ec   :  { %7434 = vmatpush3.bf16.msra.mxu0 %v7865_v4  ;;  %v7872_v4 = vld [vmem:[#allocation13 + $0x78] sm:$0xff]  }
 0x2ed   :  { %7435 = vmatprep.subr.bf16.mxu0 %v7866_v31  ;;  %v7891_v31 = vld [vmem:[#allocation13 + $0x1b0] sm:$0xff]  }
 0x2ee   :  { %3352 = vmatpush1.bf16.msra.mxu1 %v6986_v16 }
 0x2ef   :  { %3353 = vmatprep.subr.bf16.mxu1 %v6983_v17 }
 0x2f0   :  { %7436 = vmatpush3.bf16.msra.mxu0 %v7867_v35  ;;  %v7894_v35 = vld [vmem:[#allocation13 + $0x1e0] sm:$0xff]  }
 0x2f1   :  { %7437 = vmatprep.subr.bf16.mxu0 %v7868_v10 }
 0x2f2   :  { %3354 = vmatpush1.bf16.msra.mxu1 %v6982_v24 }
 0x2f3   :  { %3355 = vmatprep.subr.bf16.mxu1 %v6979_v27 }
 0x2f4   :  { %7438 = vmatpush3.bf16.msra.mxu0 %v7869_v15 }
 0x2f5   :  { %7439 = vmatprep.subr.bf16.mxu0 %v7870_v21 }
 0x2f6   :  { %3356 = vmatpush1.bf16.msra.mxu1 %v6978_v33  ;;  %v7892_v33 = vld [vmem:[#allocation13 + $0x1e8] sm:$0xff]  }
 0x2f7   :  { %3357 = vmatprep.subr.bf16.mxu1 %v7039_v34  ;;  %v7893_v34 = vld [vmem:[#allocation13 + $0x1a8] sm:$0xff]  }
 0x2f8   :  { %7440 = vmatpush3.bf16.msra.mxu0 %v7871_v53  ;;  %v7873_v53 = vld [vmem:[#allocation13 + $0x38] sm:$0xff]  }
 0x2f9   :  { %7469 = vmatprep.subr.bf16.mxu0 %v7872_v4 }
 0x2fa   :  { %3358 = vmatpush2.bf16.msra.mxu1 %v7038_v25  ;;  %v7897_v25 = vld [vmem:[#allocation13 + $0x198] sm:$0xff]  }
 0x2fb   :  { %3359 = vmatprep.subr.bf16.mxu1 %v7035_v36  ;;  %v1543_v36 = vrot.slane %v1530_v26, %v8270_v39 }
 0x2fe   :  { %3360 = vmatpush2.bf16.msra.mxu1 %v7034_v43  ;;  %v1547_v43 = vrot.slane %v1530_v26, %v8274_v42 }
 0x2ff   :  { %3361 = vmatprep.subr.bf16.mxu1 %v7031_v44 }
 0x302   :  { %3362 = vmatpush2.bf16.msra.mxu1 %v7030_v47 }
 0x303   :  { %3363 = vmatprep.subr.bf16.mxu1 %v7027_v48 }
 0x306   :  { %3364 = vmatpush2.bf16.msra.mxu1 %v7026_v54 }
 0x307   :  { %3365 = vmatprep.subr.bf16.mxu1 %v7023_v56 }
 0x30a   :  { %3366 = vmatpush2.bf16.msra.mxu1 %v7022_v59  ;;  %v7902_v59 = vld [vmem:[#allocation13 + $0x1c0] sm:$0xff]  }
 0x30b   :  { %3367 = vmatprep.subr.bf16.mxu1 %v7019_v60 }
 0x30e   :  { %3368 = vmatpush2.bf16.msra.mxu1 %v7018_v0 }
 0x30f   :  { %3369 = vmatprep.subr.bf16.mxu1 %v7015_v1  ;;  %v7904_v1 = vld [vmem:[#allocation13 + $0xf8] sm:$0xff]  }
 0x312   :  { %3370 = vmatpush2.bf16.msra.mxu1 %v7014_v61  ;;  %v2565_v61 = vrot.slane %v8362_v2, %v8272_v41 }
 0x313   :  { %3371 = vmatprep.subr.bf16.mxu1 %v7011_v32 }
 0x316   :  { %3372 = vmatpush2.bf16.msra.mxu1 %v7010_v3 }
 0x317   :  { %7447 = vmatprep.subr.bf16.mxu1 %v7888_v55  ;;  %v7875_v55 = vld [vmem:[#allocation13 + $0x30] sm:$0xff]  }
 0x319   :  { %3374 = vmatmul.mubr.bf16.vlgmr.msra.gmra.mxu1 %v8326_v14  ;;  %v2267_v8 = vpop.f32.mrf.mxu1  ;;  %v2308_v9 = vpop.f32.mrf.mxu0 }
 0x31a   :  { %v8352_v12 = vadd.f32 %v2267_v8, %v2227_v7  ;;  %7448 = vmatpush3.bf16.msra.mxu1 %v7889_v29  ;;  %v2309_v44 = vadd.f32 %v2308_v9, %v1543_v36  ;;  %v7876_v29 = vld [vmem:[#allocation13 + $0x68] sm:$0xff]   ;;  %v7886_v36 = vld [vmem:[#allocation13 + $0x40] sm:$0xff]  }
 0x31b   :  { %v2269_v16 = vpop.f32.mrf.mxu1  ;;  %v2310_v17 = vpop.f32.mrf.mxu0  ;;  %7449 = vmatprep.subr.bf16.mxu1 %v7890_v30  ;;  %v7877_v30 = vld [vmem:[#allocation13 + $0x28] sm:$0xff]  }
 0x31c   :  { %v8354_v18 = vadd.f32 %v2269_v16, %v2229_v11  ;;  %v2311_v47 = vadd.f32 %v2310_v17, %v1547_v43  ;;  %v7887_v43 = vld [vmem:[#allocation13] sm:$0xff]  }
 0x31d   :  { %v2271_v19 = vpop.f32.mrf.mxu1  ;;  %v2312_v20 = vpop.f32.mrf.mxu0 }
 0x31e   :  { %7450 = vmatpush3.bf16.msra.mxu1 %v7891_v31  ;;  %v2357_v15 = vmax.f32 %v8354_v18, 0.0  ;;  %v7878_v18 = vld [vmem:[#allocation13 + $0x60] sm:$0xff]  }
 0x31f   :  { %v2272_v24 = vpop.f32.mrf.mxu1  ;;  %v2313_v27 = vpop.f32.mrf.mxu0  ;;  %7451 = vmatprep.subr.bf16.mxu1 %v7892_v33  ;;  %v7879_v31 = vld [vmem:[#allocation13 + $0x20] sm:$0xff]   ;;  %v7880_v33 = vld [vmem:[#allocation13 + $0x58] sm:$0xff]  }
 0x320   :  { %v7874_v27 = vld [vmem:[#allocation13 + $0x70] sm:$0xff]   ;;  %v2361_v4 = vpack.c.bf16 %v2357_v15, %v2357_v15 }
 0x322   :  { %7452 = vmatpush3.bf16.msra.mxu1 %v7893_v34  ;;  %v7881_v34 = vld [vmem:[#allocation13 + $0x18] sm:$0xff]  }
 0x323   :  { %7453 = vmatprep.subr.bf16.mxu1 %v7894_v35  ;;  %v7882_v35 = vld [vmem:[#allocation13 + $0x50] sm:$0xff]  }
 0x326   :  { %7454 = vmatpush3.bf16.msra.mxu1 %v7895_v22  ;;  %v7883_v22 = vld [vmem:[#allocation13 + $0x10] sm:$0xff]  }
 0x327   :  { %7455 = vmatprep.subr.bf16.mxu1 %v7896_v23  ;;  %v7884_v23 = vld [vmem:[#allocation13 + $0x48] sm:$0xff]  }
 0x32a   :  { %7456 = vmatpush3.bf16.msra.mxu1 %v7897_v25  ;;  %v7885_v25 = vld [vmem:[#allocation13 + $0x8] sm:$0xff]  }
 0x32b   :  { %7457 = vmatprep.subr.bf16.mxu1 %v7898_v37  ;;  %v4026_v37 = vld [vmem:[#allocation10 + $0x3a0] sm:$0xff] }
 0x32e   :  { %7458 = vmatpush3.bf16.msra.mxu1 %v7899_v40  ;;  %v4028_v40 = vld [vmem:[#allocation10 + $0x3e0] sm:$0xff] }
 0x32f   :  { %7459 = vmatprep.subr.bf16.mxu1 %v7900_v46  ;;  %v4022_v46 = vld [vmem:[#allocation10 + $0x320] sm:$0xff] }
 0x332   :  { %7460 = vmatpush3.bf16.msra.mxu1 %v7901_v52 }
 0x333   :  { %7461 = vmatprep.subr.bf16.mxu1 %v7902_v59 }
 0x336   :  { %7462 = vmatpush3.bf16.msra.mxu1 %v7903_v62  ;;  %v4014_v62 = vld [vmem:[#allocation10 + $0x220] sm:$0xff] }
 0x337   :  { %7491 = vmatprep.subr.bf16.mxu1 %v7904_v1  ;;  %v4010_v1 = vld [vmem:[#allocation10 + $0x1a0] sm:$0xff] }
 0x359   :  { %v2349_v45 = vpop.f32.mrf.mxu1 }
 0x35a   :  { %v8358_v48 = vadd.f32 %v2349_v45, %v2309_v44  ;;  %v3252_v49 = vpop.f32.mrf.mxu0  ;;  %v2356_v44 = vmax.f32 %v8352_v12, 0.0  ;;  %v7133_v45 = vcombine.high %v4026_v37, %v4028_v40  ;;  %v4016_v12 = vld [vmem:[#allocation10 + $0x260] sm:$0xff] }
 0x35b   :  { %v2351_v54 = vpop.f32.mrf.mxu1  ;;  %v3253_v32 = vadd.f32 %v3252_v49, %v2561_v28  ;;  %v7132_v49 = vcombine.low %v4026_v37, %v4028_v40  ;;  %v4012_v28 = vld [vmem:[#allocation10 + $0x1e0] sm:$0xff]  ;;  %v7905_v40 = vld [vmem:[#allocation13 + $0xb8] sm:$0xff]  }
 0x35c   :  { %v8360_v56 = vadd.f32 %v2351_v54, %v2311_v47  ;;  %v3254_v57 = vpop.f32.mrf.mxu0  ;;  %v4024_v47 = vld [vmem:[#allocation10 + $0x360] sm:$0xff]  ;;  %v2360_v52 = vpack.c.bf16 %v2356_v44, %v2356_v44 }
 0x35d   :  { %v2353_v58 = vpop.f32.mrf.mxu1  ;;  %v3255_v3 = vadd.f32 %v3254_v57, %v2565_v61  ;;  %v7129_v54 = vcombine.high %v4022_v46, %v4024_v47  ;;  %v4018_v57 = vld [vmem:[#allocation10 + $0x2a0] sm:$0xff]  ;;  %v7128_v59 = vcombine.low %v4022_v46, %v4024_v47  ;;  %v7120_v61 = vcombine.low %v4014_v62, %v4016_v12 }
 0x35e   :  { %v3256_v60 = vpop.f32.mrf.mxu0  ;;  %v4020_v58 = vld [vmem:[#allocation10 + $0x2e0] sm:$0xff] }
 0x35f   :  { %v2354_v63 = vpop.f32.mrf.mxu1  ;;  %v7125_v60 = vcombine.high %v4018_v57, %v4020_v58  ;;  %v7906_v44 = vld [vmem:[#allocation13 + $0xf0] sm:$0xff]  }
 0x360   :  { %v3257_v0 = vpop.f32.mrf.mxu0  ;;  %v7124_v63 = vcombine.low %v4018_v57, %v4020_v58  ;;  %v4050_v46 = vld [vmem:[#allocation10 + $0x6a0] sm:$0xff] }
 0x361   :  { %v7121_v0 = vcombine.high %v4014_v62, %v4016_v12  ;;  %v4052_v47 = vld [vmem:[#allocation10 + $0x6e0] sm:$0xff]  ;;  %v7909_v62 = vld [vmem:[#allocation13 + $0xa8] sm:$0xff]   ;;  %v7910_v12 = vld [vmem:[#allocation13 + $0xe0] sm:$0xff]  }
 0x362   :  { %v7157_v57 = vcombine.high %v4050_v46, %v4052_v47  ;;  %v4046_v58 = vld [vmem:[#allocation10 + $0x620] sm:$0xff] }
 0x399   :  { %v3293_v26 = vpop.f32.mrf.mxu1 }
 0x39a   :  { %v3294_v5 = vadd.f32 %v3293_v26, %v3253_v32  ;;  %v8368_v6 = vpop.f32.mrf.mxu0  ;;  %v7117_v32 = vcombine.high %v4010_v1, %v4012_v28  ;;  %v4006_v26 = vld [vmem:[#allocation10 + $0x120] sm:$0xff] }
 0x39b   :  { %v3295_v7 = vpop.f32.mrf.mxu1 }
 0x39c   :  { %v3296_v8 = vadd.f32 %v3295_v7, %v3255_v3  ;;  %v8370_v9 = vpop.f32.mrf.mxu0  ;;  %v3382_v10 = vmax.f32 %v3294_v5, 0.0  ;;  %v4008_v3 = vld [vmem:[#allocation10 + $0x160] sm:$0xff]  ;;  %v7116_v5 = vcombine.low %v4010_v1, %v4012_v28 }
 0x39d   :  { %v3297_v11 = vpop.f32.mrf.mxu1  ;;  %v7113_v7 = vcombine.high %v4006_v26, %v4008_v3  ;;  %v7112_v15 = vcombine.low %v4006_v26, %v4008_v3  ;;  %v4044_v1 = vld [vmem:[#allocation10 + $0x5e0] sm:$0xff] }
 0x39e   :  { %v3383_v16 = vmax.f32 %v3296_v8, 0.0  ;;  %v3338_v17 = vpop.f32.mrf.mxu0  ;;  %v3386_v24 = vpack.c.bf16 %v3382_v10, %v3382_v10  ;;  %v4002_v8 = vld [vmem:[#allocation10 + $0xa0] sm:$0xff]  ;;  %v2569_v11 = vrot.slane %v8362_v2, %v8270_v39 }
 0x39f   :  { %v3298_v19 = vpop.f32.mrf.mxu1  ;;  %v4004_v10 = vld [vmem:[#allocation10 + $0xe0] sm:$0xff]  ;;  %v2573_v17 = vrot.slane %v8362_v2, %v8274_v42 }
 0x3a0   :  { %v3387_v20 = vpack.c.bf16 %v3383_v16, %v3383_v16  ;;  %v3339_v21 = vpop.f32.mrf.mxu0  ;;  %v7109_v16 = vcombine.high %v4002_v8, %v4004_v10  ;;  %v3998_v19 = vld [vmem:[#allocation10 + $0x20] sm:$0xff] }
 0x3a1   :  { %v3335_v21 = vadd.f32 %v8368_v6, %v2569_v11  ;;  %v2359_v6 = vmax.f32 %v8360_v56, 0.0  ;;  %v7907_v56 = vld [vmem:[#allocation13 + $0xb0] sm:$0xff]  }
 0x3a2   :  { %3678 = vmatprep.mubr.bf16.mxu0 %v3387_v20  ;;  %v4000_v20 = vld [vmem:[#allocation10 + $0x60] sm:$0xff] }
 0x3a3   :  { %3679 = vmatmul.mubr.bf16.vlgmr.msra.gmra.mxu0 %v3386_v24  ;;  %v4038_v3 = vld [vmem:[#allocation10 + $0x520] sm:$0xff] }
 0x3a4   :  { %7470 = vmatpush3.bf16.msra.mxu0 %v7873_v53  ;;  %3950 = vmatprep.mubr.bf16.mxu0 %v2361_v4  ;;  %v7108_v53 = vcombine.low %v4002_v8, %v4004_v10  ;;  %v3337_v4 = vadd.f32 %v8370_v9, %v2573_v17  ;;  %v7913_v8 = vld [vmem:[#allocation13 + $0x98] sm:$0xff]   ;;  %v7914_v10 = vld [vmem:[#allocation13 + $0xd0] sm:$0xff]  }
 0x3a5   :  { %7471 = vmatprep.subr.bf16.mxu0 %v7874_v27  ;;  %v7105_v27 = vcombine.high %v3998_v19, %v4000_v20 }
 0x3a8   :  { %7472 = vmatpush3.bf16.msra.mxu0 %v7875_v55 }
 0x3a9   :  { %7473 = vmatprep.subr.bf16.mxu0 %v7876_v29  ;;  %v4058_v29 = vld [vmem:[#allocation10 + $0x7a0] sm:$0xff] }
 0x3ac   :  { %7474 = vmatpush3.bf16.msra.mxu0 %v7877_v30  ;;  %v4060_v30 = vld [vmem:[#allocation10 + $0x7e0] sm:$0xff] }
 0x3ad   :  { %7475 = vmatprep.subr.bf16.mxu0 %v7878_v18  ;;  %v7164_v9 = vcombine.low %v4058_v29, %v4060_v30 }
 0x3b0   :  { %7476 = vmatpush3.bf16.msra.mxu0 %v7879_v31 }
 0x3b1   :  { %7477 = vmatprep.subr.bf16.mxu0 %v7880_v33  ;;  %v7104_v33 = vcombine.low %v3998_v19, %v4000_v20  ;;  %v7915_v19 = vld [vmem:[#allocation13 + $0x90] sm:$0xff]   ;;  %v7916_v20 = vld [vmem:[#allocation13 + $0xc8] sm:$0xff]  }
 0x3b4   :  { %7478 = vmatpush3.bf16.msra.mxu0 %v7881_v34 }
 0x3b5   :  { %7479 = vmatprep.subr.bf16.mxu0 %v7882_v35  ;;  %v7165_v35 = vcombine.high %v4058_v29, %v4060_v30  ;;  %v4090_v30 = vld [vmem:[#allocation10 + $0xba0] sm:$0xff] }
 0x3b8   :  { %7480 = vmatpush3.bf16.msra.mxu0 %v7883_v22 }
 0x3b9   :  { %7481 = vmatprep.subr.bf16.mxu0 %v7884_v23 }
 0x3bc   :  { %7482 = vmatpush3.bf16.msra.mxu0 %v7885_v25  ;;  %v4054_v25 = vld [vmem:[#allocation10 + $0x720] sm:$0xff] }
 0x3bd   :  { %7483 = vmatprep.subr.bf16.mxu0 %v7886_v36  ;;  %v4056_v36 = vld [vmem:[#allocation10 + $0x760] sm:$0xff] }
 0x3c0   :  { %7484 = vmatpush3.bf16.msra.mxu0 %v7887_v43 }
 0x3c1   :  { %4788 = vmatprep.subr.bf16.mxu0 %v7133_v45  ;;  %v7161_v45 = vcombine.high %v4054_v25, %v4056_v36 }
 0x3c3   :  { %3951 = vmatmul.mubr.bf16.vlgmr.msra.gmra.mxu0 %v2360_v52  ;;  %v7160_v52 = vcombine.low %v4054_v25, %v4056_v36  ;;  %v4088_v25 = vld [vmem:[#allocation10 + $0xb60] sm:$0xff]  ;;  %v4023_v36 = vld [vmem:[#allocation10 + $0x328] sm:$0xff] }
 0x3c4   :  { %4789 = vmatpush1.bf16.msra.mxu0 %v7132_v49  ;;  %4820 = vmatprep.mubr.bf16.mxu0 %v8310_v50  ;;  %v2363_v49 = vpack.c.bf16 %v2359_v6, %v2359_v6 }
 0x3c5   :  { %4790 = vmatprep.subr.bf16.mxu0 %v7129_v54  ;;  %v7908_v54 = vld [vmem:[#allocation13 + $0xe8] sm:$0xff]  }
 0x3c8   :  { %4791 = vmatpush1.bf16.msra.mxu0 %v7128_v59  ;;  %v4048_v59 = vld [vmem:[#allocation10 + $0x660] sm:$0xff] }
 0x3c9   :  { %4792 = vmatprep.subr.bf16.mxu0 %v7125_v60  ;;  %v7156_v60 = vcombine.low %v4050_v46, %v4052_v47  ;;  %v7152_v28 = vcombine.low %v4046_v58, %v4048_v59  ;;  %v4082_v46 = vld [vmem:[#allocation10 + $0xaa0] sm:$0xff] }
 0x3ca   :  { %v4084_v47 = vld [vmem:[#allocation10 + $0xae0] sm:$0xff] }
 0x3cc   :  { %4793 = vmatpush1.bf16.msra.mxu0 %v7124_v63  ;;  %v7153_v63 = vcombine.high %v4046_v58, %v4048_v59  ;;  %v4078_v58 = vld [vmem:[#allocation10 + $0xa20] sm:$0xff] }
 0x3cd   :  { %4794 = vmatprep.subr.bf16.mxu0 %v7121_v0  ;;  %v4042_v0 = vld [vmem:[#allocation10 + $0x5a0] sm:$0xff] }
 0x3ce   :  { %v7149_v26 = vcombine.high %v4042_v0, %v4044_v1  ;;  %v4080_v59 = vld [vmem:[#allocation10 + $0xa60] sm:$0xff] }
 0x3d0   :  { %4795 = vmatpush1.bf16.msra.mxu0 %v7120_v61  ;;  %v7911_v61 = vld [vmem:[#allocation13 + $0xa0] sm:$0xff]  }
 0x3d1   :  { %4796 = vmatprep.subr.bf16.mxu0 %v7117_v32  ;;  %v7912_v32 = vld [vmem:[#allocation13 + $0xd8] sm:$0xff]  }
 0x3d4   :  { %4797 = vmatpush1.bf16.msra.mxu0 %v7116_v5  ;;  %v4040_v5 = vld [vmem:[#allocation10 + $0x560] sm:$0xff] }
 0x3d5   :  { %4798 = vmatprep.subr.bf16.mxu0 %v7113_v7  ;;  %v7148_v7 = vcombine.low %v4042_v0, %v4044_v1  ;;  %v7145_v11 = vcombine.high %v4038_v3, %v4040_v5  ;;  %v7144_v17 = vcombine.low %v4038_v3, %v4040_v5  ;;  %v7185_v0 = vcombine.high %v4078_v58, %v4080_v59 }
 0x3d6   :  { %v7184_v3 = vcombine.low %v4078_v58, %v4080_v59  ;;  %v4114_v58 = vld [vmem:[#allocation10 + $0xea0] sm:$0xff] }
 0x3d7   :  { %v4116_v59 = vld [vmem:[#allocation10 + $0xee0] sm:$0xff] }
 0x3d8   :  { %4799 = vmatpush1.bf16.msra.mxu0 %v7112_v15  ;;  %v4034_v15 = vld [vmem:[#allocation10 + $0x4a0] sm:$0xff] }
 0x3d9   :  { %v3375_v24 = vpop.f32.mrf.mxu1  ;;  %4800 = vmatprep.subr.bf16.mxu0 %v7109_v16  ;;  %v4036_v16 = vld [vmem:[#allocation10 + $0x4e0] sm:$0xff] }
 0x3da   :  { %v3376_v55 = vadd.f32 %v3375_v24, %v3335_v21  ;;  %v7141_v21 = vcombine.high %v4034_v15, %v4036_v16  ;;  %v4032_v24 = vld [vmem:[#allocation10 + $0x460] sm:$0xff] }
 0x3db   :  { %v3377_v18 = vpop.f32.mrf.mxu1 }
 0x3dc   :  { %v3378_v31 = vadd.f32 %v3377_v18, %v3337_v4  ;;  %4801 = vmatpush1.bf16.msra.mxu0 %v7108_v53  ;;  %v3384_v34 = vmax.f32 %v3376_v55, 0.0  ;;  %v4030_v53 = vld [vmem:[#allocation10 + $0x420] sm:$0xff]  ;;  %v7917_v4 = vld [vmem:[#allocation13 + $0x88] sm:$0xff]   ;;  %v7918_v55 = vld [vmem:[#allocation13 + $0xc0] sm:$0xff]  }
 0x3dd   :  { %v3379_v2 = vpop.f32.mrf.mxu1  ;;  %4802 = vmatprep.subr.bf16.mxu0 %v7105_v27  ;;  %v7140_v27 = vcombine.low %v4034_v15, %v4036_v16  ;;  %v7137_v29 = vcombine.high %v4030_v53, %v4032_v24  ;;  %v4092_v18 = vld [vmem:[#allocation10 + $0xbe0] sm:$0xff]  ;;  %v4007_v15 = vld [vmem:[#allocation10 + $0x128] sm:$0xff] }
 0x3de   :  { %v3385_v22 = vmax.f32 %v3378_v31, 0.0  ;;  %v3388_v43 = vpack.c.bf16 %v3384_v34, %v3384_v34  ;;  %v4027_v31 = vld [vmem:[#allocation10 + $0x3a8] sm:$0xff]  ;;  %v7136_v34 = vcombine.low %v4030_v53, %v4032_v24  ;;  %v7919_v2 = vld [vmem:[#allocation13 + $0x80] sm:$0xff]   ;;  %v4066_v53 = vld [vmem:[#allocation10 + $0x8a0] sm:$0xff] }
 0x3df   :  { %v3380_v23 = vpop.f32.mrf.mxu1  ;;  %v4009_v16 = vld [vmem:[#allocation10 + $0x168] sm:$0xff]  ;;  %v4068_v24 = vld [vmem:[#allocation10 + $0x8e0] sm:$0xff] }
 0x3e0   :  { %v3389_v37 = vpack.c.bf16 %v3385_v22, %v3385_v22  ;;  %4803 = vmatpush1.bf16.msra.mxu0 %v7104_v33  ;;  %v4029_v33 = vld [vmem:[#allocation10 + $0x3e8] sm:$0xff]  ;;  %v7197_v22 = vcombine.high %v4090_v30, %v4092_v18  ;;  %v4086_v23 = vld [vmem:[#allocation10 + $0xb20] sm:$0xff] }
 0x3e1   :  { %4804 = vmatprep.subr.bf16.mxu0 %v7165_v35  ;;  %v2358_v35 = vmax.f32 %v8358_v48, 0.0  ;;  %v7135_v6 = vcombine.high %v4027_v31, %v4029_v33  ;;  %v4019_v48 = vld [vmem:[#allocation10 + $0x2a8] sm:$0xff] }
 0x3e2   :  { %3718 = vmatprep.mubr.bf16.mxu1 %v3389_v37  ;;  %v4025_v37 = vld [vmem:[#allocation10 + $0x368] sm:$0xff] }
 0x3e3   :  { %3719 = vmatmul.mubr.bf16.vlgmr.msra.gmra.mxu1 %v3388_v43  ;;  %v7134_v43 = vcombine.low %v4027_v31, %v4029_v33  ;;  %v4062_v31 = vld [vmem:[#allocation10 + $0x820] sm:$0xff] }
 0x3e4   :  { %7492 = vmatpush3.bf16.msra.mxu1 %v7905_v40  ;;  %4805 = vmatpush2.bf16.msra.mxu0 %v7164_v9  ;;  %v7196_v9 = vcombine.low %v4090_v30, %v4092_v18  ;;  %v2362_v40 = vpack.c.bf16 %v2358_v35, %v2358_v35  ;;  %v7173_v30 = vcombine.high %v4066_v53, %v4068_v24  ;;  %v4064_v33 = vld [vmem:[#allocation10 + $0x860] sm:$0xff] }
 0x3e5   :  { %3990 = vmatprep.mubr.bf16.mxu1 %v2363_v49  ;;  %7493 = vmatprep.subr.bf16.mxu1 %v7906_v44  ;;  %v7193_v44 = vcombine.high %v4086_v23, %v4088_v25  ;;  %v4021_v49 = vld [vmem:[#allocation10 + $0x2e8] sm:$0xff]  ;;  %v7172_v35 = vcombine.low %v4066_v53, %v4068_v24  ;;  %v4102_v53 = vld [vmem:[#allocation10 + $0xd20] sm:$0xff] }
 0x3e6   :  { %4806 = vmatprep.subr.bf16.mxu0 %v7161_v45  ;;  %v7131_v45 = vcombine.high %v4023_v36, %v4025_v37  ;;  %v4104_v24 = vld [vmem:[#allocation10 + $0xd60] sm:$0xff] }
 0x3e8   :  { %7494 = vmatpush3.bf16.msra.mxu1 %v7907_v56  ;;  %4807 = vmatpush2.bf16.msra.mxu0 %v7160_v52  ;;  %v7192_v52 = vcombine.low %v4086_v23, %v4088_v25  ;;  %v7130_v56 = vcombine.low %v4023_v36, %v4025_v37  ;;  %v4122_v25 = vld [vmem:[#allocation10 + $0xfa0] sm:$0xff]  ;;  %v4059_v37 = vld [vmem:[#allocation10 + $0x7a8] sm:$0xff] }
 0x3e9   :  { %7495 = vmatprep.subr.bf16.mxu1 %v7908_v54  ;;  %4808 = vmatprep.subr.bf16.mxu0 %v7157_v57  ;;  %v7189_v54 = vcombine.high %v4082_v46, %v4084_v47  ;;  %v7127_v57 = vcombine.high %v4019_v48, %v4021_v49  ;;  %v4124_v36 = vld [vmem:[#allocation10 + $0xfe0] sm:$0xff] }
 0x3ec   :  { %7496 = vmatpush3.bf16.msra.mxu1 %v7909_v62  ;;  %4809 = vmatpush2.bf16.msra.mxu0 %v7156_v60  ;;  %v4015_v60 = vld [vmem:[#allocation10 + $0x228] sm:$0xff] }
 0x3ed   :  { %7497 = vmatprep.subr.bf16.mxu1 %v7910_v12  ;;  %4810 = vmatprep.subr.bf16.mxu0 %v7153_v63  ;;  %v4017_v62 = vld [vmem:[#allocation10 + $0x268] sm:$0xff]  ;;  %v7188_v12 = vcombine.low %v4082_v46, %v4084_v47  ;;  %v7126_v63 = vcombine.low %v4019_v48, %v4021_v49  ;;  %v4118_v46 = vld [vmem:[#allocation10 + $0xf20] sm:$0xff] }
 0x3ee   :  { %v7123_v1 = vcombine.high %v4015_v60, %v4017_v62  ;;  %v7122_v5 = vcombine.low %v4015_v60, %v4017_v62  ;;  %v4120_v47 = vld [vmem:[#allocation10 + $0xf60] sm:$0xff]  ;;  %v4055_v48 = vld [vmem:[#allocation10 + $0x728] sm:$0xff] }
 0x3ef   :  { %v4057_v49 = vld [vmem:[#allocation10 + $0x768] sm:$0xff] }
 0x3f0   :  { %7498 = vmatpush3.bf16.msra.mxu1 %v7911_v61  ;;  %4811 = vmatpush2.bf16.msra.mxu0 %v7152_v28  ;;  %v4074_v28 = vld [vmem:[#allocation10 + $0x9a0] sm:$0xff]  ;;  %v4051_v60 = vld [vmem:[#allocation10 + $0x6a8] sm:$0xff] }
 0x3f1   :  { %7499 = vmatprep.subr.bf16.mxu1 %v7912_v32  ;;  %4812 = vmatprep.subr.bf16.mxu0 %v7149_v26  ;;  %v4076_v61 = vld [vmem:[#allocation10 + $0x9e0] sm:$0xff]  ;;  %v4011_v32 = vld [vmem:[#allocation10 + $0x1a8] sm:$0xff] }
 0x3f2   :  { %v4013_v26 = vld [vmem:[#allocation10 + $0x1e8] sm:$0xff] }
 0x3f3   :  { %v4053_v62 = vld [vmem:[#allocation10 + $0x6e8] sm:$0xff] }
 0x3f4   :  { %7500 = vmatpush3.bf16.msra.mxu1 %v7913_v8  ;;  %4813 = vmatpush2.bf16.msra.mxu0 %v7148_v7  ;;  %v7181_v7 = vcombine.high %v4074_v28, %v4076_v61  ;;  %v7119_v8 = vcombine.high %v4011_v32, %v4013_v26 }
 0x3f5   :  { %7501 = vmatprep.subr.bf16.mxu1 %v7914_v10  ;;  %4814 = vmatprep.subr.bf16.mxu0 %v7145_v11  ;;  %v4070_v10 = vld [vmem:[#allocation10 + $0x920] sm:$0xff] }
 0x3f6   :  { %v4072_v11 = vld [vmem:[#allocation10 + $0x960] sm:$0xff] }
 0x3f8   :  { %7502 = vmatpush3.bf16.msra.mxu1 %v7915_v19  ;;  %4815 = vmatpush2.bf16.msra.mxu0 %v7144_v17  ;;  %v7180_v17 = vcombine.low %v4074_v28, %v4076_v61  ;;  %v7118_v19 = vcombine.low %v4011_v32, %v4013_v26  ;;  %v4110_v28 = vld [vmem:[#allocation10 + $0xe20] sm:$0xff]  ;;  %v4047_v32 = vld [vmem:[#allocation10 + $0x628] sm:$0xff] }
 0x3f9   :  { %7503 = vmatprep.subr.bf16.mxu1 %v7916_v20  ;;  %4816 = vmatprep.subr.bf16.mxu0 %v7141_v21  ;;  %v7177_v20 = vcombine.high %v4070_v10, %v4072_v11  ;;  %v7115_v21 = vcombine.high %v4007_v15, %v4009_v16  ;;  %v4112_v61 = vld [vmem:[#allocation10 + $0xe60] sm:$0xff]  ;;  %v4049_v26 = vld [vmem:[#allocation10 + $0x668] sm:$0xff] }
 0x3fc   :  { %7504 = vmatpush3.bf16.msra.mxu1 %v7917_v4  ;;  %4817 = vmatpush2.bf16.msra.mxu0 %v7140_v27  ;;  %v4003_v27 = vld [vmem:[#allocation10 + $0xa8] sm:$0xff] }
 0x3fd   :  { %7505 = vmatprep.subr.bf16.mxu1 %v7918_v55  ;;  %4818 = vmatprep.subr.bf16.mxu0 %v7137_v29  ;;  %v4005_v4 = vld [vmem:[#allocation10 + $0xe8] sm:$0xff]  ;;  %v7176_v55 = vcombine.low %v4070_v10, %v4072_v11  ;;  %v7114_v29 = vcombine.low %v4007_v15, %v4009_v16  ;;  %v4106_v10 = vld [vmem:[#allocation10 + $0xda0] sm:$0xff] }
 0x3fe   :  { %v7111_v18 = vcombine.high %v4003_v27, %v4005_v4  ;;  %v4108_v11 = vld [vmem:[#allocation10 + $0xde0] sm:$0xff]  ;;  %v4043_v15 = vld [vmem:[#allocation10 + $0x5a8] sm:$0xff] }
 0x3ff   :  { %v4045_v16 = vld [vmem:[#allocation10 + $0x5e8] sm:$0xff] }
 0x400   :  { %7506 = vmatpush3.bf16.msra.mxu1 %v7919_v2  ;;  %4819 = vmatpush2.bf16.msra.mxu0 %v7136_v34  ;;  %v3999_v34 = vld [vmem:[#allocation10 + $0x28] sm:$0xff] }
 0x401   :  { %4829 = vmatprep.subr.bf16.mxu1 %v7197_v22  ;;  %4870 = vmatprep.subr.bf16.mxu0 %v7135_v6  ;;  %v4001_v2 = vld [vmem:[#allocation10 + $0x68] sm:$0xff]  ;;  %v7110_v22 = vcombine.low %v4003_v27, %v4005_v4  ;;  %v7169_v6 = vcombine.high %v4062_v31, %v4064_v33 }
 0x402   :  { %v7107_v23 = vcombine.high %v3999_v34, %v4001_v2  ;;  %v4039_v27 = vld [vmem:[#allocation10 + $0x528] sm:$0xff] }
 0x403   :  { %3991 = vmatmul.mubr.bf16.vlgmr.msra.gmra.mxu1 %v2362_v40  ;;  %4821 = vmatmul.mubr.bf16.vlgmr.msra.gmra.mxu0 %v8312_v51  ;;  %v7168_v40 = vcombine.low %v4062_v31, %v4064_v33  ;;  %v4041_v4 = vld [vmem:[#allocation10 + $0x568] sm:$0xff]  ;;  %v4098_v31 = vld [vmem:[#allocation10 + $0xca0] sm:$0xff] }
 0x404   :  { %4830 = vmatpush1.bf16.msra.mxu1 %v7196_v9  ;;  %4861 = vmatprep.mubr.bf16.mxu1 %v8324_v13  ;;  %v4061_v9 = vld [vmem:[#allocation10 + $0x7e8] sm:$0xff]  ;;  %v4100_v33 = vld [vmem:[#allocation10 + $0xce0] sm:$0xff] }
 0x405   :  { %4871 = vmatpush1.bf16.msra.mxu0 %v7134_v43  ;;  %4902 = vmatprep.mubr.bf16.mxu0 %v8310_v50  ;;  %v7106_v43 = vcombine.low %v3999_v34, %v4001_v2  ;;  %v4035_v34 = vld [vmem:[#allocation10 + $0x4a8] sm:$0xff] }
 0x406   :  { %4831 = vmatprep.subr.bf16.mxu1 %v7193_v44  ;;  %4872 = vmatprep.subr.bf16.mxu0 %v7131_v45  ;;  %v7229_v44 = vcombine.high %v4122_v25, %v4124_v36  ;;  %v7167_v45 = vcombine.high %v4059_v37, %v4061_v9  ;;  %v4037_v2 = vld [vmem:[#allocation10 + $0x4e8] sm:$0xff] }
 0x408   :  { %4832 = vmatpush1.bf16.msra.mxu1 %v7192_v52  ;;  %v7228_v52 = vcombine.low %v4122_v25, %v4124_v36  ;;  %v4094_v25 = vld [vmem:[#allocation10 + $0xc20] sm:$0xff] }
 0x409   :  { %4873 = vmatpush1.bf16.msra.mxu0 %v7130_v56  ;;  %4833 = vmatprep.subr.bf16.mxu1 %v7189_v54  ;;  %v7166_v56 = vcombine.low %v4059_v37, %v4061_v9  ;;  %v7225_v54 = vcombine.high %v4118_v46, %v4120_v47  ;;  %v4096_v36 = vld [vmem:[#allocation10 + $0xc60] sm:$0xff]  ;;  %v4031_v37 = vld [vmem:[#allocation10 + $0x428] sm:$0xff] }
 0x40a   :  { %4874 = vmatprep.subr.bf16.mxu0 %v7127_v57  ;;  %v7163_v57 = vcombine.high %v4055_v48, %v4057_v49  ;;  %v4033_v9 = vld [vmem:[#allocation10 + $0x468] sm:$0xff] }
 0x40c   :  { %4834 = vmatpush1.bf16.msra.mxu1 %v7188_v12  ;;  %v7224_v12 = vcombine.low %v4118_v46, %v4120_v47  ;;  %v4091_v46 = vld [vmem:[#allocation10 + $0xba8] sm:$0xff] }
 0x40d   :  { %4875 = vmatpush1.bf16.msra.mxu0 %v7126_v63  ;;  %4835 = vmatprep.subr.bf16.mxu1 %v7185_v0  ;;  %v7162_v63 = vcombine.low %v4055_v48, %v4057_v49  ;;  %v7221_v0 = vcombine.high %v4114_v58, %v4116_v59  ;;  %v4093_v47 = vld [vmem:[#allocation10 + $0xbe8] sm:$0xff]  ;;  %v7200_v48 = vcombine.low %v4094_v25, %v4096_v36 }
 0x40e   :  { %4876 = vmatprep.subr.bf16.mxu0 %v7123_v1  ;;  %v7159_v1 = vcombine.high %v4051_v60, %v4053_v62  ;;  %v7138_v49 = vcombine.low %v4031_v37, %v4033_v9 }
 0x410   :  { %4836 = vmatpush1.bf16.msra.mxu1 %v7184_v3  ;;  %v7220_v3 = vcombine.low %v4114_v58, %v4116_v59  ;;  %v4083_v59 = vld [vmem:[#allocation10 + $0xaa8] sm:$0xff] }
 0x411   :  { %4877 = vmatpush1.bf16.msra.mxu0 %v7122_v5  ;;  %4837 = vmatprep.subr.bf16.mxu1 %v7181_v7  ;;  %v7158_v5 = vcombine.low %v4051_v60, %v4053_v62  ;;  %v7217_v7 = vcombine.high %v4110_v28, %v4112_v61  ;;  %v4085_v60 = vld [vmem:[#allocation10 + $0xae8] sm:$0xff] }
 0x412   :  { %4878 = vmatprep.subr.bf16.mxu0 %v7119_v8  ;;  %v7155_v8 = vcombine.high %v4047_v32, %v4049_v26 }
 0x414   :  { %4838 = vmatpush1.bf16.msra.mxu1 %v7180_v17  ;;  %v7216_v17 = vcombine.low %v4110_v28, %v4112_v61  ;;  %v7920_v61 = vld [vmem:[#allocation13 + $0x278] sm:$0xff]  }
 0x415   :  { %4879 = vmatpush1.bf16.msra.mxu0 %v7118_v19  ;;  %4839 = vmatprep.subr.bf16.mxu1 %v7177_v20  ;;  %v7154_v19 = vcombine.low %v4047_v32, %v4049_v26  ;;  %v7213_v20 = vcombine.high %v4106_v10, %v4108_v11  ;;  %v7921_v32 = vld [vmem:[#allocation13 + $0x238] sm:$0xff]   ;;  %v7922_v26 = vld [vmem:[#allocation13 + $0x270] sm:$0xff]  }
 0x416   :  { %4880 = vmatprep.subr.bf16.mxu0 %v7115_v21  ;;  %v7151_v21 = vcombine.high %v4043_v15, %v4045_v16 }
 0x418   :  { %4840 = vmatpush1.bf16.msra.mxu1 %v7176_v55  ;;  %v7212_v55 = vcombine.low %v4106_v10, %v4108_v11  ;;  %v7924_v11 = vld [vmem:[#allocation13 + $0x268] sm:$0xff]  }
 0x419   :  { %4881 = vmatpush1.bf16.msra.mxu0 %v7114_v29  ;;  %4841 = vmatprep.subr.bf16.mxu1 %v7173_v30  ;;  %v7150_v29 = vcombine.low %v4043_v15, %v4045_v16  ;;  %v7209_v30 = vcombine.high %v4102_v53, %v4104_v24  ;;  %v4071_v15 = vld [vmem:[#allocation10 + $0x928] sm:$0xff] }
 0x41a   :  { %4882 = vmatprep.subr.bf16.mxu0 %v7111_v18  ;;  %v7147_v18 = vcombine.high %v4039_v27, %v4041_v4  ;;  %v4073_v16 = vld [vmem:[#allocation10 + $0x968] sm:$0xff] }
 0x41c   :  { %4842 = vmatpush1.bf16.msra.mxu1 %v7172_v35  ;;  %v7208_v35 = vcombine.low %v4102_v53, %v4104_v24  ;;  %v4067_v53 = vld [vmem:[#allocation10 + $0x8a8] sm:$0xff] }
 0x41d   :  { %4883 = vmatpush1.bf16.msra.mxu0 %v7110_v22  ;;  %4843 = vmatprep.subr.bf16.mxu1 %v7169_v6  ;;  %v7146_v22 = vcombine.low %v4039_v27, %v4041_v4  ;;  %v7205_v6 = vcombine.high %v4098_v31, %v4100_v33  ;;  %v4069_v24 = vld [vmem:[#allocation10 + $0x8e8] sm:$0xff]  ;;  %v7178_v27 = vcombine.low %v4071_v15, %v4073_v16  ;;  %v7927_v4 = vld [vmem:[#allocation13 + $0x220] sm:$0xff]  }
 0x41e   :  { %4884 = vmatprep.subr.bf16.mxu0 %v7107_v23  ;;  %v7143_v23 = vcombine.high %v4035_v34, %v4037_v2 }
 0x420   :  { %4844 = vmatpush1.bf16.msra.mxu1 %v7168_v40  ;;  %v7204_v40 = vcombine.low %v4098_v31, %v4100_v33  ;;  %v7174_v31 = vcombine.low %v4067_v53, %v4069_v24  ;;  %v7929_v33 = vld [vmem:[#allocation13 + $0x218] sm:$0xff]  }
 0x421   :  { %4885 = vmatpush1.bf16.msra.mxu0 %v7106_v43  ;;  %4845 = vmatprep.subr.bf16.mxu1 %v7229_v44  ;;  %v7142_v43 = vcombine.low %v4035_v34, %v4037_v2  ;;  %v7201_v44 = vcombine.high %v4094_v25, %v4096_v36  ;;  %v7930_v2 = vld [vmem:[#allocation13 + $0x250] sm:$0xff]   ;;  %v4119_v36 = vld [vmem:[#allocation10 + $0xf28] sm:$0xff] }
 0x422   :  { %4886 = vmatprep.subr.bf16.mxu0 %v7167_v45  ;;  %v7139_v45 = vcombine.high %v4031_v37, %v4033_v9  ;;  %v4121_v37 = vld [vmem:[#allocation10 + $0xf68] sm:$0xff] }
 0x424   :  { %4846 = vmatpush2.bf16.msra.mxu1 %v7228_v52  ;;  %v7199_v52 = vcombine.high %v4091_v46, %v4093_v47 }
 0x425   :  { %4887 = vmatpush2.bf16.msra.mxu0 %v7166_v56  ;;  %4847 = vmatprep.subr.bf16.mxu1 %v7225_v54  ;;  %v4087_v56 = vld [vmem:[#allocation10 + $0xb28] sm:$0xff] }
 0x426   :  { %4888 = vmatprep.subr.bf16.mxu0 %v7163_v57  ;;  %v4089_v54 = vld [vmem:[#allocation10 + $0xb68] sm:$0xff]  ;;  %v7198_v57 = vcombine.low %v4091_v46, %v4093_v47  ;;  %v7226_v46 = vcombine.low %v4119_v36, %v4121_v37 }
 0x427   :  { %v7195_v58 = vcombine.high %v4087_v56, %v4089_v54  ;;  %v7194_v62 = vcombine.low %v4087_v56, %v4089_v54  ;;  %v4113_v56 = vld [vmem:[#allocation10 + $0xe68] sm:$0xff] }
 0x428   :  { %4848 = vmatpush2.bf16.msra.mxu1 %v7224_v12  ;;  %v7191_v12 = vcombine.high %v4083_v59, %v4085_v60 }
 0x429   :  { %4889 = vmatpush2.bf16.msra.mxu0 %v7162_v63  ;;  %4849 = vmatprep.subr.bf16.mxu1 %v7221_v0  ;;  %v4079_v63 = vld [vmem:[#allocation10 + $0xa28] sm:$0xff] }
 0x42a   :  { %4890 = vmatprep.subr.bf16.mxu0 %v7159_v1  ;;  %v4081_v0 = vld [vmem:[#allocation10 + $0xa68] sm:$0xff]  ;;  %v7190_v1 = vcombine.low %v4083_v59, %v4085_v60 }
 0x42b   :  { %v7187_v28 = vcombine.high %v4079_v63, %v4081_v0  ;;  %v4107_v60 = vld [vmem:[#allocation10 + $0xda8] sm:$0xff] }
 0x42c   :  { %4850 = vmatpush2.bf16.msra.mxu1 %v7220_v3  ;;  %v4075_v3 = vld [vmem:[#allocation10 + $0x9a8] sm:$0xff] }
 0x42d   :  { %4891 = vmatpush2.bf16.msra.mxu0 %v7158_v5  ;;  %4851 = vmatprep.subr.bf16.mxu1 %v7217_v7  ;;  %v4077_v5 = vld [vmem:[#allocation10 + $0x9e8] sm:$0xff]  ;;  %v7186_v7 = vcombine.low %v4079_v63, %v4081_v0 }
 0x42e   :  { %4892 = vmatprep.subr.bf16.mxu0 %v7155_v8  ;;  %v7923_v8 = vld [vmem:[#allocation13 + $0x230] sm:$0xff]   ;;  %v7183_v10 = vcombine.high %v4075_v3, %v4077_v5  ;;  %v4103_v0 = vld [vmem:[#allocation10 + $0xd28] sm:$0xff] }
 0x430   :  { %4852 = vmatpush2.bf16.msra.mxu1 %v7216_v17  ;;  %v7182_v17 = vcombine.low %v4075_v3, %v4077_v5 }
 0x431   :  { %4893 = vmatpush2.bf16.msra.mxu0 %v7154_v19  ;;  %4853 = vmatprep.subr.bf16.mxu1 %v7213_v20  ;;  %v7925_v19 = vld [vmem:[#allocation13 + $0x228] sm:$0xff]   ;;  %v7179_v20 = vcombine.high %v4071_v15, %v4073_v16 }
 0x432   :  { %4894 = vmatprep.subr.bf16.mxu0 %v7151_v21  ;;  %v7926_v21 = vld [vmem:[#allocation13 + $0x260] sm:$0xff]  }
 0x434   :  { %4854 = vmatpush2.bf16.msra.mxu1 %v7212_v55  ;;  %v7175_v55 = vcombine.high %v4067_v53, %v4069_v24  ;;  %v7934_v24 = vld [vmem:[#allocation13 + $0x240] sm:$0xff]  }
 0x435   :  { %4895 = vmatpush2.bf16.msra.mxu0 %v7150_v29  ;;  %4855 = vmatprep.subr.bf16.mxu1 %v7209_v30  ;;  %v7928_v29 = vld [vmem:[#allocation13 + $0x258] sm:$0xff]  }
 0x436   :  { %4896 = vmatprep.subr.bf16.mxu0 %v7147_v18  ;;  %v4063_v30 = vld [vmem:[#allocation10 + $0x828] sm:$0xff] }
 0x437   :  { %v4065_v18 = vld [vmem:[#allocation10 + $0x868] sm:$0xff] }
 0x438   :  { %4856 = vmatpush2.bf16.msra.mxu1 %v7208_v35  ;;  %v7171_v34 = vcombine.high %v4063_v30, %v4065_v18  ;;  %v4123_v35 = vld [vmem:[#allocation10 + $0xfa8] sm:$0xff] }
 0x439   :  { %4897 = vmatpush2.bf16.msra.mxu0 %v7146_v22  ;;  %4857 = vmatprep.subr.bf16.mxu1 %v7205_v6  ;;  %v4125_v22 = vld [vmem:[#allocation10 + $0xfe8] sm:$0xff]  ;;  %v7170_v6 = vcombine.low %v4063_v30, %v4065_v18 }
 0x43a   :  { %4898 = vmatprep.subr.bf16.mxu0 %v7143_v23  ;;  %v7931_v23 = vld [vmem:[#allocation13 + $0x210] sm:$0xff]   ;;  %v7231_v25 = vcombine.high %v4123_v35, %v4125_v22  ;;  %v7230_v9 = vcombine.low %v4123_v35, %v4125_v22 }
 0x43c   :  { %4858 = vmatpush2.bf16.msra.mxu1 %v7204_v40  ;;  %v7227_v40 = vcombine.high %v4119_v36, %v4121_v37  ;;  %v7938_v36 = vld [vmem:[#allocation13 + $0x2f0] sm:$0xff]  }
 0x43d   :  { %4899 = vmatpush2.bf16.msra.mxu0 %v7142_v43  ;;  %4859 = vmatprep.subr.bf16.mxu1 %v7201_v44  ;;  %v4115_v43 = vld [vmem:[#allocation10 + $0xea8] sm:$0xff]  ;;  %v7939_v37 = vld [vmem:[#allocation13 + $0x2b0] sm:$0xff]  }
 0x43e   :  { %4900 = vmatprep.subr.bf16.mxu0 %v7139_v45  ;;  %v4117_v44 = vld [vmem:[#allocation10 + $0xee8] sm:$0xff] }
 0x440   :  { %4860 = vmatpush2.bf16.msra.mxu1 %v7200_v48  ;;  %v7223_v48 = vcombine.high %v4115_v43, %v4117_v44 }
 0x441   :  { %4901 = vmatpush2.bf16.msra.mxu0 %v7138_v49  ;;  %4911 = vmatprep.subr.bf16.mxu1 %v7199_v52  ;;  %v4111_v52 = vld [vmem:[#allocation10 + $0xe28] sm:$0xff] }
 0x442   :  { %7513 = vmatprep.subr.bf16.mxu0 %v7920_v61  ;;  %v7219_v59 = vcombine.high %v4111_v52, %v4113_v56 }
 0x443   :  { %4862 = vmatmul.mubr.bf16.vlgmr.msra.gmra.mxu1 %v8326_v14 }
 0x444   :  { %4903 = vmatmul.mubr.bf16.vlgmr.msra.gmra.mxu0 %v8312_v51  ;;  %4912 = vmatpush1.bf16.msra.mxu1 %v7198_v57  ;;  %v7222_v57 = vcombine.low %v4115_v43, %v4117_v44  ;;  %v7942_v43 = vld [vmem:[#allocation13 + $0x2e0] sm:$0xff]  }
 0x445   :  { %4943 = vmatprep.mubr.bf16.mxu1 %v8324_v13  ;;  %4913 = vmatprep.subr.bf16.mxu1 %v7195_v58  ;;  %v7943_v44 = vld [vmem:[#allocation13 + $0x2a0] sm:$0xff]  }
 0x446   :  { %7514 = vmatpush3.bf16.msra.mxu0 %v7921_v32  ;;  %v4099_v32 = vld [vmem:[#allocation10 + $0xca8] sm:$0xff] }
 0x447   :  { %7515 = vmatprep.subr.bf16.mxu0 %v7922_v26  ;;  %v4101_v26 = vld [vmem:[#allocation10 + $0xce8] sm:$0xff] }
 0x448   :  { %4914 = vmatpush1.bf16.msra.mxu1 %v7194_v62  ;;  %v4109_v62 = vld [vmem:[#allocation10 + $0xde8] sm:$0xff]  ;;  %v7207_v5 = vcombine.high %v4099_v32, %v4101_v26 }
 0x449   :  { %4915 = vmatprep.subr.bf16.mxu1 %v7191_v12  ;;  %v7218_v12 = vcombine.low %v4111_v52, %v4113_v56  ;;  %v7215_v63 = vcombine.high %v4107_v60, %v4109_v62  ;;  %v7948_v56 = vld [vmem:[#allocation13 + $0x2c8] sm:$0xff]  }
 0x44a   :  { %7516 = vmatpush3.bf16.msra.mxu0 %v7923_v8  ;;  %v4097_v8 = vld [vmem:[#allocation10 + $0xc68] sm:$0xff] }
 0x44b   :  { %7517 = vmatprep.subr.bf16.mxu0 %v7924_v11 }
 0x44c   :  { %4916 = vmatpush1.bf16.msra.mxu1 %v7190_v1  ;;  %v4105_v1 = vld [vmem:[#allocation10 + $0xd68] sm:$0xff] }
 0x44d   :  { %4917 = vmatprep.subr.bf16.mxu1 %v7187_v28  ;;  %v7214_v28 = vcombine.low %v4107_v60, %v4109_v62  ;;  %v7211_v61 = vcombine.high %v4103_v0, %v4105_v1  ;;  %v7210_v3 = vcombine.low %v4103_v0, %v4105_v1  ;;  %v7951_v0 = vld [vmem:[#allocation13 + $0x280] sm:$0xff]  }
 0x44e   :  { %7518 = vmatpush3.bf16.msra.mxu0 %v7925_v19  ;;  %v7933_v19 = vld [vmem:[#allocation13 + $0x208] sm:$0xff]  }
 0x44f   :  { %7519 = vmatprep.subr.bf16.mxu0 %v7926_v21 }
 0x450   :  { %4918 = vmatpush1.bf16.msra.mxu1 %v7186_v7  ;;  %v4095_v7 = vld [vmem:[#allocation10 + $0xc28] sm:$0xff] }
 0x451   :  { %4919 = vmatprep.subr.bf16.mxu1 %v7183_v10  ;;  %v7206_v10 = vcombine.low %v4099_v32, %v4101_v26  ;;  %v7203_v11 = vcombine.high %v4095_v7, %v4097_v8  ;;  %v7202_v15 = vcombine.low %v4095_v7, %v4097_v8  ;;  %v8402_v32 = vld [vmem:[#allocation10 + $0xbf0] sm:$0xff] }
 0x452   :  { %7520 = vmatpush3.bf16.msra.mxu0 %v7927_v4 }
 0x453   :  { %7521 = vmatprep.subr.bf16.mxu0 %v7928_v29  ;;  %v8392_v29 = vld [vmem:[#allocation10 + $0x3f0] sm:$0xff] }
 0x454   :  { %4920 = vmatpush1.bf16.msra.mxu1 %v7182_v17  ;;  %v7932_v17 = vld [vmem:[#allocation13 + $0x248] sm:$0xff]  }
 0x455   :  { %4921 = vmatprep.subr.bf16.mxu1 %v7179_v20 }
 0x456   :  { %7522 = vmatpush3.bf16.msra.mxu0 %v7929_v33 }
 0x457   :  { %7523 = vmatprep.subr.bf16.mxu0 %v7930_v2 }
 0x458   :  { %4922 = vmatpush1.bf16.msra.mxu1 %v7178_v27  ;;  %v7935_v27 = vld [vmem:[#allocation13 + $0x200] sm:$0xff]  }
 0x459   :  { %4923 = vmatprep.subr.bf16.mxu1 %v7175_v55  ;;  %v8390_v55 = vld [vmem:[#allocation10 + $0x3b0] sm:$0xff] }
 0x45a   :  { %7524 = vmatpush3.bf16.msra.mxu0 %v7931_v23  ;;  %v7293_v30 = vcombine.high %v8390_v55, %v8392_v29  ;;  %v7292_v18 = vcombine.low %v8390_v55, %v8392_v29  ;;  %v7936_v23 = vld [vmem:[#allocation13 + $0x2f8] sm:$0xff]   ;;  %v5307_v55 = vld [vmem:[#allocation10 + $0x170] sm:$0xff] }
 0x45b   :  { %7525 = vmatprep.subr.bf16.mxu0 %v7932_v17 }
 0x45c   :  { %4924 = vmatpush1.bf16.msra.mxu1 %v7174_v31 }
 0x45d   :  { %4925 = vmatprep.subr.bf16.mxu1 %v7171_v34 }
 0x45e   :  { %7526 = vmatpush3.bf16.msra.mxu0 %v7933_v19 }
 0x45f   :  { %7527 = vmatprep.subr.bf16.mxu0 %v7934_v24 }
 0x460   :  { %4926 = vmatpush1.bf16.msra.mxu1 %v7170_v6 }
 0x461   :  { %4927 = vmatprep.subr.bf16.mxu1 %v7231_v25  ;;  %v7937_v25 = vld [vmem:[#allocation13 + $0x2b8] sm:$0xff]  }
 0x462   :  { %7528 = vmatpush3.bf16.msra.mxu0 %v7935_v27 }
 0x463   :  { %v7441_v45 = vpop.f32.mrf.mxu0  ;;  %6087 = vmatprep.subr.bf16.mxu0 %v7293_v30  ;;  %v5321_v30 = vld [vmem:[#allocation10 + $0x330] sm:$0xff] }
 0x464   :  { %4928 = vmatpush2.bf16.msra.mxu1 %v7230_v9  ;;  %v7940_v9 = vld [vmem:[#allocation13 + $0x2e8] sm:$0xff]  }
 0x465   :  { %v7442_v47 = vpop.f32.mrf.mxu0  ;;  %4929 = vmatprep.subr.bf16.mxu1 %v7227_v40  ;;  %v7941_v40 = vld [vmem:[#allocation13 + $0x2a8] sm:$0xff]  }
 0x466   :  { %v7443_v49 = vadd.f32 %v7442_v47, %v7441_v45  ;;  %v7944_v45 = vld [vmem:[#allocation13 + $0x2d8] sm:$0xff]   ;;  %v7946_v47 = vld [vmem:[#allocation13 + $0x2d0] sm:$0xff]  }
 0x467   :  { %v7444_v54 = vpop.f32.mrf.mxu0 }
 0x468   :  { %4930 = vmatpush2.bf16.msra.mxu1 %v7226_v46  ;;  %v7945_v46 = vld [vmem:[#allocation13 + $0x298] sm:$0xff]   ;;  %v7949_v54 = vld [vmem:[#allocation13 + $0x288] sm:$0xff]  }
 0x469   :  { %v7445_v58 = vpop.f32.mrf.mxu0  ;;  %4931 = vmatprep.subr.bf16.mxu1 %v7223_v48  ;;  %v7947_v48 = vld [vmem:[#allocation13 + $0x290] sm:$0xff]  }
 0x46c   :  { %4932 = vmatpush2.bf16.msra.mxu1 %v7222_v57 }
 0x46d   :  { %4933 = vmatprep.subr.bf16.mxu1 %v7219_v59 }
 0x470   :  { %4934 = vmatpush2.bf16.msra.mxu1 %v7218_v12  ;;  %v7950_v12 = vld [vmem:[#allocation13 + $0x2c0] sm:$0xff]  }
 0x471   :  { %4935 = vmatprep.subr.bf16.mxu1 %v7215_v63 }
 0x474   :  { %4936 = vmatpush2.bf16.msra.mxu1 %v7214_v28 }
 0x475   :  { %4937 = vmatprep.subr.bf16.mxu1 %v7211_v61  ;;  %v8400_v61 = vld [vmem:[#allocation10 + $0xbb0] sm:$0xff] }
 0x476   :  { %v7357_v26 = vcombine.high %v8400_v61, %v8402_v32 }
 0x478   :  { %4938 = vmatpush2.bf16.msra.mxu1 %v7210_v3  ;;  %v7356_v3 = vcombine.low %v8400_v61, %v8402_v32 }
 0x479   :  { %4939 = vmatprep.subr.bf16.mxu1 %v7207_v5  ;;  %v8408_v5 = vld [vmem:[#allocation11 + $0x8] sm:$0xf] }
 0x47a   :  { %v4131_v7 = vrot.slane %v8408_v5, %v8268_v38  ;;  %v4135_v8 = vrot.slane %v8408_v5, %v8272_v41 }
 0x47c   :  { %4940 = vmatpush2.bf16.msra.mxu1 %v7206_v10 }
 0x47d   :  { %4941 = vmatprep.subr.bf16.mxu1 %v7203_v11 }
 0x480   :  { %4942 = vmatpush2.bf16.msra.mxu1 %v7202_v15 }
 0x481   :  { %7535 = vmatprep.subr.bf16.mxu1 %v7936_v23  ;;  %v5319_v23 = vld [vmem:[#allocation10 + $0x2f0] sm:$0xff] }
 0x483   :  { %v7485_v16 = vpop.f32.mrf.mxu0  ;;  %4944 = vmatmul.mubr.bf16.vlgmr.msra.gmra.mxu1 %v8326_v14 }
 0x484   :  { %7536 = vmatpush3.bf16.msra.mxu1 %v7937_v25 }
 0x485   :  { %v7486_v20 = vpop.f32.mrf.mxu0  ;;  %7537 = vmatprep.subr.bf16.mxu1 %v7938_v36 }
 0x486   :  { %v7487_v21 = vadd.f32 %v7486_v20, %v7485_v16 }
 0x487   :  { %v7488_v53 = vpop.f32.mrf.mxu0 }
 0x488   :  { %7538 = vmatpush3.bf16.msra.mxu1 %v7939_v37  ;;  %v5313_v37 = vld [vmem:[#allocation10 + $0x230] sm:$0xff] }
 0x489   :  { %v7489_v4 = vpop.f32.mrf.mxu0  ;;  %7539 = vmatprep.subr.bf16.mxu1 %v7940_v9  ;;  %v5315_v9 = vld [vmem:[#allocation10 + $0x270] sm:$0xff] }
 0x48c   :  { %7540 = vmatpush3.bf16.msra.mxu1 %v7941_v40 }
 0x48d   :  { %7541 = vmatprep.subr.bf16.mxu1 %v7942_v43  ;;  %v7281_v43 = vcombine.high %v5313_v37, %v5315_v9 }
 0x490   :  { %7542 = vmatpush3.bf16.msra.mxu1 %v7943_v44  ;;  %v5309_v44 = vld [vmem:[#allocation10 + $0x1b0] sm:$0xff] }
 0x491   :  { %7543 = vmatprep.subr.bf16.mxu1 %v7944_v45  ;;  %v5311_v45 = vld [vmem:[#allocation10 + $0x1f0] sm:$0xff] }
 0x492   :  { %v7276_v29 = vcombine.low %v5309_v44, %v5311_v45 }
 0x494   :  { %7544 = vmatpush3.bf16.msra.mxu1 %v7945_v46  ;;  %v7280_v46 = vcombine.low %v5313_v37, %v5315_v9  ;;  %v4143_v37 = vrot.slane %v8408_v5, %v8274_v42  ;;  %v5329_v9 = vld [vmem:[#allocation10 + $0x430] sm:$0xff] }
 0x495   :  { %7545 = vmatprep.subr.bf16.mxu1 %v7946_v47  ;;  %v7277_v47 = vcombine.high %v5309_v44, %v5311_v45 }
 0x498   :  { %7546 = vmatpush3.bf16.msra.mxu1 %v7947_v48  ;;  %v5305_v48 = vld [vmem:[#allocation10 + $0x130] sm:$0xff] }
 0x499   :  { %7547 = vmatprep.subr.bf16.mxu1 %v7948_v56  ;;  %v7272_v56 = vcombine.low %v5305_v48, %v5307_v55 }
 0x49c   :  { %7548 = vmatpush3.bf16.msra.mxu1 %v7949_v54 }
 0x49d   :  { %7549 = vmatprep.subr.bf16.mxu1 %v7950_v12  ;;  %v5359_v12 = vld [vmem:[#allocation10 + $0x7f0] sm:$0xff] }
 0x4a0   :  { %7550 = vmatpush3.bf16.msra.mxu1 %v7951_v0 }
 0x4a1   :  { %6128 = vmatprep.subr.bf16.mxu1 %v7357_v26  ;;  %v5355_v26 = vld [vmem:[#allocation10 + $0x770] sm:$0xff] }
 0x4a3   :  { %v7463_v31 = vpop.f32.mrf.mxu1 }
 0x4a5   :  { %v7464_v33 = vpop.f32.mrf.mxu1 }
 0x4a6   :  { %v7465_v34 = vadd.f32 %v7464_v33, %v7463_v31  ;;  %v5323_v31 = vld [vmem:[#allocation10 + $0x370] sm:$0xff] }
 0x4a7   :  { %v7466_v2 = vpop.f32.mrf.mxu1  ;;  %v7288_v25 = vcombine.low %v5321_v30, %v5323_v31 }
 0x4a8   :  { %v3721_v35 = vadd.f32 %v7465_v34, %v7443_v49 }
 0x4a9   :  { %v7467_v22 = vpop.f32.mrf.mxu1 }
 0x4aa   :  { %v3953_v6 = vadd.f32 %v7487_v21, %v3721_v35  ;;  %v7289_v22 = vcombine.high %v5321_v30, %v5323_v31 }
 0x4c3   :  { %v7507_v49 = vpop.f32.mrf.mxu1  ;;  %v4822_v52 = vpop.f32.mrf.mxu0 }
 0x4c4   :  { %v4823_v10 = vadd.f32 %v4822_v52, %v4131_v7  ;;  %v5303_v52 = vld [vmem:[#allocation10 + $0xf0] sm:$0xff] }
 0x4c5   :  { %v7508_v57 = vpop.f32.mrf.mxu1  ;;  %v4824_v58 = vpop.f32.mrf.mxu0 }
 0x4c6   :  { %v7509_v59 = vadd.f32 %v7508_v57, %v7507_v49  ;;  %v4825_v15 = vadd.f32 %v4824_v58, %v4135_v8  ;;  %v5301_v49 = vld [vmem:[#allocation10 + $0xb0] sm:$0xff] }
 0x4c7   :  { %v7510_v60 = vpop.f32.mrf.mxu1  ;;  %v4826_v62 = vpop.f32.mrf.mxu0  ;;  %v7269_v54 = vcombine.high %v5301_v49, %v5303_v52  ;;  %v5297_v57 = vld [vmem:[#allocation10 + $0x30] sm:$0xff] }
 0x4c8   :  { %v8398_v63 = vadd.f32 %v7509_v59, %v3953_v6  ;;  %v5317_v6 = vld [vmem:[#allocation10 + $0x2b0] sm:$0xff]  ;;  %v7268_v59 = vcombine.low %v5301_v49, %v5303_v52 }
 0x4c9   :  { %v7511_v1 = vpop.f32.mrf.mxu1  ;;  %v4827_v28 = vpop.f32.mrf.mxu0  ;;  %v7285_v36 = vcombine.high %v5317_v6, %v5319_v23  ;;  %v7284_v40 = vcombine.low %v5317_v6, %v5319_v23  ;;  %v5299_v58 = vld [vmem:[#allocation10 + $0x70] sm:$0xff]  ;;  %v4139_v23 = vrot.slane %v8408_v5, %v8270_v39 }
 0x4ca   :  { %v7265_v60 = vcombine.high %v5297_v57, %v5299_v58  ;;  %v5357_v62 = vld [vmem:[#allocation10 + $0x7b0] sm:$0xff]  ;;  %v7264_v0 = vcombine.low %v5297_v57, %v5299_v58 }
 0x4cb   :  { %v7325_v1 = vcombine.high %v5357_v62, %v5359_v12  ;;  %v5353_v28 = vld [vmem:[#allocation10 + $0x730] sm:$0xff]  ;;  %v7324_v7 = vcombine.low %v5357_v62, %v5359_v12  ;;  %v5324_v62 = vld [vmem:[#allocation10 + $0x378] sm:$0xff] }
 0x4cc   :  { %v7321_v8 = vcombine.high %v5353_v28, %v5355_v26  ;;  %v5335_v6 = vld [vmem:[#allocation10 + $0x4f0] sm:$0xff] }
 0x503   :  { %v4863_v11 = vpop.f32.mrf.mxu1 }
 0x504   :  { %v4864_v16 = vadd.f32 %v4863_v11, %v4823_v10  ;;  %v8414_v17 = vpop.f32.mrf.mxu0  ;;  %v5349_v10 = vld [vmem:[#allocation10 + $0x6b0] sm:$0xff] }
 0x505   :  { %v4865_v19 = vpop.f32.mrf.mxu1  ;;  %v5351_v11 = vld [vmem:[#allocation10 + $0x6f0] sm:$0xff] }
 0x506   :  { %v4866_v20 = vadd.f32 %v4865_v19, %v4825_v15  ;;  %v8416_v21 = vpop.f32.mrf.mxu0  ;;  %v4952_v53 = vmax.f32 %v4864_v16, 0.0  ;;  %v7320_v15 = vcombine.low %v5353_v28, %v5355_v26  ;;  %v7317_v16 = vcombine.high %v5349_v10, %v5351_v11  ;;  %v5345_v19 = vld [vmem:[#allocation10 + $0x630] sm:$0xff] }
 0x507   :  { %v4867_v24 = vpop.f32.mrf.mxu1 }
 0x508   :  { %v4953_v27 = vmax.f32 %v4866_v20, 0.0  ;;  %v4908_v4 = vpop.f32.mrf.mxu0  ;;  %v4956_v35 = vpack.c.bf16 %v4952_v53, %v4952_v53  ;;  %v5347_v20 = vld [vmem:[#allocation10 + $0x670] sm:$0xff]  ;;  %v7316_v53 = vcombine.low %v5349_v10, %v5351_v11  ;;  %v5320_v10 = vld [vmem:[#allocation10 + $0x2f8] sm:$0xff] }
 0x509   :  { %v4868_v33 = vpop.f32.mrf.mxu1  ;;  %v7313_v24 = vcombine.high %v5345_v19, %v5347_v20  ;;  %v5343_v4 = vld [vmem:[#allocation10 + $0x5f0] sm:$0xff]  ;;  %v7312_v30 = vcombine.low %v5345_v19, %v5347_v20 }
 0x50a   :  { %v4957_v34 = vpack.c.bf16 %v4953_v27, %v4953_v27  ;;  %v4909_v2 = vpop.f32.mrf.mxu0  ;;  %v5341_v27 = vld [vmem:[#allocation10 + $0x5b0] sm:$0xff] }
 0x50b   :  { %v7309_v31 = vcombine.high %v5341_v27, %v5343_v4  ;;  %v5337_v33 = vld [vmem:[#allocation10 + $0x530] sm:$0xff]  ;;  %v7308_v2 = vcombine.low %v5341_v27, %v5343_v4  ;;  %v5316_v27 = vld [vmem:[#allocation10 + $0x278] sm:$0xff] }
 0x50c   :  { %5248 = vmatprep.mubr.bf16.mxu0 %v4957_v34  ;;  %v5339_v34 = vld [vmem:[#allocation10 + $0x570] sm:$0xff] }
 0x50d   :  { %5249 = vmatmul.mubr.bf16.vlgmr.msra.gmra.mxu0 %v4956_v35  ;;  %v7305_v35 = vcombine.high %v5337_v33, %v5339_v34  ;;  %v5377_v20 = vld [vmem:[#allocation10 + $0xa30] sm:$0xff] }
 0x50e   :  { %6088 = vmatpush1.bf16.msra.mxu0 %v7292_v18  ;;  %6119 = vmatprep.mubr.bf16.mxu0 %v8310_v50  ;;  %v7273_v18 = vcombine.high %v5305_v48, %v5307_v55  ;;  %v5326_v55 = vld [vmem:[#allocation10 + $0x3b8] sm:$0xff] }
 0x50f   :  { %6089 = vmatprep.subr.bf16.mxu0 %v7289_v22  ;;  %v5333_v22 = vld [vmem:[#allocation10 + $0x4b0] sm:$0xff] }
 0x510   :  { %v7300_v44 = vcombine.low %v5333_v22, %v5335_v6 }
 0x512   :  { %6090 = vmatpush1.bf16.msra.mxu0 %v7288_v25  ;;  %v7304_v25 = vcombine.low %v5337_v33, %v5339_v34  ;;  %v5312_v33 = vld [vmem:[#allocation10 + $0x1f8] sm:$0xff] }
 0x513   :  { %6091 = vmatprep.subr.bf16.mxu0 %v7285_v36  ;;  %v7301_v36 = vcombine.high %v5333_v22, %v5335_v6  ;;  %v5369_v6 = vld [vmem:[#allocation10 + $0x930] sm:$0xff] }
 0x516   :  { %6092 = vmatpush1.bf16.msra.mxu0 %v7284_v40  ;;  %v5331_v40 = vld [vmem:[#allocation10 + $0x470] sm:$0xff] }
 0x517   :  { %6093 = vmatprep.subr.bf16.mxu0 %v7281_v43  ;;  %v4905_v43 = vadd.f32 %v8414_v17, %v4139_v23  ;;  %v7296_v52 = vcombine.low %v5329_v9, %v5331_v40  ;;  %v5385_v17 = vld [vmem:[#allocation10 + $0xb30] sm:$0xff] }
 0x518   :  { %v5371_v23 = vld [vmem:[#allocation10 + $0x970] sm:$0xff] }
 0x51a   :  { %6094 = vmatpush1.bf16.msra.mxu0 %v7280_v46  ;;  %v7297_v46 = vcombine.high %v5329_v9, %v5331_v40  ;;  %v7337_v40 = vcombine.high %v5369_v6, %v5371_v23 }
 0x51b   :  { %6095 = vmatprep.subr.bf16.mxu0 %v7277_v47  ;;  %v4907_v47 = vadd.f32 %v8416_v21, %v4143_v37 }
 0x51e   :  { %6096 = vmatpush1.bf16.msra.mxu0 %v7276_v29  ;;  %v5328_v29 = vld [vmem:[#allocation10 + $0x3f8] sm:$0xff] }
 0x51f   :  { %6097 = vmatprep.subr.bf16.mxu0 %v7273_v18  ;;  %v7294_v21 = vcombine.low %v5326_v55, %v5328_v29 }
 0x522   :  { %6098 = vmatpush1.bf16.msra.mxu0 %v7272_v56 }
 0x523   :  { %6099 = vmatprep.subr.bf16.mxu0 %v7269_v54  ;;  %v7295_v54 = vcombine.high %v5326_v55, %v5328_v29 }
 0x526   :  { %6100 = vmatpush1.bf16.msra.mxu0 %v7268_v59  ;;  %v5387_v59 = vld [vmem:[#allocation10 + $0xb70] sm:$0xff] }
 0x527   :  { %6101 = vmatprep.subr.bf16.mxu0 %v7265_v60  ;;  %v5322_v60 = vld [vmem:[#allocation10 + $0x338] sm:$0xff]  ;;  %v7353_v28 = vcombine.high %v5385_v17, %v5387_v59  ;;  %v7352_v11 = vcombine.low %v5385_v17, %v5387_v59  ;;  %v5421_v59 = vld [vmem:[#allocation10 + $0xfb0] sm:$0xff] }
 0x528   :  { %v7291_v26 = vcombine.high %v5322_v60, %v5324_v62 }
 0x52a   :  { %6102 = vmatpush1.bf16.msra.mxu0 %v7264_v0 }
 0x52b   :  { %6103 = vmatprep.subr.bf16.mxu0 %v7325_v1  ;;  %v5381_v1 = vld [vmem:[#allocation10 + $0xab0] sm:$0xff] }
 0x52e   :  { %6104 = vmatpush2.bf16.msra.mxu0 %v7324_v7  ;;  %v5383_v7 = vld [vmem:[#allocation10 + $0xaf0] sm:$0xff] }
 0x52f   :  { %6105 = vmatprep.subr.bf16.mxu0 %v7321_v8  ;;  %v5318_v8 = vld [vmem:[#allocation10 + $0x2b8] sm:$0xff]  ;;  %v7348_v4 = vcombine.low %v5381_v1, %v5383_v7 }
 0x530   :  { %v7287_v19 = vcombine.high %v5318_v8, %v5320_v10  ;;  %v7286_v61 = vcombine.low %v5318_v8, %v5320_v10  ;;  %v5354_v8 = vld [vmem:[#allocation10 + $0x738] sm:$0xff] }
 0x531   :  { %v5356_v10 = vld [vmem:[#allocation10 + $0x778] sm:$0xff] }
 0x532   :  { %6106 = vmatpush2.bf16.msra.mxu0 %v7320_v15  ;;  %v7290_v15 = vcombine.low %v5322_v60, %v5324_v62  ;;  %v5423_v60 = vld [vmem:[#allocation10 + $0xff0] sm:$0xff]  ;;  %v5358_v62 = vld [vmem:[#allocation10 + $0x7b8] sm:$0xff] }
 0x533   :  { %6107 = vmatprep.subr.bf16.mxu0 %v7317_v16  ;;  %v7349_v16 = vcombine.high %v5381_v1, %v5383_v7  ;;  %v7389_v1 = vcombine.high %v5421_v59, %v5423_v60  ;;  %v5419_v7 = vld [vmem:[#allocation10 + $0xf70] sm:$0xff] }
 0x536   :  { %6108 = vmatpush2.bf16.msra.mxu0 %v7316_v53  ;;  %v5379_v53 = vld [vmem:[#allocation10 + $0xa70] sm:$0xff] }
 0x537   :  { %6109 = vmatprep.subr.bf16.mxu0 %v7313_v24  ;;  %v5314_v24 = vld [vmem:[#allocation10 + $0x238] sm:$0xff]  ;;  %v7345_v32 = vcombine.high %v5377_v20, %v5379_v53  ;;  %v7344_v34 = vcombine.low %v5377_v20, %v5379_v53  ;;  %v5413_v20 = vld [vmem:[#allocation10 + $0xeb0] sm:$0xff] }
 0x538   :  { %v5415_v53 = vld [vmem:[#allocation10 + $0xef0] sm:$0xff] }
 0x53a   :  { %6110 = vmatpush2.bf16.msra.mxu0 %v7312_v30  ;;  %v5373_v30 = vld [vmem:[#allocation10 + $0x9b0] sm:$0xff] }
 0x53b   :  { %6111 = vmatprep.subr.bf16.mxu0 %v7309_v31  ;;  %v5310_v31 = vld [vmem:[#allocation10 + $0x1b8] sm:$0xff] }
 0x53c   :  { %v7279_v22 = vcombine.high %v5310_v31, %v5312_v33  ;;  %v7278_v9 = vcombine.low %v5310_v31, %v5312_v33  ;;  %v5346_v31 = vld [vmem:[#allocation10 + $0x638] sm:$0xff] }
 0x53d   :  { %v5348_v33 = vld [vmem:[#allocation10 + $0x678] sm:$0xff] }
 0x53e   :  { %6112 = vmatpush2.bf16.msra.mxu0 %v7308_v2  ;;  %v7282_v2 = vcombine.low %v5314_v24, %v5316_v27 }
 0x53f   :  { %6113 = vmatprep.subr.bf16.mxu0 %v7305_v35 }
 0x542   :  { %6114 = vmatpush2.bf16.msra.mxu0 %v7304_v25  ;;  %v5306_v25 = vld [vmem:[#allocation10 + $0x138] sm:$0xff] }
 0x543   :  { %v4945_v45 = vpop.f32.mrf.mxu1  ;;  %6115 = vmatprep.subr.bf16.mxu0 %v7301_v36  ;;  %v5308_v36 = vld [vmem:[#allocation10 + $0x178] sm:$0xff] }
 0x544   :  { %v4946_v48 = vadd.f32 %v4945_v45, %v4905_v43  ;;  %v7275_v43 = vcombine.high %v5306_v25, %v5308_v36  ;;  %v5367_v45 = vld [vmem:[#allocation10 + $0x8f0] sm:$0xff]  ;;  %v7274_v55 = vcombine.low %v5306_v25, %v5308_v36  ;;  %v5342_v25 = vld [vmem:[#allocation10 + $0x5b8] sm:$0xff] }
 0x545   :  { %v4947_v18 = vpop.f32.mrf.mxu1  ;;  %v5344_v36 = vld [vmem:[#allocation10 + $0x5f8] sm:$0xff] }
 0x546   :  { %v4948_v49 = vadd.f32 %v4947_v18, %v4907_v47  ;;  %6116 = vmatpush2.bf16.msra.mxu0 %v7300_v44  ;;  %v4954_v56 = vmax.f32 %v4946_v48, 0.0  ;;  %v5365_v44 = vld [vmem:[#allocation10 + $0x8b0] sm:$0xff]  ;;  %v5304_v47 = vld [vmem:[#allocation10 + $0xf8] sm:$0xff]  ;;  %v7336_v48 = vcombine.low %v5369_v6, %v5371_v23 }
 0x547   :  { %v4949_v5 = vpop.f32.mrf.mxu1  ;;  %6117 = vmatprep.subr.bf16.mxu0 %v7297_v46  ;;  %v5302_v46 = vld [vmem:[#allocation10 + $0xb8] sm:$0xff]  ;;  %v7333_v29 = vcombine.high %v5365_v44, %v5367_v45  ;;  %v5405_v6 = vld [vmem:[#allocation10 + $0xdb0] sm:$0xff] }
 0x548   :  { %v4955_v57 = vmax.f32 %v4948_v49, 0.0  ;;  %v4958_v0 = vpack.c.bf16 %v4954_v56, %v4954_v56  ;;  %v7271_v18 = vcombine.high %v5302_v46, %v5304_v47  ;;  %v5361_v49 = vld [vmem:[#allocation10 + $0x830] sm:$0xff]  ;;  %v5298_v56 = vld [vmem:[#allocation10 + $0x38] sm:$0xff] }
 0x549   :  { %v4950_v58 = vpop.f32.mrf.mxu1  ;;  %v5300_v5 = vld [vmem:[#allocation10 + $0x78] sm:$0xff]  ;;  %v5407_v23 = vld [vmem:[#allocation10 + $0xdf0] sm:$0xff] }
 0x54a   :  { %v4959_v12 = vpack.c.bf16 %v4955_v57, %v4955_v57  ;;  %6118 = vmatpush2.bf16.msra.mxu0 %v7296_v52  ;;  %v5363_v52 = vld [vmem:[#allocation10 + $0x870] sm:$0xff]  ;;  %v7270_v57 = vcombine.low %v5302_v46, %v5304_v47  ;;  %v7267_v58 = vcombine.high %v5298_v56, %v5300_v5  ;;  %v5338_v46 = vld [vmem:[#allocation10 + $0x538] sm:$0xff] }
 0x54b   :  { %6169 = vmatprep.subr.bf16.mxu0 %v7295_v54  ;;  %v7332_v54 = vcombine.low %v5365_v44, %v5367_v45  ;;  %v7329_v17 = vcombine.high %v5361_v49, %v5363_v52  ;;  %v5401_v44 = vld [vmem:[#allocation10 + $0xd30] sm:$0xff]  ;;  %v5340_v47 = vld [vmem:[#allocation10 + $0x578] sm:$0xff] }
 0x54c   :  { %5288 = vmatprep.mubr.bf16.mxu1 %v4959_v12  ;;  %v5360_v12 = vld [vmem:[#allocation10 + $0x7f8] sm:$0xff]  ;;  %v5403_v45 = vld [vmem:[#allocation10 + $0xd70] sm:$0xff] }
 0x54d   :  { %6120 = vmatmul.mubr.bf16.vlgmr.msra.gmra.mxu0 %v8312_v51  ;;  %5289 = vmatmul.mubr.bf16.vlgmr.msra.gmra.mxu1 %v4958_v0  ;;  %v7266_v0 = vcombine.low %v5298_v56, %v5300_v5  ;;  %v5334_v56 = vld [vmem:[#allocation10 + $0x4b8] sm:$0xff] }
 0x54e   :  { %6129 = vmatpush1.bf16.msra.mxu1 %v7356_v3  ;;  %6170 = vmatpush1.bf16.msra.mxu0 %v7294_v21  ;;  %v7283_v3 = vcombine.high %v5314_v24, %v5316_v27  ;;  %v7328_v21 = vcombine.low %v5361_v49, %v5363_v52  ;;  %v5350_v24 = vld [vmem:[#allocation10 + $0x6b8] sm:$0xff]  ;;  %v5397_v49 = vld [vmem:[#allocation10 + $0xcb0] sm:$0xff] }
 0x54f   :  { %6201 = vmatprep.mubr.bf16.mxu0 %v8310_v50  ;;  %6160 = vmatprep.mubr.bf16.mxu1 %v8324_v13  ;;  %v5375_v50 = vld [vmem:[#allocation10 + $0x9f0] sm:$0xff]  ;;  %v5352_v27 = vld [vmem:[#allocation10 + $0x6f8] sm:$0xff] }
 0x550   :  { %6130 = vmatprep.subr.bf16.mxu1 %v7353_v28  ;;  %6171 = vmatprep.subr.bf16.mxu0 %v7291_v26  ;;  %v7341_v35 = vcombine.high %v5373_v30, %v5375_v50  ;;  %v7340_v37 = vcombine.low %v5373_v30, %v5375_v50  ;;  %v7327_v28 = vcombine.high %v5358_v62, %v5360_v12  ;;  %v5417_v26 = vld [vmem:[#allocation10 + $0xf30] sm:$0xff]  ;;  %v5336_v5 = vld [vmem:[#allocation10 + $0x4f8] sm:$0xff] }
 0x551   :  { %v5409_v30 = vld [vmem:[#allocation10 + $0xe30] sm:$0xff] }
 0x552   :  { %6131 = vmatpush1.bf16.msra.mxu1 %v7352_v11  ;;  %6172 = vmatpush1.bf16.msra.mxu0 %v7290_v15  ;;  %v7388_v11 = vcombine.low %v5421_v59, %v5423_v60  ;;  %v7326_v15 = vcombine.low %v5358_v62, %v5360_v12  ;;  %v5411_v50 = vld [vmem:[#allocation10 + $0xe70] sm:$0xff]  ;;  %v5330_v62 = vld [vmem:[#allocation10 + $0x438] sm:$0xff] }
 0x553   :  { %6132 = vmatprep.subr.bf16.mxu1 %v7349_v16  ;;  %6173 = vmatprep.subr.bf16.mxu0 %v7287_v19  ;;  %v7385_v16 = vcombine.high %v5417_v26, %v5419_v7  ;;  %v7323_v19 = vcombine.high %v5354_v8, %v5356_v10  ;;  %v5399_v52 = vld [vmem:[#allocation10 + $0xcf0] sm:$0xff]  ;;  %v5332_v12 = vld [vmem:[#allocation10 + $0x478] sm:$0xff] }
 0x554   :  { %v5393_v59 = vld [vmem:[#allocation10 + $0xc30] sm:$0xff] }
 0x555   :  { %v5395_v60 = vld [vmem:[#allocation10 + $0xc70] sm:$0xff] }
 0x556   :  { %6133 = vmatpush1.bf16.msra.mxu1 %v7348_v4  ;;  %6174 = vmatpush1.bf16.msra.mxu0 %v7286_v61  ;;  %v7384_v4 = vcombine.low %v5417_v26, %v5419_v7  ;;  %v7322_v61 = vcombine.low %v5354_v8, %v5356_v10  ;;  %v5390_v26 = vld [vmem:[#allocation10 + $0xbb8] sm:$0xff]  ;;  %v7360_v8 = vcombine.low %v5393_v59, %v5395_v60 }
 0x557   :  { %6134 = vmatprep.subr.bf16.mxu1 %v7345_v32  ;;  %6175 = vmatprep.subr.bf16.mxu0 %v7283_v3  ;;  %v7381_v32 = vcombine.high %v5413_v20, %v5415_v53  ;;  %v7319_v3 = vcombine.high %v5350_v24, %v5352_v27  ;;  %v5392_v7 = vld [vmem:[#allocation10 + $0xbf8] sm:$0xff]  ;;  %v7298_v10 = vcombine.low %v5330_v62, %v5332_v12 }
 0x55a   :  { %6135 = vmatpush1.bf16.msra.mxu1 %v7344_v34  ;;  %6176 = vmatpush1.bf16.msra.mxu0 %v7282_v2  ;;  %v7380_v34 = vcombine.low %v5413_v20, %v5415_v53  ;;  %v7318_v2 = vcombine.low %v5350_v24, %v5352_v27  ;;  %v5382_v53 = vld [vmem:[#allocation10 + $0xab8] sm:$0xff] }
 0x55b   :  { %6136 = vmatprep.subr.bf16.mxu1 %v7341_v35  ;;  %6177 = vmatprep.subr.bf16.mxu0 %v7279_v22  ;;  %v7377_v35 = vcombine.high %v5409_v30, %v5411_v50  ;;  %v7315_v22 = vcombine.high %v5346_v31, %v5348_v33  ;;  %v5384_v24 = vld [vmem:[#allocation10 + $0xaf8] sm:$0xff] }
 0x55e   :  { %6137 = vmatpush1.bf16.msra.mxu1 %v7340_v37  ;;  %6178 = vmatpush1.bf16.msra.mxu0 %v7278_v9  ;;  %v7376_v37 = vcombine.low %v5409_v30, %v5411_v50  ;;  %v7314_v9 = vcombine.low %v5346_v31, %v5348_v33  ;;  %v5374_v50 = vld [vmem:[#allocation10 + $0x9b8] sm:$0xff]  ;;  %v7952_v33 = vld [vmem:[#allocation13 + $0x378] sm:$0xff]  }
 0x55f   :  { %6138 = vmatprep.subr.bf16.mxu1 %v7337_v40  ;;  %6179 = vmatprep.subr.bf16.mxu0 %v7275_v43  ;;  %v7373_v40 = vcombine.high %v5405_v6, %v5407_v23  ;;  %v7311_v43 = vcombine.high %v5342_v25, %v5344_v36  ;;  %v5376_v31 = vld [vmem:[#allocation10 + $0x9f8] sm:$0xff] }
 0x562   :  { %6139 = vmatpush1.bf16.msra.mxu1 %v7336_v48  ;;  %6180 = vmatpush1.bf16.msra.mxu0 %v7274_v55  ;;  %v7372_v48 = vcombine.low %v5405_v6, %v5407_v23  ;;  %v7310_v55 = vcombine.low %v5342_v25, %v5344_v36  ;;  %v5372_v6 = vld [vmem:[#allocation10 + $0x978] sm:$0xff]  ;;  %v7342_v25 = vcombine.low %v5374_v50, %v5376_v31 }
 0x563   :  { %6140 = vmatprep.subr.bf16.mxu1 %v7333_v29  ;;  %6181 = vmatprep.subr.bf16.mxu0 %v7271_v18  ;;  %v7369_v29 = vcombine.high %v5401_v44, %v5403_v45  ;;  %v7307_v18 = vcombine.high %v5338_v46, %v5340_v47  ;;  %v7956_v23 = vld [vmem:[#allocation13 + $0x368] sm:$0xff]  }
 0x566   :  { %6141 = vmatpush1.bf16.msra.mxu1 %v7332_v54  ;;  %6182 = vmatpush1.bf16.msra.mxu0 %v7270_v57  ;;  %v7368_v54 = vcombine.low %v5401_v44, %v5403_v45  ;;  %v7306_v57 = vcombine.low %v5338_v46, %v5340_v47  ;;  %v7959_v46 = vld [vmem:[#allocation13 + $0x320] sm:$0xff]   ;;  %v5362_v47 = vld [vmem:[#allocation10 + $0x838] sm:$0xff] }
 0x567   :  { %6142 = vmatprep.subr.bf16.mxu1 %v7329_v17  ;;  %6183 = vmatprep.subr.bf16.mxu0 %v7267_v58  ;;  %v7365_v17 = vcombine.high %v5397_v49, %v5399_v52  ;;  %v7303_v58 = vcombine.high %v5334_v56, %v5336_v5 }
 0x56a   :  { %6143 = vmatpush1.bf16.msra.mxu1 %v7328_v21  ;;  %6184 = vmatpush1.bf16.msra.mxu0 %v7266_v0  ;;  %v7364_v21 = vcombine.low %v5397_v49, %v5399_v52  ;;  %v7302_v0 = vcombine.low %v5334_v56, %v5336_v5  ;;  %v7961_v49 = vld [vmem:[#allocation13 + $0x318] sm:$0xff]   ;;  %v5422_v52 = vld [vmem:[#allocation10 + $0xfb8] sm:$0xff]  ;;  %v7962_v5 = vld [vmem:[#allocation13 + $0x350] sm:$0xff]  }
 0x56b   :  { %6144 = vmatprep.subr.bf16.mxu1 %v7389_v1  ;;  %6185 = vmatprep.subr.bf16.mxu0 %v7327_v28  ;;  %v7361_v1 = vcombine.high %v5393_v59, %v5395_v60  ;;  %v7299_v28 = vcombine.high %v5330_v62, %v5332_v12  ;;  %v5424_v56 = vld [vmem:[#allocation10 + $0xff8] sm:$0xff] }
 0x56c   :  { %v5420_v59 = vld [vmem:[#allocation10 + $0xf78] sm:$0xff]  ;;  %v7390_v60 = vcombine.low %v5422_v52, %v5424_v56 }
 0x56d   :  { %v5414_v12 = vld [vmem:[#allocation10 + $0xeb8] sm:$0xff] }
 0x56e   :  { %6145 = vmatpush2.bf16.msra.mxu1 %v7388_v11  ;;  %6186 = vmatpush2.bf16.msra.mxu0 %v7326_v15  ;;  %v7359_v11 = vcombine.high %v5390_v26, %v5392_v7  ;;  %v5386_v15 = vld [vmem:[#allocation10 + $0xb38] sm:$0xff] }
 0x56f   :  { %6146 = vmatprep.subr.bf16.mxu1 %v7385_v16  ;;  %6187 = vmatprep.subr.bf16.mxu0 %v7323_v19  ;;  %v5388_v16 = vld [vmem:[#allocation10 + $0xb78] sm:$0xff]  ;;  %v7358_v19 = vcombine.low %v5390_v26, %v5392_v7 }
 0x570   :  { %v7355_v20 = vcombine.high %v5386_v15, %v5388_v16  ;;  %v7354_v27 = vcombine.low %v5386_v15, %v5388_v16  ;;  %v5412_v26 = vld [vmem:[#allocation10 + $0xe78] sm:$0xff] }
 0x572   :  { %6147 = vmatpush2.bf16.msra.mxu1 %v7384_v4  ;;  %6188 = vmatpush2.bf16.msra.mxu0 %v7322_v61  ;;  %v7351_v4 = vcombine.high %v5382_v53, %v5384_v24  ;;  %v5378_v61 = vld [vmem:[#allocation10 + $0xa38] sm:$0xff] }
 0x573   :  { %6148 = vmatprep.subr.bf16.mxu1 %v7381_v32  ;;  %6189 = vmatprep.subr.bf16.mxu0 %v7319_v3  ;;  %v5380_v32 = vld [vmem:[#allocation10 + $0xa78] sm:$0xff]  ;;  %v7350_v3 = vcombine.low %v5382_v53, %v5384_v24 }
 0x574   :  { %v7347_v30 = vcombine.high %v5378_v61, %v5380_v32 }
 0x576   :  { %6149 = vmatpush2.bf16.msra.mxu1 %v7380_v34  ;;  %6190 = vmatpush2.bf16.msra.mxu0 %v7318_v2  ;;  %v7953_v34 = vld [vmem:[#allocation13 + $0x338] sm:$0xff]   ;;  %v7954_v2 = vld [vmem:[#allocation13 + $0x370] sm:$0xff]  }
 0x577   :  { %6150 = vmatprep.subr.bf16.mxu1 %v7377_v35  ;;  %6191 = vmatprep.subr.bf16.mxu0 %v7315_v22  ;;  %v7346_v35 = vcombine.low %v5378_v61, %v5380_v32  ;;  %v5370_v22 = vld [vmem:[#allocation10 + $0x938] sm:$0xff] }
 0x578   :  { %v7339_v36 = vcombine.high %v5370_v22, %v5372_v6  ;;  %v7338_v44 = vcombine.low %v5370_v22, %v5372_v6  ;;  %v7966_v6 = vld [vmem:[#allocation13 + $0x340] sm:$0xff]  }
 0x57a   :  { %6151 = vmatpush2.bf16.msra.mxu1 %v7376_v37  ;;  %6192 = vmatpush2.bf16.msra.mxu0 %v7314_v9  ;;  %v7957_v37 = vld [vmem:[#allocation13 + $0x328] sm:$0xff]  }
 0x57b   :  { %6152 = vmatprep.subr.bf16.mxu1 %v7373_v40  ;;  %6193 = vmatprep.subr.bf16.mxu0 %v7311_v43  ;;  %v5366_v9 = vld [vmem:[#allocation10 + $0x8b8] sm:$0xff]  ;;  %v7958_v43 = vld [vmem:[#allocation13 + $0x360] sm:$0xff]  }
 0x57c   :  { %v5368_v40 = vld [vmem:[#allocation10 + $0x8f8] sm:$0xff] }
 0x57d   :  { %v7335_v45 = vcombine.high %v5366_v9, %v5368_v40 }
 0x57e   :  { %6153 = vmatpush2.bf16.msra.mxu1 %v7372_v48  ;;  %6194 = vmatpush2.bf16.msra.mxu0 %v7310_v55  ;;  %v5364_v48 = vld [vmem:[#allocation10 + $0x878] sm:$0xff]  ;;  %v7960_v55 = vld [vmem:[#allocation13 + $0x358] sm:$0xff]  }
 0x57f   :  { %6154 = vmatprep.subr.bf16.mxu1 %v7369_v29  ;;  %6195 = vmatprep.subr.bf16.mxu0 %v7307_v18  ;;  %v7334_v29 = vcombine.low %v5366_v9, %v5368_v40  ;;  %v7331_v18 = vcombine.high %v5362_v47, %v5364_v48  ;;  %v7970_v9 = vld [vmem:[#allocation13 + $0x3f0] sm:$0xff]  }
 0x580   :  { %v7971_v40 = vld [vmem:[#allocation13 + $0x3b0] sm:$0xff]  }
 0x582   :  { %6155 = vmatpush2.bf16.msra.mxu1 %v7368_v54  ;;  %6196 = vmatpush2.bf16.msra.mxu0 %v7306_v57  ;;  %v7330_v54 = vcombine.low %v5362_v47, %v5364_v48  ;;  %v7391_v57 = vcombine.high %v5422_v52, %v5424_v56  ;;  %v7977_v47 = vld [vmem:[#allocation13 + $0x398] sm:$0xff]   ;;  %v7978_v48 = vld [vmem:[#allocation13 + $0x3d0] sm:$0xff]  }
 0x583   :  { %6156 = vmatprep.subr.bf16.mxu1 %v7365_v17  ;;  %6197 = vmatprep.subr.bf16.mxu0 %v7303_v58  ;;  %v7963_v17 = vld [vmem:[#allocation13 + $0x310] sm:$0xff]   ;;  %v5418_v58 = vld [vmem:[#allocation10 + $0xf38] sm:$0xff] }
 0x584   :  { %v7387_v62 = vcombine.high %v5418_v58, %v5420_v59 }
 0x586   :  { %6157 = vmatpush2.bf16.msra.mxu1 %v7364_v21  ;;  %6198 = vmatpush2.bf16.msra.mxu0 %v7302_v0  ;;  %v5416_v21 = vld [vmem:[#allocation10 + $0xef8] sm:$0xff]  ;;  %v7386_v0 = vcombine.low %v5418_v58, %v5420_v59  ;;  %v7982_v59 = vld [vmem:[#allocation13 + $0x3c0] sm:$0xff]  }
 0x587   :  { %6158 = vmatprep.subr.bf16.mxu1 %v7361_v1  ;;  %6199 = vmatprep.subr.bf16.mxu0 %v7299_v28  ;;  %v7383_v1 = vcombine.high %v5414_v12, %v5416_v21  ;;  %v5410_v28 = vld [vmem:[#allocation10 + $0xe38] sm:$0xff]  ;;  %v7382_v7 = vcombine.low %v5414_v12, %v5416_v21  ;;  %v7983_v12 = vld [vmem:[#allocation13 + $0x380] sm:$0xff]  }
 0x588   :  { %v7378_v15 = vcombine.low %v5410_v28, %v5412_v26 }
 0x58a   :  { %6159 = vmatpush2.bf16.msra.mxu1 %v7360_v8  ;;  %6200 = vmatpush2.bf16.msra.mxu0 %v7298_v10  ;;  %v7379_v8 = vcombine.high %v5410_v28, %v5412_v26  ;;  %v5406_v10 = vld [vmem:[#allocation10 + $0xdb8] sm:$0xff] }
 0x58b   :  { %6210 = vmatprep.subr.bf16.mxu1 %v7359_v11  ;;  %7557 = vmatprep.subr.bf16.mxu0 %v7952_v33  ;;  %v5408_v11 = vld [vmem:[#allocation10 + $0xdf8] sm:$0xff] }
 0x58c   :  { %v7375_v16 = vcombine.high %v5406_v10, %v5408_v11  ;;  %v7374_v53 = vcombine.low %v5406_v10, %v5408_v11 }
 0x58d   :  { %6161 = vmatmul.mubr.bf16.vlgmr.msra.gmra.mxu1 %v8326_v14  ;;  %6202 = vmatmul.mubr.bf16.vlgmr.msra.gmra.mxu0 %v8312_v51  ;;  %v7343_v51 = vcombine.high %v5374_v50, %v5376_v31 }
 0x58e   :  { %6211 = vmatpush1.bf16.msra.mxu1 %v7358_v19  ;;  %6242 = vmatprep.mubr.bf16.mxu1 %v8324_v13  ;;  %v7955_v13 = vld [vmem:[#allocation13 + $0x330] sm:$0xff]   ;;  %v5402_v19 = vld [vmem:[#allocation10 + $0xd38] sm:$0xff] }
 0x58f   :  { %6212 = vmatprep.subr.bf16.mxu1 %v7355_v20  ;;  %7558 = vmatpush3.bf16.msra.mxu0 %v7953_v34  ;;  %v5404_v20 = vld [vmem:[#allocation10 + $0xd78] sm:$0xff] }
 0x590   :  { %7559 = vmatprep.subr.bf16.mxu0 %v7954_v2  ;;  %v7371_v24 = vcombine.high %v5402_v19, %v5404_v20  ;;  %v7370_v61 = vcombine.low %v5402_v19, %v5404_v20  ;;  %v7964_v2 = vld [vmem:[#allocation13 + $0x348] sm:$0xff]  }
 0x592   :  { %6213 = vmatpush1.bf16.msra.mxu1 %v7354_v27  ;;  %v5398_v27 = vld [vmem:[#allocation10 + $0xcb8] sm:$0xff] }
 0x593   :  { %6214 = vmatprep.subr.bf16.mxu1 %v7351_v4  ;;  %7560 = vmatpush3.bf16.msra.mxu0 %v7955_v13  ;;  %v5400_v4 = vld [vmem:[#allocation10 + $0xcf8] sm:$0xff] }
 0x594   :  { %7561 = vmatprep.subr.bf16.mxu0 %v7956_v23  ;;  %v7367_v32 = vcombine.high %v5398_v27, %v5400_v4  ;;  %v7366_v50 = vcombine.low %v5398_v27, %v5400_v4 }
 0x596   :  { %6215 = vmatpush1.bf16.msra.mxu1 %v7350_v3  ;;  %v5394_v3 = vld [vmem:[#allocation10 + $0xc38] sm:$0xff] }
 0x597   :  { %6216 = vmatprep.subr.bf16.mxu1 %v7347_v30  ;;  %7562 = vmatpush3.bf16.msra.mxu0 %v7957_v37  ;;  %v5396_v30 = vld [vmem:[#allocation10 + $0xc78] sm:$0xff]  ;;  %v7969_v37 = vld [vmem:[#allocation13 + $0x3b8] sm:$0xff]  }
 0x598   :  { %7563 = vmatprep.subr.bf16.mxu0 %v7958_v43  ;;  %v7363_v31 = vcombine.high %v5394_v3, %v5396_v30  ;;  %v7362_v33 = vcombine.low %v5394_v3, %v5396_v30  ;;  %v7973_v43 = vld [vmem:[#allocation13 + $0x3a8] sm:$0xff]  }
 0x59a   :  { %6217 = vmatpush1.bf16.msra.mxu1 %v7346_v35 }
 0x59b   :  { %6218 = vmatprep.subr.bf16.mxu1 %v7343_v51  ;;  %7564 = vmatpush3.bf16.msra.mxu0 %v7959_v46  ;;  %v7965_v51 = vld [vmem:[#allocation13 + $0x308] sm:$0xff]   ;;  %v7976_v46 = vld [vmem:[#allocation13 + $0x3d8] sm:$0xff]  }
 0x59c   :  { %7565 = vmatprep.subr.bf16.mxu0 %v7960_v55  ;;  %v7979_v55 = vld [vmem:[#allocation13 + $0x390] sm:$0xff]  }
 0x59e   :  { %6219 = vmatpush1.bf16.msra.mxu1 %v7342_v25  ;;  %v7967_v25 = vld [vmem:[#allocation13 + $0x300] sm:$0xff]  }
 0x59f   :  { %6220 = vmatprep.subr.bf16.mxu1 %v7339_v36  ;;  %7566 = vmatpush3.bf16.msra.mxu0 %v7961_v49  ;;  %v7968_v36 = vld [vmem:[#allocation13 + $0x3f8] sm:$0xff]   ;;  %v7980_v49 = vld [vmem:[#allocation13 + $0x3c8] sm:$0xff]  }
 0x5a0   :  { %7567 = vmatprep.subr.bf16.mxu0 %v7962_v5  ;;  %v7981_v5 = vld [vmem:[#allocation13 + $0x388] sm:$0xff]  }
 0x5a2   :  { %6221 = vmatpush1.bf16.msra.mxu1 %v7338_v44  ;;  %v7974_v44 = vld [vmem:[#allocation13 + $0x3e0] sm:$0xff]  }
 0x5a3   :  { %6222 = vmatprep.subr.bf16.mxu1 %v7335_v45  ;;  %7568 = vmatpush3.bf16.msra.mxu0 %v7963_v17  ;;  %v7975_v45 = vld [vmem:[#allocation13 + $0x3a0] sm:$0xff]  }
 0x5a4   :  { %7569 = vmatprep.subr.bf16.mxu0 %v7964_v2 }
 0x5a6   :  { %6223 = vmatpush1.bf16.msra.mxu1 %v7334_v29 }
 0x5a7   :  { %6224 = vmatprep.subr.bf16.mxu1 %v7331_v18  ;;  %7570 = vmatpush3.bf16.msra.mxu0 %v7965_v51 }
 0x5a8   :  { %7571 = vmatprep.subr.bf16.mxu0 %v7966_v6 }
 0x5aa   :  { %6225 = vmatpush1.bf16.msra.mxu1 %v7330_v54 }
 0x5ab   :  { %6226 = vmatprep.subr.bf16.mxu1 %v7391_v57  ;;  %7572 = vmatpush3.bf16.msra.mxu0 %v7967_v25 }
 0x5ae   :  { %6227 = vmatpush2.bf16.msra.mxu1 %v7390_v60 }
 0x5af   :  { %6228 = vmatprep.subr.bf16.mxu1 %v7387_v62 }
 0x5b2   :  { %6229 = vmatpush2.bf16.msra.mxu1 %v7386_v0  ;;  %v5425_v0 = vld [vmem:[#allocation11 + $0xc] sm:$0xf] }
 0x5b3   :  { %6230 = vmatprep.subr.bf16.mxu1 %v7383_v1  ;;  %v5430_v1 = vrot.slane %v5425_v0, %v8268_v38  ;;  %v5434_v28 = vrot.slane %v5425_v0, %v8272_v41  ;;  %v5438_v38 = vrot.slane %v5425_v0, %v8270_v39  ;;  %v5442_v41 = vrot.slane %v5425_v0, %v8274_v42 }
 0x5b6   :  { %6231 = vmatpush2.bf16.msra.mxu1 %v7382_v7 }
 0x5b7   :  { %6232 = vmatprep.subr.bf16.mxu1 %v7379_v8 }
 0x5ba   :  { %6233 = vmatpush2.bf16.msra.mxu1 %v7378_v15 }
 0x5bb   :  { %6234 = vmatprep.subr.bf16.mxu1 %v7375_v16 }
 0x5be   :  { %6235 = vmatpush2.bf16.msra.mxu1 %v7374_v53 }
 0x5bf   :  { %6236 = vmatprep.subr.bf16.mxu1 %v7371_v24 }
 0x5c2   :  { %6237 = vmatpush2.bf16.msra.mxu1 %v7370_v61 }
 0x5c3   :  { %6238 = vmatprep.subr.bf16.mxu1 %v7367_v32 }
 0x5c6   :  { %6239 = vmatpush2.bf16.msra.mxu1 %v7366_v50 }
 0x5c7   :  { %6240 = vmatprep.subr.bf16.mxu1 %v7363_v31 }
 0x5ca   :  { %6241 = vmatpush2.bf16.msra.mxu1 %v7362_v33 }
 0x5cb   :  { %7579 = vmatprep.subr.bf16.mxu1 %v7968_v36 }
 0x5cd   :  { %6243 = vmatmul.mubr.bf16.vlgmr.msra.gmra.mxu1 %v8326_v14  ;;  %v7529_v34 = vpop.f32.mrf.mxu0  ;;  %v7972_v14 = vld [vmem:[#allocation13 + $0x3e8] sm:$0xff]  }
 0x5ce   :  { %7580 = vmatpush3.bf16.msra.mxu1 %v7969_v37 }
 0x5cf   :  { %v7530_v35 = vpop.f32.mrf.mxu0  ;;  %7581 = vmatprep.subr.bf16.mxu1 %v7970_v9 }
 0x5d0   :  { %v7531_v13 = vadd.f32 %v7530_v35, %v7529_v34 }
 0x5d1   :  { %v7532_v22 = vpop.f32.mrf.mxu0 }
 0x5d2   :  { %7582 = vmatpush3.bf16.msra.mxu1 %v7971_v40 }
 0x5d3   :  { %v7533_v23 = vpop.f32.mrf.mxu0  ;;  %7583 = vmatprep.subr.bf16.mxu1 %v7972_v14 }
 0x5d6   :  { %7584 = vmatpush3.bf16.msra.mxu1 %v7973_v43 }
 0x5d7   :  { %7585 = vmatprep.subr.bf16.mxu1 %v7974_v44 }
 0x5da   :  { %7586 = vmatpush3.bf16.msra.mxu1 %v7975_v45  ;;  %v7424_v45 = vld [vmem:[#allocation14] ss:$0 sm:$0xff] }
 0x5db   :  { %7587 = vmatprep.subr.bf16.mxu1 %v7976_v46 }
 0x5de   :  { %7588 = vmatpush3.bf16.msra.mxu1 %v7977_v47 }
 0x5df   :  { %7589 = vmatprep.subr.bf16.mxu1 %v7978_v48 }
 0x5e2   :  { %7590 = vmatpush3.bf16.msra.mxu1 %v7979_v55 }
 0x5e3   :  { %7591 = vmatprep.subr.bf16.mxu1 %v7980_v49 }
 0x5e6   :  { %7592 = vmatpush3.bf16.msra.mxu1 %v7981_v5 }
 0x5e7   :  { %7593 = vmatprep.subr.bf16.mxu1 %v7982_v59 }
 0x5ea   :  { %7594 = vmatpush3.bf16.msra.mxu1 %v7983_v12 }
 0x60d   :  { %v6121_v29 = vpop.f32.mrf.mxu0  ;;  %v7551_v18 = vpop.f32.mrf.mxu1 }
 0x60e   :  { %v6122_v26 = vadd.f32 %v6121_v29, %v5430_v1 }
 0x60f   :  { %v6123_v52 = vpop.f32.mrf.mxu0  ;;  %v7552_v56 = vpop.f32.mrf.mxu1 }
 0x610   :  { %v7553_v54 = vadd.f32 %v7552_v56, %v7551_v18  ;;  %v6124_v10 = vadd.f32 %v6123_v52, %v5434_v28 }
 0x611   :  { %v6125_v57 = vpop.f32.mrf.mxu0  ;;  %v7554_v17 = vpop.f32.mrf.mxu1 }
 0x612   :  { %v5291_v58 = vadd.f32 %v7553_v54, %v7531_v13 }
 0x613   :  { %v6126_v60 = vpop.f32.mrf.mxu0  ;;  %v7555_v62 = vpop.f32.mrf.mxu1 }
 0x614   :  { %v5296_v21 = vadd.f32 %v5291_v58, %v8398_v63 }
 0x64d   :  { %v6162_v7 = vpop.f32.mrf.mxu1  ;;  %v6203_v8 = vpop.f32.mrf.mxu0 }
 0x64e   :  { %v6163_v11 = vadd.f32 %v6162_v7, %v6122_v26  ;;  %v6204_v3 = vadd.f32 %v6203_v8, %v5438_v38 }
 0x64f   :  { %v6164_v15 = vpop.f32.mrf.mxu1  ;;  %v6205_v16 = vpop.f32.mrf.mxu0 }
 0x650   :  { %v6165_v19 = vadd.f32 %v6164_v15, %v6124_v10  ;;  %v6251_v20 = vmax.f32 %v6163_v11, 0.0  ;;  %v6206_v50 = vadd.f32 %v6205_v16, %v5442_v41 }
 0x651   :  { %v6166_v53 = vpop.f32.mrf.mxu1  ;;  %v6207_v24 = vpop.f32.mrf.mxu0 }
 0x652   :  { %v6252_v27 = vmax.f32 %v6165_v19, 0.0  ;;  %v6255_v32 = vpack.c.bf16 %v6251_v20, %v6251_v20 }
 0x653   :  { %v6167_v63 = vpop.f32.mrf.mxu1  ;;  %v6208_v4 = vpop.f32.mrf.mxu0 }
 0x654   :  { %v6256_v61 = vpack.c.bf16 %v6252_v27, %v6252_v27 }
 0x656   :  { %6547 = vmatprep.mubr.bf16.mxu0 %v6256_v61 }
 0x657   :  { %6548 = vmatmul.mubr.bf16.vlgmr.msra.gmra.mxu0 %v6255_v32 }
 0x68d   :  { %v6244_v30 = vpop.f32.mrf.mxu1 }
 0x68e   :  { %v6245_v31 = vadd.f32 %v6244_v30, %v6204_v3 }
 0x68f   :  { %v6246_v33 = vpop.f32.mrf.mxu1 }
 0x690   :  { %v6247_v34 = vadd.f32 %v6246_v33, %v6206_v50  ;;  %v6253_v2 = vmax.f32 %v6245_v31, 0.0 }
 0x691   :  { %v6248_v35 = vpop.f32.mrf.mxu1 }
 0x692   :  { %v6254_v51 = vmax.f32 %v6247_v34, 0.0  ;;  %v6257_v6 = vpack.c.bf16 %v6253_v2, %v6253_v2 }
 0x693   :  { %v6249_v13 = vpop.f32.mrf.mxu1 }
 0x694   :  { %v6258_v22 = vpack.c.bf16 %v6254_v51, %v6254_v51 }
 0x696   :  { %6587 = vmatprep.mubr.bf16.mxu1 %v6258_v22 }
 0x697   :  { %6588 = vmatmul.mubr.bf16.vlgmr.msra.gmra.mxu1 %v6257_v6 }
 0x717   :  { %v7573_v23 = vpop.f32.mrf.mxu0 }
 0x719   :  { %v7574_v25 = vpop.f32.mrf.mxu0 }
 0x71a   :  { %v7575_v36 = vadd.f32 %v7574_v25, %v7573_v23 }
 0x71b   :  { %v7576_v39 = vpop.f32.mrf.mxu0 }
 0x71d   :  { %v7577_v37 = vpop.f32.mrf.mxu0 }
 0x757   :  { %v7595_v42 = vpop.f32.mrf.mxu1 }
 0x759   :  { %v7596_v9 = vpop.f32.mrf.mxu1 }
 0x75a   :  { %v7597_v40 = vadd.f32 %v7596_v9, %v7595_v42 }
 0x75b   :  { %v7598_v14 = vpop.f32.mrf.mxu1 }
 0x75c   :  { %v6590_v43 = vadd.f32 %v7597_v40, %v7575_v36 }
 0x75d   :  { %v7599_v44 = vpop.f32.mrf.mxu1 }
 0x75e   :  { %v6595_v46 = vadd.f32 %v6590_v43, %v5296_v21 }
 0x760   :  { %v6603_v47 = vadd.f32 %v7424_v45, %v6595_v46 }
 0x762   :  { %6604 = vst [vmem:[#allocation16] sm:$0xff] %v6603_v47 }
 0x763   :  { %8155 = shalt.err (!%p8152_p2)
}
 0x764   :  { %6614 = dma.vmem_to_hbm [thread:$0]  %s6612_s26, 128, %s8455_s9, [#allocation4]  }
 0x765   :  { %8174 = dma.done.wait [#allocation4], 128  }
 0x766   :  { %8175 = vsyncadd [#allocation4], 4294967168 }
 0x767   :  { %6618 = vsyncpa [#allocation3], 1 }
 0x768   :  { %6619 = vsyncpa [#allocation6], 1 }
 0x769   :  { %6620 = vsyncpa [#allocation9], 1 }
 0x76a   :  { %6621 = vsyncpa [#allocation12], 1 }
 0x76b   :  { %6622 = vsyncpa [#allocation15], 1 }
 0x76c   :  { %6623 = vsyncpa [#allocation4], 1 }

// kernel: _encoder_forward_impl.1
= control target key start
LH: loop header
LB: loop body
LE: loop exit
PB: predicated region body
PF: predicated region fallthrough
CT: control target
= control target key end

     0   :  { %14 = vsyncpa [#allocation3], 0  ;;  %s8446_s0 = inlined_call_operand.vmem [shape: bf16[8,128], index: 0, kind: input, shape index: {}]   ;;  %s8447_s1 = inlined_call_operand.hbm [shape: bf16[128,512], index: 1, kind: input, shape index: {}]   ;;  %s8448_s2 = inlined_call_operand.hbm [shape: f32[1,512], index: 2, kind: input, shape index: {}]   ;;  %s8449_s3 = inlined_call_operand.hbm [shape: bf16[512,512], index: 3, kind: input, shape index: {}]   ;;  %s8450_s4 = inlined_call_operand.hbm [shape: f32[1,512], index: 4, kind: input, shape index: {}]   ;;  %s8451_s5 = inlined_call_operand.hbm [shape: bf16[512,2048], index: 5, kind: input, shape index: {}]   ;;  %s8452_s6 = inlined_call_operand.hbm [shape: f32[1,2048], index: 6, kind: input, shape index: {}]   ;;  %s8453_s7 = inlined_call_operand.hbm [shape: bf16[2048,128], index: 7, kind: input, shape index: {}]   ;;  %s8454_s8 = inlined_call_operand.hbm [shape: f32[1,128], index: 8, kind: input, shape index: {}]   ;;  %s8455_s9 = inlined_call_operand.hbm [shape: f32[8,128], index: 9, kind: output, shape index: {}]  }
   0x1   :  { %15 = vsyncpa [#allocation6], 0 }
   0x2   :  { %16 = vsyncpa [#allocation9], 0 }
   0x3   :  { %17 = vsyncpa [#allocation12], 0 }
   0x4   :  { %18 = vsyncpa [#allocation15], 0 }
   0x5   :  { %19 = vsyncpa [#allocation4], 0  ;;  %s8176_s30 = smov [#allocation5]   ;;  %s8177_s11 = smov [#allocation8]  }
   0x6   :  { %s40_s10 = sshll.u32 %s8176_s30, 4  ;;  %s62_s12 = sshll.u32 %s8177_s11, 4  ;;  %s41_s10 = int_to_ptr.vmem [resolvable:$true] %s40_s10  ;;  %s63_s12 = int_to_ptr.vmem [resolvable:$true] %s62_s12 }
   0x7   :  { %s7992_s13 = scalar_lea.vmem %s41_s10, 64  ;;  %p7997_p1 = scmp.lt.s32.totalorder %s41_s10, %s41_s10 }
   0x8   :  { %p7993_p0 = scmp.ne.s32.totalorder %s41_s10, %s7992_s13  ;;  %p7998_p2 = scmp.lt.s32.totalorder %s7992_s13, %s7992_s13 }
   0xa   :  { %p7999_p3 = por %p7998_p2, %p7997_p1 }
   0xc   :  { %p8000_p4 = pnand %p7999_p3, %p7993_p0 }
   0xe   :  { %8003 = shalt.err (!%p8000_p4)
}
   0xf   :  { %43 = dma.hbm_to_vmem [thread:$0]  %s8448_s2, 64, %s41_s10, [#allocation6]  }
  0x10   :  { %s8012_s16 = scalar_lea.vmem %s63_s12, 64  ;;  %p8017_p6 = scmp.lt.s32.totalorder %s63_s12, %s63_s12 }
  0x11   :  { %p8013_p5 = scmp.ne.s32.totalorder %s63_s12, %s8012_s16  ;;  %p8018_p7 = scmp.lt.s32.totalorder %s8012_s16, %s8012_s16 }
  0x13   :  { %p8019_p8 = por %p8018_p7, %p8017_p6 }
  0x15   :  { %p8020_p9 = pnand %p8019_p8, %p8013_p5 }
  0x17   :  { %8023 = shalt.err (!%p8020_p9)
}
  0x18   :  { %65 = dma.hbm_to_vmem [thread:$0]  %s8450_s4, 64, %s63_s12, [#allocation9]  }
  0x19   :  { %s8178_s19 = smov [#allocation11]   ;;  %s8179_s21 = smov [#allocation2]  }
  0x1a   :  { %s84_s20 = sshll.u32 %s8178_s19, 4  ;;  %s27_s22 = sshll.u32 %s8179_s21, 4  ;;  %s85_s20 = int_to_ptr.vmem [resolvable:$true] %s84_s20  ;;  %s28_s22 = int_to_ptr.vmem [resolvable:$true] %s27_s22 }
  0x1b   :  { %s8032_s23 = scalar_lea.vmem %s85_s20, 256  ;;  %p8037_p11 = scmp.lt.s32.totalorder %s85_s20, %s85_s20 }
  0x1c   :  { %p8033_p10 = scmp.ne.s32.totalorder %s85_s20, %s8032_s23  ;;  %p8038_p12 = scmp.lt.s32.totalorder %s8032_s23, %s8032_s23 }
  0x1e   :  { %p8039_p13 = por %p8038_p12, %p8037_p11 }
  0x20   :  { %p8040_p0 = pnand %p8039_p13, %p8033_p10 }
  0x22   :  { %8043 = shalt.err (!%p8040_p0)
}
  0x23   :  { %87 = dma.hbm_to_vmem [thread:$0]  %s8452_s6, 256, %s85_s20, [#allocation12]  }
  0x24   :  { %s8052_s25 = scalar_lea.vmem %s28_s22, 4096  ;;  %p8057_p2 = scmp.lt.s32.totalorder %s28_s22, %s28_s22 }
  0x25   :  { %p8053_p1 = scmp.ne.s32.totalorder %s28_s22, %s8052_s25  ;;  %p8058_p3 = scmp.lt.s32.totalorder %s8052_s25, %s8052_s25 }
  0x27   :  { %p8059_p4 = por %p8058_p3, %p8057_p2 }
  0x29   :  { %p8060_p5 = pnand %p8059_p4, %p8053_p1 }
  0x2b   :  { %8063 = shalt.err (!%p8060_p5)
}
  0x2c   :  { %s8180_s4 = smov 256   ;;  %s8181_s26 = smov 16  }
  0x2d   :  { %33 = dma.hbm_to_vmem [thread:$0]  %s8447_s1, 4096, %s28_s22, [#allocation3], %s8180_s4, %s8180_s4, %s8181_s26  }
  0x2e   :  { %s8182_s29 = smov [#allocation7]   ;;  %s8183_s10 = smov [#allocation10]  }
  0x2f   :  { %s49_s30 = sshll.u32 %s8182_s29, 4  ;;  %s71_s11 = sshll.u32 %s8183_s10, 4  ;;  %s50_s30 = int_to_ptr.vmem [resolvable:$true] %s49_s30  ;;  %s72_s11 = int_to_ptr.vmem [resolvable:$true] %s71_s11 }
  0x30   :  { %s8072_s6 = scalar_lea.vmem %s50_s30, 16384  ;;  %p8077_p7 = scmp.lt.s32.totalorder %s50_s30, %s50_s30 }
  0x31   :  { %p8073_p6 = scmp.ne.s32.totalorder %s50_s30, %s8072_s6  ;;  %p8078_p8 = scmp.lt.s32.totalorder %s8072_s6, %s8072_s6 }
  0x33   :  { %p8079_p9 = por %p8078_p8, %p8077_p7 }
  0x35   :  { %p8080_p10 = pnand %p8079_p9, %p8073_p6 }
  0x37   :  { %8083 = shalt.err (!%p8080_p10)
}
  0x38   :  { %55 = dma.hbm_to_vmem [thread:$0]  %s8449_s3, 16384, %s50_s30, [#allocation6], %s8180_s4, %s8180_s4, %s8181_s26  }
  0x39   :  { %s8092_s14 = scalar_lea.vmem %s72_s11, 65536  ;;  %p8097_p12 = scmp.lt.s32.totalorder %s72_s11, %s72_s11 }
  0x3a   :  { %p8093_p11 = scmp.ne.s32.totalorder %s72_s11, %s8092_s14  ;;  %p8098_p13 = scmp.lt.s32.totalorder %s8092_s14, %s8092_s14 }
  0x3c   :  { %p8099_p0 = por %p8098_p13, %p8097_p12 }
  0x3e   :  { %p8100_p1 = pnand %p8099_p0, %p8093_p11 }
  0x40   :  { %8103 = shalt.err (!%p8100_p1)
}
  0x41   :  { %s8184_s1 = smov 1024   ;;  %s8185_s15 = smov 64  }
  0x42   :  { %77 = dma.hbm_to_vmem [thread:$0]  %s8451_s5, 65536, %s72_s11, [#allocation9], %s8184_s1, %s8184_s1, %s8185_s15  }
  0x43   :  { %s8186_s18 = smov [#allocation13]   ;;  %s8187_s20 = smov [#allocation14]  }
  0x44   :  { %s93_s19 = sshll.u32 %s8186_s18, 4  ;;  %s106_s21 = sshll.u32 %s8187_s20, 4  ;;  %s94_s19 = int_to_ptr.vmem [resolvable:$true] %s93_s19  ;;  %s107_s21 = int_to_ptr.vmem [resolvable:$true] %s106_s21 }
  0x45   :  { %s8112_s22 = scalar_lea.vmem %s94_s19, 16384  ;;  %p8117_p3 = scmp.lt.s32.totalorder %s94_s19, %s94_s19 }
  0x46   :  { %p8113_p2 = scmp.ne.s32.totalorder %s94_s19, %s8112_s22  ;;  %p8118_p4 = scmp.lt.s32.totalorder %s8112_s22, %s8112_s22 }
  0x48   :  { %p8119_p5 = por %p8118_p4, %p8117_p3 }
  0x4a   :  { %p8120_p6 = pnand %p8119_p5, %p8113_p2 }
  0x4c   :  { %8123 = shalt.err (!%p8120_p6)
}
  0x4d   :  { %s8188_s3 = smov 4   ;;  %s8132_s24 = scalar_lea.vmem %s107_s21, 16 }
  0x4e   :  { %99 = dma.hbm_to_vmem [thread:$0]  %s8453_s7, 16384, %s94_s19, [#allocation12], %s8185_s15, %s8185_s15, %s8188_s3  }
  0x4f   :  { %p8133_p7 = scmp.ne.s32.totalorder %s107_s21, %s8132_s24  ;;  %s8136_s5 = scalar_lea.vmem %s107_s21, 32 }
  0x50   :  { %p8137_p8 = scmp.lt.s32.totalorder %s107_s21, %s107_s21  ;;  %p8138_p9 = scmp.lt.s32.totalorder %s8136_s5, %s8132_s24 }
  0x52   :  { %p8139_p10 = por %p8138_p9, %p8137_p8 }
  0x54   :  { %p8140_p11 = pnand %p8139_p10, %p8133_p7 }
  0x56   :  { %8143 = shalt.err (!%p8140_p11)
}
  0x57   :  { %109 = dma.hbm_to_vmem [thread:$0]  %s8454_s8, 16, %s107_s21, [#allocation15]  }
  0x58   :  { %8164 = dma.done.wait [#allocation3], 4096  }
  0x59   :  { %8165 = vsyncadd [#allocation3], 4294963200 }
  0x5a   :  { %8166 = dma.done.wait [#allocation6], 16448  }
  0x5b   :  { %8167 = vsyncadd [#allocation6], 4294950848 }
  0x5c   :  { %8168 = dma.done.wait [#allocation9], 65600  }
  0x5d   :  { %8169 = vsyncadd [#allocation9], 4294901696 }
  0x5e   :  { %8170 = dma.done.wait [#allocation12], 16640  }
  0x5f   :  { %8171 = vsyncadd [#allocation12], 4294950656 }
  0x60   :  { %8172 = dma.done.wait [#allocation15], 16  }
  0x61   :  { %8173 = vsyncadd [#allocation15], 4294967280  ;;  %v8189_v0 = vmov 0   ;;  %v7616_v1 = vld [vmem:[#allocation2 + $0xe4] ss:$16 sps:$4 sm:$0xff]  }
  0x62   :  { %382 = vmatprep.mubr.bf16.mxu0 %v8189_v0  ;;  %423 = vmatprep.mubr.bf16.mxu1 %v8189_v0  ;;  %v7618_v2 = vld [vmem:[#allocation2 + $0xec] ss:$16 sps:$4 sm:$0xff]   ;;  %v7620_v3 = vld [vmem:[#allocation2 + $0xe0] ss:$16 sps:$4 sm:$0xff]   ;;  %v7621_v4 = vld [vmem:[#allocation2 + $0xe8] ss:$16 sps:$4 sm:$0xff]  }
  0x63   :  { %350 = vmatprep.subr.bf16.mxu0 %v7616_v1  ;;  %391 = vmatprep.subr.bf16.mxu1 %v7618_v2  ;;  %v7622_v5 = vld [vmem:[#allocation2 + $0xc4] ss:$16 sps:$4 sm:$0xff]   ;;  %v7624_v6 = vld [vmem:[#allocation2 + $0xcc] ss:$16 sps:$4 sm:$0xff]   ;;  %v7626_v7 = vld [vmem:[#allocation2 + $0xc0] ss:$16 sps:$4 sm:$0xff]  }
  0x64   :  { %351 = vmatpush1.bf16.msra.mxu0 %v7620_v3  ;;  %392 = vmatpush1.bf16.msra.mxu1 %v7621_v4  ;;  %v7627_v8 = vld [vmem:[#allocation2 + $0xc8] ss:$16 sps:$4 sm:$0xff]   ;;  %v7628_v9 = vld [vmem:[#allocation2 + $0xa4] ss:$16 sps:$4 sm:$0xff]   ;;  %v7630_v10 = vld [vmem:[#allocation2 + $0xac] ss:$16 sps:$4 sm:$0xff]  }
  0x65   :  { %352 = vmatprep.subr.bf16.mxu0 %v7622_v5  ;;  %393 = vmatprep.subr.bf16.mxu1 %v7624_v6  ;;  %v7632_v11 = vld [vmem:[#allocation2 + $0xa0] ss:$16 sps:$4 sm:$0xff]   ;;  %v7633_v12 = vld [vmem:[#allocation2 + $0xa8] ss:$16 sps:$4 sm:$0xff]   ;;  %v7634_v13 = vld [vmem:[#allocation2 + $0x84] ss:$16 sps:$4 sm:$0xff]  }
  0x66   :  { %v7636_v14 = vld [vmem:[#allocation2 + $0x8c] ss:$16 sps:$4 sm:$0xff]   ;;  %v7638_v15 = vld [vmem:[#allocation2 + $0x80] ss:$16 sps:$4 sm:$0xff]   ;;  %v7639_v16 = vld [vmem:[#allocation2 + $0x88] ss:$16 sps:$4 sm:$0xff]  }
  0x67   :  { %v7640_v17 = vld [vmem:[#allocation2 + $0x64] ss:$16 sps:$4 sm:$0xff]   ;;  %v7642_v18 = vld [vmem:[#allocation2 + $0x6c] ss:$16 sps:$4 sm:$0xff]   ;;  %v7644_v19 = vld [vmem:[#allocation2 + $0x60] ss:$16 sps:$4 sm:$0xff]  }
  0x68   :  { %353 = vmatpush1.bf16.msra.mxu0 %v7626_v7  ;;  %394 = vmatpush1.bf16.msra.mxu1 %v7627_v8  ;;  %v7645_v20 = vld [vmem:[#allocation2 + $0x68] ss:$16 sps:$4 sm:$0xff]   ;;  %v7646_v21 = vld [vmem:[#allocation2 + $0x44] ss:$16 sps:$4 sm:$0xff]   ;;  %v7648_v22 = vld [vmem:[#allocation2 + $0x4c] ss:$16 sps:$4 sm:$0xff]  }
  0x69   :  { %354 = vmatprep.subr.bf16.mxu0 %v7628_v9  ;;  %395 = vmatprep.subr.bf16.mxu1 %v7630_v10  ;;  %v7650_v23 = vld [vmem:[#allocation2 + $0x40] ss:$16 sps:$4 sm:$0xff]   ;;  %v7651_v24 = vld [vmem:[#allocation2 + $0x48] ss:$16 sps:$4 sm:$0xff]   ;;  %v7652_v25 = vld [vmem:[#allocation2 + $0x24] ss:$16 sps:$4 sm:$0xff]  }
  0x6a   :  { %v7654_v26 = vld [vmem:[#allocation2 + $0x2c] ss:$16 sps:$4 sm:$0xff]   ;;  %v7656_v27 = vld [vmem:[#allocation2 + $0x20] ss:$16 sps:$4 sm:$0xff]   ;;  %v7657_v28 = vld [vmem:[#allocation2 + $0x28] ss:$16 sps:$4 sm:$0xff]  }
  0x6b   :  { %v7658_v29 = vld [vmem:[#allocation2 + $0x4] ss:$16 sps:$4 sm:$0xff]   ;;  %v7660_v30 = vld [vmem:[#allocation2 + $0xc] ss:$16 sps:$4 sm:$0xff]   ;;  %v7662_v31 = vld [vmem:[#allocation2] ss:$16 sps:$4 sm:$0xff]  }
  0x6c   :  { %355 = vmatpush1.bf16.msra.mxu0 %v7632_v11  ;;  %396 = vmatpush1.bf16.msra.mxu1 %v7633_v12  ;;  %v7663_v32 = vld [vmem:[#allocation2 + $0x8] ss:$16 sps:$4 sm:$0xff]   ;;  %v135_v35 = vld [vmem:[%s8446_s0] sm:$0xf]  ;;  %v7664_v36 = vld [vmem:[#allocation7 + $0xe0] ss:$16 sps:$4 sm:$0xff]  }
  0x6d   :  { %356 = vmatprep.subr.bf16.mxu0 %v7634_v13  ;;  %397 = vmatprep.subr.bf16.mxu1 %v7636_v14  ;;  %v7666_v33 = vld [vmem:[#allocation7 + $0xe4] ss:$16 sps:$4 sm:$0xff]   ;;  %v7667_v37 = vld [vmem:[#allocation7 + $0x2e0] ss:$16 sps:$4 sm:$0xff]   ;;  %s8190_s0 = smov [#allocation16]  }
  0x6e   :  { %v7669_v34 = vld [vmem:[#allocation7 + $0x2e4] ss:$16 sps:$4 sm:$0xff]   ;;  %v7670_v40 = vld [vmem:[#allocation7 + $0xc0] ss:$16 sps:$4 sm:$0xff]   ;;  %s6611_s26 = sshll.u32 %s8190_s0, 4  ;;  %s6612_s26 = int_to_ptr.vmem [resolvable:$true] %s6611_s26 }
  0x6f   :  { %v7672_v38 = vld [vmem:[#allocation7 + $0xc4] ss:$16 sps:$4 sm:$0xff]   ;;  %v7673_v41 = vld [vmem:[#allocation7 + $0x2c0] ss:$16 sps:$4 sm:$0xff]   ;;  %s8144_s27 = scalar_lea.vmem %s6612_s26, 128  ;;  %p8149_p13 = scmp.lt.s32.totalorder %s6612_s26, %s6612_s26 }
  0x70   :  { %357 = vmatpush1.bf16.msra.mxu0 %v7638_v15  ;;  %398 = vmatpush1.bf16.msra.mxu1 %v7639_v16  ;;  %v7675_v39 = vld [vmem:[#allocation7 + $0x2c4] ss:$16 sps:$4 sm:$0xff]   ;;  %v7676_v44 = vld [vmem:[#allocation7 + $0xa0] ss:$16 sps:$4 sm:$0xff]   ;;  %p8145_p12 = scmp.ne.s32.totalorder %s6612_s26, %s8144_s27  ;;  %p8150_p0 = scmp.lt.s32.totalorder %s8144_s27, %s8144_s27 }
  0x71   :  { %358 = vmatprep.subr.bf16.mxu0 %v7640_v17  ;;  %399 = vmatprep.subr.bf16.mxu1 %v7642_v18  ;;  %v7678_v42 = vld [vmem:[#allocation7 + $0xa4] ss:$16 sps:$4 sm:$0xff]   ;;  %v7679_v45 = vld [vmem:[#allocation7 + $0x2a0] ss:$16 sps:$4 sm:$0xff]  }
  0x72   :  { %v7681_v43 = vld [vmem:[#allocation7 + $0x2a4] ss:$16 sps:$4 sm:$0xff]   ;;  %v7682_v48 = vld [vmem:[#allocation7 + $0x80] ss:$16 sps:$4 sm:$0xff]   ;;  %p8151_p1 = por %p8150_p0, %p8149_p13 }
  0x73   :  { %v7684_v46 = vld [vmem:[#allocation7 + $0x84] ss:$16 sps:$4 sm:$0xff]   ;;  %v7685_v49 = vld [vmem:[#allocation7 + $0x280] ss:$16 sps:$4 sm:$0xff]  }
  0x74   :  { %359 = vmatpush1.bf16.msra.mxu0 %v7644_v19  ;;  %400 = vmatpush1.bf16.msra.mxu1 %v7645_v20  ;;  %v7687_v47 = vld [vmem:[#allocation7 + $0x284] ss:$16 sps:$4 sm:$0xff]   ;;  %v7688_v52 = vld [vmem:[#allocation7 + $0x60] ss:$16 sps:$4 sm:$0xff]   ;;  %p8152_p2 = pnand %p8151_p1, %p8145_p12 }
  0x75   :  { %360 = vmatprep.subr.bf16.mxu0 %v7646_v21  ;;  %401 = vmatprep.subr.bf16.mxu1 %v7648_v22  ;;  %v7690_v50 = vld [vmem:[#allocation7 + $0x64] ss:$16 sps:$4 sm:$0xff]   ;;  %v7691_v53 = vld [vmem:[#allocation7 + $0x260] ss:$16 sps:$4 sm:$0xff]  }
  0x76   :  { %v7693_v51 = vld [vmem:[#allocation7 + $0x264] ss:$16 sps:$4 sm:$0xff]   ;;  %v7694_v56 = vld [vmem:[#allocation7 + $0x40] ss:$16 sps:$4 sm:$0xff]  }
  0x77   :  { %v7696_v54 = vld [vmem:[#allocation7 + $0x44] ss:$16 sps:$4 sm:$0xff]   ;;  %v7697_v57 = vld [vmem:[#allocation7 + $0x240] ss:$16 sps:$4 sm:$0xff]  }
  0x78   :  { %361 = vmatpush1.bf16.msra.mxu0 %v7650_v23  ;;  %402 = vmatpush1.bf16.msra.mxu1 %v7651_v24  ;;  %v7699_v55 = vld [vmem:[#allocation7 + $0x244] ss:$16 sps:$4 sm:$0xff]   ;;  %v7700_v60 = vld [vmem:[#allocation7 + $0x20] ss:$16 sps:$4 sm:$0xff]  }
  0x79   :  { %362 = vmatprep.subr.bf16.mxu0 %v7652_v25  ;;  %403 = vmatprep.subr.bf16.mxu1 %v7654_v26  ;;  %v7702_v58 = vld [vmem:[#allocation7 + $0x24] ss:$16 sps:$4 sm:$0xff]   ;;  %v7703_v61 = vld [vmem:[#allocation7 + $0x220] ss:$16 sps:$4 sm:$0xff]  }
  0x7a   :  { %v7705_v59 = vld [vmem:[#allocation7 + $0x224] ss:$16 sps:$4 sm:$0xff]   ;;  %v7706_v0 = vld [vmem:[#allocation7] ss:$16 sps:$4 sm:$0xff]  }
  0x7b   :  { %v7708_v62 = vld [vmem:[#allocation7 + $0x4] ss:$16 sps:$4 sm:$0xff]   ;;  %v7709_v1 = vld [vmem:[#allocation7 + $0x200] ss:$16 sps:$4 sm:$0xff]  }
  0x7c   :  { %363 = vmatpush1.bf16.msra.mxu0 %v7656_v27  ;;  %404 = vmatpush1.bf16.msra.mxu1 %v7657_v28  ;;  %v7711_v63 = vld [vmem:[#allocation7 + $0x204] ss:$16 sps:$4 sm:$0xff]   ;;  %v7712_v4 = vld [vmem:[#allocation7 + $0x1e0] ss:$16 sps:$4 sm:$0xff]  }
  0x7d   :  { %364 = vmatprep.subr.bf16.mxu0 %v7658_v29  ;;  %405 = vmatprep.subr.bf16.mxu1 %v7660_v30  ;;  %v7714_v2 = vld [vmem:[#allocation7 + $0x1e4] ss:$16 sps:$4 sm:$0xff]   ;;  %v7715_v5 = vld [vmem:[#allocation7 + $0x3e0] ss:$16 sps:$4 sm:$0xff]  }
  0x7e   :  { %v7717_v3 = vld [vmem:[#allocation7 + $0x3e4] ss:$16 sps:$4 sm:$0xff]   ;;  %v7718_v8 = vld [vmem:[#allocation7 + $0x1c0] ss:$16 sps:$4 sm:$0xff]  }
  0x7f   :  { %v7720_v6 = vld [vmem:[#allocation7 + $0x1c4] ss:$16 sps:$4 sm:$0xff]   ;;  %v7721_v9 = vld [vmem:[#allocation7 + $0x3c0] ss:$16 sps:$4 sm:$0xff]  }
  0x80   :  { %365 = vmatpush1.bf16.msra.mxu0 %v7662_v31  ;;  %406 = vmatpush1.bf16.msra.mxu1 %v7663_v32  ;;  %v7723_v7 = vld [vmem:[#allocation7 + $0x3c4] ss:$16 sps:$4 sm:$0xff]   ;;  %v7724_v12 = vld [vmem:[#allocation7 + $0x1a0] ss:$16 sps:$4 sm:$0xff]  }
  0x81   :  { %1230 = vmatprep.subr.bf16.mxu0 %v7666_v33  ;;  %1271 = vmatprep.subr.bf16.mxu1 %v7669_v34  ;;  %v7726_v10 = vld [vmem:[#allocation7 + $0x1a4] ss:$16 sps:$4 sm:$0xff]   ;;  %v7727_v13 = vld [vmem:[#allocation7 + $0x3a0] ss:$16 sps:$4 sm:$0xff]   ;;  %v7762_v34 = vld [vmem:[#allocation7 + $0xec] ss:$16 sps:$4 sm:$0xff]  }
  0x82   :  { %v7729_v11 = vld [vmem:[#allocation7 + $0x3a4] ss:$16 sps:$4 sm:$0xff]   ;;  %v7730_v16 = vld [vmem:[#allocation7 + $0x180] ss:$16 sps:$4 sm:$0xff]  }
  0x83   :  { %383 = vmatmul.mubr.bf16.vlgmr.msra.gmra.mxu0 %v135_v35  ;;  %424 = vmatmul.mubr.bf16.vlgmr.msra.gmra.mxu1 %v135_v35  ;;  %v7732_v14 = vld [vmem:[#allocation7 + $0x184] ss:$16 sps:$4 sm:$0xff]   ;;  %v7733_v17 = vld [vmem:[#allocation7 + $0x380] ss:$16 sps:$4 sm:$0xff]   ;;  %v7765_v35 = vld [vmem:[#allocation7 + $0x2ec] ss:$16 sps:$4 sm:$0xff]  }
  0x84   :  { %1231 = vmatpush1.bf16.msra.mxu0 %v7664_v36  ;;  %1272 = vmatpush1.bf16.msra.mxu1 %v7667_v37  ;;  %v7735_v15 = vld [vmem:[#allocation7 + $0x384] ss:$16 sps:$4 sm:$0xff]   ;;  %v7736_v20 = vld [vmem:[#allocation7 + $0x160] ss:$16 sps:$4 sm:$0xff]   ;;  %v170_v36 = vlaneseq }
  0x85   :  { %1232 = vmatprep.subr.bf16.mxu0 %v7672_v38  ;;  %1273 = vmatprep.subr.bf16.mxu1 %v7675_v39  ;;  %v7738_v18 = vld [vmem:[#allocation7 + $0x164] ss:$16 sps:$4 sm:$0xff]   ;;  %v7739_v21 = vld [vmem:[#allocation7 + $0x360] ss:$16 sps:$4 sm:$0xff]  }
  0x86   :  { %v7741_v19 = vld [vmem:[#allocation7 + $0x364] ss:$16 sps:$4 sm:$0xff]   ;;  %v7742_v24 = vld [vmem:[#allocation7 + $0x140] ss:$16 sps:$4 sm:$0xff]   ;;  %v171_v37 = vshrl.u32 %v170_v36, 7 }
  0x87   :  { %v7744_v22 = vld [vmem:[#allocation7 + $0x144] ss:$16 sps:$4 sm:$0xff]   ;;  %v7745_v25 = vld [vmem:[#allocation7 + $0x340] ss:$16 sps:$4 sm:$0xff]   ;;  %v7811_v36 = vld [vmem:[#allocation7 + $0x3e8] ss:$16 sps:$4 sm:$0xff]  }
  0x88   :  { %1233 = vmatpush1.bf16.msra.mxu0 %v7670_v40  ;;  %1274 = vmatpush1.bf16.msra.mxu1 %v7673_v41  ;;  %v7747_v23 = vld [vmem:[#allocation7 + $0x344] ss:$16 sps:$4 sm:$0xff]   ;;  %v7748_v28 = vld [vmem:[#allocation7 + $0x120] ss:$16 sps:$4 sm:$0xff]   ;;  %v8268_v38 = vsub.s32 0, %v171_v37  ;;  %v8270_v39 = vsub.s32 2, %v171_v37 }
  0x89   :  { %1234 = vmatprep.subr.bf16.mxu0 %v7678_v42  ;;  %1275 = vmatprep.subr.bf16.mxu1 %v7681_v43  ;;  %v7750_v26 = vld [vmem:[#allocation7 + $0x124] ss:$16 sps:$4 sm:$0xff]   ;;  %v7751_v29 = vld [vmem:[#allocation7 + $0x320] ss:$16 sps:$4 sm:$0xff]   ;;  %v168_v40 = vld [vmem:[#allocation5] sm:$0xf] }
  0x8a   :  { %v7753_v27 = vld [vmem:[#allocation7 + $0x324] ss:$16 sps:$4 sm:$0xff]   ;;  %v7754_v32 = vld [vmem:[#allocation7 + $0x100] ss:$16 sps:$4 sm:$0xff]   ;;  %v8272_v41 = vsub.s32 1, %v171_v37  ;;  %v8274_v42 = vsub.s32 3, %v171_v37  ;;  %v173_v43 = vrot.slane %v168_v40, %v8268_v38 }
  0x8b   :  { %v7756_v30 = vld [vmem:[#allocation7 + $0x104] ss:$16 sps:$4 sm:$0xff]   ;;  %v7757_v33 = vld [vmem:[#allocation7 + $0x300] ss:$16 sps:$4 sm:$0xff]   ;;  %v7816_v37 = vld [vmem:[#allocation7 + $0x1cc] ss:$16 sps:$4 sm:$0xff]  }
  0x8c   :  { %1235 = vmatpush1.bf16.msra.mxu0 %v7676_v44  ;;  %1276 = vmatpush1.bf16.msra.mxu1 %v7679_v45  ;;  %v7759_v31 = vld [vmem:[#allocation7 + $0x304] ss:$16 sps:$4 sm:$0xff]   ;;  %v181_v44 = vrot.slane %v168_v40, %v8270_v39  ;;  %v177_v45 = vrot.slane %v168_v40, %v8272_v41 }
  0x8d   :  { %1236 = vmatprep.subr.bf16.mxu0 %v7684_v46  ;;  %1277 = vmatprep.subr.bf16.mxu1 %v7687_v47  ;;  %v185_v46 = vrot.slane %v168_v40, %v8274_v42  ;;  %v7819_v40 = vld [vmem:[#allocation7 + $0x3cc] ss:$16 sps:$4 sm:$0xff]  }
  0x90   :  { %1237 = vmatpush1.bf16.msra.mxu0 %v7682_v48  ;;  %1278 = vmatpush1.bf16.msra.mxu1 %v7685_v49 }
  0x91   :  { %1238 = vmatprep.subr.bf16.mxu0 %v7690_v50  ;;  %1279 = vmatprep.subr.bf16.mxu1 %v7693_v51 }
  0x94   :  { %1239 = vmatpush1.bf16.msra.mxu0 %v7688_v52  ;;  %1280 = vmatpush1.bf16.msra.mxu1 %v7691_v53 }
  0x95   :  { %1240 = vmatprep.subr.bf16.mxu0 %v7696_v54  ;;  %1281 = vmatprep.subr.bf16.mxu1 %v7699_v55 }
  0x98   :  { %1241 = vmatpush1.bf16.msra.mxu0 %v7694_v56  ;;  %1282 = vmatpush1.bf16.msra.mxu1 %v7697_v57 }
  0x99   :  { %1242 = vmatprep.subr.bf16.mxu0 %v7702_v58  ;;  %1283 = vmatprep.subr.bf16.mxu1 %v7705_v59 }
  0x9c   :  { %1243 = vmatpush1.bf16.msra.mxu0 %v7700_v60  ;;  %1284 = vmatpush1.bf16.msra.mxu1 %v7703_v61 }
  0x9d   :  { %1244 = vmatprep.subr.bf16.mxu0 %v7708_v62  ;;  %1285 = vmatprep.subr.bf16.mxu1 %v7711_v63 }
  0xa0   :  { %1245 = vmatpush1.bf16.msra.mxu0 %v7706_v0  ;;  %1286 = vmatpush1.bf16.msra.mxu1 %v7709_v1 }
  0xa1   :  { %1246 = vmatprep.subr.bf16.mxu0 %v7714_v2  ;;  %1287 = vmatprep.subr.bf16.mxu1 %v7717_v3  ;;  %v7760_v2 = vld [vmem:[#allocation7 + $0xe8] ss:$16 sps:$4 sm:$0xff]  }
  0xa2   :  { %v7763_v3 = vld [vmem:[#allocation7 + $0x2e8] ss:$16 sps:$4 sm:$0xff]  }
  0xa4   :  { %1247 = vmatpush2.bf16.msra.mxu0 %v7712_v4  ;;  %1288 = vmatpush2.bf16.msra.mxu1 %v7715_v5  ;;  %v7768_v5 = vld [vmem:[#allocation7 + $0xcc] ss:$16 sps:$4 sm:$0xff]  }
  0xa5   :  { %1248 = vmatprep.subr.bf16.mxu0 %v7720_v6  ;;  %1289 = vmatprep.subr.bf16.mxu1 %v7723_v7  ;;  %v7771_v6 = vld [vmem:[#allocation7 + $0x2cc] ss:$16 sps:$4 sm:$0xff]   ;;  %v7766_v7 = vld [vmem:[#allocation7 + $0xc8] ss:$16 sps:$4 sm:$0xff]  }
  0xa8   :  { %1249 = vmatpush2.bf16.msra.mxu0 %v7718_v8  ;;  %1290 = vmatpush2.bf16.msra.mxu1 %v7721_v9  ;;  %v7769_v8 = vld [vmem:[#allocation7 + $0x2c8] ss:$16 sps:$4 sm:$0xff]   ;;  %v7774_v9 = vld [vmem:[#allocation7 + $0xac] ss:$16 sps:$4 sm:$0xff]  }
  0xa9   :  { %1250 = vmatprep.subr.bf16.mxu0 %v7726_v10  ;;  %1291 = vmatprep.subr.bf16.mxu1 %v7729_v11  ;;  %v7777_v10 = vld [vmem:[#allocation7 + $0x2ac] ss:$16 sps:$4 sm:$0xff]   ;;  %v7772_v11 = vld [vmem:[#allocation7 + $0xa8] ss:$16 sps:$4 sm:$0xff]  }
  0xac   :  { %1251 = vmatpush2.bf16.msra.mxu0 %v7724_v12  ;;  %1292 = vmatpush2.bf16.msra.mxu1 %v7727_v13  ;;  %v7775_v12 = vld [vmem:[#allocation7 + $0x2a8] ss:$16 sps:$4 sm:$0xff]   ;;  %v7780_v13 = vld [vmem:[#allocation7 + $0x8c] ss:$16 sps:$4 sm:$0xff]  }
  0xad   :  { %1252 = vmatprep.subr.bf16.mxu0 %v7732_v14  ;;  %1293 = vmatprep.subr.bf16.mxu1 %v7735_v15  ;;  %v7783_v14 = vld [vmem:[#allocation7 + $0x28c] ss:$16 sps:$4 sm:$0xff]   ;;  %v7778_v15 = vld [vmem:[#allocation7 + $0x88] ss:$16 sps:$4 sm:$0xff]  }
  0xb0   :  { %1253 = vmatpush2.bf16.msra.mxu0 %v7730_v16  ;;  %1294 = vmatpush2.bf16.msra.mxu1 %v7733_v17  ;;  %v7781_v16 = vld [vmem:[#allocation7 + $0x288] ss:$16 sps:$4 sm:$0xff]   ;;  %v7786_v17 = vld [vmem:[#allocation7 + $0x6c] ss:$16 sps:$4 sm:$0xff]  }
  0xb1   :  { %1254 = vmatprep.subr.bf16.mxu0 %v7738_v18  ;;  %1295 = vmatprep.subr.bf16.mxu1 %v7741_v19  ;;  %v7789_v18 = vld [vmem:[#allocation7 + $0x26c] ss:$16 sps:$4 sm:$0xff]   ;;  %v7784_v19 = vld [vmem:[#allocation7 + $0x68] ss:$16 sps:$4 sm:$0xff]  }
  0xb4   :  { %1255 = vmatpush2.bf16.msra.mxu0 %v7736_v20  ;;  %1296 = vmatpush2.bf16.msra.mxu1 %v7739_v21  ;;  %v7787_v20 = vld [vmem:[#allocation7 + $0x268] ss:$16 sps:$4 sm:$0xff]   ;;  %v7792_v21 = vld [vmem:[#allocation7 + $0x4c] ss:$16 sps:$4 sm:$0xff]  }
  0xb5   :  { %1256 = vmatprep.subr.bf16.mxu0 %v7744_v22  ;;  %1297 = vmatprep.subr.bf16.mxu1 %v7747_v23  ;;  %v7795_v22 = vld [vmem:[#allocation7 + $0x24c] ss:$16 sps:$4 sm:$0xff]   ;;  %v7790_v23 = vld [vmem:[#allocation7 + $0x48] ss:$16 sps:$4 sm:$0xff]  }
  0xb8   :  { %1257 = vmatpush2.bf16.msra.mxu0 %v7742_v24  ;;  %1298 = vmatpush2.bf16.msra.mxu1 %v7745_v25  ;;  %v7793_v24 = vld [vmem:[#allocation7 + $0x248] ss:$16 sps:$4 sm:$0xff]   ;;  %v7798_v25 = vld [vmem:[#allocation7 + $0x2c] ss:$16 sps:$4 sm:$0xff]  }
  0xb9   :  { %1258 = vmatprep.subr.bf16.mxu0 %v7750_v26  ;;  %1299 = vmatprep.subr.bf16.mxu1 %v7753_v27  ;;  %v7801_v26 = vld [vmem:[#allocation7 + $0x22c] ss:$16 sps:$4 sm:$0xff]   ;;  %v7796_v27 = vld [vmem:[#allocation7 + $0x28] ss:$16 sps:$4 sm:$0xff]  }
  0xbc   :  { %1259 = vmatpush2.bf16.msra.mxu0 %v7748_v28  ;;  %1300 = vmatpush2.bf16.msra.mxu1 %v7751_v29  ;;  %v7799_v28 = vld [vmem:[#allocation7 + $0x228] ss:$16 sps:$4 sm:$0xff]   ;;  %v7804_v29 = vld [vmem:[#allocation7 + $0xc] ss:$16 sps:$4 sm:$0xff]  }
  0xbd   :  { %1260 = vmatprep.subr.bf16.mxu0 %v7756_v30  ;;  %1301 = vmatprep.subr.bf16.mxu1 %v7759_v31  ;;  %v7807_v30 = vld [vmem:[#allocation7 + $0x20c] ss:$16 sps:$4 sm:$0xff]   ;;  %v7802_v31 = vld [vmem:[#allocation7 + $0x8] ss:$16 sps:$4 sm:$0xff]  }
  0xc0   :  { %1261 = vmatpush2.bf16.msra.mxu0 %v7754_v32  ;;  %1302 = vmatpush2.bf16.msra.mxu1 %v7757_v33  ;;  %v7805_v32 = vld [vmem:[#allocation7 + $0x208] ss:$16 sps:$4 sm:$0xff]   ;;  %v7810_v33 = vld [vmem:[#allocation7 + $0x1ec] ss:$16 sps:$4 sm:$0xff]  }
  0xc1   :  { %1312 = vmatprep.subr.bf16.mxu0 %v7762_v34  ;;  %1353 = vmatprep.subr.bf16.mxu1 %v7765_v35  ;;  %v7813_v34 = vld [vmem:[#allocation7 + $0x3ec] ss:$16 sps:$4 sm:$0xff]   ;;  %v7808_v35 = vld [vmem:[#allocation7 + $0x1e8] ss:$16 sps:$4 sm:$0xff]  }
 0x143   :  { %v384_v47 = vpop.f32.mrf.mxu0  ;;  %v425_v48 = vpop.f32.mrf.mxu1 }
 0x144   :  { %v385_v49 = vadd.f32 %v384_v47, %v173_v43  ;;  %v426_v50 = vadd.f32 %v425_v48, %v181_v44  ;;  %v7814_v43 = vld [vmem:[#allocation7 + $0x1c8] ss:$16 sps:$4 sm:$0xff]  }
 0x145   :  { %v386_v51 = vpop.f32.mrf.mxu0  ;;  %v427_v52 = vpop.f32.mrf.mxu1  ;;  %v7817_v44 = vld [vmem:[#allocation7 + $0x3c8] ss:$16 sps:$4 sm:$0xff]  }
 0x146   :  { %v434_v53 = vmax.f32 %v426_v50, 0.0  ;;  %v387_v54 = vadd.f32 %v386_v51, %v177_v45  ;;  %v428_v55 = vadd.f32 %v427_v52, %v185_v46  ;;  %v432_v56 = vmax.f32 %v385_v49, 0.0  ;;  %v7822_v45 = vld [vmem:[#allocation7 + $0x1ac] ss:$16 sps:$4 sm:$0xff]   ;;  %v7820_v47 = vld [vmem:[#allocation7 + $0x1a8] ss:$16 sps:$4 sm:$0xff]  }
 0x147   :  { %v388_v57 = vpop.f32.mrf.mxu0  ;;  %v429_v58 = vpop.f32.mrf.mxu1  ;;  %v7825_v46 = vld [vmem:[#allocation7 + $0x3ac] ss:$16 sps:$4 sm:$0xff]   ;;  %v7823_v48 = vld [vmem:[#allocation7 + $0x3a8] ss:$16 sps:$4 sm:$0xff]  }
 0x148   :  { %v433_v59 = vmax.f32 %v387_v54, 0.0  ;;  %v435_v60 = vmax.f32 %v428_v55, 0.0  ;;  %v8280_v61 = vpack.c.bf16 %v434_v53, %v434_v53  ;;  %v8282_v4 = vpack.c.bf16 %v432_v56, %v432_v56  ;;  %v7828_v49 = vld [vmem:[#allocation7 + $0x18c] ss:$16 sps:$4 sm:$0xff]   ;;  %v7826_v51 = vld [vmem:[#allocation7 + $0x188] ss:$16 sps:$4 sm:$0xff]  }
 0x149   :  { %v389_v62 = vpop.f32.mrf.mxu0  ;;  %v430_v63 = vpop.f32.mrf.mxu1  ;;  %v7831_v50 = vld [vmem:[#allocation7 + $0x38c] ss:$16 sps:$4 sm:$0xff]   ;;  %v7829_v52 = vld [vmem:[#allocation7 + $0x388] ss:$16 sps:$4 sm:$0xff]  }
 0x14a   :  { %v437_v0 = vpack.c.bf16 %v433_v59, %v433_v59  ;;  %v439_v1 = vpack.c.bf16 %v435_v60, %v435_v60  ;;  %v7834_v53 = vld [vmem:[#allocation7 + $0x16c] ss:$16 sps:$4 sm:$0xff]   ;;  %v7832_v55 = vld [vmem:[#allocation7 + $0x168] ss:$16 sps:$4 sm:$0xff]  }
 0x14b   :  { %v7837_v54 = vld [vmem:[#allocation7 + $0x36c] ss:$16 sps:$4 sm:$0xff]   ;;  %v7835_v56 = vld [vmem:[#allocation7 + $0x368] ss:$16 sps:$4 sm:$0xff]  }
 0x14c   :  { %1262 = vmatprep.mubr.bf16.mxu0 %v437_v0  ;;  %1303 = vmatprep.mubr.bf16.mxu1 %v439_v1  ;;  %v7840_v57 = vld [vmem:[#allocation7 + $0x14c] ss:$16 sps:$4 sm:$0xff]   ;;  %v7838_v59 = vld [vmem:[#allocation7 + $0x148] ss:$16 sps:$4 sm:$0xff]  }
 0x14d   :  { %1263 = vmatmul.mubr.bf16.vlgmr.msra.gmra.mxu0 %v8282_v4  ;;  %1304 = vmatmul.mubr.bf16.vlgmr.msra.gmra.mxu1 %v8280_v61  ;;  %v7843_v58 = vld [vmem:[#allocation7 + $0x34c] ss:$16 sps:$4 sm:$0xff]   ;;  %v7841_v60 = vld [vmem:[#allocation7 + $0x348] ss:$16 sps:$4 sm:$0xff]  }
 0x14e   :  { %1313 = vmatpush1.bf16.msra.mxu0 %v7760_v2  ;;  %1354 = vmatpush1.bf16.msra.mxu1 %v7763_v3  ;;  %v7846_v62 = vld [vmem:[#allocation7 + $0x12c] ss:$16 sps:$4 sm:$0xff]  }
 0x14f   :  { %1344 = vmatprep.mubr.bf16.mxu0 %v437_v0  ;;  %1385 = vmatprep.mubr.bf16.mxu1 %v439_v1  ;;  %v7849_v63 = vld [vmem:[#allocation7 + $0x32c] ss:$16 sps:$4 sm:$0xff]   ;;  %v7844_v0 = vld [vmem:[#allocation7 + $0x128] ss:$16 sps:$4 sm:$0xff]  }
 0x150   :  { %1314 = vmatprep.subr.bf16.mxu0 %v7768_v5  ;;  %1355 = vmatprep.subr.bf16.mxu1 %v7771_v6  ;;  %v7847_v1 = vld [vmem:[#allocation7 + $0x328] ss:$16 sps:$4 sm:$0xff]   ;;  %v7852_v2 = vld [vmem:[#allocation7 + $0x10c] ss:$16 sps:$4 sm:$0xff]  }
 0x151   :  { %v7855_v3 = vld [vmem:[#allocation7 + $0x30c] ss:$16 sps:$4 sm:$0xff]   ;;  %v1430_v5 = vld [vmem:[#allocation10 + $0x380] sm:$0xff] }
 0x152   :  { %1315 = vmatpush1.bf16.msra.mxu0 %v7766_v7  ;;  %1356 = vmatpush1.bf16.msra.mxu1 %v7769_v8  ;;  %v1432_v6 = vld [vmem:[#allocation10 + $0x3c0] sm:$0xff] }
 0x153   :  { %1316 = vmatprep.subr.bf16.mxu0 %v7774_v9  ;;  %1357 = vmatprep.subr.bf16.mxu1 %v7777_v10  ;;  %v7850_v7 = vld [vmem:[#allocation7 + $0x108] ss:$16 sps:$4 sm:$0xff]   ;;  %v6813_v9 = vcombine.high %v1430_v5, %v1432_v6 }
 0x154   :  { %v7853_v8 = vld [vmem:[#allocation7 + $0x308] ss:$16 sps:$4 sm:$0xff]  }
 0x155   :  { %v1426_v10 = vld [vmem:[#allocation10 + $0x300] sm:$0xff] }
 0x156   :  { %1317 = vmatpush1.bf16.msra.mxu0 %v7772_v11  ;;  %1358 = vmatpush1.bf16.msra.mxu1 %v7775_v12  ;;  %v1428_v11 = vld [vmem:[#allocation10 + $0x340] sm:$0xff]  ;;  %v6812_v12 = vcombine.low %v1430_v5, %v1432_v6 }
 0x157   :  { %1318 = vmatprep.subr.bf16.mxu0 %v7780_v13  ;;  %1359 = vmatprep.subr.bf16.mxu1 %v7783_v14  ;;  %v6809_v13 = vcombine.high %v1426_v10, %v1428_v11  ;;  %v1422_v14 = vld [vmem:[#allocation10 + $0x280] sm:$0xff] }
 0x158   :  { %v1458_v5 = vld [vmem:[#allocation10 + $0x700] sm:$0xff] }
 0x159   :  { %v1460_v6 = vld [vmem:[#allocation10 + $0x740] sm:$0xff] }
 0x15a   :  { %1319 = vmatpush1.bf16.msra.mxu0 %v7778_v15  ;;  %1360 = vmatpush1.bf16.msra.mxu1 %v7781_v16  ;;  %v1424_v15 = vld [vmem:[#allocation10 + $0x2c0] sm:$0xff]  ;;  %v6808_v16 = vcombine.low %v1426_v10, %v1428_v11 }
 0x15b   :  { %1320 = vmatprep.subr.bf16.mxu0 %v7786_v17  ;;  %1361 = vmatprep.subr.bf16.mxu1 %v7789_v18  ;;  %v6805_v17 = vcombine.high %v1422_v14, %v1424_v15  ;;  %v1418_v18 = vld [vmem:[#allocation10 + $0x200] sm:$0xff] }
 0x15e   :  { %1321 = vmatpush1.bf16.msra.mxu0 %v7784_v19  ;;  %1362 = vmatpush1.bf16.msra.mxu1 %v7787_v20  ;;  %v1420_v19 = vld [vmem:[#allocation10 + $0x240] sm:$0xff]  ;;  %v6804_v20 = vcombine.low %v1422_v14, %v1424_v15 }
 0x15f   :  { %1322 = vmatprep.subr.bf16.mxu0 %v7792_v21  ;;  %1363 = vmatprep.subr.bf16.mxu1 %v7795_v22  ;;  %v6801_v21 = vcombine.high %v1418_v18, %v1420_v19  ;;  %v1414_v22 = vld [vmem:[#allocation10 + $0x180] sm:$0xff] }
 0x160   :  { %v1456_v14 = vld [vmem:[#allocation10 + $0x6c0] sm:$0xff] }
 0x161   :  { %v1470_v15 = vld [vmem:[#allocation10 + $0x880] sm:$0xff] }
 0x162   :  { %1323 = vmatpush1.bf16.msra.mxu0 %v7790_v23  ;;  %1364 = vmatpush1.bf16.msra.mxu1 %v7793_v24  ;;  %v1416_v23 = vld [vmem:[#allocation10 + $0x1c0] sm:$0xff] }
 0x163   :  { %1324 = vmatprep.subr.bf16.mxu0 %v7798_v25  ;;  %1365 = vmatprep.subr.bf16.mxu1 %v7801_v26  ;;  %v1494_v24 = vld [vmem:[#allocation10 + $0xb80] sm:$0xff]  ;;  %v6800_v26 = vcombine.low %v1418_v18, %v1420_v19 }
 0x164   :  { %v1496_v25 = vld [vmem:[#allocation10 + $0xbc0] sm:$0xff] }
 0x166   :  { %1325 = vmatpush1.bf16.msra.mxu0 %v7796_v27  ;;  %1366 = vmatpush1.bf16.msra.mxu1 %v7799_v28  ;;  %v6876_v27 = vcombine.low %v1494_v24, %v1496_v25  ;;  %v8288_v28 = vld [vmem:[#allocation10 + $0x388] sm:$0xff] }
 0x167   :  { %1326 = vmatprep.subr.bf16.mxu0 %v7804_v29  ;;  %1367 = vmatprep.subr.bf16.mxu1 %v7807_v30  ;;  %v6797_v29 = vcombine.high %v1414_v22, %v1416_v23  ;;  %v1410_v30 = vld [vmem:[#allocation10 + $0x100] sm:$0xff] }
 0x16a   :  { %1327 = vmatpush1.bf16.msra.mxu0 %v7802_v31  ;;  %1368 = vmatpush1.bf16.msra.mxu1 %v7805_v32  ;;  %v1412_v31 = vld [vmem:[#allocation10 + $0x140] sm:$0xff] }
 0x16b   :  { %1328 = vmatprep.subr.bf16.mxu0 %v7810_v33  ;;  %1369 = vmatprep.subr.bf16.mxu1 %v7813_v34  ;;  %v1490_v33 = vld [vmem:[#allocation10 + $0xb00] sm:$0xff] }
 0x16c   :  { %v1492_v34 = vld [vmem:[#allocation10 + $0xb40] sm:$0xff] }
 0x16e   :  { %1329 = vmatpush2.bf16.msra.mxu0 %v7808_v35  ;;  %1370 = vmatpush2.bf16.msra.mxu1 %v7811_v36  ;;  %v6796_v35 = vcombine.low %v1414_v22, %v1416_v23  ;;  %v6872_v36 = vcombine.low %v1490_v33, %v1492_v34  ;;  %v1452_v22 = vld [vmem:[#allocation10 + $0x640] sm:$0xff] }
 0x16f   :  { %1330 = vmatprep.subr.bf16.mxu0 %v7816_v37  ;;  %1371 = vmatprep.subr.bf16.mxu1 %v7819_v40  ;;  %v6873_v37 = vcombine.high %v1490_v33, %v1492_v34  ;;  %v6793_v40 = vcombine.high %v1410_v30, %v1412_v31  ;;  %v1466_v23 = vld [vmem:[#allocation10 + $0x800] sm:$0xff] }
 0x170   :  { %v1528_v33 = vld [vmem:[#allocation10 + $0xfc0] sm:$0xff] }
 0x172   :  { %1331 = vmatpush2.bf16.msra.mxu0 %v7814_v43  ;;  %1372 = vmatpush2.bf16.msra.mxu1 %v7817_v44  ;;  %v1406_v43 = vld [vmem:[#allocation10 + $0x80] sm:$0xff] }
 0x173   :  { %1332 = vmatprep.subr.bf16.mxu0 %v7822_v45  ;;  %1373 = vmatprep.subr.bf16.mxu1 %v7825_v46  ;;  %v1408_v44 = vld [vmem:[#allocation10 + $0xc0] sm:$0xff] }
 0x174   :  { %v1486_v45 = vld [vmem:[#allocation10 + $0xa80] sm:$0xff] }
 0x175   :  { %v1488_v46 = vld [vmem:[#allocation10 + $0xac0] sm:$0xff] }
 0x176   :  { %1333 = vmatpush2.bf16.msra.mxu0 %v7820_v47  ;;  %1374 = vmatpush2.bf16.msra.mxu1 %v7823_v48  ;;  %v6792_v47 = vcombine.low %v1410_v30, %v1412_v31  ;;  %v6868_v48 = vcombine.low %v1486_v45, %v1488_v46  ;;  %v1448_v30 = vld [vmem:[#allocation10 + $0x5c0] sm:$0xff] }
 0x177   :  { %1334 = vmatprep.subr.bf16.mxu0 %v7828_v49  ;;  %1375 = vmatprep.subr.bf16.mxu1 %v7831_v50  ;;  %v6869_v49 = vcombine.high %v1486_v45, %v1488_v46  ;;  %v6789_v50 = vcombine.high %v1406_v43, %v1408_v44  ;;  %v1526_v31 = vld [vmem:[#allocation10 + $0xf80] sm:$0xff] }
 0x178   :  { %v1524_v45 = vld [vmem:[#allocation10 + $0xf40] sm:$0xff] }
 0x17a   :  { %1335 = vmatpush2.bf16.msra.mxu0 %v7826_v51  ;;  %1376 = vmatpush2.bf16.msra.mxu1 %v7829_v52  ;;  %v1402_v51 = vld [vmem:[#allocation10] sm:$0xff] }
 0x17b   :  { %1336 = vmatprep.subr.bf16.mxu0 %v7834_v53  ;;  %1377 = vmatprep.subr.bf16.mxu1 %v7837_v54  ;;  %v1404_v52 = vld [vmem:[#allocation10 + $0x40] sm:$0xff] }
 0x17c   :  { %v1482_v53 = vld [vmem:[#allocation10 + $0xa00] sm:$0xff] }
 0x17d   :  { %v1484_v54 = vld [vmem:[#allocation10 + $0xa40] sm:$0xff] }
 0x17e   :  { %1337 = vmatpush2.bf16.msra.mxu0 %v7832_v55  ;;  %1378 = vmatpush2.bf16.msra.mxu1 %v7835_v56  ;;  %v6788_v55 = vcombine.low %v1406_v43, %v1408_v44  ;;  %v6864_v56 = vcombine.low %v1482_v53, %v1484_v54  ;;  %v1444_v43 = vld [vmem:[#allocation10 + $0x540] sm:$0xff] }
 0x17f   :  { %1338 = vmatprep.subr.bf16.mxu0 %v7840_v57  ;;  %1379 = vmatprep.subr.bf16.mxu1 %v7843_v58  ;;  %v6865_v57 = vcombine.high %v1482_v53, %v1484_v54  ;;  %v6785_v58 = vcombine.high %v1402_v51, %v1404_v52  ;;  %v1522_v44 = vld [vmem:[#allocation10 + $0xf00] sm:$0xff] }
 0x180   :  { %v1520_v53 = vld [vmem:[#allocation10 + $0xec0] sm:$0xff] }
 0x182   :  { %1339 = vmatpush2.bf16.msra.mxu0 %v7838_v59  ;;  %1380 = vmatpush2.bf16.msra.mxu1 %v7841_v60  ;;  %v1462_v59 = vld [vmem:[#allocation10 + $0x780] sm:$0xff] }
 0x183   :  { %1340 = vmatprep.subr.bf16.mxu0 %v7846_v62  ;;  %1381 = vmatprep.subr.bf16.mxu1 %v7849_v63  ;;  %v1464_v60 = vld [vmem:[#allocation10 + $0x7c0] sm:$0xff] }
 0x184   :  { %v1478_v62 = vld [vmem:[#allocation10 + $0x980] sm:$0xff] }
 0x185   :  { %v1480_v63 = vld [vmem:[#allocation10 + $0x9c0] sm:$0xff] }
 0x186   :  { %1341 = vmatpush2.bf16.msra.mxu0 %v7844_v0  ;;  %1382 = vmatpush2.bf16.msra.mxu1 %v7847_v1  ;;  %v6784_v0 = vcombine.low %v1402_v51, %v1404_v52  ;;  %v6860_v1 = vcombine.low %v1478_v62, %v1480_v63  ;;  %v1440_v51 = vld [vmem:[#allocation10 + $0x4c0] sm:$0xff] }
 0x187   :  { %1342 = vmatprep.subr.bf16.mxu0 %v7852_v2  ;;  %1383 = vmatprep.subr.bf16.mxu1 %v7855_v3  ;;  %v6861_v2 = vcombine.high %v1478_v62, %v1480_v63  ;;  %v6845_v3 = vcombine.high %v1462_v59, %v1464_v60  ;;  %v1518_v52 = vld [vmem:[#allocation10 + $0xe80] sm:$0xff] }
 0x188   :  { %v1516_v62 = vld [vmem:[#allocation10 + $0xe40] sm:$0xff] }
 0x18a   :  { %1343 = vmatpush2.bf16.msra.mxu0 %v7850_v7  ;;  %1384 = vmatpush2.bf16.msra.mxu1 %v7853_v8  ;;  %v1474_v7 = vld [vmem:[#allocation10 + $0x900] sm:$0xff] }
 0x18b   :  { %2192 = vmatprep.subr.bf16.mxu0 %v6813_v9  ;;  %v1476_v8 = vld [vmem:[#allocation10 + $0x940] sm:$0xff]  ;;  %v6844_v9 = vcombine.low %v1462_v59, %v1464_v60 }
 0x18c   :  { %v6856_v10 = vcombine.low %v1474_v7, %v1476_v8  ;;  %v6857_v11 = vcombine.high %v1474_v7, %v1476_v8  ;;  %v1436_v59 = vld [vmem:[#allocation10 + $0x440] sm:$0xff] }
 0x18d   :  { %1345 = vmatmul.mubr.bf16.vlgmr.msra.gmra.mxu0 %v8282_v4  ;;  %1386 = vmatmul.mubr.bf16.vlgmr.msra.gmra.mxu1 %v8280_v61  ;;  %v6877_v4 = vcombine.high %v1494_v24, %v1496_v25  ;;  %v8290_v61 = vld [vmem:[#allocation10 + $0x3c8] sm:$0xff]  ;;  %v1468_v24 = vld [vmem:[#allocation10 + $0x840] sm:$0xff] }
 0x18e   :  { %2193 = vmatpush1.bf16.msra.mxu0 %v6812_v12  ;;  %v6814_v32 = vcombine.low %v8288_v28, %v8290_v61  ;;  %v6841_v12 = vcombine.high %v1458_v5, %v1460_v6  ;;  %v1514_v60 = vld [vmem:[#allocation10 + $0xe00] sm:$0xff] }
 0x18f   :  { %2194 = vmatprep.subr.bf16.mxu0 %v6809_v13  ;;  %2233 = vmatprep.subr.bf16.mxu1 %v6877_v4  ;;  %v1454_v13 = vld [vmem:[#allocation10 + $0x680] sm:$0xff] }
 0x190   :  { %2234 = vmatpush1.bf16.msra.mxu1 %v6876_v27  ;;  %v6836_v25 = vcombine.low %v1454_v13, %v1456_v14  ;;  %v6849_v27 = vcombine.high %v1466_v23, %v1468_v24 }
 0x191   :  { %2235 = vmatprep.subr.bf16.mxu1 %v6873_v37 }
 0x192   :  { %2195 = vmatpush1.bf16.msra.mxu0 %v6808_v16  ;;  %v1472_v16 = vld [vmem:[#allocation10 + $0x8c0] sm:$0xff] }
 0x193   :  { %2196 = vmatprep.subr.bf16.mxu0 %v6805_v17  ;;  %v6840_v17 = vcombine.low %v1458_v5, %v1460_v6  ;;  %v6852_v18 = vcombine.low %v1470_v15, %v1472_v16  ;;  %v6853_v19 = vcombine.high %v1470_v15, %v1472_v16  ;;  %v1512_v5 = vld [vmem:[#allocation10 + $0xdc0] sm:$0xff] }
 0x194   :  { %2236 = vmatpush1.bf16.msra.mxu1 %v6872_v36  ;;  %v6909_v36 = vcombine.high %v1526_v31, %v1528_v33  ;;  %v1504_v15 = vld [vmem:[#allocation10 + $0xcc0] sm:$0xff] }
 0x195   :  { %2237 = vmatprep.subr.bf16.mxu1 %v6869_v49 }
 0x196   :  { %2197 = vmatpush1.bf16.msra.mxu0 %v6804_v20  ;;  %v6837_v20 = vcombine.high %v1454_v13, %v1456_v14  ;;  %v1502_v14 = vld [vmem:[#allocation10 + $0xc80] sm:$0xff] }
 0x197   :  { %2198 = vmatprep.subr.bf16.mxu0 %v6801_v21  ;;  %v1450_v21 = vld [vmem:[#allocation10 + $0x600] sm:$0xff]  ;;  %v6885_v16 = vcombine.high %v1502_v14, %v1504_v15 }
 0x198   :  { %2238 = vmatpush1.bf16.msra.mxu1 %v6868_v48  ;;  %v6833_v4 = vcombine.high %v1450_v21, %v1452_v22  ;;  %v6832_v34 = vcombine.low %v1450_v21, %v1452_v22  ;;  %v6905_v48 = vcombine.high %v1522_v44, %v1524_v45  ;;  %v8296_v22 = vld [vmem:[#allocation10 + $0xb88] sm:$0xff] }
 0x199   :  { %2239 = vmatprep.subr.bf16.mxu1 %v6865_v57 }
 0x19a   :  { %2199 = vmatpush1.bf16.msra.mxu0 %v6800_v26  ;;  %v6848_v26 = vcombine.low %v1466_v23, %v1468_v24  ;;  %v8298_v23 = vld [vmem:[#allocation10 + $0xbc8] sm:$0xff] }
 0x19b   :  { %2200 = vmatprep.subr.bf16.mxu0 %v6797_v29  ;;  %v1446_v29 = vld [vmem:[#allocation10 + $0x580] sm:$0xff]  ;;  %v6879_v24 = vcombine.high %v8296_v22, %v8298_v23 }
 0x19c   :  { %2240 = vmatpush1.bf16.msra.mxu1 %v6864_v56  ;;  %v6829_v37 = vcombine.high %v1446_v29, %v1448_v30  ;;  %v6828_v46 = vcombine.low %v1446_v29, %v1448_v30  ;;  %v6901_v56 = vcombine.high %v1518_v52, %v1520_v53 }
 0x19d   :  { %2241 = vmatprep.subr.bf16.mxu1 %v6861_v2 }
 0x19e   :  { %2201 = vmatpush1.bf16.msra.mxu0 %v6796_v35  ;;  %v6908_v35 = vcombine.low %v1526_v31, %v1528_v33 }
 0x19f   :  { %2202 = vmatprep.subr.bf16.mxu0 %v6793_v40  ;;  %v1442_v40 = vld [vmem:[#allocation10 + $0x500] sm:$0xff] }
 0x1a0   :  { %2242 = vmatpush1.bf16.msra.mxu1 %v6860_v1  ;;  %v6825_v49 = vcombine.high %v1442_v40, %v1444_v43  ;;  %v6824_v54 = vcombine.low %v1442_v40, %v1444_v43  ;;  %v6897_v1 = vcombine.high %v1514_v60, %v1516_v62 }
 0x1a1   :  { %2243 = vmatprep.subr.bf16.mxu1 %v6857_v11  ;;  %v1508_v11 = vld [vmem:[#allocation10 + $0xd40] sm:$0xff] }
 0x1a2   :  { %2203 = vmatpush1.bf16.msra.mxu0 %v6792_v47  ;;  %v6904_v47 = vcombine.low %v1522_v44, %v1524_v45 }
 0x1a3   :  { %2204 = vmatprep.subr.bf16.mxu0 %v6789_v50  ;;  %v1438_v50 = vld [vmem:[#allocation10 + $0x480] sm:$0xff] }
 0x1a4   :  { %2244 = vmatpush1.bf16.msra.mxu1 %v6856_v10  ;;  %v6821_v57 = vcombine.high %v1438_v50, %v1440_v51  ;;  %v6820_v63 = vcombine.low %v1438_v50, %v1440_v51  ;;  %v1506_v10 = vld [vmem:[#allocation10 + $0xd00] sm:$0xff] }
 0x1a5   :  { %2245 = vmatprep.subr.bf16.mxu1 %v6853_v19  ;;  %v6889_v13 = vcombine.high %v1506_v10, %v1508_v11  ;;  %v1500_v19 = vld [vmem:[#allocation10 + $0xc40] sm:$0xff] }
 0x1a6   :  { %2205 = vmatpush1.bf16.msra.mxu0 %v6788_v55  ;;  %v6900_v55 = vcombine.low %v1518_v52, %v1520_v53  ;;  %v1423_v53 = vld [vmem:[#allocation10 + $0x288] sm:$0xff] }
 0x1a7   :  { %2206 = vmatprep.subr.bf16.mxu0 %v6785_v58  ;;  %v1434_v58 = vld [vmem:[#allocation10 + $0x400] sm:$0xff] }
 0x1a8   :  { %2246 = vmatpush1.bf16.msra.mxu1 %v6852_v18  ;;  %v6817_v2 = vcombine.high %v1434_v58, %v1436_v59  ;;  %v6816_v6 = vcombine.low %v1434_v58, %v1436_v59  ;;  %v1498_v18 = vld [vmem:[#allocation10 + $0xc00] sm:$0xff]  ;;  %v1421_v58 = vld [vmem:[#allocation10 + $0x248] sm:$0xff] }
 0x1a9   :  { %2247 = vmatprep.subr.bf16.mxu1 %v6849_v27  ;;  %v6880_v21 = vcombine.low %v1498_v18, %v1500_v19 }
 0x1aa   :  { %2207 = vmatpush1.bf16.msra.mxu0 %v6784_v0  ;;  %v6896_v0 = vcombine.low %v1514_v60, %v1516_v62  ;;  %v1415_v62 = vld [vmem:[#allocation10 + $0x188] sm:$0xff] }
 0x1ab   :  { %2208 = vmatprep.subr.bf16.mxu0 %v6845_v3  ;;  %v1510_v3 = vld [vmem:[#allocation10 + $0xd80] sm:$0xff] }
 0x1ac   :  { %2248 = vmatpush1.bf16.msra.mxu1 %v6848_v26  ;;  %v6892_v7 = vcombine.low %v1510_v3, %v1512_v5  ;;  %v6893_v8 = vcombine.high %v1510_v3, %v1512_v5  ;;  %v8304_v26 = vld [vmem:[#allocation8] sm:$0xf]  ;;  %v1407_v3 = vld [vmem:[#allocation10 + $0x88] sm:$0xff] }
 0x1ad   :  { %2249 = vmatprep.subr.bf16.mxu1 %v6909_v36  ;;  %v573_v27 = vrot.slane %v8304_v26, %v8268_v38  ;;  %v1409_v5 = vld [vmem:[#allocation10 + $0xc8] sm:$0xff] }
 0x1ae   :  { %2209 = vmatpush2.bf16.msra.mxu0 %v6844_v9  ;;  %v6815_v9 = vcombine.high %v8288_v28, %v8290_v61  ;;  %v1413_v28 = vld [vmem:[#allocation10 + $0x148] sm:$0xff] }
 0x1af   :  { %2210 = vmatprep.subr.bf16.mxu0 %v6841_v12  ;;  %v6888_v12 = vcombine.low %v1506_v10, %v1508_v11  ;;  %v6790_v10 = vcombine.low %v1407_v3, %v1409_v5 }
 0x1b0   :  { %2250 = vmatpush2.bf16.msra.mxu1 %v6908_v35 }
 0x1b1   :  { %2251 = vmatprep.subr.bf16.mxu1 %v6905_v48  ;;  %v1427_v48 = vld [vmem:[#allocation10 + $0x308] sm:$0xff] }
 0x1b2   :  { %2211 = vmatpush2.bf16.msra.mxu0 %v6840_v17  ;;  %v6884_v17 = vcombine.low %v1502_v14, %v1504_v15 }
 0x1b3   :  { %2212 = vmatprep.subr.bf16.mxu0 %v6837_v20  ;;  %v6881_v20 = vcombine.high %v1498_v18, %v1500_v19 }
 0x1b4   :  { %2252 = vmatpush2.bf16.msra.mxu1 %v6904_v47 }
 0x1b5   :  { %2253 = vmatprep.subr.bf16.mxu1 %v6901_v56 }
 0x1b6   :  { %2213 = vmatpush2.bf16.msra.mxu0 %v6836_v25  ;;  %v6878_v25 = vcombine.low %v8296_v22, %v8298_v23 }
 0x1b7   :  { %2214 = vmatprep.subr.bf16.mxu0 %v6833_v4  ;;  %v577_v4 = vrot.slane %v8304_v26, %v8272_v41 }
 0x1b8   :  { %2254 = vmatpush2.bf16.msra.mxu1 %v6900_v55 }
 0x1b9   :  { %2255 = vmatprep.subr.bf16.mxu1 %v6897_v1 }
 0x1ba   :  { %2215 = vmatpush2.bf16.msra.mxu0 %v6832_v34 }
 0x1bb   :  { %2216 = vmatprep.subr.bf16.mxu0 %v6829_v37 }
 0x1bc   :  { %2256 = vmatpush2.bf16.msra.mxu1 %v6896_v0 }
 0x1bd   :  { %2257 = vmatprep.subr.bf16.mxu1 %v6893_v8  ;;  %v1403_v8 = vld [vmem:[#allocation10 + $0x8] sm:$0xff] }
 0x1be   :  { %2217 = vmatpush2.bf16.msra.mxu0 %v6828_v46 }
 0x1bf   :  { %2218 = vmatprep.subr.bf16.mxu0 %v6825_v49  ;;  %v1429_v49 = vld [vmem:[#allocation10 + $0x348] sm:$0xff] }
 0x1c0   :  { %2258 = vmatpush2.bf16.msra.mxu1 %v6892_v7  ;;  %v6811_v52 = vcombine.high %v1427_v48, %v1429_v49  ;;  %v6810_v55 = vcombine.low %v1427_v48, %v1429_v49  ;;  %v6791_v7 = vcombine.high %v1407_v3, %v1409_v5 }
 0x1c1   :  { %2259 = vmatprep.subr.bf16.mxu1 %v6889_v13  ;;  %v1465_v13 = vld [vmem:[#allocation10 + $0x7c8] sm:$0xff] }
 0x1c2   :  { %2219 = vmatpush2.bf16.msra.mxu0 %v6824_v54  ;;  %v1425_v54 = vld [vmem:[#allocation10 + $0x2c8] sm:$0xff] }
 0x1c3   :  { %2220 = vmatprep.subr.bf16.mxu0 %v6821_v57  ;;  %v6807_v56 = vcombine.high %v1423_v53, %v1425_v54  ;;  %v1419_v57 = vld [vmem:[#allocation10 + $0x208] sm:$0xff]  ;;  %v6806_v59 = vcombine.low %v1423_v53, %v1425_v54 }
 0x1c4   :  { %2260 = vmatpush2.bf16.msra.mxu1 %v6888_v12  ;;  %v6803_v60 = vcombine.high %v1419_v57, %v1421_v58  ;;  %v6802_v0 = vcombine.low %v1419_v57, %v1421_v58  ;;  %v1463_v12 = vld [vmem:[#allocation10 + $0x788] sm:$0xff] }
 0x1c5   :  { %2261 = vmatprep.subr.bf16.mxu1 %v6885_v16  ;;  %v6847_v15 = vcombine.high %v1463_v12, %v1465_v13  ;;  %v1459_v16 = vld [vmem:[#allocation10 + $0x708] sm:$0xff]  ;;  %v6846_v18 = vcombine.low %v1463_v12, %v1465_v13  ;;  %v2454_v12 = vld [vmem:[#allocation10 + $0x350] sm:$0xff] }
 0x1c6   :  { %2221 = vmatpush2.bf16.msra.mxu0 %v6820_v63  ;;  %v1417_v63 = vld [vmem:[#allocation10 + $0x1c8] sm:$0xff] }
 0x1c7   :  { %2222 = vmatprep.subr.bf16.mxu0 %v6817_v2  ;;  %v6799_v1 = vcombine.high %v1415_v62, %v1417_v63  ;;  %v1411_v2 = vld [vmem:[#allocation10 + $0x108] sm:$0xff]  ;;  %v6798_v61 = vcombine.low %v1415_v62, %v1417_v63 }
 0x1c8   :  { %2262 = vmatpush2.bf16.msra.mxu1 %v6884_v17  ;;  %v1461_v17 = vld [vmem:[#allocation10 + $0x748] sm:$0xff] }
 0x1c9   :  { %2263 = vmatprep.subr.bf16.mxu1 %v6881_v20  ;;  %v6843_v19 = vcombine.high %v1459_v16, %v1461_v17  ;;  %v1455_v20 = vld [vmem:[#allocation10 + $0x688] sm:$0xff] }
 0x1ca   :  { %2223 = vmatpush2.bf16.msra.mxu0 %v6816_v6  ;;  %v6794_v6 = vcombine.low %v1411_v2, %v1413_v28  ;;  %v1435_v53 = vld [vmem:[#allocation10 + $0x408] sm:$0xff] }
 0x1cb   :  { %2274 = vmatprep.subr.bf16.mxu0 %v6815_v9  ;;  %v1405_v9 = vld [vmem:[#allocation10 + $0x48] sm:$0xff] }
 0x1cc   :  { %2264 = vmatpush2.bf16.msra.mxu1 %v6880_v21  ;;  %v6787_v11 = vcombine.high %v1403_v8, %v1405_v9  ;;  %v6786_v14 = vcombine.low %v1403_v8, %v1405_v9  ;;  %v1457_v21 = vld [vmem:[#allocation10 + $0x6c8] sm:$0xff] }
 0x1cd   :  { %2315 = vmatprep.subr.bf16.mxu1 %v6879_v24  ;;  %v6842_v24 = vcombine.low %v1459_v16, %v1461_v17  ;;  %v1437_v54 = vld [vmem:[#allocation10 + $0x448] sm:$0xff] }
 0x1ce   :  { %v6819_v62 = vcombine.high %v1435_v53, %v1437_v54  ;;  %v1491_v9 = vld [vmem:[#allocation10 + $0xb08] sm:$0xff] }
 0x20d   :  { %v1264_v29 = vpop.f32.mrf.mxu0  ;;  %v1305_v30 = vpop.f32.mrf.mxu1 }
 0x20e   :  { %v1265_v31 = vadd.f32 %v1264_v29, %v573_v27  ;;  %v6839_v27 = vcombine.high %v1455_v20, %v1457_v21  ;;  %v1453_v29 = vld [vmem:[#allocation10 + $0x648] sm:$0xff] }
 0x20f   :  { %v1266_v33 = vpop.f32.mrf.mxu0  ;;  %v1307_v34 = vpop.f32.mrf.mxu1 }
 0x210   :  { %v1306_v35 = vadd.f32 %v1305_v30, %v1265_v31  ;;  %v1267_v36 = vadd.f32 %v1266_v33, %v577_v4  ;;  %v1451_v4 = vld [vmem:[#allocation10 + $0x608] sm:$0xff]  ;;  %v6838_v30 = vcombine.low %v1455_v20, %v1457_v21  ;;  %v2448_v20 = vld [vmem:[#allocation10 + $0x290] sm:$0xff] }
 0x211   :  { %v1268_v37 = vpop.f32.mrf.mxu0  ;;  %v1309_v40 = vpop.f32.mrf.mxu1  ;;  %v6835_v31 = vcombine.high %v1451_v4, %v1453_v29  ;;  %v1447_v33 = vld [vmem:[#allocation10 + $0x588] sm:$0xff]  ;;  %v2450_v21 = vld [vmem:[#allocation10 + $0x2d0] sm:$0xff] }
 0x212   :  { %v1308_v43 = vadd.f32 %v1307_v34, %v1267_v36  ;;  %v1394_v44 = vmax.f32 %v1306_v35, 0.0  ;;  %v1449_v34 = vld [vmem:[#allocation10 + $0x5c8] sm:$0xff]  ;;  %v6834_v35 = vcombine.low %v1451_v4, %v1453_v29  ;;  %v6933_v29 = vcombine.high %v2448_v20, %v2450_v21 }
 0x213   :  { %v1269_v45 = vpop.f32.mrf.mxu0  ;;  %v1310_v46 = vpop.f32.mrf.mxu1  ;;  %v6831_v36 = vcombine.high %v1447_v33, %v1449_v34  ;;  %v1443_v37 = vld [vmem:[#allocation10 + $0x508] sm:$0xff]  ;;  %v6932_v22 = vcombine.low %v2448_v20, %v2450_v21  ;;  %v2484_v20 = vld [vmem:[#allocation10 + $0x710] sm:$0xff] }
 0x214   :  { %v1395_v47 = vmax.f32 %v1308_v43, 0.0  ;;  %v8312_v51 = vpack.c.bf16 %v1394_v44, %v1394_v44  ;;  %v1445_v40 = vld [vmem:[#allocation10 + $0x548] sm:$0xff]  ;;  %v6830_v43 = vcombine.low %v1447_v33, %v1449_v34  ;;  %v2444_v33 = vld [vmem:[#allocation10 + $0x210] sm:$0xff] }
 0x215   :  { %v6827_v44 = vcombine.high %v1443_v37, %v1445_v40  ;;  %v1439_v45 = vld [vmem:[#allocation10 + $0x488] sm:$0xff]  ;;  %v6826_v48 = vcombine.low %v1443_v37, %v1445_v40  ;;  %v2446_v34 = vld [vmem:[#allocation10 + $0x250] sm:$0xff] }
 0x216   :  { %v8310_v50 = vpack.c.bf16 %v1395_v47, %v1395_v47  ;;  %v1441_v46 = vld [vmem:[#allocation10 + $0x4c8] sm:$0xff]  ;;  %v581_v47 = vrot.slane %v8304_v26, %v8270_v39  ;;  %v2440_v40 = vld [vmem:[#allocation10 + $0x190] sm:$0xff] }
 0x217   :  { %v6823_v49 = vcombine.high %v1439_v45, %v1441_v46  ;;  %v6822_v58 = vcombine.low %v1439_v45, %v1441_v46  ;;  %v1481_v37 = vld [vmem:[#allocation10 + $0x9c8] sm:$0xff]  ;;  %v6928_v45 = vcombine.low %v2444_v33, %v2446_v34  ;;  %v2486_v21 = vld [vmem:[#allocation10 + $0x750] sm:$0xff] }
 0x218   :  { %2224 = vmatprep.mubr.bf16.mxu0 %v8310_v50 }
 0x219   :  { %2225 = vmatmul.mubr.bf16.vlgmr.msra.gmra.mxu0 %v8312_v51 }
 0x21a   :  { %2275 = vmatpush1.bf16.msra.mxu0 %v6814_v32  ;;  %2306 = vmatprep.mubr.bf16.mxu0 %v8310_v50  ;;  %v6795_v32 = vcombine.high %v1411_v2, %v1413_v28  ;;  %v2458_v2 = vld [vmem:[#allocation10 + $0x3d0] sm:$0xff] }
 0x21b   :  { %2276 = vmatprep.subr.bf16.mxu0 %v6811_v52  ;;  %v585_v52 = vrot.slane %v8304_v26, %v8274_v42  ;;  %v6818_v26 = vcombine.low %v1435_v53, %v1437_v54  ;;  %v2438_v53 = vld [vmem:[#allocation10 + $0x150] sm:$0xff] }
 0x21e   :  { %2277 = vmatpush1.bf16.msra.mxu0 %v6810_v55 }
 0x21f   :  { %2278 = vmatprep.subr.bf16.mxu0 %v6807_v56 }
 0x222   :  { %2279 = vmatpush1.bf16.msra.mxu0 %v6806_v59 }
 0x223   :  { %2280 = vmatprep.subr.bf16.mxu0 %v6803_v60 }
 0x226   :  { %2281 = vmatpush1.bf16.msra.mxu0 %v6802_v0 }
 0x227   :  { %2282 = vmatprep.subr.bf16.mxu0 %v6799_v1  ;;  %v2456_v1 = vld [vmem:[#allocation10 + $0x390] sm:$0xff] }
 0x22a   :  { %2283 = vmatpush1.bf16.msra.mxu0 %v6798_v61 }
 0x22b   :  { %2284 = vmatprep.subr.bf16.mxu0 %v6795_v32 }
 0x22e   :  { %2285 = vmatpush1.bf16.msra.mxu0 %v6794_v6 }
 0x22f   :  { %2286 = vmatprep.subr.bf16.mxu0 %v6791_v7  ;;  %v6941_v7 = vcombine.high %v2456_v1, %v2458_v2 }
 0x232   :  { %2287 = vmatpush1.bf16.msra.mxu0 %v6790_v10  ;;  %v1493_v10 = vld [vmem:[#allocation10 + $0xb48] sm:$0xff] }
 0x233   :  { %2288 = vmatprep.subr.bf16.mxu0 %v6787_v11  ;;  %v2452_v11 = vld [vmem:[#allocation10 + $0x310] sm:$0xff]  ;;  %v6875_v16 = vcombine.high %v1491_v9, %v1493_v10 }
 0x234   :  { %v6937_v17 = vcombine.high %v2452_v11, %v2454_v12 }
 0x236   :  { %2289 = vmatpush1.bf16.msra.mxu0 %v6786_v14 }
 0x237   :  { %2290 = vmatprep.subr.bf16.mxu0 %v6847_v15  ;;  %v6940_v15 = vcombine.low %v2456_v1, %v2458_v2 }
 0x23a   :  { %2291 = vmatpush2.bf16.msra.mxu0 %v6846_v18  ;;  %v1487_v18 = vld [vmem:[#allocation10 + $0xa88] sm:$0xff] }
 0x23b   :  { %2292 = vmatprep.subr.bf16.mxu0 %v6843_v19  ;;  %v1489_v19 = vld [vmem:[#allocation10 + $0xac8] sm:$0xff] }
 0x23c   :  { %v6871_v4 = vcombine.high %v1487_v18, %v1489_v19 }
 0x23e   :  { %2293 = vmatpush2.bf16.msra.mxu0 %v6842_v24  ;;  %v6874_v24 = vcombine.low %v1491_v9, %v1493_v10  ;;  %v1529_v9 = vld [vmem:[#allocation10 + $0xfc8] sm:$0xff]  ;;  %v2488_v10 = vld [vmem:[#allocation10 + $0x790] sm:$0xff] }
 0x23f   :  { %2294 = vmatprep.subr.bf16.mxu0 %v6839_v27  ;;  %v6936_v27 = vcombine.low %v2452_v11, %v2454_v12  ;;  %v2490_v11 = vld [vmem:[#allocation10 + $0x7d0] sm:$0xff] }
 0x242   :  { %2295 = vmatpush2.bf16.msra.mxu0 %v6838_v30  ;;  %v1483_v30 = vld [vmem:[#allocation10 + $0xa08] sm:$0xff] }
 0x243   :  { %2296 = vmatprep.subr.bf16.mxu0 %v6835_v31  ;;  %v1485_v31 = vld [vmem:[#allocation10 + $0xa48] sm:$0xff] }
 0x244   :  { %v6867_v23 = vcombine.high %v1483_v30, %v1485_v31 }
 0x246   :  { %2297 = vmatpush2.bf16.msra.mxu0 %v6834_v35  ;;  %v6870_v35 = vcombine.low %v1487_v18, %v1489_v19  ;;  %v1523_v18 = vld [vmem:[#allocation10 + $0xf08] sm:$0xff] }
 0x247   :  { %2298 = vmatprep.subr.bf16.mxu0 %v6831_v36  ;;  %v1479_v36 = vld [vmem:[#allocation10 + $0x988] sm:$0xff] }
 0x248   :  { %v6863_v46 = vcombine.high %v1479_v36, %v1481_v37  ;;  %v6862_v54 = vcombine.low %v1479_v36, %v1481_v37  ;;  %v1525_v19 = vld [vmem:[#allocation10 + $0xf48] sm:$0xff] }
 0x249   :  { %v1515_v36 = vld [vmem:[#allocation10 + $0xe08] sm:$0xff] }
 0x24a   :  { %2299 = vmatpush2.bf16.msra.mxu0 %v6830_v43  ;;  %v2442_v43 = vld [vmem:[#allocation10 + $0x1d0] sm:$0xff]  ;;  %v1517_v37 = vld [vmem:[#allocation10 + $0xe48] sm:$0xff] }
 0x24b   :  { %2300 = vmatprep.subr.bf16.mxu0 %v6827_v44  ;;  %v6866_v44 = vcombine.low %v1483_v30, %v1485_v31  ;;  %v1519_v30 = vld [vmem:[#allocation10 + $0xe88] sm:$0xff] }
 0x24c   :  { %v1521_v31 = vld [vmem:[#allocation10 + $0xec8] sm:$0xff] }
 0x24d   :  { %v1346_v55 = vpop.f32.mrf.mxu0  ;;  %v1387_v56 = vpop.f32.mrf.mxu1 }
 0x24e   :  { %v1347_v57 = vadd.f32 %v1346_v55, %v581_v47  ;;  %2301 = vmatpush2.bf16.msra.mxu0 %v6826_v48  ;;  %v6925_v47 = vcombine.high %v2440_v40, %v2442_v43  ;;  %v1475_v48 = vld [vmem:[#allocation10 + $0x908] sm:$0xff]  ;;  %v6924_v55 = vcombine.low %v2440_v40, %v2442_v43  ;;  %v2476_v40 = vld [vmem:[#allocation10 + $0x610] sm:$0xff] }
 0x24f   :  { %v1348_v59 = vpop.f32.mrf.mxu0  ;;  %v1389_v60 = vpop.f32.mrf.mxu1  ;;  %2302 = vmatprep.subr.bf16.mxu0 %v6823_v49  ;;  %v1477_v49 = vld [vmem:[#allocation10 + $0x948] sm:$0xff]  ;;  %v2478_v43 = vld [vmem:[#allocation10 + $0x650] sm:$0xff] }
 0x250   :  { %v1388_v63 = vadd.f32 %v1387_v56, %v1347_v57  ;;  %v1349_v0 = vadd.f32 %v1348_v59, %v585_v52  ;;  %v2436_v52 = vld [vmem:[#allocation10 + $0x110] sm:$0xff]  ;;  %v6859_v56 = vcombine.high %v1475_v48, %v1477_v49  ;;  %v1473_v59 = vld [vmem:[#allocation10 + $0x8c8] sm:$0xff] }
 0x251   :  { %v1350_v28 = vpop.f32.mrf.mxu0  ;;  %v1391_v61 = vpop.f32.mrf.mxu1  ;;  %v6921_v57 = vcombine.high %v2436_v52, %v2438_v53 }
 0x252   :  { %v1390_v32 = vadd.f32 %v1389_v60, %v1349_v0  ;;  %2303 = vmatpush2.bf16.msra.mxu0 %v6822_v58  ;;  %v1396_v3 = vmax.f32 %v1388_v63, 0.0  ;;  %v1471_v58 = vld [vmem:[#allocation10 + $0x888] sm:$0xff]  ;;  %v2432_v60 = vld [vmem:[#allocation10 + $0x90] sm:$0xff]  ;;  %v6858_v63 = vcombine.low %v1475_v48, %v1477_v49  ;;  %v6920_v0 = vcombine.low %v2436_v52, %v2438_v53 }
 0x253   :  { %v1351_v5 = vpop.f32.mrf.mxu0  ;;  %v1392_v6 = vpop.f32.mrf.mxu1  ;;  %2304 = vmatprep.subr.bf16.mxu0 %v6819_v62  ;;  %v2434_v62 = vld [vmem:[#allocation10 + $0xd0] sm:$0xff]  ;;  %v6855_v1 = vcombine.high %v1471_v58, %v1473_v59  ;;  %v1467_v28 = vld [vmem:[#allocation10 + $0x808] sm:$0xff] }
 0x254   :  { %v1397_v8 = vmax.f32 %v1390_v32, 0.0  ;;  %v8326_v14 = vpack.c.bf16 %v1396_v3, %v1396_v3  ;;  %v6917_v2 = vcombine.high %v2432_v60, %v2434_v62  ;;  %v1469_v61 = vld [vmem:[#allocation10 + $0x848] sm:$0xff]  ;;  %v2428_v32 = vld [vmem:[#allocation10 + $0x10] sm:$0xff]  ;;  %v6854_v3 = vcombine.low %v1471_v58, %v1473_v59 }
 0x255   :  { %v6916_v5 = vcombine.low %v2432_v60, %v2434_v62  ;;  %v6851_v6 = vcombine.high %v1467_v28, %v1469_v61  ;;  %v6850_v12 = vcombine.low %v1467_v28, %v1469_v61  ;;  %v1511_v48 = vld [vmem:[#allocation10 + $0xd88] sm:$0xff]  ;;  %v2472_v52 = vld [vmem:[#allocation10 + $0x590] sm:$0xff] }
 0x256   :  { %v8324_v13 = vpack.c.bf16 %v1397_v8, %v1397_v8  ;;  %2305 = vmatpush2.bf16.msra.mxu0 %v6818_v26  ;;  %v2430_v26 = vld [vmem:[#allocation10 + $0x50] sm:$0xff]  ;;  %v1527_v8 = vld [vmem:[#allocation10 + $0xf88] sm:$0xff] }
 0x257   :  { %3218 = vmatprep.subr.bf16.mxu0 %v6941_v7  ;;  %v6913_v7 = vcombine.high %v2428_v32, %v2430_v26  ;;  %v1513_v49 = vld [vmem:[#allocation10 + $0xdc8] sm:$0xff]  ;;  %v2474_v53 = vld [vmem:[#allocation10 + $0x5d0] sm:$0xff] }
 0x258   :  { %2265 = vmatprep.mubr.bf16.mxu1 %v8324_v13  ;;  %v1507_v58 = vld [vmem:[#allocation10 + $0xd08] sm:$0xff]  ;;  %v2468_v60 = vld [vmem:[#allocation10 + $0x510] sm:$0xff] }
 0x259   :  { %2266 = vmatmul.mubr.bf16.vlgmr.msra.gmra.mxu1 %v8326_v14  ;;  %2307 = vmatmul.mubr.bf16.vlgmr.msra.gmra.mxu0 %v8312_v51  ;;  %v1509_v59 = vld [vmem:[#allocation10 + $0xd48] sm:$0xff]  ;;  %v2470_v62 = vld [vmem:[#allocation10 + $0x550] sm:$0xff] }
 0x25a   :  { %2316 = vmatpush1.bf16.msra.mxu1 %v6878_v25  ;;  %2347 = vmatprep.mubr.bf16.mxu1 %v8324_v13  ;;  %v6929_v25 = vcombine.high %v2444_v33, %v2446_v34  ;;  %v2480_v33 = vld [vmem:[#allocation10 + $0x690] sm:$0xff]  ;;  %v1503_v28 = vld [vmem:[#allocation10 + $0xc88] sm:$0xff] }
 0x25b   :  { %3219 = vmatpush1.bf16.msra.mxu0 %v6940_v15  ;;  %3250 = vmatprep.mubr.bf16.mxu0 %v8310_v50  ;;  %v6912_v15 = vcombine.low %v2428_v32, %v2430_v26  ;;  %v2482_v34 = vld [vmem:[#allocation10 + $0x6d0] sm:$0xff]  ;;  %v1505_v61 = vld [vmem:[#allocation10 + $0xcc8] sm:$0xff] }
 0x25c   :  { %2317 = vmatprep.subr.bf16.mxu1 %v6875_v16  ;;  %3220 = vmatprep.subr.bf16.mxu0 %v6937_v17  ;;  %v6911_v16 = vcombine.high %v1527_v8, %v1529_v9  ;;  %v6973_v17 = vcombine.high %v2488_v10, %v2490_v11  ;;  %v2464_v32 = vld [vmem:[#allocation10 + $0x490] sm:$0xff] }
 0x25d   :  { %v2466_v26 = vld [vmem:[#allocation10 + $0x4d0] sm:$0xff] }
 0x25e   :  { %2318 = vmatpush1.bf16.msra.mxu1 %v6874_v24  ;;  %v6910_v24 = vcombine.low %v1527_v8, %v1529_v9  ;;  %v1499_v8 = vld [vmem:[#allocation10 + $0xc08] sm:$0xff] }
 0x25f   :  { %3221 = vmatpush1.bf16.msra.mxu0 %v6936_v27  ;;  %2319 = vmatprep.subr.bf16.mxu1 %v6871_v4  ;;  %v6972_v27 = vcombine.low %v2488_v10, %v2490_v11  ;;  %v6907_v4 = vcombine.high %v1523_v18, %v1525_v19  ;;  %v1501_v9 = vld [vmem:[#allocation10 + $0xc48] sm:$0xff]  ;;  %v2460_v10 = vld [vmem:[#allocation10 + $0x410] sm:$0xff] }
 0x260   :  { %3222 = vmatprep.subr.bf16.mxu0 %v6933_v29  ;;  %v6969_v29 = vcombine.high %v2484_v20, %v2486_v21  ;;  %v2462_v11 = vld [vmem:[#allocation10 + $0x450] sm:$0xff] }
 0x262   :  { %2320 = vmatpush1.bf16.msra.mxu1 %v6870_v35  ;;  %v6906_v35 = vcombine.low %v1523_v18, %v1525_v19  ;;  %v2520_v18 = vld [vmem:[#allocation10 + $0xb90] sm:$0xff] }
 0x263   :  { %3223 = vmatpush1.bf16.msra.mxu0 %v6932_v22  ;;  %2321 = vmatprep.subr.bf16.mxu1 %v6867_v23  ;;  %v6968_v22 = vcombine.low %v2484_v20, %v2486_v21  ;;  %v6903_v23 = vcombine.high %v1519_v30, %v1521_v31  ;;  %v2522_v19 = vld [vmem:[#allocation10 + $0xbd0] sm:$0xff]  ;;  %v2457_v20 = vld [vmem:[#allocation10 + $0x398] sm:$0xff] }
 0x264   :  { %3224 = vmatprep.subr.bf16.mxu0 %v6929_v25  ;;  %v6965_v25 = vcombine.high %v2480_v33, %v2482_v34  ;;  %v2459_v21 = vld [vmem:[#allocation10 + $0x3d8] sm:$0xff] }
 0x266   :  { %2322 = vmatpush1.bf16.msra.mxu1 %v6866_v44  ;;  %v6902_v44 = vcombine.low %v1519_v30, %v1521_v31  ;;  %v2516_v30 = vld [vmem:[#allocation10 + $0xb10] sm:$0xff] }
 0x267   :  { %3225 = vmatpush1.bf16.msra.mxu0 %v6928_v45  ;;  %2323 = vmatprep.subr.bf16.mxu1 %v6863_v46  ;;  %v6964_v45 = vcombine.low %v2480_v33, %v2482_v34  ;;  %v6899_v46 = vcombine.high %v1515_v36, %v1517_v37  ;;  %v2518_v31 = vld [vmem:[#allocation10 + $0xb50] sm:$0xff]  ;;  %v7004_v33 = vcombine.low %v2520_v18, %v2522_v19  ;;  %v2453_v34 = vld [vmem:[#allocation10 + $0x318] sm:$0xff] }
 0x268   :  { %3226 = vmatprep.subr.bf16.mxu0 %v6925_v47  ;;  %v6961_v47 = vcombine.high %v2476_v40, %v2478_v43 }
 0x26a   :  { %2324 = vmatpush1.bf16.msra.mxu1 %v6862_v54  ;;  %v6898_v54 = vcombine.low %v1515_v36, %v1517_v37  ;;  %v2514_v36 = vld [vmem:[#allocation10 + $0xad0] sm:$0xff] }
 0x26b   :  { %3227 = vmatpush1.bf16.msra.mxu0 %v6924_v55  ;;  %2325 = vmatprep.subr.bf16.mxu1 %v6859_v56  ;;  %v6960_v55 = vcombine.low %v2476_v40, %v2478_v43  ;;  %v6895_v56 = vcombine.high %v1511_v48, %v1513_v49  ;;  %v2449_v40 = vld [vmem:[#allocation10 + $0x298] sm:$0xff] }
 0x26c   :  { %3228 = vmatprep.subr.bf16.mxu0 %v6921_v57  ;;  %v6957_v57 = vcombine.high %v2472_v52, %v2474_v53  ;;  %v2451_v43 = vld [vmem:[#allocation10 + $0x2d8] sm:$0xff] }
 0x26e   :  { %2326 = vmatpush1.bf16.msra.mxu1 %v6858_v63  ;;  %v6894_v63 = vcombine.low %v1511_v48, %v1513_v49  ;;  %v2508_v48 = vld [vmem:[#allocation10 + $0xa10] sm:$0xff] }
 0x26f   :  { %3229 = vmatpush1.bf16.msra.mxu0 %v6920_v0  ;;  %2327 = vmatprep.subr.bf16.mxu1 %v6855_v1  ;;  %v6956_v0 = vcombine.low %v2472_v52, %v2474_v53  ;;  %v6891_v1 = vcombine.high %v1507_v58, %v1509_v59  ;;  %v2510_v49 = vld [vmem:[#allocation10 + $0xa50] sm:$0xff]  ;;  %v2445_v52 = vld [vmem:[#allocation10 + $0x218] sm:$0xff] }
 0x270   :  { %3230 = vmatprep.subr.bf16.mxu0 %v6917_v2  ;;  %v6953_v2 = vcombine.high %v2468_v60, %v2470_v62  ;;  %v2447_v53 = vld [vmem:[#allocation10 + $0x258] sm:$0xff] }
 0x272   :  { %2328 = vmatpush1.bf16.msra.mxu1 %v6854_v3  ;;  %v6890_v3 = vcombine.low %v1507_v58, %v1509_v59  ;;  %v2504_v58 = vld [vmem:[#allocation10 + $0x990] sm:$0xff] }
 0x273   :  { %3231 = vmatpush1.bf16.msra.mxu0 %v6916_v5  ;;  %2329 = vmatprep.subr.bf16.mxu1 %v6851_v6  ;;  %v6952_v5 = vcombine.low %v2468_v60, %v2470_v62  ;;  %v6887_v6 = vcombine.high %v1503_v28, %v1505_v61  ;;  %v2506_v59 = vld [vmem:[#allocation10 + $0x9d0] sm:$0xff]  ;;  %v2441_v60 = vld [vmem:[#allocation10 + $0x198] sm:$0xff] }
 0x274   :  { %3232 = vmatprep.subr.bf16.mxu0 %v6913_v7  ;;  %v6949_v7 = vcombine.high %v2464_v32, %v2466_v26  ;;  %v2443_v62 = vld [vmem:[#allocation10 + $0x1d8] sm:$0xff] }
 0x276   :  { %2330 = vmatpush1.bf16.msra.mxu1 %v6850_v12  ;;  %v6886_v12 = vcombine.low %v1503_v28, %v1505_v61  ;;  %v2500_v28 = vld [vmem:[#allocation10 + $0x910] sm:$0xff] }
 0x277   :  { %3233 = vmatpush1.bf16.msra.mxu0 %v6912_v15  ;;  %2331 = vmatprep.subr.bf16.mxu1 %v6911_v16  ;;  %v6948_v15 = vcombine.low %v2464_v32, %v2466_v26  ;;  %v6883_v16 = vcombine.high %v1499_v8, %v1501_v9  ;;  %v2502_v61 = vld [vmem:[#allocation10 + $0x950] sm:$0xff]  ;;  %v2437_v32 = vld [vmem:[#allocation10 + $0x118] sm:$0xff] }
 0x278   :  { %3234 = vmatprep.subr.bf16.mxu0 %v6973_v17  ;;  %v6945_v17 = vcombine.high %v2460_v10, %v2462_v11  ;;  %v2439_v26 = vld [vmem:[#allocation10 + $0x158] sm:$0xff] }
 0x27a   :  { %2332 = vmatpush2.bf16.msra.mxu1 %v6910_v24  ;;  %v6882_v24 = vcombine.low %v1499_v8, %v1501_v9  ;;  %v2496_v8 = vld [vmem:[#allocation10 + $0x890] sm:$0xff] }
 0x27b   :  { %3235 = vmatpush2.bf16.msra.mxu0 %v6972_v27  ;;  %2333 = vmatprep.subr.bf16.mxu1 %v6907_v4  ;;  %v6944_v27 = vcombine.low %v2460_v10, %v2462_v11  ;;  %v7005_v4 = vcombine.high %v2520_v18, %v2522_v19  ;;  %v2498_v9 = vld [vmem:[#allocation10 + $0x8d0] sm:$0xff]  ;;  %v2433_v10 = vld [vmem:[#allocation10 + $0x98] sm:$0xff] }
 0x27c   :  { %3236 = vmatprep.subr.bf16.mxu0 %v6969_v29  ;;  %v6943_v29 = vcombine.high %v2457_v20, %v2459_v21  ;;  %v2435_v11 = vld [vmem:[#allocation10 + $0xd8] sm:$0xff]  ;;  %v2492_v18 = vld [vmem:[#allocation10 + $0x810] sm:$0xff] }
 0x27d   :  { %v2494_v19 = vld [vmem:[#allocation10 + $0x850] sm:$0xff] }
 0x27e   :  { %2334 = vmatpush2.bf16.msra.mxu1 %v6906_v35  ;;  %v2455_v35 = vld [vmem:[#allocation10 + $0x358] sm:$0xff] }
 0x27f   :  { %3237 = vmatpush2.bf16.msra.mxu0 %v6968_v22  ;;  %2335 = vmatprep.subr.bf16.mxu1 %v6903_v23  ;;  %v6942_v22 = vcombine.low %v2457_v20, %v2459_v21  ;;  %v7001_v23 = vcombine.high %v2516_v30, %v2518_v31  ;;  %v6939_v37 = vcombine.high %v2453_v34, %v2455_v35  ;;  %v2429_v20 = vld [vmem:[#allocation10 + $0x18] sm:$0xff] }
 0x280   :  { %3238 = vmatprep.subr.bf16.mxu0 %v6965_v25  ;;  %v2512_v25 = vld [vmem:[#allocation10 + $0xa90] sm:$0xff]  ;;  %v2431_v21 = vld [vmem:[#allocation10 + $0x58] sm:$0xff] }
 0x282   :  { %2336 = vmatpush2.bf16.msra.mxu1 %v6902_v44  ;;  %v7000_v44 = vcombine.low %v2516_v30, %v2518_v31  ;;  %v2552_v30 = vld [vmem:[#allocation10 + $0xf90] sm:$0xff] }
 0x283   :  { %3239 = vmatpush2.bf16.msra.mxu0 %v6964_v45  ;;  %2337 = vmatprep.subr.bf16.mxu1 %v6899_v46  ;;  %v6938_v45 = vcombine.low %v2453_v34, %v2455_v35  ;;  %v6997_v46 = vcombine.high %v2512_v25, %v2514_v36  ;;  %v2554_v31 = vld [vmem:[#allocation10 + $0xfd0] sm:$0xff]  ;;  %v2491_v34 = vld [vmem:[#allocation10 + $0x7d8] sm:$0xff]  ;;  %v6976_v35 = vcombine.low %v2492_v18, %v2494_v19 }
 0x284   :  { %3240 = vmatprep.subr.bf16.mxu0 %v6961_v47  ;;  %v6935_v47 = vcombine.high %v2449_v40, %v2451_v43 }
 0x286   :  { %2338 = vmatpush2.bf16.msra.mxu1 %v6898_v54  ;;  %v6996_v54 = vcombine.low %v2512_v25, %v2514_v36  ;;  %v2548_v36 = vld [vmem:[#allocation10 + $0xf10] sm:$0xff] }
 0x287   :  { %3241 = vmatpush2.bf16.msra.mxu0 %v6960_v55  ;;  %2339 = vmatprep.subr.bf16.mxu1 %v6895_v56  ;;  %v6934_v55 = vcombine.low %v2449_v40, %v2451_v43  ;;  %v6993_v56 = vcombine.high %v2508_v48, %v2510_v49  ;;  %v2485_v40 = vld [vmem:[#allocation10 + $0x718] sm:$0xff] }
 0x288   :  { %3242 = vmatprep.subr.bf16.mxu0 %v6957_v57  ;;  %v6931_v57 = vcombine.high %v2445_v52, %v2447_v53  ;;  %v2487_v43 = vld [vmem:[#allocation10 + $0x758] sm:$0xff] }
 0x28a   :  { %2340 = vmatpush2.bf16.msra.mxu1 %v6894_v63  ;;  %v6992_v63 = vcombine.low %v2508_v48, %v2510_v49  ;;  %v2544_v48 = vld [vmem:[#allocation10 + $0xe90] sm:$0xff] }
 0x28b   :  { %3243 = vmatpush2.bf16.msra.mxu0 %v6956_v0  ;;  %2341 = vmatprep.subr.bf16.mxu1 %v6891_v1  ;;  %v6930_v0 = vcombine.low %v2445_v52, %v2447_v53  ;;  %v6989_v1 = vcombine.high %v2504_v58, %v2506_v59  ;;  %v2546_v49 = vld [vmem:[#allocation10 + $0xed0] sm:$0xff]  ;;  %v2481_v52 = vld [vmem:[#allocation10 + $0x698] sm:$0xff] }
 0x28c   :  { %3244 = vmatprep.subr.bf16.mxu0 %v6953_v2  ;;  %v6927_v2 = vcombine.high %v2441_v60, %v2443_v62  ;;  %v2483_v53 = vld [vmem:[#allocation10 + $0x6d8] sm:$0xff] }
 0x28e   :  { %2342 = vmatpush2.bf16.msra.mxu1 %v6890_v3  ;;  %v6988_v3 = vcombine.low %v2504_v58, %v2506_v59  ;;  %v2540_v58 = vld [vmem:[#allocation10 + $0xe10] sm:$0xff] }
 0x28f   :  { %3245 = vmatpush2.bf16.msra.mxu0 %v6952_v5  ;;  %2343 = vmatprep.subr.bf16.mxu1 %v6887_v6  ;;  %v6926_v5 = vcombine.low %v2441_v60, %v2443_v62  ;;  %v6985_v6 = vcombine.high %v2500_v28, %v2502_v61  ;;  %v2542_v59 = vld [vmem:[#allocation10 + $0xe50] sm:$0xff]  ;;  %v2477_v60 = vld [vmem:[#allocation10 + $0x618] sm:$0xff] }
 0x290   :  { %3246 = vmatprep.subr.bf16.mxu0 %v6949_v7  ;;  %v6923_v7 = vcombine.high %v2437_v32, %v2439_v26  ;;  %v2479_v62 = vld [vmem:[#allocation10 + $0x658] sm:$0xff] }
 0x292   :  { %2344 = vmatpush2.bf16.msra.mxu1 %v6886_v12  ;;  %v6984_v12 = vcombine.low %v2500_v28, %v2502_v61  ;;  %v2536_v28 = vld [vmem:[#allocation10 + $0xd90] sm:$0xff] }
 0x293   :  { %3247 = vmatpush2.bf16.msra.mxu0 %v6948_v15  ;;  %2345 = vmatprep.subr.bf16.mxu1 %v6883_v16  ;;  %v6922_v15 = vcombine.low %v2437_v32, %v2439_v26  ;;  %v6981_v16 = vcombine.high %v2496_v8, %v2498_v9  ;;  %v2538_v61 = vld [vmem:[#allocation10 + $0xdd0] sm:$0xff]  ;;  %v2473_v32 = vld [vmem:[#allocation10 + $0x598] sm:$0xff] }
 0x294   :  { %3248 = vmatprep.subr.bf16.mxu0 %v6945_v17  ;;  %v6919_v17 = vcombine.high %v2433_v10, %v2435_v11  ;;  %v2475_v26 = vld [vmem:[#allocation10 + $0x5d8] sm:$0xff] }
 0x296   :  { %2346 = vmatpush2.bf16.msra.mxu1 %v6882_v24  ;;  %v6980_v24 = vcombine.low %v2496_v8, %v2498_v9  ;;  %v2532_v8 = vld [vmem:[#allocation10 + $0xd10] sm:$0xff] }
 0x297   :  { %3249 = vmatpush2.bf16.msra.mxu0 %v6944_v27  ;;  %3259 = vmatprep.subr.bf16.mxu1 %v7005_v4  ;;  %v6918_v27 = vcombine.low %v2433_v10, %v2435_v11  ;;  %v6977_v4 = vcombine.high %v2492_v18, %v2494_v19  ;;  %v2534_v9 = vld [vmem:[#allocation10 + $0xd50] sm:$0xff]  ;;  %v2469_v10 = vld [vmem:[#allocation10 + $0x518] sm:$0xff] }
 0x298   :  { %3300 = vmatprep.subr.bf16.mxu0 %v6943_v29  ;;  %v6915_v29 = vcombine.high %v2429_v20, %v2431_v21  ;;  %v2471_v11 = vld [vmem:[#allocation10 + $0x558] sm:$0xff]  ;;  %v2528_v18 = vld [vmem:[#allocation10 + $0xc90] sm:$0xff] }
 0x299   :  { %2348 = vmatmul.mubr.bf16.vlgmr.msra.gmra.mxu1 %v8326_v14  ;;  %v2530_v19 = vld [vmem:[#allocation10 + $0xcd0] sm:$0xff] }
 0x29a   :  { %3251 = vmatmul.mubr.bf16.vlgmr.msra.gmra.mxu0 %v8312_v51  ;;  %3260 = vmatpush1.bf16.msra.mxu1 %v7004_v33  ;;  %v2489_v33 = vld [vmem:[#allocation10 + $0x798] sm:$0xff] }
 0x29b   :  { %3291 = vmatprep.mubr.bf16.mxu1 %v8324_v13  ;;  %3301 = vmatpush1.bf16.msra.mxu0 %v6942_v22  ;;  %v6914_v22 = vcombine.low %v2429_v20, %v2431_v21  ;;  %v6975_v25 = vcombine.high %v2489_v33, %v2491_v34  ;;  %v2465_v20 = vld [vmem:[#allocation10 + $0x498] sm:$0xff] }
 0x29c   :  { %3332 = vmatprep.mubr.bf16.mxu0 %v8310_v50  ;;  %3261 = vmatprep.subr.bf16.mxu1 %v7001_v23  ;;  %v7037_v23 = vcombine.high %v2552_v30, %v2554_v31  ;;  %v2467_v21 = vld [vmem:[#allocation10 + $0x4d8] sm:$0xff] }
 0x29d   :  { %3302 = vmatprep.subr.bf16.mxu0 %v6939_v37  ;;  %v2550_v37 = vld [vmem:[#allocation10 + $0xf50] sm:$0xff] }
 0x29e   :  { %3262 = vmatpush1.bf16.msra.mxu1 %v7000_v44  ;;  %v7036_v44 = vcombine.low %v2552_v30, %v2554_v31  ;;  %v2524_v30 = vld [vmem:[#allocation10 + $0xc10] sm:$0xff] }
 0x29f   :  { %3303 = vmatpush1.bf16.msra.mxu0 %v6938_v45  ;;  %3263 = vmatprep.subr.bf16.mxu1 %v6997_v46  ;;  %v6974_v45 = vcombine.low %v2489_v33, %v2491_v34  ;;  %v7033_v46 = vcombine.high %v2548_v36, %v2550_v37  ;;  %v2526_v31 = vld [vmem:[#allocation10 + $0xc50] sm:$0xff]  ;;  %v2461_v33 = vld [vmem:[#allocation10 + $0x418] sm:$0xff] }
 0x2a0   :  { %3304 = vmatprep.subr.bf16.mxu0 %v6935_v47  ;;  %v6971_v47 = vcombine.high %v2485_v40, %v2487_v43  ;;  %v2463_v34 = vld [vmem:[#allocation10 + $0x458] sm:$0xff] }
 0x2a2   :  { %3264 = vmatpush1.bf16.msra.mxu1 %v6996_v54  ;;  %v7032_v54 = vcombine.low %v2548_v36, %v2550_v37  ;;  %v2521_v36 = vld [vmem:[#allocation10 + $0xb98] sm:$0xff] }
 0x2a3   :  { %3305 = vmatpush1.bf16.msra.mxu0 %v6934_v55  ;;  %3265 = vmatprep.subr.bf16.mxu1 %v6993_v56  ;;  %v6970_v55 = vcombine.low %v2485_v40, %v2487_v43  ;;  %v7029_v56 = vcombine.high %v2544_v48, %v2546_v49  ;;  %v2523_v37 = vld [vmem:[#allocation10 + $0xbd8] sm:$0xff]  ;;  %v7008_v40 = vcombine.low %v2524_v30, %v2526_v31 }
 0x2a4   :  { %3306 = vmatprep.subr.bf16.mxu0 %v6931_v57  ;;  %v6967_v57 = vcombine.high %v2481_v52, %v2483_v53  ;;  %v6946_v43 = vcombine.low %v2461_v33, %v2463_v34 }
 0x2a6   :  { %3266 = vmatpush1.bf16.msra.mxu1 %v6992_v63  ;;  %v7028_v63 = vcombine.low %v2544_v48, %v2546_v49  ;;  %v2513_v49 = vld [vmem:[#allocation10 + $0xa98] sm:$0xff] }
 0x2a7   :  { %3307 = vmatpush1.bf16.msra.mxu0 %v6930_v0  ;;  %3267 = vmatprep.subr.bf16.mxu1 %v6989_v1  ;;  %v6966_v0 = vcombine.low %v2481_v52, %v2483_v53  ;;  %v7025_v1 = vcombine.high %v2540_v58, %v2542_v59  ;;  %v2515_v52 = vld [vmem:[#allocation10 + $0xad8] sm:$0xff] }
 0x2a8   :  { %3308 = vmatprep.subr.bf16.mxu0 %v6927_v2  ;;  %v6963_v2 = vcombine.high %v2477_v60, %v2479_v62 }
 0x2aa   :  { %3268 = vmatpush1.bf16.msra.mxu1 %v6988_v3  ;;  %v7024_v3 = vcombine.low %v2540_v58, %v2542_v59  ;;  %v2511_v58 = vld [vmem:[#allocation10 + $0xa58] sm:$0xff] }
 0x2ab   :  { %3309 = vmatpush1.bf16.msra.mxu0 %v6926_v5  ;;  %3269 = vmatprep.subr.bf16.mxu1 %v6985_v6  ;;  %v6962_v5 = vcombine.low %v2477_v60, %v2479_v62  ;;  %v7021_v6 = vcombine.high %v2536_v28, %v2538_v61  ;;  %v6998_v60 = vcombine.low %v2513_v49, %v2515_v52 }
 0x2ac   :  { %3310 = vmatprep.subr.bf16.mxu0 %v6923_v7  ;;  %v6959_v7 = vcombine.high %v2473_v32, %v2475_v26 }
 0x2ae   :  { %3270 = vmatpush1.bf16.msra.mxu1 %v6984_v12  ;;  %v7020_v12 = vcombine.low %v2536_v28, %v2538_v61  ;;  %v7857_v28 = vld [vmem:[#allocation13 + $0x138] sm:$0xff]   ;;  %v7858_v61 = vld [vmem:[#allocation13 + $0x170] sm:$0xff]  }
 0x2af   :  { %3311 = vmatpush1.bf16.msra.mxu0 %v6922_v15  ;;  %3271 = vmatprep.subr.bf16.mxu1 %v6981_v16  ;;  %v6958_v15 = vcombine.low %v2473_v32, %v2475_v26  ;;  %v7017_v16 = vcombine.high %v2532_v8, %v2534_v9 }
 0x2b0   :  { %3312 = vmatprep.subr.bf16.mxu0 %v6919_v17  ;;  %v6955_v17 = vcombine.high %v2469_v10, %v2471_v11 }
 0x2b2   :  { %3272 = vmatpush1.bf16.msra.mxu1 %v6980_v24  ;;  %v7016_v24 = vcombine.low %v2532_v8, %v2534_v9 }
 0x2b3   :  { %3313 = vmatpush1.bf16.msra.mxu0 %v6918_v27  ;;  %3273 = vmatprep.subr.bf16.mxu1 %v6977_v4  ;;  %v6954_v27 = vcombine.low %v2469_v10, %v2471_v11  ;;  %v7013_v4 = vcombine.high %v2528_v18, %v2530_v19  ;;  %v7861_v10 = vld [vmem:[#allocation13 + $0x128] sm:$0xff]  }
 0x2b4   :  { %3314 = vmatprep.subr.bf16.mxu0 %v6915_v29  ;;  %v6951_v29 = vcombine.high %v2465_v20, %v2467_v21  ;;  %v2497_v11 = vld [vmem:[#allocation10 + $0x898] sm:$0xff] }
 0x2b6   :  { %3274 = vmatpush1.bf16.msra.mxu1 %v6976_v35  ;;  %v7012_v35 = vcombine.low %v2528_v18, %v2530_v19  ;;  %v7863_v18 = vld [vmem:[#allocation13 + $0x120] sm:$0xff]   ;;  %v2493_v19 = vld [vmem:[#allocation10 + $0x818] sm:$0xff] }
 0x2b7   :  { %3315 = vmatpush1.bf16.msra.mxu0 %v6914_v22  ;;  %3275 = vmatprep.subr.bf16.mxu1 %v7037_v23  ;;  %v6950_v22 = vcombine.low %v2465_v20, %v2467_v21  ;;  %v7009_v23 = vcombine.high %v2524_v30, %v2526_v31  ;;  %v2495_v20 = vld [vmem:[#allocation10 + $0x858] sm:$0xff]  ;;  %v7864_v21 = vld [vmem:[#allocation13 + $0x158] sm:$0xff]   ;;  %v7866_v31 = vld [vmem:[#allocation13 + $0x150] sm:$0xff]  }
 0x2b8   :  { %3316 = vmatprep.subr.bf16.mxu0 %v6975_v25  ;;  %v6947_v25 = vcombine.high %v2461_v33, %v2463_v34  ;;  %v2555_v30 = vld [vmem:[#allocation10 + $0xfd8] sm:$0xff]  ;;  %v6978_v33 = vcombine.low %v2493_v19, %v2495_v20 }
 0x2ba   :  { %3276 = vmatpush2.bf16.msra.mxu1 %v7036_v44  ;;  %v7007_v44 = vcombine.high %v2521_v36, %v2523_v37 }
 0x2bb   :  { %3317 = vmatpush2.bf16.msra.mxu0 %v6974_v45  ;;  %3277 = vmatprep.subr.bf16.mxu1 %v7033_v46  ;;  %v2517_v45 = vld [vmem:[#allocation10 + $0xb18] sm:$0xff] }
 0x2bc   :  { %3318 = vmatprep.subr.bf16.mxu0 %v6971_v47  ;;  %v2519_v46 = vld [vmem:[#allocation10 + $0xb58] sm:$0xff]  ;;  %v7006_v47 = vcombine.low %v2521_v36, %v2523_v37 }
 0x2bd   :  { %v7003_v48 = vcombine.high %v2517_v45, %v2519_v46  ;;  %v2545_v37 = vld [vmem:[#allocation10 + $0xe98] sm:$0xff] }
 0x2be   :  { %3278 = vmatpush2.bf16.msra.mxu1 %v7032_v54  ;;  %v7002_v54 = vcombine.low %v2517_v45, %v2519_v46  ;;  %v2541_v45 = vld [vmem:[#allocation10 + $0xe18] sm:$0xff] }
 0x2bf   :  { %3319 = vmatpush2.bf16.msra.mxu0 %v6970_v55  ;;  %3279 = vmatprep.subr.bf16.mxu1 %v7029_v56  ;;  %v6999_v56 = vcombine.high %v2513_v49, %v2515_v52  ;;  %v2543_v46 = vld [vmem:[#allocation10 + $0xe58] sm:$0xff] }
 0x2c0   :  { %3320 = vmatprep.subr.bf16.mxu0 %v6967_v57  ;;  %v2509_v57 = vld [vmem:[#allocation10 + $0xa18] sm:$0xff] }
 0x2c1   :  { %v6994_v32 = vcombine.low %v2509_v57, %v2511_v58  ;;  %v2537_v49 = vld [vmem:[#allocation10 + $0xd98] sm:$0xff] }
 0x2c2   :  { %3280 = vmatpush2.bf16.msra.mxu1 %v7028_v63  ;;  %v6995_v63 = vcombine.high %v2509_v57, %v2511_v58  ;;  %v2539_v52 = vld [vmem:[#allocation10 + $0xdd8] sm:$0xff] }
 0x2c3   :  { %3321 = vmatpush2.bf16.msra.mxu0 %v6966_v0  ;;  %3281 = vmatprep.subr.bf16.mxu1 %v7025_v1  ;;  %v2505_v0 = vld [vmem:[#allocation10 + $0x998] sm:$0xff] }
 0x2c4   :  { %3322 = vmatprep.subr.bf16.mxu0 %v6963_v2  ;;  %v2507_v1 = vld [vmem:[#allocation10 + $0x9d8] sm:$0xff]  ;;  %v7856_v2 = vld [vmem:[#allocation13 + $0x178] sm:$0xff]  }
 0x2c5   :  { %v6991_v26 = vcombine.high %v2505_v0, %v2507_v1  ;;  %v6990_v8 = vcombine.low %v2505_v0, %v2507_v1  ;;  %v2533_v57 = vld [vmem:[#allocation10 + $0xd18] sm:$0xff] }
 0x2c6   :  { %3282 = vmatpush2.bf16.msra.mxu1 %v7024_v3  ;;  %v7859_v3 = vld [vmem:[#allocation13 + $0x130] sm:$0xff]   ;;  %v2535_v58 = vld [vmem:[#allocation10 + $0xd58] sm:$0xff] }
 0x2c7   :  { %3323 = vmatpush2.bf16.msra.mxu0 %v6962_v5  ;;  %3283 = vmatprep.subr.bf16.mxu1 %v7021_v6  ;;  %v2501_v5 = vld [vmem:[#allocation10 + $0x918] sm:$0xff]  ;;  %v7018_v0 = vcombine.low %v2533_v57, %v2535_v58 }
 0x2c8   :  { %3324 = vmatprep.subr.bf16.mxu0 %v6959_v7  ;;  %v2503_v6 = vld [vmem:[#allocation10 + $0x958] sm:$0xff] }
 0x2c9   :  { %v7860_v7 = vld [vmem:[#allocation13 + $0x168] sm:$0xff]   ;;  %v6987_v9 = vcombine.high %v2501_v5, %v2503_v6 }
 0x2ca   :  { %3284 = vmatpush2.bf16.msra.mxu1 %v7020_v12  ;;  %v2499_v12 = vld [vmem:[#allocation10 + $0x8d8] sm:$0xff] }
 0x2cb   :  { %3325 = vmatpush2.bf16.msra.mxu0 %v6958_v15  ;;  %3285 = vmatprep.subr.bf16.mxu1 %v7017_v16  ;;  %v7862_v15 = vld [vmem:[#allocation13 + $0x160] sm:$0xff]   ;;  %v6986_v16 = vcombine.low %v2501_v5, %v2503_v6 }
 0x2cc   :  { %3326 = vmatprep.subr.bf16.mxu0 %v6955_v17  ;;  %v6983_v17 = vcombine.high %v2497_v11, %v2499_v12 }
 0x2ce   :  { %3286 = vmatpush2.bf16.msra.mxu1 %v7016_v24  ;;  %v6982_v24 = vcombine.low %v2497_v11, %v2499_v12 }
 0x2cf   :  { %3327 = vmatpush2.bf16.msra.mxu0 %v6954_v27  ;;  %3287 = vmatprep.subr.bf16.mxu1 %v7013_v4  ;;  %v6979_v27 = vcombine.high %v2493_v19, %v2495_v20  ;;  %v7865_v4 = vld [vmem:[#allocation13 + $0x118] sm:$0xff]  }
 0x2d0   :  { %3328 = vmatprep.subr.bf16.mxu0 %v6951_v29  ;;  %v2553_v29 = vld [vmem:[#allocation10 + $0xf98] sm:$0xff] }
 0x2d1   :  { %v7039_v34 = vcombine.high %v2553_v29, %v2555_v30 }
 0x2d2   :  { %3288 = vmatpush2.bf16.msra.mxu1 %v7012_v35  ;;  %v7867_v35 = vld [vmem:[#allocation13 + $0x110] sm:$0xff]  }
 0x2d3   :  { %3329 = vmatpush2.bf16.msra.mxu0 %v6950_v22  ;;  %3289 = vmatprep.subr.bf16.mxu1 %v7009_v23  ;;  %v2549_v22 = vld [vmem:[#allocation10 + $0xf18] sm:$0xff] }
 0x2d4   :  { %3330 = vmatprep.subr.bf16.mxu0 %v6947_v25  ;;  %v2551_v23 = vld [vmem:[#allocation10 + $0xf58] sm:$0xff]  ;;  %v7038_v25 = vcombine.low %v2553_v29, %v2555_v30  ;;  %v7889_v29 = vld [vmem:[#allocation13 + $0x1b8] sm:$0xff]   ;;  %v7890_v30 = vld [vmem:[#allocation13 + $0x1f0] sm:$0xff]  }
 0x2d5   :  { %v7035_v36 = vcombine.high %v2549_v22, %v2551_v23 }
 0x2d6   :  { %3290 = vmatpush2.bf16.msra.mxu1 %v7008_v40  ;;  %v2547_v40 = vld [vmem:[#allocation10 + $0xed8] sm:$0xff] }
 0x2d7   :  { %3331 = vmatpush2.bf16.msra.mxu0 %v6946_v43  ;;  %3341 = vmatprep.subr.bf16.mxu1 %v7007_v44  ;;  %v7034_v43 = vcombine.low %v2549_v22, %v2551_v23  ;;  %v7031_v44 = vcombine.high %v2545_v37, %v2547_v40  ;;  %v7895_v22 = vld [vmem:[#allocation13 + $0x1a0] sm:$0xff]   ;;  %v7896_v23 = vld [vmem:[#allocation13 + $0x1d8] sm:$0xff]  }
 0x2d8   :  { %7425 = vmatprep.subr.bf16.mxu0 %v7856_v2  ;;  %v2525_v2 = vld [vmem:[#allocation10 + $0xc18] sm:$0xff] }
 0x2d9   :  { %3292 = vmatmul.mubr.bf16.vlgmr.msra.gmra.mxu1 %v8326_v14  ;;  %v8341_v53 = vpop.f32.mrf.mxu0 }
 0x2da   :  { %3333 = vmatmul.mubr.bf16.vlgmr.msra.gmra.mxu0 %v8312_v51  ;;  %3342 = vmatpush1.bf16.msra.mxu1 %v7006_v47  ;;  %v7030_v47 = vcombine.low %v2545_v37, %v2547_v40  ;;  %v7898_v37 = vld [vmem:[#allocation13 + $0x1d0] sm:$0xff]  }
 0x2db   :  { %3373 = vmatprep.mubr.bf16.mxu1 %v8324_v13  ;;  %v8345_v55 = vpop.f32.mrf.mxu0  ;;  %3343 = vmatprep.subr.bf16.mxu1 %v7003_v48  ;;  %v7027_v48 = vcombine.high %v2541_v45, %v2543_v46  ;;  %v7899_v40 = vld [vmem:[#allocation13 + $0x190] sm:$0xff]  }
 0x2dc   :  { %7426 = vmatpush3.bf16.msra.mxu0 %v7857_v28  ;;  %v2527_v28 = vld [vmem:[#allocation10 + $0xc58] sm:$0xff] }
 0x2dd   :  { %v2230_v59 = vpop.f32.mrf.mxu0  ;;  %7427 = vmatprep.subr.bf16.mxu0 %v7858_v61 }
 0x2de   :  { %3344 = vmatpush1.bf16.msra.mxu1 %v7002_v54  ;;  %v7026_v54 = vcombine.low %v2541_v45, %v2543_v46  ;;  %v7022_v59 = vcombine.low %v2537_v49, %v2539_v52  ;;  %v7900_v46 = vld [vmem:[#allocation13 + $0x1c8] sm:$0xff]  }
 0x2df   :  { %v2231_v62 = vpop.f32.mrf.mxu0  ;;  %3345 = vmatprep.subr.bf16.mxu1 %v6999_v56  ;;  %v7023_v56 = vcombine.high %v2537_v49, %v2539_v52  ;;  %v7901_v52 = vld [vmem:[#allocation13 + $0x188] sm:$0xff]  }
 0x2e0   :  { %7428 = vmatpush3.bf16.msra.mxu0 %v7859_v3  ;;  %v2529_v62 = vld [vmem:[#allocation10 + $0xc98] sm:$0xff]  ;;  %v7010_v3 = vcombine.low %v2525_v2, %v2527_v28 }
 0x2e1   :  { %7429 = vmatprep.subr.bf16.mxu0 %v7860_v7 }
 0x2e2   :  { %3346 = vmatpush1.bf16.msra.mxu1 %v6998_v60  ;;  %v7019_v60 = vcombine.high %v2533_v57, %v2535_v58 }
 0x2e3   :  { %3347 = vmatprep.subr.bf16.mxu1 %v6995_v63  ;;  %v2531_v63 = vld [vmem:[#allocation10 + $0xcd8] sm:$0xff] }
 0x2e4   :  { %7430 = vmatpush3.bf16.msra.mxu0 %v7861_v10  ;;  %v7015_v1 = vcombine.high %v2529_v62, %v2531_v63  ;;  %v7014_v61 = vcombine.low %v2529_v62, %v2531_v63  ;;  %v7868_v10 = vld [vmem:[#allocation13 + $0x148] sm:$0xff]   ;;  %v7903_v62 = vld [vmem:[#allocation13 + $0x180] sm:$0xff]  }
 0x2e5   :  { %7431 = vmatprep.subr.bf16.mxu0 %v7862_v15  ;;  %v7869_v15 = vld [vmem:[#allocation13 + $0x108] sm:$0xff]  }
 0x2e6   :  { %3348 = vmatpush1.bf16.msra.mxu1 %v6994_v32  ;;  %v7011_v32 = vcombine.high %v2525_v2, %v2527_v28  ;;  %v8362_v2 = vld [vmem:[#allocation11 + $0x4] sm:$0xf] }
 0x2e7   :  { %3349 = vmatprep.subr.bf16.mxu1 %v6991_v26  ;;  %v1530_v26 = vld [vmem:[#allocation11] sm:$0xf]  ;;  %v2561_v28 = vrot.slane %v8362_v2, %v8268_v38 }
 0x2e8   :  { %7432 = vmatpush3.bf16.msra.mxu0 %v7863_v18  ;;  %v1535_v5 = vrot.slane %v1530_v26, %v8268_v38  ;;  %v1539_v6 = vrot.slane %v1530_v26, %v8272_v41 }
 0x2e9   :  { %7433 = vmatprep.subr.bf16.mxu0 %v7864_v21  ;;  %v7870_v21 = vld [vmem:[#allocation13 + $0x140] sm:$0xff]  }
 0x2ea   :  { %3350 = vmatpush1.bf16.msra.mxu1 %v6990_v8  ;;  %v2227_v7 = vadd.f32 %v8341_v53, %v1535_v5  ;;  %v2229_v11 = vadd.f32 %v8345_v55, %v1539_v6  ;;  %v7871_v53 = vld [vmem:[#allocation13 + $0x100] sm:$0xff]   ;;  %v7888_v55 = vld [vmem:[#allocation13 + $0x1f8] sm:$0xff]  }
 0x2eb   :  { %3351 = vmatprep.subr.bf16.mxu1 %v6987_v9 }
 0x2ec   :  { %7434 = vmatpush3.bf16.msra.mxu0 %v7865_v4  ;;  %v7872_v4 = vld [vmem:[#allocation13 + $0x78] sm:$0xff]  }
 0x2ed   :  { %7435 = vmatprep.subr.bf16.mxu0 %v7866_v31  ;;  %v7891_v31 = vld [vmem:[#allocation13 + $0x1b0] sm:$0xff]  }
 0x2ee   :  { %3352 = vmatpush1.bf16.msra.mxu1 %v6986_v16 }
 0x2ef   :  { %3353 = vmatprep.subr.bf16.mxu1 %v6983_v17 }
 0x2f0   :  { %7436 = vmatpush3.bf16.msra.mxu0 %v7867_v35  ;;  %v7894_v35 = vld [vmem:[#allocation13 + $0x1e0] sm:$0xff]  }
 0x2f1   :  { %7437 = vmatprep.subr.bf16.mxu0 %v7868_v10 }
 0x2f2   :  { %3354 = vmatpush1.bf16.msra.mxu1 %v6982_v24 }
 0x2f3   :  { %3355 = vmatprep.subr.bf16.mxu1 %v6979_v27 }
 0x2f4   :  { %7438 = vmatpush3.bf16.msra.mxu0 %v7869_v15 }
 0x2f5   :  { %7439 = vmatprep.subr.bf16.mxu0 %v7870_v21 }
 0x2f6   :  { %3356 = vmatpush1.bf16.msra.mxu1 %v6978_v33  ;;  %v7892_v33 = vld [vmem:[#allocation13 + $0x1e8] sm:$0xff]  }
 0x2f7   :  { %3357 = vmatprep.subr.bf16.mxu1 %v7039_v34  ;;  %v7893_v34 = vld [vmem:[#allocation13 + $0x1a8] sm:$0xff]  }
 0x2f8   :  { %7440 = vmatpush3.bf16.msra.mxu0 %v7871_v53  ;;  %v7873_v53 = vld [vmem:[#allocation13 + $0x38] sm:$0xff]  }
 0x2f9   :  { %7469 = vmatprep.subr.bf16.mxu0 %v7872_v4 }
 0x2fa   :  { %3358 = vmatpush2.bf16.msra.mxu1 %v7038_v25  ;;  %v7897_v25 = vld [vmem:[#allocation13 + $0x198] sm:$0xff]  }
 0x2fb   :  { %3359 = vmatprep.subr.bf16.mxu1 %v7035_v36  ;;  %v1543_v36 = vrot.slane %v1530_v26, %v8270_v39 }
 0x2fe   :  { %3360 = vmatpush2.bf16.msra.mxu1 %v7034_v43  ;;  %v1547_v43 = vrot.slane %v1530_v26, %v8274_v42 }
 0x2ff   :  { %3361 = vmatprep.subr.bf16.mxu1 %v7031_v44 }
 0x302   :  { %3362 = vmatpush2.bf16.msra.mxu1 %v7030_v47 }
 0x303   :  { %3363 = vmatprep.subr.bf16.mxu1 %v7027_v48 }
 0x306   :  { %3364 = vmatpush2.bf16.msra.mxu1 %v7026_v54 }
 0x307   :  { %3365 = vmatprep.subr.bf16.mxu1 %v7023_v56 }
 0x30a   :  { %3366 = vmatpush2.bf16.msra.mxu1 %v7022_v59  ;;  %v7902_v59 = vld [vmem:[#allocation13 + $0x1c0] sm:$0xff]  }
 0x30b   :  { %3367 = vmatprep.subr.bf16.mxu1 %v7019_v60 }
 0x30e   :  { %3368 = vmatpush2.bf16.msra.mxu1 %v7018_v0 }
 0x30f   :  { %3369 = vmatprep.subr.bf16.mxu1 %v7015_v1  ;;  %v7904_v1 = vld [vmem:[#allocation13 + $0xf8] sm:$0xff]  }
 0x312   :  { %3370 = vmatpush2.bf16.msra.mxu1 %v7014_v61  ;;  %v2565_v61 = vrot.slane %v8362_v2, %v8272_v41 }
 0x313   :  { %3371 = vmatprep.subr.bf16.mxu1 %v7011_v32 }
 0x316   :  { %3372 = vmatpush2.bf16.msra.mxu1 %v7010_v3 }
 0x317   :  { %7447 = vmatprep.subr.bf16.mxu1 %v7888_v55  ;;  %v7875_v55 = vld [vmem:[#allocation13 + $0x30] sm:$0xff]  }
 0x319   :  { %3374 = vmatmul.mubr.bf16.vlgmr.msra.gmra.mxu1 %v8326_v14  ;;  %v2267_v8 = vpop.f32.mrf.mxu1  ;;  %v2308_v9 = vpop.f32.mrf.mxu0 }
 0x31a   :  { %v8352_v12 = vadd.f32 %v2267_v8, %v2227_v7  ;;  %7448 = vmatpush3.bf16.msra.mxu1 %v7889_v29  ;;  %v2309_v44 = vadd.f32 %v2308_v9, %v1543_v36  ;;  %v7876_v29 = vld [vmem:[#allocation13 + $0x68] sm:$0xff]   ;;  %v7886_v36 = vld [vmem:[#allocation13 + $0x40] sm:$0xff]  }
 0x31b   :  { %v2269_v16 = vpop.f32.mrf.mxu1  ;;  %v2310_v17 = vpop.f32.mrf.mxu0  ;;  %7449 = vmatprep.subr.bf16.mxu1 %v7890_v30  ;;  %v7877_v30 = vld [vmem:[#allocation13 + $0x28] sm:$0xff]  }
 0x31c   :  { %v8354_v18 = vadd.f32 %v2269_v16, %v2229_v11  ;;  %v2311_v47 = vadd.f32 %v2310_v17, %v1547_v43  ;;  %v7887_v43 = vld [vmem:[#allocation13] sm:$0xff]  }
 0x31d   :  { %v2271_v19 = vpop.f32.mrf.mxu1  ;;  %v2312_v20 = vpop.f32.mrf.mxu0 }
 0x31e   :  { %7450 = vmatpush3.bf16.msra.mxu1 %v7891_v31  ;;  %v2357_v15 = vmax.f32 %v8354_v18, 0.0  ;;  %v7878_v18 = vld [vmem:[#allocation13 + $0x60] sm:$0xff]  }
 0x31f   :  { %v2272_v24 = vpop.f32.mrf.mxu1  ;;  %v2313_v27 = vpop.f32.mrf.mxu0  ;;  %7451 = vmatprep.subr.bf16.mxu1 %v7892_v33  ;;  %v7879_v31 = vld [vmem:[#allocation13 + $0x20] sm:$0xff]   ;;  %v7880_v33 = vld [vmem:[#allocation13 + $0x58] sm:$0xff]  }
 0x320   :  { %v7874_v27 = vld [vmem:[#allocation13 + $0x70] sm:$0xff]   ;;  %v2361_v4 = vpack.c.bf16 %v2357_v15, %v2357_v15 }
 0x322   :  { %7452 = vmatpush3.bf16.msra.mxu1 %v7893_v34  ;;  %v7881_v34 = vld [vmem:[#allocation13 + $0x18] sm:$0xff]  }
 0x323   :  { %7453 = vmatprep.subr.bf16.mxu1 %v7894_v35  ;;  %v7882_v35 = vld [vmem:[#allocation13 + $0x50] sm:$0xff]  }
 0x326   :  { %7454 = vmatpush3.bf16.msra.mxu1 %v7895_v22  ;;  %v7883_v22 = vld [vmem:[#allocation13 + $0x10] sm:$0xff]  }
 0x327   :  { %7455 = vmatprep.subr.bf16.mxu1 %v7896_v23  ;;  %v7884_v23 = vld [vmem:[#allocation13 + $0x48] sm:$0xff]  }
 0x32a   :  { %7456 = vmatpush3.bf16.msra.mxu1 %v7897_v25  ;;  %v7885_v25 = vld [vmem:[#allocation13 + $0x8] sm:$0xff]  }
 0x32b   :  { %7457 = vmatprep.subr.bf16.mxu1 %v7898_v37  ;;  %v4026_v37 = vld [vmem:[#allocation10 + $0x3a0] sm:$0xff] }
 0x32e   :  { %7458 = vmatpush3.bf16.msra.mxu1 %v7899_v40  ;;  %v4028_v40 = vld [vmem:[#allocation10 + $0x3e0] sm:$0xff] }
 0x32f   :  { %7459 = vmatprep.subr.bf16.mxu1 %v7900_v46  ;;  %v4022_v46 = vld [vmem:[#allocation10 + $0x320] sm:$0xff] }
 0x332   :  { %7460 = vmatpush3.bf16.msra.mxu1 %v7901_v52 }
 0x333   :  { %7461 = vmatprep.subr.bf16.mxu1 %v7902_v59 }
 0x336   :  { %7462 = vmatpush3.bf16.msra.mxu1 %v7903_v62  ;;  %v4014_v62 = vld [vmem:[#allocation10 + $0x220] sm:$0xff] }
 0x337   :  { %7491 = vmatprep.subr.bf16.mxu1 %v7904_v1  ;;  %v4010_v1 = vld [vmem:[#allocation10 + $0x1a0] sm:$0xff] }
 0x359   :  { %v2349_v45 = vpop.f32.mrf.mxu1 }
 0x35a   :  { %v8358_v48 = vadd.f32 %v2349_v45, %v2309_v44  ;;  %v3252_v49 = vpop.f32.mrf.mxu0  ;;  %v2356_v44 = vmax.f32 %v8352_v12, 0.0  ;;  %v7133_v45 = vcombine.high %v4026_v37, %v4028_v40  ;;  %v4016_v12 = vld [vmem:[#allocation10 + $0x260] sm:$0xff] }
 0x35b   :  { %v2351_v54 = vpop.f32.mrf.mxu1  ;;  %v3253_v32 = vadd.f32 %v3252_v49, %v2561_v28  ;;  %v7132_v49 = vcombine.low %v4026_v37, %v4028_v40  ;;  %v4012_v28 = vld [vmem:[#allocation10 + $0x1e0] sm:$0xff]  ;;  %v7905_v40 = vld [vmem:[#allocation13 + $0xb8] sm:$0xff]  }
 0x35c   :  { %v8360_v56 = vadd.f32 %v2351_v54, %v2311_v47  ;;  %v3254_v57 = vpop.f32.mrf.mxu0  ;;  %v4024_v47 = vld [vmem:[#allocation10 + $0x360] sm:$0xff]  ;;  %v2360_v52 = vpack.c.bf16 %v2356_v44, %v2356_v44 }
 0x35d   :  { %v2353_v58 = vpop.f32.mrf.mxu1  ;;  %v3255_v3 = vadd.f32 %v3254_v57, %v2565_v61  ;;  %v7129_v54 = vcombine.high %v4022_v46, %v4024_v47  ;;  %v4018_v57 = vld [vmem:[#allocation10 + $0x2a0] sm:$0xff]  ;;  %v7128_v59 = vcombine.low %v4022_v46, %v4024_v47  ;;  %v7120_v61 = vcombine.low %v4014_v62, %v4016_v12 }
 0x35e   :  { %v3256_v60 = vpop.f32.mrf.mxu0  ;;  %v4020_v58 = vld [vmem:[#allocation10 + $0x2e0] sm:$0xff] }
 0x35f   :  { %v2354_v63 = vpop.f32.mrf.mxu1  ;;  %v7125_v60 = vcombine.high %v4018_v57, %v4020_v58  ;;  %v7906_v44 = vld [vmem:[#allocation13 + $0xf0] sm:$0xff]  }
 0x360   :  { %v3257_v0 = vpop.f32.mrf.mxu0  ;;  %v7124_v63 = vcombine.low %v4018_v57, %v4020_v58  ;;  %v4050_v46 = vld [vmem:[#allocation10 + $0x6a0] sm:$0xff] }
 0x361   :  { %v7121_v0 = vcombine.high %v4014_v62, %v4016_v12  ;;  %v4052_v47 = vld [vmem:[#allocation10 + $0x6e0] sm:$0xff]  ;;  %v7909_v62 = vld [vmem:[#allocation13 + $0xa8] sm:$0xff]   ;;  %v7910_v12 = vld [vmem:[#allocation13 + $0xe0] sm:$0xff]  }
 0x362   :  { %v7157_v57 = vcombine.high %v4050_v46, %v4052_v47  ;;  %v4046_v58 = vld [vmem:[#allocation10 + $0x620] sm:$0xff] }
 0x399   :  { %v3293_v26 = vpop.f32.mrf.mxu1 }
 0x39a   :  { %v3294_v5 = vadd.f32 %v3293_v26, %v3253_v32  ;;  %v8368_v6 = vpop.f32.mrf.mxu0  ;;  %v7117_v32 = vcombine.high %v4010_v1, %v4012_v28  ;;  %v4006_v26 = vld [vmem:[#allocation10 + $0x120] sm:$0xff] }
 0x39b   :  { %v3295_v7 = vpop.f32.mrf.mxu1 }
 0x39c   :  { %v3296_v8 = vadd.f32 %v3295_v7, %v3255_v3  ;;  %v8370_v9 = vpop.f32.mrf.mxu0  ;;  %v3382_v10 = vmax.f32 %v3294_v5, 0.0  ;;  %v4008_v3 = vld [vmem:[#allocation10 + $0x160] sm:$0xff]  ;;  %v7116_v5 = vcombine.low %v4010_v1, %v4012_v28 }
 0x39d   :  { %v3297_v11 = vpop.f32.mrf.mxu1  ;;  %v7113_v7 = vcombine.high %v4006_v26, %v4008_v3  ;;  %v7112_v15 = vcombine.low %v4006_v26, %v4008_v3  ;;  %v4044_v1 = vld [vmem:[#allocation10 + $0x5e0] sm:$0xff] }
 0x39e   :  { %v3383_v16 = vmax.f32 %v3296_v8, 0.0  ;;  %v3338_v17 = vpop.f32.mrf.mxu0  ;;  %v3386_v24 = vpack.c.bf16 %v3382_v10, %v3382_v10  ;;  %v4002_v8 = vld [vmem:[#allocation10 + $0xa0] sm:$0xff]  ;;  %v2569_v11 = vrot.slane %v8362_v2, %v8270_v39 }
 0x39f   :  { %v3298_v19 = vpop.f32.mrf.mxu1  ;;  %v4004_v10 = vld [vmem:[#allocation10 + $0xe0] sm:$0xff]  ;;  %v2573_v17 = vrot.slane %v8362_v2, %v8274_v42 }
 0x3a0   :  { %v3387_v20 = vpack.c.bf16 %v3383_v16, %v3383_v16  ;;  %v3339_v21 = vpop.f32.mrf.mxu0  ;;  %v7109_v16 = vcombine.high %v4002_v8, %v4004_v10  ;;  %v3998_v19 = vld [vmem:[#allocation10 + $0x20] sm:$0xff] }
 0x3a1   :  { %v3335_v21 = vadd.f32 %v8368_v6, %v2569_v11  ;;  %v2359_v6 = vmax.f32 %v8360_v56, 0.0  ;;  %v7907_v56 = vld [vmem:[#allocation13 + $0xb0] sm:$0xff]  }
 0x3a2   :  { %3678 = vmatprep.mubr.bf16.mxu0 %v3387_v20  ;;  %v4000_v20 = vld [vmem:[#allocation10 + $0x60] sm:$0xff] }
 0x3a3   :  { %3679 = vmatmul.mubr.bf16.vlgmr.msra.gmra.mxu0 %v3386_v24  ;;  %v4038_v3 = vld [vmem:[#allocation10 + $0x520] sm:$0xff] }
 0x3a4   :  { %7470 = vmatpush3.bf16.msra.mxu0 %v7873_v53  ;;  %3950 = vmatprep.mubr.bf16.mxu0 %v2361_v4  ;;  %v7108_v53 = vcombine.low %v4002_v8, %v4004_v10  ;;  %v3337_v4 = vadd.f32 %v8370_v9, %v2573_v17  ;;  %v7913_v8 = vld [vmem:[#allocation13 + $0x98] sm:$0xff]   ;;  %v7914_v10 = vld [vmem:[#allocation13 + $0xd0] sm:$0xff]  }
 0x3a5   :  { %7471 = vmatprep.subr.bf16.mxu0 %v7874_v27  ;;  %v7105_v27 = vcombine.high %v3998_v19, %v4000_v20 }
 0x3a8   :  { %7472 = vmatpush3.bf16.msra.mxu0 %v7875_v55 }
 0x3a9   :  { %7473 = vmatprep.subr.bf16.mxu0 %v7876_v29  ;;  %v4058_v29 = vld [vmem:[#allocation10 + $0x7a0] sm:$0xff] }
 0x3ac   :  { %7474 = vmatpush3.bf16.msra.mxu0 %v7877_v30  ;;  %v4060_v30 = vld [vmem:[#allocation10 + $0x7e0] sm:$0xff] }
 0x3ad   :  { %7475 = vmatprep.subr.bf16.mxu0 %v7878_v18  ;;  %v7164_v9 = vcombine.low %v4058_v29, %v4060_v30 }
 0x3b0   :  { %7476 = vmatpush3.bf16.msra.mxu0 %v7879_v31 }
 0x3b1   :  { %7477 = vmatprep.subr.bf16.mxu0 %v7880_v33  ;;  %v7104_v33 = vcombine.low %v3998_v19, %v4000_v20  ;;  %v7915_v19 = vld [vmem:[#allocation13 + $0x90] sm:$0xff]   ;;  %v7916_v20 = vld [vmem:[#allocation13 + $0xc8] sm:$0xff]  }
 0x3b4   :  { %7478 = vmatpush3.bf16.msra.mxu0 %v7881_v34 }
 0x3b5   :  { %7479 = vmatprep.subr.bf16.mxu0 %v7882_v35  ;;  %v7165_v35 = vcombine.high %v4058_v29, %v4060_v30  ;;  %v4090_v30 = vld [vmem:[#allocation10 + $0xba0] sm:$0xff] }
 0x3b8   :  { %7480 = vmatpush3.bf16.msra.mxu0 %v7883_v22 }
 0x3b9   :  { %7481 = vmatprep.subr.bf16.mxu0 %v7884_v23 }
 0x3bc   :  { %7482 = vmatpush3.bf16.msra.mxu0 %v7885_v25  ;;  %v4054_v25 = vld [vmem:[#allocation10 + $0x720] sm:$0xff] }
 0x3bd   :  { %7483 = vmatprep.subr.bf16.mxu0 %v7886_v36  ;;  %v4056_v36 = vld [vmem:[#allocation10 + $0x760] sm:$0xff] }
 0x3c0   :  { %7484 = vmatpush3.bf16.msra.mxu0 %v7887_v43 }
 0x3c1   :  { %4788 = vmatprep.subr.bf16.mxu0 %v7133_v45  ;;  %v7161_v45 = vcombine.high %v4054_v25, %v4056_v36 }
 0x3c3   :  { %3951 = vmatmul.mubr.bf16.vlgmr.msra.gmra.mxu0 %v2360_v52  ;;  %v7160_v52 = vcombine.low %v4054_v25, %v4056_v36  ;;  %v4088_v25 = vld [vmem:[#allocation10 + $0xb60] sm:$0xff]  ;;  %v4023_v36 = vld [vmem:[#allocation10 + $0x328] sm:$0xff] }
 0x3c4   :  { %4789 = vmatpush1.bf16.msra.mxu0 %v7132_v49  ;;  %4820 = vmatprep.mubr.bf16.mxu0 %v8310_v50  ;;  %v2363_v49 = vpack.c.bf16 %v2359_v6, %v2359_v6 }
 0x3c5   :  { %4790 = vmatprep.subr.bf16.mxu0 %v7129_v54  ;;  %v7908_v54 = vld [vmem:[#allocation13 + $0xe8] sm:$0xff]  }
 0x3c8   :  { %4791 = vmatpush1.bf16.msra.mxu0 %v7128_v59  ;;  %v4048_v59 = vld [vmem:[#allocation10 + $0x660] sm:$0xff] }
 0x3c9   :  { %4792 = vmatprep.subr.bf16.mxu0 %v7125_v60  ;;  %v7156_v60 = vcombine.low %v4050_v46, %v4052_v47  ;;  %v7152_v28 = vcombine.low %v4046_v58, %v4048_v59  ;;  %v4082_v46 = vld [vmem:[#allocation10 + $0xaa0] sm:$0xff] }
 0x3ca   :  { %v4084_v47 = vld [vmem:[#allocation10 + $0xae0] sm:$0xff] }
 0x3cc   :  { %4793 = vmatpush1.bf16.msra.mxu0 %v7124_v63  ;;  %v7153_v63 = vcombine.high %v4046_v58, %v4048_v59  ;;  %v4078_v58 = vld [vmem:[#allocation10 + $0xa20] sm:$0xff] }
 0x3cd   :  { %4794 = vmatprep.subr.bf16.mxu0 %v7121_v0  ;;  %v4042_v0 = vld [vmem:[#allocation10 + $0x5a0] sm:$0xff] }
 0x3ce   :  { %v7149_v26 = vcombine.high %v4042_v0, %v4044_v1  ;;  %v4080_v59 = vld [vmem:[#allocation10 + $0xa60] sm:$0xff] }
 0x3d0   :  { %4795 = vmatpush1.bf16.msra.mxu0 %v7120_v61  ;;  %v7911_v61 = vld [vmem:[#allocation13 + $0xa0] sm:$0xff]  }
 0x3d1   :  { %4796 = vmatprep.subr.bf16.mxu0 %v7117_v32  ;;  %v7912_v32 = vld [vmem:[#allocation13 + $0xd8] sm:$0xff]  }
 0x3d4   :  { %4797 = vmatpush1.bf16.msra.mxu0 %v7116_v5  ;;  %v4040_v5 = vld [vmem:[#allocation10 + $0x560] sm:$0xff] }
 0x3d5   :  { %4798 = vmatprep.subr.bf16.mxu0 %v7113_v7  ;;  %v7148_v7 = vcombine.low %v4042_v0, %v4044_v1  ;;  %v7145_v11 = vcombine.high %v4038_v3, %v4040_v5  ;;  %v7144_v17 = vcombine.low %v4038_v3, %v4040_v5  ;;  %v7185_v0 = vcombine.high %v4078_v58, %v4080_v59 }
 0x3d6   :  { %v7184_v3 = vcombine.low %v4078_v58, %v4080_v59  ;;  %v4114_v58 = vld [vmem:[#allocation10 + $0xea0] sm:$0xff] }
 0x3d7   :  { %v4116_v59 = vld [vmem:[#allocation10 + $0xee0] sm:$0xff] }
 0x3d8   :  { %4799 = vmatpush1.bf16.msra.mxu0 %v7112_v15  ;;  %v4034_v15 = vld [vmem:[#allocation10 + $0x4a0] sm:$0xff] }
 0x3d9   :  { %v3375_v24 = vpop.f32.mrf.mxu1  ;;  %4800 = vmatprep.subr.bf16.mxu0 %v7109_v16  ;;  %v4036_v16 = vld [vmem:[#allocation10 + $0x4e0] sm:$0xff] }
 0x3da   :  { %v3376_v55 = vadd.f32 %v3375_v24, %v3335_v21  ;;  %v7141_v21 = vcombine.high %v4034_v15, %v4036_v16  ;;  %v4032_v24 = vld [vmem:[#allocation10 + $0x460] sm:$0xff] }
 0x3db   :  { %v3377_v18 = vpop.f32.mrf.mxu1 }
 0x3dc   :  { %v3378_v31 = vadd.f32 %v3377_v18, %v3337_v4  ;;  %4801 = vmatpush1.bf16.msra.mxu0 %v7108_v53  ;;  %v3384_v34 = vmax.f32 %v3376_v55, 0.0  ;;  %v4030_v53 = vld [vmem:[#allocation10 + $0x420] sm:$0xff]  ;;  %v7917_v4 = vld [vmem:[#allocation13 + $0x88] sm:$0xff]   ;;  %v7918_v55 = vld [vmem:[#allocation13 + $0xc0] sm:$0xff]  }
 0x3dd   :  { %v3379_v2 = vpop.f32.mrf.mxu1  ;;  %4802 = vmatprep.subr.bf16.mxu0 %v7105_v27  ;;  %v7140_v27 = vcombine.low %v4034_v15, %v4036_v16  ;;  %v7137_v29 = vcombine.high %v4030_v53, %v4032_v24  ;;  %v4092_v18 = vld [vmem:[#allocation10 + $0xbe0] sm:$0xff]  ;;  %v4007_v15 = vld [vmem:[#allocation10 + $0x128] sm:$0xff] }
 0x3de   :  { %v3385_v22 = vmax.f32 %v3378_v31, 0.0  ;;  %v3388_v43 = vpack.c.bf16 %v3384_v34, %v3384_v34  ;;  %v4027_v31 = vld [vmem:[#allocation10 + $0x3a8] sm:$0xff]  ;;  %v7136_v34 = vcombine.low %v4030_v53, %v4032_v24  ;;  %v7919_v2 = vld [vmem:[#allocation13 + $0x80] sm:$0xff]   ;;  %v4066_v53 = vld [vmem:[#allocation10 + $0x8a0] sm:$0xff] }
 0x3df   :  { %v3380_v23 = vpop.f32.mrf.mxu1  ;;  %v4009_v16 = vld [vmem:[#allocation10 + $0x168] sm:$0xff]  ;;  %v4068_v24 = vld [vmem:[#allocation10 + $0x8e0] sm:$0xff] }
 0x3e0   :  { %v3389_v37 = vpack.c.bf16 %v3385_v22, %v3385_v22  ;;  %4803 = vmatpush1.bf16.msra.mxu0 %v7104_v33  ;;  %v4029_v33 = vld [vmem:[#allocation10 + $0x3e8] sm:$0xff]  ;;  %v7197_v22 = vcombine.high %v4090_v30, %v4092_v18  ;;  %v4086_v23 = vld [vmem:[#allocation10 + $0xb20] sm:$0xff] }
 0x3e1   :  { %4804 = vmatprep.subr.bf16.mxu0 %v7165_v35  ;;  %v2358_v35 = vmax.f32 %v8358_v48, 0.0  ;;  %v7135_v6 = vcombine.high %v4027_v31, %v4029_v33  ;;  %v4019_v48 = vld [vmem:[#allocation10 + $0x2a8] sm:$0xff] }
 0x3e2   :  { %3718 = vmatprep.mubr.bf16.mxu1 %v3389_v37  ;;  %v4025_v37 = vld [vmem:[#allocation10 + $0x368] sm:$0xff] }
 0x3e3   :  { %3719 = vmatmul.mubr.bf16.vlgmr.msra.gmra.mxu1 %v3388_v43  ;;  %v7134_v43 = vcombine.low %v4027_v31, %v4029_v33  ;;  %v4062_v31 = vld [vmem:[#allocation10 + $0x820] sm:$0xff] }
 0x3e4   :  { %7492 = vmatpush3.bf16.msra.mxu1 %v7905_v40  ;;  %4805 = vmatpush2.bf16.msra.mxu0 %v7164_v9  ;;  %v7196_v9 = vcombine.low %v4090_v30, %v4092_v18  ;;  %v2362_v40 = vpack.c.bf16 %v2358_v35, %v2358_v35  ;;  %v7173_v30 = vcombine.high %v4066_v53, %v4068_v24  ;;  %v4064_v33 = vld [vmem:[#allocation10 + $0x860] sm:$0xff] }
 0x3e5   :  { %3990 = vmatprep.mubr.bf16.mxu1 %v2363_v49  ;;  %7493 = vmatprep.subr.bf16.mxu1 %v7906_v44  ;;  %v7193_v44 = vcombine.high %v4086_v23, %v4088_v25  ;;  %v4021_v49 = vld [vmem:[#allocation10 + $0x2e8] sm:$0xff]  ;;  %v7172_v35 = vcombine.low %v4066_v53, %v4068_v24  ;;  %v4102_v53 = vld [vmem:[#allocation10 + $0xd20] sm:$0xff] }
 0x3e6   :  { %4806 = vmatprep.subr.bf16.mxu0 %v7161_v45  ;;  %v7131_v45 = vcombine.high %v4023_v36, %v4025_v37  ;;  %v4104_v24 = vld [vmem:[#allocation10 + $0xd60] sm:$0xff] }
 0x3e8   :  { %7494 = vmatpush3.bf16.msra.mxu1 %v7907_v56  ;;  %4807 = vmatpush2.bf16.msra.mxu0 %v7160_v52  ;;  %v7192_v52 = vcombine.low %v4086_v23, %v4088_v25  ;;  %v7130_v56 = vcombine.low %v4023_v36, %v4025_v37  ;;  %v4122_v25 = vld [vmem:[#allocation10 + $0xfa0] sm:$0xff]  ;;  %v4059_v37 = vld [vmem:[#allocation10 + $0x7a8] sm:$0xff] }
 0x3e9   :  { %7495 = vmatprep.subr.bf16.mxu1 %v7908_v54  ;;  %4808 = vmatprep.subr.bf16.mxu0 %v7157_v57  ;;  %v7189_v54 = vcombine.high %v4082_v46, %v4084_v47  ;;  %v7127_v57 = vcombine.high %v4019_v48, %v4021_v49  ;;  %v4124_v36 = vld [vmem:[#allocation10 + $0xfe0] sm:$0xff] }
 0x3ec   :  { %7496 = vmatpush3.bf16.msra.mxu1 %v7909_v62  ;;  %4809 = vmatpush2.bf16.msra.mxu0 %v7156_v60  ;;  %v4015_v60 = vld [vmem:[#allocation10 + $0x228] sm:$0xff] }
 0x3ed   :  { %7497 = vmatprep.subr.bf16.mxu1 %v7910_v12  ;;  %4810 = vmatprep.subr.bf16.mxu0 %v7153_v63  ;;  %v4017_v62 = vld [vmem:[#allocation10 + $0x268] sm:$0xff]  ;;  %v7188_v12 = vcombine.low %v4082_v46, %v4084_v47  ;;  %v7126_v63 = vcombine.low %v4019_v48, %v4021_v49  ;;  %v4118_v46 = vld [vmem:[#allocation10 + $0xf20] sm:$0xff] }
 0x3ee   :  { %v7123_v1 = vcombine.high %v4015_v60, %v4017_v62  ;;  %v7122_v5 = vcombine.low %v4015_v60, %v4017_v62  ;;  %v4120_v47 = vld [vmem:[#allocation10 + $0xf60] sm:$0xff]  ;;  %v4055_v48 = vld [vmem:[#allocation10 + $0x728] sm:$0xff] }
 0x3ef   :  { %v4057_v49 = vld [vmem:[#allocation10 + $0x768] sm:$0xff] }
 0x3f0   :  { %7498 = vmatpush3.bf16.msra.mxu1 %v7911_v61  ;;  %4811 = vmatpush2.bf16.msra.mxu0 %v7152_v28  ;;  %v4074_v28 = vld [vmem:[#allocation10 + $0x9a0] sm:$0xff]  ;;  %v4051_v60 = vld [vmem:[#allocation10 + $0x6a8] sm:$0xff] }
 0x3f1   :  { %7499 = vmatprep.subr.bf16.mxu1 %v7912_v32  ;;  %4812 = vmatprep.subr.bf16.mxu0 %v7149_v26  ;;  %v4076_v61 = vld [vmem:[#allocation10 + $0x9e0] sm:$0xff]  ;;  %v4011_v32 = vld [vmem:[#allocation10 + $0x1a8] sm:$0xff] }
 0x3f2   :  { %v4013_v26 = vld [vmem:[#allocation10 + $0x1e8] sm:$0xff] }
 0x3f3   :  { %v4053_v62 = vld [vmem:[#allocation10 + $0x6e8] sm:$0xff] }
 0x3f4   :  { %7500 = vmatpush3.bf16.msra.mxu1 %v7913_v8  ;;  %4813 = vmatpush2.bf16.msra.mxu0 %v7148_v7  ;;  %v7181_v7 = vcombine.high %v4074_v28, %v4076_v61  ;;  %v7119_v8 = vcombine.high %v4011_v32, %v4013_v26 }
 0x3f5   :  { %7501 = vmatprep.subr.bf16.mxu1 %v7914_v10  ;;  %4814 = vmatprep.subr.bf16.mxu0 %v7145_v11  ;;  %v4070_v10 = vld [vmem:[#allocation10 + $0x920] sm:$0xff] }
 0x3f6   :  { %v4072_v11 = vld [vmem:[#allocation10 + $0x960] sm:$0xff] }
 0x3f8   :  { %7502 = vmatpush3.bf16.msra.mxu1 %v7915_v19  ;;  %4815 = vmatpush2.bf16.msra.mxu0 %v7144_v17  ;;  %v7180_v17 = vcombine.low %v4074_v28, %v4076_v61  ;;  %v7118_v19 = vcombine.low %v4011_v32, %v4013_v26  ;;  %v4110_v28 = vld [vmem:[#allocation10 + $0xe20] sm:$0xff]  ;;  %v4047_v32 = vld [vmem:[#allocation10 + $0x628] sm:$0xff] }
 0x3f9   :  { %7503 = vmatprep.subr.bf16.mxu1 %v7916_v20  ;;  %4816 = vmatprep.subr.bf16.mxu0 %v7141_v21  ;;  %v7177_v20 = vcombine.high %v4070_v10, %v4072_v11  ;;  %v7115_v21 = vcombine.high %v4007_v15, %v4009_v16  ;;  %v4112_v61 = vld [vmem:[#allocation10 + $0xe60] sm:$0xff]  ;;  %v4049_v26 = vld [vmem:[#allocation10 + $0x668] sm:$0xff] }
 0x3fc   :  { %7504 = vmatpush3.bf16.msra.mxu1 %v7917_v4  ;;  %4817 = vmatpush2.bf16.msra.mxu0 %v7140_v27  ;;  %v4003_v27 = vld [vmem:[#allocation10 + $0xa8] sm:$0xff] }
 0x3fd   :  { %7505 = vmatprep.subr.bf16.mxu1 %v7918_v55  ;;  %4818 = vmatprep.subr.bf16.mxu0 %v7137_v29  ;;  %v4005_v4 = vld [vmem:[#allocation10 + $0xe8] sm:$0xff]  ;;  %v7176_v55 = vcombine.low %v4070_v10, %v4072_v11  ;;  %v7114_v29 = vcombine.low %v4007_v15, %v4009_v16  ;;  %v4106_v10 = vld [vmem:[#allocation10 + $0xda0] sm:$0xff] }
 0x3fe   :  { %v7111_v18 = vcombine.high %v4003_v27, %v4005_v4  ;;  %v4108_v11 = vld [vmem:[#allocation10 + $0xde0] sm:$0xff]  ;;  %v4043_v15 = vld [vmem:[#allocation10 + $0x5a8] sm:$0xff] }
 0x3ff   :  { %v4045_v16 = vld [vmem:[#allocation10 + $0x5e8] sm:$0xff] }
 0x400   :  { %7506 = vmatpush3.bf16.msra.mxu1 %v7919_v2  ;;  %4819 = vmatpush2.bf16.msra.mxu0 %v7136_v34  ;;  %v3999_v34 = vld [vmem:[#allocation10 + $0x28] sm:$0xff] }
 0x401   :  { %4829 = vmatprep.subr.bf16.mxu1 %v7197_v22  ;;  %4870 = vmatprep.subr.bf16.mxu0 %v7135_v6  ;;  %v4001_v2 = vld [vmem:[#allocation10 + $0x68] sm:$0xff]  ;;  %v7110_v22 = vcombine.low %v4003_v27, %v4005_v4  ;;  %v7169_v6 = vcombine.high %v4062_v31, %v4064_v33 }
 0x402   :  { %v7107_v23 = vcombine.high %v3999_v34, %v4001_v2  ;;  %v4039_v27 = vld [vmem:[#allocation10 + $0x528] sm:$0xff] }
 0x403   :  { %3991 = vmatmul.mubr.bf16.vlgmr.msra.gmra.mxu1 %v2362_v40  ;;  %4821 = vmatmul.mubr.bf16.vlgmr.msra.gmra.mxu0 %v8312_v51  ;;  %v7168_v40 = vcombine.low %v4062_v31, %v4064_v33  ;;  %v4041_v4 = vld [vmem:[#allocation10 + $0x568] sm:$0xff]  ;;  %v4098_v31 = vld [vmem:[#allocation10 + $0xca0] sm:$0xff] }
 0x404   :  { %4830 = vmatpush1.bf16.msra.mxu1 %v7196_v9  ;;  %4861 = vmatprep.mubr.bf16.mxu1 %v8324_v13  ;;  %v4061_v9 = vld [vmem:[#allocation10 + $0x7e8] sm:$0xff]  ;;  %v4100_v33 = vld [vmem:[#allocation10 + $0xce0] sm:$0xff] }
 0x405   :  { %4871 = vmatpush1.bf16.msra.mxu0 %v7134_v43  ;;  %4902 = vmatprep.mubr.bf16.mxu0 %v8310_v50  ;;  %v7106_v43 = vcombine.low %v3999_v34, %v4001_v2  ;;  %v4035_v34 = vld [vmem:[#allocation10 + $0x4a8] sm:$0xff] }
 0x406   :  { %4831 = vmatprep.subr.bf16.mxu1 %v7193_v44  ;;  %4872 = vmatprep.subr.bf16.mxu0 %v7131_v45  ;;  %v7229_v44 = vcombine.high %v4122_v25, %v4124_v36  ;;  %v7167_v45 = vcombine.high %v4059_v37, %v4061_v9  ;;  %v4037_v2 = vld [vmem:[#allocation10 + $0x4e8] sm:$0xff] }
 0x408   :  { %4832 = vmatpush1.bf16.msra.mxu1 %v7192_v52  ;;  %v7228_v52 = vcombine.low %v4122_v25, %v4124_v36  ;;  %v4094_v25 = vld [vmem:[#allocation10 + $0xc20] sm:$0xff] }
 0x409   :  { %4873 = vmatpush1.bf16.msra.mxu0 %v7130_v56  ;;  %4833 = vmatprep.subr.bf16.mxu1 %v7189_v54  ;;  %v7166_v56 = vcombine.low %v4059_v37, %v4061_v9  ;;  %v7225_v54 = vcombine.high %v4118_v46, %v4120_v47  ;;  %v4096_v36 = vld [vmem:[#allocation10 + $0xc60] sm:$0xff]  ;;  %v4031_v37 = vld [vmem:[#allocation10 + $0x428] sm:$0xff] }
 0x40a   :  { %4874 = vmatprep.subr.bf16.mxu0 %v7127_v57  ;;  %v7163_v57 = vcombine.high %v4055_v48, %v4057_v49  ;;  %v4033_v9 = vld [vmem:[#allocation10 + $0x468] sm:$0xff] }
 0x40c   :  { %4834 = vmatpush1.bf16.msra.mxu1 %v7188_v12  ;;  %v7224_v12 = vcombine.low %v4118_v46, %v4120_v47  ;;  %v4091_v46 = vld [vmem:[#allocation10 + $0xba8] sm:$0xff] }
 0x40d   :  { %4875 = vmatpush1.bf16.msra.mxu0 %v7126_v63  ;;  %4835 = vmatprep.subr.bf16.mxu1 %v7185_v0  ;;  %v7162_v63 = vcombine.low %v4055_v48, %v4057_v49  ;;  %v7221_v0 = vcombine.high %v4114_v58, %v4116_v59  ;;  %v4093_v47 = vld [vmem:[#allocation10 + $0xbe8] sm:$0xff]  ;;  %v7200_v48 = vcombine.low %v4094_v25, %v4096_v36 }
 0x40e   :  { %4876 = vmatprep.subr.bf16.mxu0 %v7123_v1  ;;  %v7159_v1 = vcombine.high %v4051_v60, %v4053_v62  ;;  %v7138_v49 = vcombine.low %v4031_v37, %v4033_v9 }
 0x410   :  { %4836 = vmatpush1.bf16.msra.mxu1 %v7184_v3  ;;  %v7220_v3 = vcombine.low %v4114_v58, %v4116_v59  ;;  %v4083_v59 = vld [vmem:[#allocation10 + $0xaa8] sm:$0xff] }
 0x411   :  { %4877 = vmatpush1.bf16.msra.mxu0 %v7122_v5  ;;  %4837 = vmatprep.subr.bf16.mxu1 %v7181_v7  ;;  %v7158_v5 = vcombine.low %v4051_v60, %v4053_v62  ;;  %v7217_v7 = vcombine.high %v4110_v28, %v4112_v61  ;;  %v4085_v60 = vld [vmem:[#allocation10 + $0xae8] sm:$0xff] }
 0x412   :  { %4878 = vmatprep.subr.bf16.mxu0 %v7119_v8  ;;  %v7155_v8 = vcombine.high %v4047_v32, %v4049_v26 }
 0x414   :  { %4838 = vmatpush1.bf16.msra.mxu1 %v7180_v17  ;;  %v7216_v17 = vcombine.low %v4110_v28, %v4112_v61  ;;  %v7920_v61 = vld [vmem:[#allocation13 + $0x278] sm:$0xff]  }
 0x415   :  { %4879 = vmatpush1.bf16.msra.mxu0 %v7118_v19  ;;  %4839 = vmatprep.subr.bf16.mxu1 %v7177_v20  ;;  %v7154_v19 = vcombine.low %v4047_v32, %v4049_v26  ;;  %v7213_v20 = vcombine.high %v4106_v10, %v4108_v11  ;;  %v7921_v32 = vld [vmem:[#allocation13 + $0x238] sm:$0xff]   ;;  %v7922_v26 = vld [vmem:[#allocation13 + $0x270] sm:$0xff]  }
 0x416   :  { %4880 = vmatprep.subr.bf16.mxu0 %v7115_v21  ;;  %v7151_v21 = vcombine.high %v4043_v15, %v4045_v16 }
 0x418   :  { %4840 = vmatpush1.bf16.msra.mxu1 %v7176_v55  ;;  %v7212_v55 = vcombine.low %v4106_v10, %v4108_v11  ;;  %v7924_v11 = vld [vmem:[#allocation13 + $0x268] sm:$0xff]  }
 0x419   :  { %4881 = vmatpush1.bf16.msra.mxu0 %v7114_v29  ;;  %4841 = vmatprep.subr.bf16.mxu1 %v7173_v30  ;;  %v7150_v29 = vcombine.low %v4043_v15, %v4045_v16  ;;  %v7209_v30 = vcombine.high %v4102_v53, %v4104_v24  ;;  %v4071_v15 = vld [vmem:[#allocation10 + $0x928] sm:$0xff] }
 0x41a   :  { %4882 = vmatprep.subr.bf16.mxu0 %v7111_v18  ;;  %v7147_v18 = vcombine.high %v4039_v27, %v4041_v4  ;;  %v4073_v16 = vld [vmem:[#allocation10 + $0x968] sm:$0xff] }
 0x41c   :  { %4842 = vmatpush1.bf16.msra.mxu1 %v7172_v35  ;;  %v7208_v35 = vcombine.low %v4102_v53, %v4104_v24  ;;  %v4067_v53 = vld [vmem:[#allocation10 + $0x8a8] sm:$0xff] }
 0x41d   :  { %4883 = vmatpush1.bf16.msra.mxu0 %v7110_v22  ;;  %4843 = vmatprep.subr.bf16.mxu1 %v7169_v6  ;;  %v7146_v22 = vcombine.low %v4039_v27, %v4041_v4  ;;  %v7205_v6 = vcombine.high %v4098_v31, %v4100_v33  ;;  %v4069_v24 = vld [vmem:[#allocation10 + $0x8e8] sm:$0xff]  ;;  %v7178_v27 = vcombine.low %v4071_v15, %v4073_v16  ;;  %v7927_v4 = vld [vmem:[#allocation13 + $0x220] sm:$0xff]  }
 0x41e   :  { %4884 = vmatprep.subr.bf16.mxu0 %v7107_v23  ;;  %v7143_v23 = vcombine.high %v4035_v34, %v4037_v2 }
 0x420   :  { %4844 = vmatpush1.bf16.msra.mxu1 %v7168_v40  ;;  %v7204_v40 = vcombine.low %v4098_v31, %v4100_v33  ;;  %v7174_v31 = vcombine.low %v4067_v53, %v4069_v24  ;;  %v7929_v33 = vld [vmem:[#allocation13 + $0x218] sm:$0xff]  }
 0x421   :  { %4885 = vmatpush1.bf16.msra.mxu0 %v7106_v43  ;;  %4845 = vmatprep.subr.bf16.mxu1 %v7229_v44  ;;  %v7142_v43 = vcombine.low %v4035_v34, %v4037_v2  ;;  %v7201_v44 = vcombine.high %v4094_v25, %v4096_v36  ;;  %v7930_v2 = vld [vmem:[#allocation13 + $0x250] sm:$0xff]   ;;  %v4119_v36 = vld [vmem:[#allocation10 + $0xf28] sm:$0xff] }
 0x422   :  { %4886 = vmatprep.subr.bf16.mxu0 %v7167_v45  ;;  %v7139_v45 = vcombine.high %v4031_v37, %v4033_v9  ;;  %v4121_v37 = vld [vmem:[#allocation10 + $0xf68] sm:$0xff] }
 0x424   :  { %4846 = vmatpush2.bf16.msra.mxu1 %v7228_v52  ;;  %v7199_v52 = vcombine.high %v4091_v46, %v4093_v47 }
 0x425   :  { %4887 = vmatpush2.bf16.msra.mxu0 %v7166_v56  ;;  %4847 = vmatprep.subr.bf16.mxu1 %v7225_v54  ;;  %v4087_v56 = vld [vmem:[#allocation10 + $0xb28] sm:$0xff] }
 0x426   :  { %4888 = vmatprep.subr.bf16.mxu0 %v7163_v57  ;;  %v4089_v54 = vld [vmem:[#allocation10 + $0xb68] sm:$0xff]  ;;  %v7198_v57 = vcombine.low %v4091_v46, %v4093_v47  ;;  %v7226_v46 = vcombine.low %v4119_v36, %v4121_v37 }
 0x427   :  { %v7195_v58 = vcombine.high %v4087_v56, %v4089_v54  ;;  %v7194_v62 = vcombine.low %v4087_v56, %v4089_v54  ;;  %v4113_v56 = vld [vmem:[#allocation10 + $0xe68] sm:$0xff] }
 0x428   :  { %4848 = vmatpush2.bf16.msra.mxu1 %v7224_v12  ;;  %v7191_v12 = vcombine.high %v4083_v59, %v4085_v60 }
 0x429   :  { %4889 = vmatpush2.bf16.msra.mxu0 %v7162_v63  ;;  %4849 = vmatprep.subr.bf16.mxu1 %v7221_v0  ;;  %v4079_v63 = vld [vmem:[#allocation10 + $0xa28] sm:$0xff] }
 0x42a   :  { %4890 = vmatprep.subr.bf16.mxu0 %v7159_v1  ;;  %v4081_v0 = vld [vmem:[#allocation10 + $0xa68] sm:$0xff]  ;;  %v7190_v1 = vcombine.low %v4083_v59, %v4085_v60 }
 0x42b   :  { %v7187_v28 = vcombine.high %v4079_v63, %v4081_v0  ;;  %v4107_v60 = vld [vmem:[#allocation10 + $0xda8] sm:$0xff] }
 0x42c   :  { %4850 = vmatpush2.bf16.msra.mxu1 %v7220_v3  ;;  %v4075_v3 = vld [vmem:[#allocation10 + $0x9a8] sm:$0xff] }
 0x42d   :  { %4891 = vmatpush2.bf16.msra.mxu0 %v7158_v5  ;;  %4851 = vmatprep.subr.bf16.mxu1 %v7217_v7  ;;  %v4077_v5 = vld [vmem:[#allocation10 + $0x9e8] sm:$0xff]  ;;  %v7186_v7 = vcombine.low %v4079_v63, %v4081_v0 }
 0x42e   :  { %4892 = vmatprep.subr.bf16.mxu0 %v7155_v8  ;;  %v7923_v8 = vld [vmem:[#allocation13 + $0x230] sm:$0xff]   ;;  %v7183_v10 = vcombine.high %v4075_v3, %v4077_v5  ;;  %v4103_v0 = vld [vmem:[#allocation10 + $0xd28] sm:$0xff] }
 0x430   :  { %4852 = vmatpush2.bf16.msra.mxu1 %v7216_v17  ;;  %v7182_v17 = vcombine.low %v4075_v3, %v4077_v5 }
 0x431   :  { %4893 = vmatpush2.bf16.msra.mxu0 %v7154_v19  ;;  %4853 = vmatprep.subr.bf16.mxu1 %v7213_v20  ;;  %v7925_v19 = vld [vmem:[#allocation13 + $0x228] sm:$0xff]   ;;  %v7179_v20 = vcombine.high %v4071_v15, %v4073_v16 }
 0x432   :  { %4894 = vmatprep.subr.bf16.mxu0 %v7151_v21  ;;  %v7926_v21 = vld [vmem:[#allocation13 + $0x260] sm:$0xff]  }
 0x434   :  { %4854 = vmatpush2.bf16.msra.mxu1 %v7212_v55  ;;  %v7175_v55 = vcombine.high %v4067_v53, %v4069_v24  ;;  %v7934_v24 = vld [vmem:[#allocation13 + $0x240] sm:$0xff]  }
 0x435   :  { %4895 = vmatpush2.bf16.msra.mxu0 %v7150_v29  ;;  %4855 = vmatprep.subr.bf16.mxu1 %v7209_v30  ;;  %v7928_v29 = vld [vmem:[#allocation13 + $0x258] sm:$0xff]  }
 0x436   :  { %4896 = vmatprep.subr.bf16.mxu0 %v7147_v18  ;;  %v4063_v30 = vld [vmem:[#allocation10 + $0x828] sm:$0xff] }
 0x437   :  { %v4065_v18 = vld [vmem:[#allocation10 + $0x868] sm:$0xff] }
 0x438   :  { %4856 = vmatpush2.bf16.msra.mxu1 %v7208_v35  ;;  %v7171_v34 = vcombine.high %v4063_v30, %v4065_v18  ;;  %v4123_v35 = vld [vmem:[#allocation10 + $0xfa8] sm:$0xff] }
 0x439   :  { %4897 = vmatpush2.bf16.msra.mxu0 %v7146_v22  ;;  %4857 = vmatprep.subr.bf16.mxu1 %v7205_v6  ;;  %v4125_v22 = vld [vmem:[#allocation10 + $0xfe8] sm:$0xff]  ;;  %v7170_v6 = vcombine.low %v4063_v30, %v4065_v18 }
 0x43a   :  { %4898 = vmatprep.subr.bf16.mxu0 %v7143_v23  ;;  %v7931_v23 = vld [vmem:[#allocation13 + $0x210] sm:$0xff]   ;;  %v7231_v25 = vcombine.high %v4123_v35, %v4125_v22  ;;  %v7230_v9 = vcombine.low %v4123_v35, %v4125_v22 }
 0x43c   :  { %4858 = vmatpush2.bf16.msra.mxu1 %v7204_v40  ;;  %v7227_v40 = vcombine.high %v4119_v36, %v4121_v37  ;;  %v7938_v36 = vld [vmem:[#allocation13 + $0x2f0] sm:$0xff]  }
 0x43d   :  { %4899 = vmatpush2.bf16.msra.mxu0 %v7142_v43  ;;  %4859 = vmatprep.subr.bf16.mxu1 %v7201_v44  ;;  %v4115_v43 = vld [vmem:[#allocation10 + $0xea8] sm:$0xff]  ;;  %v7939_v37 = vld [vmem:[#allocation13 + $0x2b0] sm:$0xff]  }
 0x43e   :  { %4900 = vmatprep.subr.bf16.mxu0 %v7139_v45  ;;  %v4117_v44 = vld [vmem:[#allocation10 + $0xee8] sm:$0xff] }
 0x440   :  { %4860 = vmatpush2.bf16.msra.mxu1 %v7200_v48  ;;  %v7223_v48 = vcombine.high %v4115_v43, %v4117_v44 }
 0x441   :  { %4901 = vmatpush2.bf16.msra.mxu0 %v7138_v49  ;;  %4911 = vmatprep.subr.bf16.mxu1 %v7199_v52  ;;  %v4111_v52 = vld [vmem:[#allocation10 + $0xe28] sm:$0xff] }
 0x442   :  { %7513 = vmatprep.subr.bf16.mxu0 %v7920_v61  ;;  %v7219_v59 = vcombine.high %v4111_v52, %v4113_v56 }
 0x443   :  { %4862 = vmatmul.mubr.bf16.vlgmr.msra.gmra.mxu1 %v8326_v14 }
 0x444   :  { %4903 = vmatmul.mubr.bf16.vlgmr.msra.gmra.mxu0 %v8312_v51  ;;  %4912 = vmatpush1.bf16.msra.mxu1 %v7198_v57  ;;  %v7222_v57 = vcombine.low %v4115_v43, %v4117_v44  ;;  %v7942_v43 = vld [vmem:[#allocation13 + $0x2e0] sm:$0xff]  }
 0x445   :  { %4943 = vmatprep.mubr.bf16.mxu1 %v8324_v13  ;;  %4913 = vmatprep.subr.bf16.mxu1 %v7195_v58  ;;  %v7943_v44 = vld [vmem:[#allocation13 + $0x2a0] sm:$0xff]  }
 0x446   :  { %7514 = vmatpush3.bf16.msra.mxu0 %v7921_v32  ;;  %v4099_v32 = vld [vmem:[#allocation10 + $0xca8] sm:$0xff] }
 0x447   :  { %7515 = vmatprep.subr.bf16.mxu0 %v7922_v26  ;;  %v4101_v26 = vld [vmem:[#allocation10 + $0xce8] sm:$0xff] }
 0x448   :  { %4914 = vmatpush1.bf16.msra.mxu1 %v7194_v62  ;;  %v4109_v62 = vld [vmem:[#allocation10 + $0xde8] sm:$0xff]  ;;  %v7207_v5 = vcombine.high %v4099_v32, %v4101_v26 }
 0x449   :  { %4915 = vmatprep.subr.bf16.mxu1 %v7191_v12  ;;  %v7218_v12 = vcombine.low %v4111_v52, %v4113_v56  ;;  %v7215_v63 = vcombine.high %v4107_v60, %v4109_v62  ;;  %v7948_v56 = vld [vmem:[#allocation13 + $0x2c8] sm:$0xff]  }
 0x44a   :  { %7516 = vmatpush3.bf16.msra.mxu0 %v7923_v8  ;;  %v4097_v8 = vld [vmem:[#allocation10 + $0xc68] sm:$0xff] }
 0x44b   :  { %7517 = vmatprep.subr.bf16.mxu0 %v7924_v11 }
 0x44c   :  { %4916 = vmatpush1.bf16.msra.mxu1 %v7190_v1  ;;  %v4105_v1 = vld [vmem:[#allocation10 + $0xd68] sm:$0xff] }
 0x44d   :  { %4917 = vmatprep.subr.bf16.mxu1 %v7187_v28  ;;  %v7214_v28 = vcombine.low %v4107_v60, %v4109_v62  ;;  %v7211_v61 = vcombine.high %v4103_v0, %v4105_v1  ;;  %v7210_v3 = vcombine.low %v4103_v0, %v4105_v1  ;;  %v7951_v0 = vld [vmem:[#allocation13 + $0x280] sm:$0xff]  }
 0x44e   :  { %7518 = vmatpush3.bf16.msra.mxu0 %v7925_v19  ;;  %v7933_v19 = vld [vmem:[#allocation13 + $0x208] sm:$0xff]  }
 0x44f   :  { %7519 = vmatprep.subr.bf16.mxu0 %v7926_v21 }
 0x450   :  { %4918 = vmatpush1.bf16.msra.mxu1 %v7186_v7  ;;  %v4095_v7 = vld [vmem:[#allocation10 + $0xc28] sm:$0xff] }
 0x451   :  { %4919 = vmatprep.subr.bf16.mxu1 %v7183_v10  ;;  %v7206_v10 = vcombine.low %v4099_v32, %v4101_v26  ;;  %v7203_v11 = vcombine.high %v4095_v7, %v4097_v8  ;;  %v7202_v15 = vcombine.low %v4095_v7, %v4097_v8  ;;  %v8402_v32 = vld [vmem:[#allocation10 + $0xbf0] sm:$0xff] }
 0x452   :  { %7520 = vmatpush3.bf16.msra.mxu0 %v7927_v4 }
 0x453   :  { %7521 = vmatprep.subr.bf16.mxu0 %v7928_v29  ;;  %v8392_v29 = vld [vmem:[#allocation10 + $0x3f0] sm:$0xff] }
 0x454   :  { %4920 = vmatpush1.bf16.msra.mxu1 %v7182_v17  ;;  %v7932_v17 = vld [vmem:[#allocation13 + $0x248] sm:$0xff]  }
 0x455   :  { %4921 = vmatprep.subr.bf16.mxu1 %v7179_v20 }
 0x456   :  { %7522 = vmatpush3.bf16.msra.mxu0 %v7929_v33 }
 0x457   :  { %7523 = vmatprep.subr.bf16.mxu0 %v7930_v2 }
 0x458   :  { %4922 = vmatpush1.bf16.msra.mxu1 %v7178_v27  ;;  %v7935_v27 = vld [vmem:[#allocation13 + $0x200] sm:$0xff]  }
 0x459   :  { %4923 = vmatprep.subr.bf16.mxu1 %v7175_v55  ;;  %v8390_v55 = vld [vmem:[#allocation10 + $0x3b0] sm:$0xff] }
 0x45a   :  { %7524 = vmatpush3.bf16.msra.mxu0 %v7931_v23  ;;  %v7293_v30 = vcombine.high %v8390_v55, %v8392_v29  ;;  %v7292_v18 = vcombine.low %v8390_v55, %v8392_v29  ;;  %v7936_v23 = vld [vmem:[#allocation13 + $0x2f8] sm:$0xff]   ;;  %v5307_v55 = vld [vmem:[#allocation10 + $0x170] sm:$0xff] }
 0x45b   :  { %7525 = vmatprep.subr.bf16.mxu0 %v7932_v17 }
 0x45c   :  { %4924 = vmatpush1.bf16.msra.mxu1 %v7174_v31 }
 0x45d   :  { %4925 = vmatprep.subr.bf16.mxu1 %v7171_v34 }
 0x45e   :  { %7526 = vmatpush3.bf16.msra.mxu0 %v7933_v19 }
 0x45f   :  { %7527 = vmatprep.subr.bf16.mxu0 %v7934_v24 }
 0x460   :  { %4926 = vmatpush1.bf16.msra.mxu1 %v7170_v6 }
 0x461   :  { %4927 = vmatprep.subr.bf16.mxu1 %v7231_v25  ;;  %v7937_v25 = vld [vmem:[#allocation13 + $0x2b8] sm:$0xff]  }
 0x462   :  { %7528 = vmatpush3.bf16.msra.mxu0 %v7935_v27 }
 0x463   :  { %v7441_v45 = vpop.f32.mrf.mxu0  ;;  %6087 = vmatprep.subr.bf16.mxu0 %v7293_v30  ;;  %v5321_v30 = vld [vmem:[#allocation10 + $0x330] sm:$0xff] }
 0x464   :  { %4928 = vmatpush2.bf16.msra.mxu1 %v7230_v9  ;;  %v7940_v9 = vld [vmem:[#allocation13 + $0x2e8] sm:$0xff]  }
 0x465   :  { %v7442_v47 = vpop.f32.mrf.mxu0  ;;  %4929 = vmatprep.subr.bf16.mxu1 %v7227_v40  ;;  %v7941_v40 = vld [vmem:[#allocation13 + $0x2a8] sm:$0xff]  }
 0x466   :  { %v7443_v49 = vadd.f32 %v7442_v47, %v7441_v45  ;;  %v7944_v45 = vld [vmem:[#allocation13 + $0x2d8] sm:$0xff]   ;;  %v7946_v47 = vld [vmem:[#allocation13 + $0x2d0] sm:$0xff]  }
 0x467   :  { %v7444_v54 = vpop.f32.mrf.mxu0 }
 0x468   :  { %4930 = vmatpush2.bf16.msra.mxu1 %v7226_v46  ;;  %v7945_v46 = vld [vmem:[#allocation13 + $0x298] sm:$0xff]   ;;  %v7949_v54 = vld [vmem:[#allocation13 + $0x288] sm:$0xff]  }
 0x469   :  { %v7445_v58 = vpop.f32.mrf.mxu0  ;;  %4931 = vmatprep.subr.bf16.mxu1 %v7223_v48  ;;  %v7947_v48 = vld [vmem:[#allocation13 + $0x290] sm:$0xff]  }
 0x46c   :  { %4932 = vmatpush2.bf16.msra.mxu1 %v7222_v57 }
 0x46d   :  { %4933 = vmatprep.subr.bf16.mxu1 %v7219_v59 }
 0x470   :  { %4934 = vmatpush2.bf16.msra.mxu1 %v7218_v12  ;;  %v7950_v12 = vld [vmem:[#allocation13 + $0x2c0] sm:$0xff]  }
 0x471   :  { %4935 = vmatprep.subr.bf16.mxu1 %v7215_v63 }
 0x474   :  { %4936 = vmatpush2.bf16.msra.mxu1 %v7214_v28 }
 0x475   :  { %4937 = vmatprep.subr.bf16.mxu1 %v7211_v61  ;;  %v8400_v61 = vld [vmem:[#allocation10 + $0xbb0] sm:$0xff] }
 0x476   :  { %v7357_v26 = vcombine.high %v8400_v61, %v8402_v32 }
 0x478   :  { %4938 = vmatpush2.bf16.msra.mxu1 %v7210_v3  ;;  %v7356_v3 = vcombine.low %v8400_v61, %v8402_v32 }
 0x479   :  { %4939 = vmatprep.subr.bf16.mxu1 %v7207_v5  ;;  %v8408_v5 = vld [vmem:[#allocation11 + $0x8] sm:$0xf] }
 0x47a   :  { %v4131_v7 = vrot.slane %v8408_v5, %v8268_v38  ;;  %v4135_v8 = vrot.slane %v8408_v5, %v8272_v41 }
 0x47c   :  { %4940 = vmatpush2.bf16.msra.mxu1 %v7206_v10 }
 0x47d   :  { %4941 = vmatprep.subr.bf16.mxu1 %v7203_v11 }
 0x480   :  { %4942 = vmatpush2.bf16.msra.mxu1 %v7202_v15 }
 0x481   :  { %7535 = vmatprep.subr.bf16.mxu1 %v7936_v23  ;;  %v5319_v23 = vld [vmem:[#allocation10 + $0x2f0] sm:$0xff] }
 0x483   :  { %v7485_v16 = vpop.f32.mrf.mxu0  ;;  %4944 = vmatmul.mubr.bf16.vlgmr.msra.gmra.mxu1 %v8326_v14 }
 0x484   :  { %7536 = vmatpush3.bf16.msra.mxu1 %v7937_v25 }
 0x485   :  { %v7486_v20 = vpop.f32.mrf.mxu0  ;;  %7537 = vmatprep.subr.bf16.mxu1 %v7938_v36 }
 0x486   :  { %v7487_v21 = vadd.f32 %v7486_v20, %v7485_v16 }
 0x487   :  { %v7488_v53 = vpop.f32.mrf.mxu0 }
 0x488   :  { %7538 = vmatpush3.bf16.msra.mxu1 %v7939_v37  ;;  %v5313_v37 = vld [vmem:[#allocation10 + $0x230] sm:$0xff] }
 0x489   :  { %v7489_v4 = vpop.f32.mrf.mxu0  ;;  %7539 = vmatprep.subr.bf16.mxu1 %v7940_v9  ;;  %v5315_v9 = vld [vmem:[#allocation10 + $0x270] sm:$0xff] }
 0x48c   :  { %7540 = vmatpush3.bf16.msra.mxu1 %v7941_v40 }
 0x48d   :  { %7541 = vmatprep.subr.bf16.mxu1 %v7942_v43  ;;  %v7281_v43 = vcombine.high %v5313_v37, %v5315_v9 }
 0x490   :  { %7542 = vmatpush3.bf16.msra.mxu1 %v7943_v44  ;;  %v5309_v44 = vld [vmem:[#allocation10 + $0x1b0] sm:$0xff] }
 0x491   :  { %7543 = vmatprep.subr.bf16.mxu1 %v7944_v45  ;;  %v5311_v45 = vld [vmem:[#allocation10 + $0x1f0] sm:$0xff] }
 0x492   :  { %v7276_v29 = vcombine.low %v5309_v44, %v5311_v45 }
 0x494   :  { %7544 = vmatpush3.bf16.msra.mxu1 %v7945_v46  ;;  %v7280_v46 = vcombine.low %v5313_v37, %v5315_v9  ;;  %v4143_v37 = vrot.slane %v8408_v5, %v8274_v42  ;;  %v5329_v9 = vld [vmem:[#allocation10 + $0x430] sm:$0xff] }
 0x495   :  { %7545 = vmatprep.subr.bf16.mxu1 %v7946_v47  ;;  %v7277_v47 = vcombine.high %v5309_v44, %v5311_v45 }
 0x498   :  { %7546 = vmatpush3.bf16.msra.mxu1 %v7947_v48  ;;  %v5305_v48 = vld [vmem:[#allocation10 + $0x130] sm:$0xff] }
 0x499   :  { %7547 = vmatprep.subr.bf16.mxu1 %v7948_v56  ;;  %v7272_v56 = vcombine.low %v5305_v48, %v5307_v55 }
 0x49c   :  { %7548 = vmatpush3.bf16.msra.mxu1 %v7949_v54 }
 0x49d   :  { %7549 = vmatprep.subr.bf16.mxu1 %v7950_v12  ;;  %v5359_v12 = vld [vmem:[#allocation10 + $0x7f0] sm:$0xff] }
 0x4a0   :  { %7550 = vmatpush3.bf16.msra.mxu1 %v7951_v0 }
 0x4a1   :  { %6128 = vmatprep.subr.bf16.mxu1 %v7357_v26  ;;  %v5355_v26 = vld [vmem:[#allocation10 + $0x770] sm:$0xff] }
 0x4a3   :  { %v7463_v31 = vpop.f32.mrf.mxu1 }
 0x4a5   :  { %v7464_v33 = vpop.f32.mrf.mxu1 }
 0x4a6   :  { %v7465_v34 = vadd.f32 %v7464_v33, %v7463_v31  ;;  %v5323_v31 = vld [vmem:[#allocation10 + $0x370] sm:$0xff] }
 0x4a7   :  { %v7466_v2 = vpop.f32.mrf.mxu1  ;;  %v7288_v25 = vcombine.low %v5321_v30, %v5323_v31 }
 0x4a8   :  { %v3721_v35 = vadd.f32 %v7465_v34, %v7443_v49 }
 0x4a9   :  { %v7467_v22 = vpop.f32.mrf.mxu1 }
 0x4aa   :  { %v3953_v6 = vadd.f32 %v7487_v21, %v3721_v35  ;;  %v7289_v22 = vcombine.high %v5321_v30, %v5323_v31 }
 0x4c3   :  { %v7507_v49 = vpop.f32.mrf.mxu1  ;;  %v4822_v52 = vpop.f32.mrf.mxu0 }
 0x4c4   :  { %v4823_v10 = vadd.f32 %v4822_v52, %v4131_v7  ;;  %v5303_v52 = vld [vmem:[#allocation10 + $0xf0] sm:$0xff] }
 0x4c5   :  { %v7508_v57 = vpop.f32.mrf.mxu1  ;;  %v4824_v58 = vpop.f32.mrf.mxu0 }
 0x4c6   :  { %v7509_v59 = vadd.f32 %v7508_v57, %v7507_v49  ;;  %v4825_v15 = vadd.f32 %v4824_v58, %v4135_v8  ;;  %v5301_v49 = vld [vmem:[#allocation10 + $0xb0] sm:$0xff] }
 0x4c7   :  { %v7510_v60 = vpop.f32.mrf.mxu1  ;;  %v4826_v62 = vpop.f32.mrf.mxu0  ;;  %v7269_v54 = vcombine.high %v5301_v49, %v5303_v52  ;;  %v5297_v57 = vld [vmem:[#allocation10 + $0x30] sm:$0xff] }
 0x4c8   :  { %v8398_v63 = vadd.f32 %v7509_v59, %v3953_v6  ;;  %v5317_v6 = vld [vmem:[#allocation10 + $0x2b0] sm:$0xff]  ;;  %v7268_v59 = vcombine.low %v5301_v49, %v5303_v52 }
 0x4c9   :  { %v7511_v1 = vpop.f32.mrf.mxu1  ;;  %v4827_v28 = vpop.f32.mrf.mxu0  ;;  %v7285_v36 = vcombine.high %v5317_v6, %v5319_v23  ;;  %v7284_v40 = vcombine.low %v5317_v6, %v5319_v23  ;;  %v5299_v58 = vld [vmem:[#allocation10 + $0x70] sm:$0xff]  ;;  %v4139_v23 = vrot.slane %v8408_v5, %v8270_v39 }
 0x4ca   :  { %v7265_v60 = vcombine.high %v5297_v57, %v5299_v58  ;;  %v5357_v62 = vld [vmem:[#allocation10 + $0x7b0] sm:$0xff]  ;;  %v7264_v0 = vcombine.low %v5297_v57, %v5299_v58 }
 0x4cb   :  { %v7325_v1 = vcombine.high %v5357_v62, %v5359_v12  ;;  %v5353_v28 = vld [vmem:[#allocation10 + $0x730] sm:$0xff]  ;;  %v7324_v7 = vcombine.low %v5357_v62, %v5359_v12  ;;  %v5324_v62 = vld [vmem:[#allocation10 + $0x378] sm:$0xff] }
 0x4cc   :  { %v7321_v8 = vcombine.high %v5353_v28, %v5355_v26  ;;  %v5335_v6 = vld [vmem:[#allocation10 + $0x4f0] sm:$0xff] }
 0x503   :  { %v4863_v11 = vpop.f32.mrf.mxu1 }
 0x504   :  { %v4864_v16 = vadd.f32 %v4863_v11, %v4823_v10  ;;  %v8414_v17 = vpop.f32.mrf.mxu0  ;;  %v5349_v10 = vld [vmem:[#allocation10 + $0x6b0] sm:$0xff] }
 0x505   :  { %v4865_v19 = vpop.f32.mrf.mxu1  ;;  %v5351_v11 = vld [vmem:[#allocation10 + $0x6f0] sm:$0xff] }
 0x506   :  { %v4866_v20 = vadd.f32 %v4865_v19, %v4825_v15  ;;  %v8416_v21 = vpop.f32.mrf.mxu0  ;;  %v4952_v53 = vmax.f32 %v4864_v16, 0.0  ;;  %v7320_v15 = vcombine.low %v5353_v28, %v5355_v26  ;;  %v7317_v16 = vcombine.high %v5349_v10, %v5351_v11  ;;  %v5345_v19 = vld [vmem:[#allocation10 + $0x630] sm:$0xff] }
 0x507   :  { %v4867_v24 = vpop.f32.mrf.mxu1 }
 0x508   :  { %v4953_v27 = vmax.f32 %v4866_v20, 0.0  ;;  %v4908_v4 = vpop.f32.mrf.mxu0  ;;  %v4956_v35 = vpack.c.bf16 %v4952_v53, %v4952_v53  ;;  %v5347_v20 = vld [vmem:[#allocation10 + $0x670] sm:$0xff]  ;;  %v7316_v53 = vcombine.low %v5349_v10, %v5351_v11  ;;  %v5320_v10 = vld [vmem:[#allocation10 + $0x2f8] sm:$0xff] }
 0x509   :  { %v4868_v33 = vpop.f32.mrf.mxu1  ;;  %v7313_v24 = vcombine.high %v5345_v19, %v5347_v20  ;;  %v5343_v4 = vld [vmem:[#allocation10 + $0x5f0] sm:$0xff]  ;;  %v7312_v30 = vcombine.low %v5345_v19, %v5347_v20 }
 0x50a   :  { %v4957_v34 = vpack.c.bf16 %v4953_v27, %v4953_v27  ;;  %v4909_v2 = vpop.f32.mrf.mxu0  ;;  %v5341_v27 = vld [vmem:[#allocation10 + $0x5b0] sm:$0xff] }
 0x50b   :  { %v7309_v31 = vcombine.high %v5341_v27, %v5343_v4  ;;  %v5337_v33 = vld [vmem:[#allocation10 + $0x530] sm:$0xff]  ;;  %v7308_v2 = vcombine.low %v5341_v27, %v5343_v4  ;;  %v5316_v27 = vld [vmem:[#allocation10 + $0x278] sm:$0xff] }
 0x50c   :  { %5248 = vmatprep.mubr.bf16.mxu0 %v4957_v34  ;;  %v5339_v34 = vld [vmem:[#allocation10 + $0x570] sm:$0xff] }
 0x50d   :  { %5249 = vmatmul.mubr.bf16.vlgmr.msra.gmra.mxu0 %v4956_v35  ;;  %v7305_v35 = vcombine.high %v5337_v33, %v5339_v34  ;;  %v5377_v20 = vld [vmem:[#allocation10 + $0xa30] sm:$0xff] }
 0x50e   :  { %6088 = vmatpush1.bf16.msra.mxu0 %v7292_v18  ;;  %6119 = vmatprep.mubr.bf16.mxu0 %v8310_v50  ;;  %v7273_v18 = vcombine.high %v5305_v48, %v5307_v55  ;;  %v5326_v55 = vld [vmem:[#allocation10 + $0x3b8] sm:$0xff] }
 0x50f   :  { %6089 = vmatprep.subr.bf16.mxu0 %v7289_v22  ;;  %v5333_v22 = vld [vmem:[#allocation10 + $0x4b0] sm:$0xff] }
 0x510   :  { %v7300_v44 = vcombine.low %v5333_v22, %v5335_v6 }
 0x512   :  { %6090 = vmatpush1.bf16.msra.mxu0 %v7288_v25  ;;  %v7304_v25 = vcombine.low %v5337_v33, %v5339_v34  ;;  %v5312_v33 = vld [vmem:[#allocation10 + $0x1f8] sm:$0xff] }
 0x513   :  { %6091 = vmatprep.subr.bf16.mxu0 %v7285_v36  ;;  %v7301_v36 = vcombine.high %v5333_v22, %v5335_v6  ;;  %v5369_v6 = vld [vmem:[#allocation10 + $0x930] sm:$0xff] }
 0x516   :  { %6092 = vmatpush1.bf16.msra.mxu0 %v7284_v40  ;;  %v5331_v40 = vld [vmem:[#allocation10 + $0x470] sm:$0xff] }
 0x517   :  { %6093 = vmatprep.subr.bf16.mxu0 %v7281_v43  ;;  %v4905_v43 = vadd.f32 %v8414_v17, %v4139_v23  ;;  %v7296_v52 = vcombine.low %v5329_v9, %v5331_v40  ;;  %v5385_v17 = vld [vmem:[#allocation10 + $0xb30] sm:$0xff] }
 0x518   :  { %v5371_v23 = vld [vmem:[#allocation10 + $0x970] sm:$0xff] }
 0x51a   :  { %6094 = vmatpush1.bf16.msra.mxu0 %v7280_v46  ;;  %v7297_v46 = vcombine.high %v5329_v9, %v5331_v40  ;;  %v7337_v40 = vcombine.high %v5369_v6, %v5371_v23 }
 0x51b   :  { %6095 = vmatprep.subr.bf16.mxu0 %v7277_v47  ;;  %v4907_v47 = vadd.f32 %v8416_v21, %v4143_v37 }
 0x51e   :  { %6096 = vmatpush1.bf16.msra.mxu0 %v7276_v29  ;;  %v5328_v29 = vld [vmem:[#allocation10 + $0x3f8] sm:$0xff] }
 0x51f   :  { %6097 = vmatprep.subr.bf16.mxu0 %v7273_v18  ;;  %v7294_v21 = vcombine.low %v5326_v55, %v5328_v29 }
 0x522   :  { %6098 = vmatpush1.bf16.msra.mxu0 %v7272_v56 }
 0x523   :  { %6099 = vmatprep.subr.bf16.mxu0 %v7269_v54  ;;  %v7295_v54 = vcombine.high %v5326_v55, %v5328_v29 }
 0x526   :  { %6100 = vmatpush1.bf16.msra.mxu0 %v7268_v59  ;;  %v5387_v59 = vld [vmem:[#allocation10 + $0xb70] sm:$0xff] }
 0x527   :  { %6101 = vmatprep.subr.bf16.mxu0 %v7265_v60  ;;  %v5322_v60 = vld [vmem:[#allocation10 + $0x338] sm:$0xff]  ;;  %v7353_v28 = vcombine.high %v5385_v17, %v5387_v59  ;;  %v7352_v11 = vcombine.low %v5385_v17, %v5387_v59  ;;  %v5421_v59 = vld [vmem:[#allocation10 + $0xfb0] sm:$0xff] }
 0x528   :  { %v7291_v26 = vcombine.high %v5322_v60, %v5324_v62 }
 0x52a   :  { %6102 = vmatpush1.bf16.msra.mxu0 %v7264_v0 }
 0x52b   :  { %6103 = vmatprep.subr.bf16.mxu0 %v7325_v1  ;;  %v5381_v1 = vld [vmem:[#allocation10 + $0xab0] sm:$0xff] }
 0x52e   :  { %6104 = vmatpush2.bf16.msra.mxu0 %v7324_v7  ;;  %v5383_v7 = vld [vmem:[#allocation10 + $0xaf0] sm:$0xff] }
 0x52f   :  { %6105 = vmatprep.subr.bf16.mxu0 %v7321_v8  ;;  %v5318_v8 = vld [vmem:[#allocation10 + $0x2b8] sm:$0xff]  ;;  %v7348_v4 = vcombine.low %v5381_v1, %v5383_v7 }
 0x530   :  { %v7287_v19 = vcombine.high %v5318_v8, %v5320_v10  ;;  %v7286_v61 = vcombine.low %v5318_v8, %v5320_v10  ;;  %v5354_v8 = vld [vmem:[#allocation10 + $0x738] sm:$0xff] }
 0x531   :  { %v5356_v10 = vld [vmem:[#allocation10 + $0x778] sm:$0xff] }
 0x532   :  { %6106 = vmatpush2.bf16.msra.mxu0 %v7320_v15  ;;  %v7290_v15 = vcombine.low %v5322_v60, %v5324_v62  ;;  %v5423_v60 = vld [vmem:[#allocation10 + $0xff0] sm:$0xff]  ;;  %v5358_v62 = vld [vmem:[#allocation10 + $0x7b8] sm:$0xff] }
 0x533   :  { %6107 = vmatprep.subr.bf16.mxu0 %v7317_v16  ;;  %v7349_v16 = vcombine.high %v5381_v1, %v5383_v7  ;;  %v7389_v1 = vcombine.high %v5421_v59, %v5423_v60  ;;  %v5419_v7 = vld [vmem:[#allocation10 + $0xf70] sm:$0xff] }
 0x536   :  { %6108 = vmatpush2.bf16.msra.mxu0 %v7316_v53  ;;  %v5379_v53 = vld [vmem:[#allocation10 + $0xa70] sm:$0xff] }
 0x537   :  { %6109 = vmatprep.subr.bf16.mxu0 %v7313_v24  ;;  %v5314_v24 = vld [vmem:[#allocation10 + $0x238] sm:$0xff]  ;;  %v7345_v32 = vcombine.high %v5377_v20, %v5379_v53  ;;  %v7344_v34 = vcombine.low %v5377_v20, %v5379_v53  ;;  %v5413_v20 = vld [vmem:[#allocation10 + $0xeb0] sm:$0xff] }
 0x538   :  { %v5415_v53 = vld [vmem:[#allocation10 + $0xef0] sm:$0xff] }
 0x53a   :  { %6110 = vmatpush2.bf16.msra.mxu0 %v7312_v30  ;;  %v5373_v30 = vld [vmem:[#allocation10 + $0x9b0] sm:$0xff] }
 0x53b   :  { %6111 = vmatprep.subr.bf16.mxu0 %v7309_v31  ;;  %v5310_v31 = vld [vmem:[#allocation10 + $0x1b8] sm:$0xff] }
 0x53c   :  { %v7279_v22 = vcombine.high %v5310_v31, %v5312_v33  ;;  %v7278_v9 = vcombine.low %v5310_v31, %v5312_v33  ;;  %v5346_v31 = vld [vmem:[#allocation10 + $0x638] sm:$0xff] }
 0x53d   :  { %v5348_v33 = vld [vmem:[#allocation10 + $0x678] sm:$0xff] }
 0x53e   :  { %6112 = vmatpush2.bf16.msra.mxu0 %v7308_v2  ;;  %v7282_v2 = vcombine.low %v5314_v24, %v5316_v27 }
 0x53f   :  { %6113 = vmatprep.subr.bf16.mxu0 %v7305_v35 }
 0x542   :  { %6114 = vmatpush2.bf16.msra.mxu0 %v7304_v25  ;;  %v5306_v25 = vld [vmem:[#allocation10 + $0x138] sm:$0xff] }
 0x543   :  { %v4945_v45 = vpop.f32.mrf.mxu1  ;;  %6115 = vmatprep.subr.bf16.mxu0 %v7301_v36  ;;  %v5308_v36 = vld [vmem:[#allocation10 + $0x178] sm:$0xff] }
 0x544   :  { %v4946_v48 = vadd.f32 %v4945_v45, %v4905_v43  ;;  %v7275_v43 = vcombine.high %v5306_v25, %v5308_v36  ;;  %v5367_v45 = vld [vmem:[#allocation10 + $0x8f0] sm:$0xff]  ;;  %v7274_v55 = vcombine.low %v5306_v25, %v5308_v36  ;;  %v5342_v25 = vld [vmem:[#allocation10 + $0x5b8] sm:$0xff] }
 0x545   :  { %v4947_v18 = vpop.f32.mrf.mxu1  ;;  %v5344_v36 = vld [vmem:[#allocation10 + $0x5f8] sm:$0xff] }
 0x546   :  { %v4948_v49 = vadd.f32 %v4947_v18, %v4907_v47  ;;  %6116 = vmatpush2.bf16.msra.mxu0 %v7300_v44  ;;  %v4954_v56 = vmax.f32 %v4946_v48, 0.0  ;;  %v5365_v44 = vld [vmem:[#allocation10 + $0x8b0] sm:$0xff]  ;;  %v5304_v47 = vld [vmem:[#allocation10 + $0xf8] sm:$0xff]  ;;  %v7336_v48 = vcombine.low %v5369_v6, %v5371_v23 }
 0x547   :  { %v4949_v5 = vpop.f32.mrf.mxu1  ;;  %6117 = vmatprep.subr.bf16.mxu0 %v7297_v46  ;;  %v5302_v46 = vld [vmem:[#allocation10 + $0xb8] sm:$0xff]  ;;  %v7333_v29 = vcombine.high %v5365_v44, %v5367_v45  ;;  %v5405_v6 = vld [vmem:[#allocation10 + $0xdb0] sm:$0xff] }
 0x548   :  { %v4955_v57 = vmax.f32 %v4948_v49, 0.0  ;;  %v4958_v0 = vpack.c.bf16 %v4954_v56, %v4954_v56  ;;  %v7271_v18 = vcombine.high %v5302_v46, %v5304_v47  ;;  %v5361_v49 = vld [vmem:[#allocation10 + $0x830] sm:$0xff]  ;;  %v5298_v56 = vld [vmem:[#allocation10 + $0x38] sm:$0xff] }
 0x549   :  { %v4950_v58 = vpop.f32.mrf.mxu1  ;;  %v5300_v5 = vld [vmem:[#allocation10 + $0x78] sm:$0xff]  ;;  %v5407_v23 = vld [vmem:[#allocation10 + $0xdf0] sm:$0xff] }
 0x54a   :  { %v4959_v12 = vpack.c.bf16 %v4955_v57, %v4955_v57  ;;  %6118 = vmatpush2.bf16.msra.mxu0 %v7296_v52  ;;  %v5363_v52 = vld [vmem:[#allocation10 + $0x870] sm:$0xff]  ;;  %v7270_v57 = vcombine.low %v5302_v46, %v5304_v47  ;;  %v7267_v58 = vcombine.high %v5298_v56, %v5300_v5  ;;  %v5338_v46 = vld [vmem:[#allocation10 + $0x538] sm:$0xff] }
 0x54b   :  { %6169 = vmatprep.subr.bf16.mxu0 %v7295_v54  ;;  %v7332_v54 = vcombine.low %v5365_v44, %v5367_v45  ;;  %v7329_v17 = vcombine.high %v5361_v49, %v5363_v52  ;;  %v5401_v44 = vld [vmem:[#allocation10 + $0xd30] sm:$0xff]  ;;  %v5340_v47 = vld [vmem:[#allocation10 + $0x578] sm:$0xff] }
 0x54c   :  { %5288 = vmatprep.mubr.bf16.mxu1 %v4959_v12  ;;  %v5360_v12 = vld [vmem:[#allocation10 + $0x7f8] sm:$0xff]  ;;  %v5403_v45 = vld [vmem:[#allocation10 + $0xd70] sm:$0xff] }
 0x54d   :  { %6120 = vmatmul.mubr.bf16.vlgmr.msra.gmra.mxu0 %v8312_v51  ;;  %5289 = vmatmul.mubr.bf16.vlgmr.msra.gmra.mxu1 %v4958_v0  ;;  %v7266_v0 = vcombine.low %v5298_v56, %v5300_v5  ;;  %v5334_v56 = vld [vmem:[#allocation10 + $0x4b8] sm:$0xff] }
 0x54e   :  { %6129 = vmatpush1.bf16.msra.mxu1 %v7356_v3  ;;  %6170 = vmatpush1.bf16.msra.mxu0 %v7294_v21  ;;  %v7283_v3 = vcombine.high %v5314_v24, %v5316_v27  ;;  %v7328_v21 = vcombine.low %v5361_v49, %v5363_v52  ;;  %v5350_v24 = vld [vmem:[#allocation10 + $0x6b8] sm:$0xff]  ;;  %v5397_v49 = vld [vmem:[#allocation10 + $0xcb0] sm:$0xff] }
 0x54f   :  { %6201 = vmatprep.mubr.bf16.mxu0 %v8310_v50  ;;  %6160 = vmatprep.mubr.bf16.mxu1 %v8324_v13  ;;  %v5375_v50 = vld [vmem:[#allocation10 + $0x9f0] sm:$0xff]  ;;  %v5352_v27 = vld [vmem:[#allocation10 + $0x6f8] sm:$0xff] }
 0x550   :  { %6130 = vmatprep.subr.bf16.mxu1 %v7353_v28  ;;  %6171 = vmatprep.subr.bf16.mxu0 %v7291_v26  ;;  %v7341_v35 = vcombine.high %v5373_v30, %v5375_v50  ;;  %v7340_v37 = vcombine.low %v5373_v30, %v5375_v50  ;;  %v7327_v28 = vcombine.high %v5358_v62, %v5360_v12  ;;  %v5417_v26 = vld [vmem:[#allocation10 + $0xf30] sm:$0xff]  ;;  %v5336_v5 = vld [vmem:[#allocation10 + $0x4f8] sm:$0xff] }
 0x551   :  { %v5409_v30 = vld [vmem:[#allocation10 + $0xe30] sm:$0xff] }
 0x552   :  { %6131 = vmatpush1.bf16.msra.mxu1 %v7352_v11  ;;  %6172 = vmatpush1.bf16.msra.mxu0 %v7290_v15  ;;  %v7388_v11 = vcombine.low %v5421_v59, %v5423_v60  ;;  %v7326_v15 = vcombine.low %v5358_v62, %v5360_v12  ;;  %v5411_v50 = vld [vmem:[#allocation10 + $0xe70] sm:$0xff]  ;;  %v5330_v62 = vld [vmem:[#allocation10 + $0x438] sm:$0xff] }
 0x553   :  { %6132 = vmatprep.subr.bf16.mxu1 %v7349_v16  ;;  %6173 = vmatprep.subr.bf16.mxu0 %v7287_v19  ;;  %v7385_v16 = vcombine.high %v5417_v26, %v5419_v7  ;;  %v7323_v19 = vcombine.high %v5354_v8, %v5356_v10  ;;  %v5399_v52 = vld [vmem:[#allocation10 + $0xcf0] sm:$0xff]  ;;  %v5332_v12 = vld [vmem:[#allocation10 + $0x478] sm:$0xff] }
 0x554   :  { %v5393_v59 = vld [vmem:[#allocation10 + $0xc30] sm:$0xff] }
 0x555   :  { %v5395_v60 = vld [vmem:[#allocation10 + $0xc70] sm:$0xff] }
 0x556   :  { %6133 = vmatpush1.bf16.msra.mxu1 %v7348_v4  ;;  %6174 = vmatpush1.bf16.msra.mxu0 %v7286_v61  ;;  %v7384_v4 = vcombine.low %v5417_v26, %v5419_v7  ;;  %v7322_v61 = vcombine.low %v5354_v8, %v5356_v10  ;;  %v5390_v26 = vld [vmem:[#allocation10 + $0xbb8] sm:$0xff]  ;;  %v7360_v8 = vcombine.low %v5393_v59, %v5395_v60 }
 0x557   :  { %6134 = vmatprep.subr.bf16.mxu1 %v7345_v32  ;;  %6175 = vmatprep.subr.bf16.mxu0 %v7283_v3  ;;  %v7381_v32 = vcombine.high %v5413_v20, %v5415_v53  ;;  %v7319_v3 = vcombine.high %v5350_v24, %v5352_v27  ;;  %v5392_v7 = vld [vmem:[#allocation10 + $0xbf8] sm:$0xff]  ;;  %v7298_v10 = vcombine.low %v5330_v62, %v5332_v12 }
 0x55a   :  { %6135 = vmatpush1.bf16.msra.mxu1 %v7344_v34  ;;  %6176 = vmatpush1.bf16.msra.mxu0 %v7282_v2  ;;  %v7380_v34 = vcombine.low %v5413_v20, %v5415_v53  ;;  %v7318_v2 = vcombine.low %v5350_v24, %v5352_v27  ;;  %v5382_v53 = vld [vmem:[#allocation10 + $0xab8] sm:$0xff] }
 0x55b   :  { %6136 = vmatprep.subr.bf16.mxu1 %v7341_v35  ;;  %6177 = vmatprep.subr.bf16.mxu0 %v7279_v22  ;;  %v7377_v35 = vcombine.high %v5409_v30, %v5411_v50  ;;  %v7315_v22 = vcombine.high %v5346_v31, %v5348_v33  ;;  %v5384_v24 = vld [vmem:[#allocation10 + $0xaf8] sm:$0xff] }
 0x55e   :  { %6137 = vmatpush1.bf16.msra.mxu1 %v7340_v37  ;;  %6178 = vmatpush1.bf16.msra.mxu0 %v7278_v9  ;;  %v7376_v37 = vcombine.low %v5409_v30, %v5411_v50  ;;  %v7314_v9 = vcombine.low %v5346_v31, %v5348_v33  ;;  %v5374_v50 = vld [vmem:[#allocation10 + $0x9b8] sm:$0xff]  ;;  %v7952_v33 = vld [vmem:[#allocation13 + $0x378] sm:$0xff]  }
 0x55f   :  { %6138 = vmatprep.subr.bf16.mxu1 %v7337_v40  ;;  %6179 = vmatprep.subr.bf16.mxu0 %v7275_v43  ;;  %v7373_v40 = vcombine.high %v5405_v6, %v5407_v23  ;;  %v7311_v43 = vcombine.high %v5342_v25, %v5344_v36  ;;  %v5376_v31 = vld [vmem:[#allocation10 + $0x9f8] sm:$0xff] }
 0x562   :  { %6139 = vmatpush1.bf16.msra.mxu1 %v7336_v48  ;;  %6180 = vmatpush1.bf16.msra.mxu0 %v7274_v55  ;;  %v7372_v48 = vcombine.low %v5405_v6, %v5407_v23  ;;  %v7310_v55 = vcombine.low %v5342_v25, %v5344_v36  ;;  %v5372_v6 = vld [vmem:[#allocation10 + $0x978] sm:$0xff]  ;;  %v7342_v25 = vcombine.low %v5374_v50, %v5376_v31 }
 0x563   :  { %6140 = vmatprep.subr.bf16.mxu1 %v7333_v29  ;;  %6181 = vmatprep.subr.bf16.mxu0 %v7271_v18  ;;  %v7369_v29 = vcombine.high %v5401_v44, %v5403_v45  ;;  %v7307_v18 = vcombine.high %v5338_v46, %v5340_v47  ;;  %v7956_v23 = vld [vmem:[#allocation13 + $0x368] sm:$0xff]  }
 0x566   :  { %6141 = vmatpush1.bf16.msra.mxu1 %v7332_v54  ;;  %6182 = vmatpush1.bf16.msra.mxu0 %v7270_v57  ;;  %v7368_v54 = vcombine.low %v5401_v44, %v5403_v45  ;;  %v7306_v57 = vcombine.low %v5338_v46, %v5340_v47  ;;  %v7959_v46 = vld [vmem:[#allocation13 + $0x320] sm:$0xff]   ;;  %v5362_v47 = vld [vmem:[#allocation10 + $0x838] sm:$0xff] }
 0x567   :  { %6142 = vmatprep.subr.bf16.mxu1 %v7329_v17  ;;  %6183 = vmatprep.subr.bf16.mxu0 %v7267_v58  ;;  %v7365_v17 = vcombine.high %v5397_v49, %v5399_v52  ;;  %v7303_v58 = vcombine.high %v5334_v56, %v5336_v5 }
 0x56a   :  { %6143 = vmatpush1.bf16.msra.mxu1 %v7328_v21  ;;  %6184 = vmatpush1.bf16.msra.mxu0 %v7266_v0  ;;  %v7364_v21 = vcombine.low %v5397_v49, %v5399_v52  ;;  %v7302_v0 = vcombine.low %v5334_v56, %v5336_v5  ;;  %v7961_v49 = vld [vmem:[#allocation13 + $0x318] sm:$0xff]   ;;  %v5422_v52 = vld [vmem:[#allocation10 + $0xfb8] sm:$0xff]  ;;  %v7962_v5 = vld [vmem:[#allocation13 + $0x350] sm:$0xff]  }
 0x56b   :  { %6144 = vmatprep.subr.bf16.mxu1 %v7389_v1  ;;  %6185 = vmatprep.subr.bf16.mxu0 %v7327_v28  ;;  %v7361_v1 = vcombine.high %v5393_v59, %v5395_v60  ;;  %v7299_v28 = vcombine.high %v5330_v62, %v5332_v12  ;;  %v5424_v56 = vld [vmem:[#allocation10 + $0xff8] sm:$0xff] }
 0x56c   :  { %v5420_v59 = vld [vmem:[#allocation10 + $0xf78] sm:$0xff]  ;;  %v7390_v60 = vcombine.low %v5422_v52, %v5424_v56 }
 0x56d   :  { %v5414_v12 = vld [vmem:[#allocation10 + $0xeb8] sm:$0xff] }
 0x56e   :  { %6145 = vmatpush2.bf16.msra.mxu1 %v7388_v11  ;;  %6186 = vmatpush2.bf16.msra.mxu0 %v7326_v15  ;;  %v7359_v11 = vcombine.high %v5390_v26, %v5392_v7  ;;  %v5386_v15 = vld [vmem:[#allocation10 + $0xb38] sm:$0xff] }
 0x56f   :  { %6146 = vmatprep.subr.bf16.mxu1 %v7385_v16  ;;  %6187 = vmatprep.subr.bf16.mxu0 %v7323_v19  ;;  %v5388_v16 = vld [vmem:[#allocation10 + $0xb78] sm:$0xff]  ;;  %v7358_v19 = vcombine.low %v5390_v26, %v5392_v7 }
 0x570   :  { %v7355_v20 = vcombine.high %v5386_v15, %v5388_v16  ;;  %v7354_v27 = vcombine.low %v5386_v15, %v5388_v16  ;;  %v5412_v26 = vld [vmem:[#allocation10 + $0xe78] sm:$0xff] }
 0x572   :  { %6147 = vmatpush2.bf16.msra.mxu1 %v7384_v4  ;;  %6188 = vmatpush2.bf16.msra.mxu0 %v7322_v61  ;;  %v7351_v4 = vcombine.high %v5382_v53, %v5384_v24  ;;  %v5378_v61 = vld [vmem:[#allocation10 + $0xa38] sm:$0xff] }
 0x573   :  { %6148 = vmatprep.subr.bf16.mxu1 %v7381_v32  ;;  %6189 = vmatprep.subr.bf16.mxu0 %v7319_v3  ;;  %v5380_v32 = vld [vmem:[#allocation10 + $0xa78] sm:$0xff]  ;;  %v7350_v3 = vcombine.low %v5382_v53, %v5384_v24 }
 0x574   :  { %v7347_v30 = vcombine.high %v5378_v61, %v5380_v32 }
 0x576   :  { %6149 = vmatpush2.bf16.msra.mxu1 %v7380_v34  ;;  %6190 = vmatpush2.bf16.msra.mxu0 %v7318_v2  ;;  %v7953_v34 = vld [vmem:[#allocation13 + $0x338] sm:$0xff]   ;;  %v7954_v2 = vld [vmem:[#allocation13 + $0x370] sm:$0xff]  }
 0x577   :  { %6150 = vmatprep.subr.bf16.mxu1 %v7377_v35  ;;  %6191 = vmatprep.subr.bf16.mxu0 %v7315_v22  ;;  %v7346_v35 = vcombine.low %v5378_v61, %v5380_v32  ;;  %v5370_v22 = vld [vmem:[#allocation10 + $0x938] sm:$0xff] }
 0x578   :  { %v7339_v36 = vcombine.high %v5370_v22, %v5372_v6  ;;  %v7338_v44 = vcombine.low %v5370_v22, %v5372_v6  ;;  %v7966_v6 = vld [vmem:[#allocation13 + $0x340] sm:$0xff]  }
 0x57a   :  { %6151 = vmatpush2.bf16.msra.mxu1 %v7376_v37  ;;  %6192 = vmatpush2.bf16.msra.mxu0 %v7314_v9  ;;  %v7957_v37 = vld [vmem:[#allocation13 + $0x328] sm:$0xff]  }
 0x57b   :  { %6152 = vmatprep.subr.bf16.mxu1 %v7373_v40  ;;  %6193 = vmatprep.subr.bf16.mxu0 %v7311_v43  ;;  %v5366_v9 = vld [vmem:[#allocation10 + $0x8b8] sm:$0xff]  ;;  %v7958_v43 = vld [vmem:[#allocation13 + $0x360] sm:$0xff]  }
 0x57c   :  { %v5368_v40 = vld [vmem:[#allocation10 + $0x8f8] sm:$0xff] }
 0x57d   :  { %v7335_v45 = vcombine.high %v5366_v9, %v5368_v40 }
 0x57e   :  { %6153 = vmatpush2.bf16.msra.mxu1 %v7372_v48  ;;  %6194 = vmatpush2.bf16.msra.mxu0 %v7310_v55  ;;  %v5364_v48 = vld [vmem:[#allocation10 + $0x878] sm:$0xff]  ;;  %v7960_v55 = vld [vmem:[#allocation13 + $0x358] sm:$0xff]  }
 0x57f   :  { %6154 = vmatprep.subr.bf16.mxu1 %v7369_v29  ;;  %6195 = vmatprep.subr.bf16.mxu0 %v7307_v18  ;;  %v7334_v29 = vcombine.low %v5366_v9, %v5368_v40  ;;  %v7331_v18 = vcombine.high %v5362_v47, %v5364_v48  ;;  %v7970_v9 = vld [vmem:[#allocation13 + $0x3f0] sm:$0xff]  }
 0x580   :  { %v7971_v40 = vld [vmem:[#allocation13 + $0x3b0] sm:$0xff]  }
 0x582   :  { %6155 = vmatpush2.bf16.msra.mxu1 %v7368_v54  ;;  %6196 = vmatpush2.bf16.msra.mxu0 %v7306_v57  ;;  %v7330_v54 = vcombine.low %v5362_v47, %v5364_v48  ;;  %v7391_v57 = vcombine.high %v5422_v52, %v5424_v56  ;;  %v7977_v47 = vld [vmem:[#allocation13 + $0x398] sm:$0xff]   ;;  %v7978_v48 = vld [vmem:[#allocation13 + $0x3d0] sm:$0xff]  }
 0x583   :  { %6156 = vmatprep.subr.bf16.mxu1 %v7365_v17  ;;  %6197 = vmatprep.subr.bf16.mxu0 %v7303_v58  ;;  %v7963_v17 = vld [vmem:[#allocation13 + $0x310] sm:$0xff]   ;;  %v5418_v58 = vld [vmem:[#allocation10 + $0xf38] sm:$0xff] }
 0x584   :  { %v7387_v62 = vcombine.high %v5418_v58, %v5420_v59 }
 0x586   :  { %6157 = vmatpush2.bf16.msra.mxu1 %v7364_v21  ;;  %6198 = vmatpush2.bf16.msra.mxu0 %v7302_v0  ;;  %v5416_v21 = vld [vmem:[#allocation10 + $0xef8] sm:$0xff]  ;;  %v7386_v0 = vcombine.low %v5418_v58, %v5420_v59  ;;  %v7982_v59 = vld [vmem:[#allocation13 + $0x3c0] sm:$0xff]  }
 0x587   :  { %6158 = vmatprep.subr.bf16.mxu1 %v7361_v1  ;;  %6199 = vmatprep.subr.bf16.mxu0 %v7299_v28  ;;  %v7383_v1 = vcombine.high %v5414_v12, %v5416_v21  ;;  %v5410_v28 = vld [vmem:[#allocation10 + $0xe38] sm:$0xff]  ;;  %v7382_v7 = vcombine.low %v5414_v12, %v5416_v21  ;;  %v7983_v12 = vld [vmem:[#allocation13 + $0x380] sm:$0xff]  }
 0x588   :  { %v7378_v15 = vcombine.low %v5410_v28, %v5412_v26 }
 0x58a   :  { %6159 = vmatpush2.bf16.msra.mxu1 %v7360_v8  ;;  %6200 = vmatpush2.bf16.msra.mxu0 %v7298_v10  ;;  %v7379_v8 = vcombine.high %v5410_v28, %v5412_v26  ;;  %v5406_v10 = vld [vmem:[#allocation10 + $0xdb8] sm:$0xff] }
 0x58b   :  { %6210 = vmatprep.subr.bf16.mxu1 %v7359_v11  ;;  %7557 = vmatprep.subr.bf16.mxu0 %v7952_v33  ;;  %v5408_v11 = vld [vmem:[#allocation10 + $0xdf8] sm:$0xff] }
 0x58c   :  { %v7375_v16 = vcombine.high %v5406_v10, %v5408_v11  ;;  %v7374_v53 = vcombine.low %v5406_v10, %v5408_v11 }
 0x58d   :  { %6161 = vmatmul.mubr.bf16.vlgmr.msra.gmra.mxu1 %v8326_v14  ;;  %6202 = vmatmul.mubr.bf16.vlgmr.msra.gmra.mxu0 %v8312_v51  ;;  %v7343_v51 = vcombine.high %v5374_v50, %v5376_v31 }
 0x58e   :  { %6211 = vmatpush1.bf16.msra.mxu1 %v7358_v19  ;;  %6242 = vmatprep.mubr.bf16.mxu1 %v8324_v13  ;;  %v7955_v13 = vld [vmem:[#allocation13 + $0x330] sm:$0xff]   ;;  %v5402_v19 = vld [vmem:[#allocation10 + $0xd38] sm:$0xff] }
 0x58f   :  { %6212 = vmatprep.subr.bf16.mxu1 %v7355_v20  ;;  %7558 = vmatpush3.bf16.msra.mxu0 %v7953_v34  ;;  %v5404_v20 = vld [vmem:[#allocation10 + $0xd78] sm:$0xff] }
 0x590   :  { %7559 = vmatprep.subr.bf16.mxu0 %v7954_v2  ;;  %v7371_v24 = vcombine.high %v5402_v19, %v5404_v20  ;;  %v7370_v61 = vcombine.low %v5402_v19, %v5404_v20  ;;  %v7964_v2 = vld [vmem:[#allocation13 + $0x348] sm:$0xff]  }
 0x592   :  { %6213 = vmatpush1.bf16.msra.mxu1 %v7354_v27  ;;  %v5398_v27 = vld [vmem:[#allocation10 + $0xcb8] sm:$0xff] }
 0x593   :  { %6214 = vmatprep.subr.bf16.mxu1 %v7351_v4  ;;  %7560 = vmatpush3.bf16.msra.mxu0 %v7955_v13  ;;  %v5400_v4 = vld [vmem:[#allocation10 + $0xcf8] sm:$0xff] }
 0x594   :  { %7561 = vmatprep.subr.bf16.mxu0 %v7956_v23  ;;  %v7367_v32 = vcombine.high %v5398_v27, %v5400_v4  ;;  %v7366_v50 = vcombine.low %v5398_v27, %v5400_v4 }
 0x596   :  { %6215 = vmatpush1.bf16.msra.mxu1 %v7350_v3  ;;  %v5394_v3 = vld [vmem:[#allocation10 + $0xc38] sm:$0xff] }
 0x597   :  { %6216 = vmatprep.subr.bf16.mxu1 %v7347_v30  ;;  %7562 = vmatpush3.bf16.msra.mxu0 %v7957_v37  ;;  %v5396_v30 = vld [vmem:[#allocation10 + $0xc78] sm:$0xff]  ;;  %v7969_v37 = vld [vmem:[#allocation13 + $0x3b8] sm:$0xff]  }
 0x598   :  { %7563 = vmatprep.subr.bf16.mxu0 %v7958_v43  ;;  %v7363_v31 = vcombine.high %v5394_v3, %v5396_v30  ;;  %v7362_v33 = vcombine.low %v5394_v3, %v5396_v30  ;;  %v7973_v43 = vld [vmem:[#allocation13 + $0x3a8] sm:$0xff]  }
 0x59a   :  { %6217 = vmatpush1.bf16.msra.mxu1 %v7346_v35 }
 0x59b   :  { %6218 = vmatprep.subr.bf16.mxu1 %v7343_v51  ;;  %7564 = vmatpush3.bf16.msra.mxu0 %v7959_v46  ;;  %v7965_v51 = vld [vmem:[#allocation13 + $0x308] sm:$0xff]   ;;  %v7976_v46 = vld [vmem:[#allocation13 + $0x3d8] sm:$0xff]  }
 0x59c   :  { %7565 = vmatprep.subr.bf16.mxu0 %v7960_v55  ;;  %v7979_v55 = vld [vmem:[#allocation13 + $0x390] sm:$0xff]  }
 0x59e   :  { %6219 = vmatpush1.bf16.msra.mxu1 %v7342_v25  ;;  %v7967_v25 = vld [vmem:[#allocation13 + $0x300] sm:$0xff]  }
 0x59f   :  { %6220 = vmatprep.subr.bf16.mxu1 %v7339_v36  ;;  %7566 = vmatpush3.bf16.msra.mxu0 %v7961_v49  ;;  %v7968_v36 = vld [vmem:[#allocation13 + $0x3f8] sm:$0xff]   ;;  %v7980_v49 = vld [vmem:[#allocation13 + $0x3c8] sm:$0xff]  }
 0x5a0   :  { %7567 = vmatprep.subr.bf16.mxu0 %v7962_v5  ;;  %v7981_v5 = vld [vmem:[#allocation13 + $0x388] sm:$0xff]  }
 0x5a2   :  { %6221 = vmatpush1.bf16.msra.mxu1 %v7338_v44  ;;  %v7974_v44 = vld [vmem:[#allocation13 + $0x3e0] sm:$0xff]  }
 0x5a3   :  { %6222 = vmatprep.subr.bf16.mxu1 %v7335_v45  ;;  %7568 = vmatpush3.bf16.msra.mxu0 %v7963_v17  ;;  %v7975_v45 = vld [vmem:[#allocation13 + $0x3a0] sm:$0xff]  }
 0x5a4   :  { %7569 = vmatprep.subr.bf16.mxu0 %v7964_v2 }
 0x5a6   :  { %6223 = vmatpush1.bf16.msra.mxu1 %v7334_v29 }
 0x5a7   :  { %6224 = vmatprep.subr.bf16.mxu1 %v7331_v18  ;;  %7570 = vmatpush3.bf16.msra.mxu0 %v7965_v51 }
 0x5a8   :  { %7571 = vmatprep.subr.bf16.mxu0 %v7966_v6 }
 0x5aa   :  { %6225 = vmatpush1.bf16.msra.mxu1 %v7330_v54 }
 0x5ab   :  { %6226 = vmatprep.subr.bf16.mxu1 %v7391_v57  ;;  %7572 = vmatpush3.bf16.msra.mxu0 %v7967_v25 }
 0x5ae   :  { %6227 = vmatpush2.bf16.msra.mxu1 %v7390_v60 }
 0x5af   :  { %6228 = vmatprep.subr.bf16.mxu1 %v7387_v62 }
 0x5b2   :  { %6229 = vmatpush2.bf16.msra.mxu1 %v7386_v0  ;;  %v5425_v0 = vld [vmem:[#allocation11 + $0xc] sm:$0xf] }
 0x5b3   :  { %6230 = vmatprep.subr.bf16.mxu1 %v7383_v1  ;;  %v5430_v1 = vrot.slane %v5425_v0, %v8268_v38  ;;  %v5434_v28 = vrot.slane %v5425_v0, %v8272_v41  ;;  %v5438_v38 = vrot.slane %v5425_v0, %v8270_v39  ;;  %v5442_v41 = vrot.slane %v5425_v0, %v8274_v42 }
 0x5b6   :  { %6231 = vmatpush2.bf16.msra.mxu1 %v7382_v7 }
 0x5b7   :  { %6232 = vmatprep.subr.bf16.mxu1 %v7379_v8 }
 0x5ba   :  { %6233 = vmatpush2.bf16.msra.mxu1 %v7378_v15 }
 0x5bb   :  { %6234 = vmatprep.subr.bf16.mxu1 %v7375_v16 }
 0x5be   :  { %6235 = vmatpush2.bf16.msra.mxu1 %v7374_v53 }
 0x5bf   :  { %6236 = vmatprep.subr.bf16.mxu1 %v7371_v24 }
 0x5c2   :  { %6237 = vmatpush2.bf16.msra.mxu1 %v7370_v61 }
 0x5c3   :  { %6238 = vmatprep.subr.bf16.mxu1 %v7367_v32 }
 0x5c6   :  { %6239 = vmatpush2.bf16.msra.mxu1 %v7366_v50 }
 0x5c7   :  { %6240 = vmatprep.subr.bf16.mxu1 %v7363_v31 }
 0x5ca   :  { %6241 = vmatpush2.bf16.msra.mxu1 %v7362_v33 }
 0x5cb   :  { %7579 = vmatprep.subr.bf16.mxu1 %v7968_v36 }
 0x5cd   :  { %6243 = vmatmul.mubr.bf16.vlgmr.msra.gmra.mxu1 %v8326_v14  ;;  %v7529_v34 = vpop.f32.mrf.mxu0  ;;  %v7972_v14 = vld [vmem:[#allocation13 + $0x3e8] sm:$0xff]  }
 0x5ce   :  { %7580 = vmatpush3.bf16.msra.mxu1 %v7969_v37 }
 0x5cf   :  { %v7530_v35 = vpop.f32.mrf.mxu0  ;;  %7581 = vmatprep.subr.bf16.mxu1 %v7970_v9 }
 0x5d0   :  { %v7531_v13 = vadd.f32 %v7530_v35, %v7529_v34 }
 0x5d1   :  { %v7532_v22 = vpop.f32.mrf.mxu0 }
 0x5d2   :  { %7582 = vmatpush3.bf16.msra.mxu1 %v7971_v40 }
 0x5d3   :  { %v7533_v23 = vpop.f32.mrf.mxu0  ;;  %7583 = vmatprep.subr.bf16.mxu1 %v7972_v14 }
 0x5d6   :  { %7584 = vmatpush3.bf16.msra.mxu1 %v7973_v43 }
 0x5d7   :  { %7585 = vmatprep.subr.bf16.mxu1 %v7974_v44 }
 0x5da   :  { %7586 = vmatpush3.bf16.msra.mxu1 %v7975_v45  ;;  %v7424_v45 = vld [vmem:[#allocation14] ss:$0 sm:$0xff] }
 0x5db   :  { %7587 = vmatprep.subr.bf16.mxu1 %v7976_v46 }
 0x5de   :  { %7588 = vmatpush3.bf16.msra.mxu1 %v7977_v47 }
 0x5df   :  { %7589 = vmatprep.subr.bf16.mxu1 %v7978_v48 }
 0x5e2   :  { %7590 = vmatpush3.bf16.msra.mxu1 %v7979_v55 }
 0x5e3   :  { %7591 = vmatprep.subr.bf16.mxu1 %v7980_v49 }
 0x5e6   :  { %7592 = vmatpush3.bf16.msra.mxu1 %v7981_v5 }
 0x5e7   :  { %7593 = vmatprep.subr.bf16.mxu1 %v7982_v59 }
 0x5ea   :  { %7594 = vmatpush3.bf16.msra.mxu1 %v7983_v12 }
 0x60d   :  { %v6121_v29 = vpop.f32.mrf.mxu0  ;;  %v7551_v18 = vpop.f32.mrf.mxu1 }
 0x60e   :  { %v6122_v26 = vadd.f32 %v6121_v29, %v5430_v1 }
 0x60f   :  { %v6123_v52 = vpop.f32.mrf.mxu0  ;;  %v7552_v56 = vpop.f32.mrf.mxu1 }
 0x610   :  { %v7553_v54 = vadd.f32 %v7552_v56, %v7551_v18  ;;  %v6124_v10 = vadd.f32 %v6123_v52, %v5434_v28 }
 0x611   :  { %v6125_v57 = vpop.f32.mrf.mxu0  ;;  %v7554_v17 = vpop.f32.mrf.mxu1 }
 0x612   :  { %v5291_v58 = vadd.f32 %v7553_v54, %v7531_v13 }
 0x613   :  { %v6126_v60 = vpop.f32.mrf.mxu0  ;;  %v7555_v62 = vpop.f32.mrf.mxu1 }
 0x614   :  { %v5296_v21 = vadd.f32 %v5291_v58, %v8398_v63 }
 0x64d   :  { %v6162_v7 = vpop.f32.mrf.mxu1  ;;  %v6203_v8 = vpop.f32.mrf.mxu0 }
 0x64e   :  { %v6163_v11 = vadd.f32 %v6162_v7, %v6122_v26  ;;  %v6204_v3 = vadd.f32 %v6203_v8, %v5438_v38 }
 0x64f   :  { %v6164_v15 = vpop.f32.mrf.mxu1  ;;  %v6205_v16 = vpop.f32.mrf.mxu0 }
 0x650   :  { %v6165_v19 = vadd.f32 %v6164_v15, %v6124_v10  ;;  %v6251_v20 = vmax.f32 %v6163_v11, 0.0  ;;  %v6206_v50 = vadd.f32 %v6205_v16, %v5442_v41 }
 0x651   :  { %v6166_v53 = vpop.f32.mrf.mxu1  ;;  %v6207_v24 = vpop.f32.mrf.mxu0 }
 0x652   :  { %v6252_v27 = vmax.f32 %v6165_v19, 0.0  ;;  %v6255_v32 = vpack.c.bf16 %v6251_v20, %v6251_v20 }
 0x653   :  { %v6167_v63 = vpop.f32.mrf.mxu1  ;;  %v6208_v4 = vpop.f32.mrf.mxu0 }
 0x654   :  { %v6256_v61 = vpack.c.bf16 %v6252_v27, %v6252_v27 }
 0x656   :  { %6547 = vmatprep.mubr.bf16.mxu0 %v6256_v61 }
 0x657   :  { %6548 = vmatmul.mubr.bf16.vlgmr.msra.gmra.mxu0 %v6255_v32 }
 0x68d   :  { %v6244_v30 = vpop.f32.mrf.mxu1 }
 0x68e   :  { %v6245_v31 = vadd.f32 %v6244_v30, %v6204_v3 }
 0x68f   :  { %v6246_v33 = vpop.f32.mrf.mxu1 }
 0x690   :  { %v6247_v34 = vadd.f32 %v6246_v33, %v6206_v50  ;;  %v6253_v2 = vmax.f32 %v6245_v31, 0.0 }
 0x691   :  { %v6248_v35 = vpop.f32.mrf.mxu1 }
 0x692   :  { %v6254_v51 = vmax.f32 %v6247_v34, 0.0  ;;  %v6257_v6 = vpack.c.bf16 %v6253_v2, %v6253_v2 }
 0x693   :  { %v6249_v13 = vpop.f32.mrf.mxu1 }
 0x694   :  { %v6258_v22 = vpack.c.bf16 %v6254_v51, %v6254_v51 }
 0x696   :  { %6587 = vmatprep.mubr.bf16.mxu1 %v6258_v22 }
 0x697   :  { %6588 = vmatmul.mubr.bf16.vlgmr.msra.gmra.mxu1 %v6257_v6 }
 0x717   :  { %v7573_v23 = vpop.f32.mrf.mxu0 }
 0x719   :  { %v7574_v25 = vpop.f32.mrf.mxu0 }
 0x71a   :  { %v7575_v36 = vadd.f32 %v7574_v25, %v7573_v23 }
 0x71b   :  { %v7576_v39 = vpop.f32.mrf.mxu0 }
 0x71d   :  { %v7577_v37 = vpop.f32.mrf.mxu0 }
 0x757   :  { %v7595_v42 = vpop.f32.mrf.mxu1 }
 0x759   :  { %v7596_v9 = vpop.f32.mrf.mxu1 }
 0x75a   :  { %v7597_v40 = vadd.f32 %v7596_v9, %v7595_v42 }
 0x75b   :  { %v7598_v14 = vpop.f32.mrf.mxu1 }
 0x75c   :  { %v6590_v43 = vadd.f32 %v7597_v40, %v7575_v36 }
 0x75d   :  { %v7599_v44 = vpop.f32.mrf.mxu1 }
 0x75e   :  { %v6595_v46 = vadd.f32 %v6590_v43, %v5296_v21 }
 0x760   :  { %v6603_v47 = vadd.f32 %v7424_v45, %v6595_v46 }
 0x762   :  { %6604 = vst [vmem:[#allocation16] sm:$0xff] %v6603_v47 }
 0x763   :  { %8155 = shalt.err (!%p8152_p2)
}
 0x764   :  { %6614 = dma.vmem_to_hbm [thread:$0]  %s6612_s26, 128, %s8455_s9, [#allocation4]  }
 0x765   :  { %8174 = dma.done.wait [#allocation4], 128  }
 0x766   :  { %8175 = vsyncadd [#allocation4], 4294967168 }
 0x767   :  { %6618 = vsyncpa [#allocation3], 1 }
 0x768   :  { %6619 = vsyncpa [#allocation6], 1 }
 0x769   :  { %6620 = vsyncpa [#allocation9], 1 }
 0x76a   :  { %6621 = vsyncpa [#allocation12], 1 }
 0x76b   :  { %6622 = vsyncpa [#allocation15], 1 }
 0x76c   :  { %6623 = vsyncpa [#allocation4], 1 }

</bundles_post_ra>
